<compile_context>
chip_gen: v5e
topology: v5e:2x2
jax: 0.10.0
libtpu: 0.0.40
codegen_flags: <defaults>
</compile_context>

<pallas_src>
import jax
import jax.numpy as jnp
from jax.experimental import pallas as pl
from jax.experimental.pallas import tpu as pltpu

# --- dims from JointSG: MultiHeadAttention(512, 512, 26, 4, 1, 1) ------------
X_DIM, Y_DIM, Z_DIM = 512, 512, 26
X_HEADS = 4
X_HEAD_DIM = X_DIM // X_HEADS          # 128  (query out-dim, per-head dim)
KEY_OUT = Y_DIM                        # 512  (y_head_dim * y_heads)
VAL_OUT = X_HEAD_DIM * X_HEADS         # 512


def _mha_kernel(x_ref, y_ref, z_ref,
                wq_ref, bq_ref, wk_ref, bk_ref, wv_ref, bv_ref,
                o_ref, probs_ref):
    nx = x_ref.shape[0]
    n_per_head = nx // X_HEADS         # == Ny

    # ---- probs (512, 512) is computed once (grid step 0) into persistent
    #      VMEM scratch; every Nz-tile afterwards just reuses it. ----
    @pl.when(pl.program_id(0) == 0)
    def _():
        # query / key projections: bf16 operands, f32 accumulation, f32 bias
        q = jnp.dot(x_ref[...], wq_ref[...],
                    preferred_element_type=jnp.float32) + bq_ref[...]     # (Nx,128)
        k16 = (jnp.dot(y_ref[...], wk_ref[...],
                       preferred_element_type=jnp.float32)
               + bk_ref[...]).astype(jnp.bfloat16)                        # (Ny,512)

        # one up-front transpose (single XLU pass) instead of one per head
        qT16 = q.T.astype(jnp.bfloat16)                                   # (128,Nx)

        for h in range(X_HEADS):
            # scores_h = q_h^T @ k fed to the MXU in native [M,K]x[K,N] form
            s = jnp.dot(qT16[:, h * n_per_head:(h + 1) * n_per_head], k16,
                        preferred_element_type=jnp.float32)               # (128,512)
            m = jnp.max(s, axis=-1, keepdims=True)
            e = jnp.exp(s - m)
            inv = pl.reciprocal(jnp.sum(e, axis=-1, keepdims=True), approx=True)
            probs_ref[h * X_HEAD_DIM:(h + 1) * X_HEAD_DIM, :] = (
                (e * inv).astype(probs_ref.dtype))

    # ---- per-tile epilogue: value projection + ONE fused K=512 matmul ----
    v = jnp.dot(z_ref[...], wv_ref[...],
                preferred_element_type=jnp.float32) + bv_ref[...]         # (tile,512)
    o_ref[...] = jnp.dot(v.astype(jnp.bfloat16), probs_ref[...],
                         preferred_element_type=jnp.float32)


def mha_pallas(x, y, z, wq, bq, wk, bk, wv, bv, *, tile_nz=256):
    nx, ny, nz = x.shape[0], y.shape[0], z.shape[0]
    assert nx % X_HEADS == 0, "Nx must be divisible by x_heads (4)"
    assert ny == nx // X_HEADS, "Ny must equal Nx // x_heads"
    assert x.shape[1] == X_DIM and y.shape[1] == Y_DIM and z.shape[1] == Z_DIM

    # Nz tiling: full-dim block for small Nz, 8-aligned 256-row tiles otherwise.
    if nz <= tile_nz:
        tile_nz = nz
    grid = (pl.cdiv(nz, tile_nz),)

    # bf16 operands for every MXU matmul (halves HBM/VMEM traffic as well);
    # biases stay f32 and accumulation is f32 via preferred_element_type.
    xb, yb, zb = (a.astype(jnp.bfloat16) for a in (x, y, z))
    wqb, wkb, wvb = (w.astype(jnp.bfloat16) for w in (wq, wk, wv))

    const2 = lambda i: (0, 0)
    in_specs = [
        pl.BlockSpec(xb.shape, const2),                     # x   (resident)
        pl.BlockSpec(yb.shape, const2),                     # y   (resident)
        pl.BlockSpec((tile_nz, Z_DIM), lambda i: (i, 0)),   # z   (Nz-tiled)
        pl.BlockSpec(wqb.shape, const2),
        pl.BlockSpec(bq.shape, const2),
        pl.BlockSpec(wkb.shape, const2),
        pl.BlockSpec(bk.shape, const2),
        pl.BlockSpec(wvb.shape, const2),
        pl.BlockSpec(bv.shape, const2),
    ]
    out_spec = pl.BlockSpec((tile_nz, VAL_OUT), lambda i: (i, 0))

    # Explicit VMEM budget (resident operands x2 pipeline buffers, tiled z/out
    # x2 double-buffer, probs scratch, f32 temporaries) + headroom, clamped so
    # it never relies on the per-generation default scoped limit.
    nbytes = lambda a: a.size * a.dtype.itemsize
    resident = sum(nbytes(a) for a in (xb, yb, wqb, wkb, wvb, bq, bk, bv))
    tiled = tile_nz * Z_DIM * 2 + tile_nz * VAL_OUT * 4
    temps = (nx * X_HEAD_DIM * 4 * 2            # q and qT
             + ny * KEY_OUT * 4                 # k
             + X_HEAD_DIM * KEY_OUT * 4 * 2     # scores + exp
             + tile_nz * VAL_OUT * 4)           # v
    scratch_bytes = X_DIM * KEY_OUT * 2         # probs (bf16)
    est = 2 * resident + 2 * tiled + scratch_bytes + temps
    vmem_limit = int(min(48 * 1024 * 1024,
                         max(16 * 1024 * 1024, 2 * est + (4 << 20))))

    return pl.pallas_call(
        _mha_kernel,
        out_shape=jax.ShapeDtypeStruct((nz, VAL_OUT), jnp.float32),
        grid=grid,
        in_specs=in_specs,
        out_specs=out_spec,
        scratch_shapes=[pltpu.VMEM((X_HEADS * X_HEAD_DIM, KEY_OUT),
                                   jnp.bfloat16)],
        compiler_params=pltpu.CompilerParams(
            # probs scratch is carried across Nz tiles -> sequential axis
            dimension_semantics=("arbitrary",),
            vmem_limit_bytes=vmem_limit),
    )(xb, yb, zb, wqb, bq, wkb, bk, wvb, bv)


def mha_ref(x, y, z, wq, bq, wk, bk, wv, bv):
    """Pure-JAX (f32) transcription of the PyTorch forward, for verification."""
    q = x @ wq + bq                                   # (Nx, 128)
    k = y @ wk + bk                                   # (Ny, 512)
    v = z @ wv + bv                                   # (Nz, 512)
    nx = x.shape[0]
    n_per_head = nx // X_HEADS
    qr = q.reshape(X_HEADS, n_per_head, X_HEAD_DIM)   # (4, Ny, 128)
    scores = jnp.einsum('hnd,ne->hde', qr, k)         # (4, 128, 512)
    probs = jax.nn.softmax(scores.reshape(X_HEADS * X_HEAD_DIM, -1), axis=-1)
    return v @ probs                                  # (Nz, 512)


if __name__ == "__main__":
    key = jax.random.PRNGKey(0)
    ks = jax.random.split(key, 9)

    # small but shape-consistent sizes:
    #   Nx (roi/image features) must be 4 * Ny (node/geo features);
    #   Nz (descriptors) = number of nodes.
    Nx, Ny, Nz = 32, 8, 8

    x = jax.random.normal(ks[0], (Nx, X_DIM), jnp.float32)   # img_feature
    y = jax.random.normal(ks[1], (Ny, Y_DIM), jnp.float32)   # geo_feature
    z = jax.random.normal(ks[2], (Nz, Z_DIM), jnp.float32)   # descriptor

    # deterministic Linear parameters (weights stored transposed: (in, out))
    wq = 0.02 * jax.random.normal(ks[3], (X_DIM, X_HEAD_DIM), jnp.float32)
    bq = 0.01 * jax.random.normal(ks[4], (1, X_HEAD_DIM), jnp.float32)
    wk = 0.02 * jax.random.normal(ks[5], (Y_DIM, KEY_OUT), jnp.float32)
    bk = 0.01 * jax.random.normal(ks[6], (1, KEY_OUT), jnp.float32)
    wv = 0.02 * jax.random.normal(ks[7], (Z_DIM, VAL_OUT), jnp.float32)
    bv = 0.01 * jax.random.normal(ks[8], (1, VAL_OUT), jnp.float32)

    out = mha_pallas(x, y, z, wq, bq, wk, bk, wv, bv)
    out = jax.block_until_ready(out)

    ref = mha_ref(x, y, z, wq, bq[0], wk, bk[0], wv, bv[0])
    assert out.shape == (Nz, VAL_OUT)
    # bf16 matmuls with f32 accumulation: loosened tolerance vs f32 reference
    assert jnp.allclose(out, ref, rtol=2e-2, atol=2e-3), "mismatch vs reference"

    print("KERNEL_OK")
</pallas_src>

<mosaic_0001>
module attributes {stable_mosaic.version = 11 : i64} {
  func.func @_mha_kernel(%arg0: i32, %arg1: memref<32x512xbf16, #tpu.memory_space<vmem>>, %arg2: memref<8x512xbf16, #tpu.memory_space<vmem>>, %arg3: memref<8x26xbf16, #tpu.memory_space<vmem>>, %arg4: memref<512x128xbf16, #tpu.memory_space<vmem>>, %arg5: memref<1x128xf32, #tpu.memory_space<vmem>>, %arg6: memref<512x512xbf16, #tpu.memory_space<vmem>>, %arg7: memref<1x512xf32, #tpu.memory_space<vmem>>, %arg8: memref<26x512xbf16, #tpu.memory_space<vmem>>, %arg9: memref<1x512xf32, #tpu.memory_space<vmem>>, %arg10: memref<8x512xf32, #tpu.memory_space<vmem>>, %arg11: memref<512x512xbf16, #tpu.memory_space<vmem>>) attributes {dimension_semantics = [#tpu.dimension_semantics<arbitrary>], iteration_bounds = array<i64: 1>, scalar_prefetch = 0 : i64, scratch_operands = 1 : i64, tpu.core_type = #tpu.core_type<tc>, window_params = [{pipeline_mode = #tpu.pipeline_mode<synchronous>, transform_indices = @transform_0, window_bounds = array<i64: 32, 512>}, {pipeline_mode = #tpu.pipeline_mode<synchronous>, transform_indices = @transform_1, window_bounds = array<i64: 8, 512>}, {transform_indices = @transform_2, window_bounds = array<i64: 8, 26>}, {pipeline_mode = #tpu.pipeline_mode<synchronous>, transform_indices = @transform_3, window_bounds = array<i64: 512, 128>}, {pipeline_mode = #tpu.pipeline_mode<synchronous>, transform_indices = @transform_4, window_bounds = array<i64: 1, 128>}, {pipeline_mode = #tpu.pipeline_mode<synchronous>, transform_indices = @transform_5, window_bounds = array<i64: 512, 512>}, {pipeline_mode = #tpu.pipeline_mode<synchronous>, transform_indices = @transform_6, window_bounds = array<i64: 1, 512>}, {pipeline_mode = #tpu.pipeline_mode<synchronous>, transform_indices = @transform_7, window_bounds = array<i64: 26, 512>}, {pipeline_mode = #tpu.pipeline_mode<synchronous>, transform_indices = @transform_8, window_bounds = array<i64: 1, 512>}, {transform_indices = @transform_9, window_bounds = array<i64: 8, 512>}]} {
    %c0_i32 = arith.constant 0 : i32
    %0 = arith.cmpi eq, %arg0, %c0_i32 : i32
    %1 = arith.extui %0 : i1 to i32
    %c0_i32_0 = arith.constant 0 : i32
    %2 = arith.cmpi ne, %1, %c0_i32_0 : i32
    scf.if %2 {
      %c0_11 = arith.constant 0 : index
      %c0_12 = arith.constant 0 : index
      %13 = vector.load %arg1[%c0_11, %c0_12] : memref<32x512xbf16, #tpu.memory_space<vmem>>, vector<32x512xbf16>
      %c0_13 = arith.constant 0 : index
      %c0_14 = arith.constant 0 : index
      %14 = vector.load %arg4[%c0_13, %c0_14] : memref<512x128xbf16, #tpu.memory_space<vmem>>, vector<512x128xbf16>
      %cst_15 = arith.constant dense<0.000000e+00> : vector<32x128xf32>
      %15 = tpu.matmul %13, %14, %cst_15 {dimension_numbers = #tpu.dot_dimension_numbers<[1], [0], [0], [1], [0, 0, 1, 1], [], []>} : vector<32x512xbf16>, vector<512x128xbf16>, vector<32x128xf32> -> vector<32x128xf32>
      %c0_16 = arith.constant 0 : index
      %c0_17 = arith.constant 0 : index
      %16 = vector.load %arg5[%c0_16, %c0_17] : memref<1x128xf32, #tpu.memory_space<vmem>>, vector<1x128xf32>
      %17 = vector.broadcast %16 : vector<1x128xf32> to vector<32x128xf32>
      %18 = arith.addf %15, %17 : vector<32x128xf32>
      %c0_18 = arith.constant 0 : index
      %c0_19 = arith.constant 0 : index
      %19 = vector.load %arg2[%c0_18, %c0_19] : memref<8x512xbf16, #tpu.memory_space<vmem>>, vector<8x512xbf16>
      %c0_20 = arith.constant 0 : index
      %c0_21 = arith.constant 0 : index
      %20 = vector.load %arg6[%c0_20, %c0_21] : memref<512x512xbf16, #tpu.memory_space<vmem>>, vector<512x512xbf16>
      %cst_22 = arith.constant dense<0.000000e+00> : vector<8x512xf32>
      %21 = tpu.matmul %19, %20, %cst_22 {dimension_numbers = #tpu.dot_dimension_numbers<[1], [0], [0], [1], [0, 0, 1, 1], [], []>} : vector<8x512xbf16>, vector<512x512xbf16>, vector<8x512xf32> -> vector<8x512xf32>
      %c0_23 = arith.constant 0 : index
      %c0_24 = arith.constant 0 : index
      %22 = vector.load %arg7[%c0_23, %c0_24] : memref<1x512xf32, #tpu.memory_space<vmem>>, vector<1x512xf32>
      %23 = vector.broadcast %22 : vector<1x512xf32> to vector<8x512xf32>
      %24 = arith.addf %21, %23 : vector<8x512xf32>
      %25 = arith.truncf %24 : vector<8x512xf32> to vector<8x512xbf16>
      %26 = tpu.transpose %18, [1, 0] : vector<32x128xf32> -> vector<128x32xf32>
      %27 = arith.truncf %26 : vector<128x32xf32> to vector<128x32xbf16>
      %28 = vector.extract_strided_slice %27 {offsets = [0, 0], sizes = [128, 8], strides = [1, 1]} : vector<128x32xbf16> to vector<128x8xbf16>
      %cst_25 = arith.constant dense<0.000000e+00> : vector<128x512xf32>
      %29 = tpu.matmul %28, %25, %cst_25 {dimension_numbers = #tpu.dot_dimension_numbers<[1], [0], [0], [1], [0, 0, 1, 1], [], []>} : vector<128x8xbf16>, vector<8x512xbf16>, vector<128x512xf32> -> vector<128x512xf32>
      %cst_26 = arith.constant dense<0xFF800000> : vector<128xf32>
      %30 = vector.multi_reduction <maximumf>, %29, %cst_26 [1] : vector<128x512xf32> to vector<128xf32>
      %31 = vector.shape_cast %30 : vector<128xf32> to vector<128x1xf32>
      %32 = vector.broadcast %31 : vector<128x1xf32> to vector<128x512xf32>
      %33 = arith.subf %29, %32 : vector<128x512xf32>
      %34 = math.exp %33 : vector<128x512xf32>
      %cst_27 = arith.constant dense<0.000000e+00> : vector<128xf32>
      %35 = vector.multi_reduction <add>, %34, %cst_27 [1] : vector<128x512xf32> to vector<128xf32>
      %36 = vector.shape_cast %35 : vector<128xf32> to vector<128x1xf32>
      %37 = tpu.reciprocal %36 {approx = true} : vector<128x1xf32> -> vector<128x1xf32>
      %38 = vector.broadcast %37 : vector<128x1xf32> to vector<128x512xf32>
      %39 = arith.mulf %34, %38 : vector<128x512xf32>
      %40 = arith.truncf %39 : vector<128x512xf32> to vector<128x512xbf16>
      %c0_28 = arith.constant 0 : index
      %c0_29 = arith.constant 0 : index
      %41 = vector.load %arg11[%c0_28, %c0_29] : memref<512x512xbf16, #tpu.memory_space<vmem>>, vector<128x512xbf16>
      tpu.vector_store %arg11[%c0_28, %c0_29], %40 {strides = array<i32>} : memref<512x512xbf16, #tpu.memory_space<vmem>>, vector<128x512xbf16>,
      %42 = vector.extract_strided_slice %27 {offsets = [0, 8], sizes = [128, 8], strides = [1, 1]} : vector<128x32xbf16> to vector<128x8xbf16>
      %cst_30 = arith.constant dense<0.000000e+00> : vector<128x512xf32>
      %43 = tpu.matmul %42, %25, %cst_30 {dimension_numbers = #tpu.dot_dimension_numbers<[1], [0], [0], [1], [0, 0, 1, 1], [], []>} : vector<128x8xbf16>, vector<8x512xbf16>, vector<128x512xf32> -> vector<128x512xf32>
      %cst_31 = arith.constant dense<0xFF800000> : vector<128xf32>
      %44 = vector.multi_reduction <maximumf>, %43, %cst_31 [1] : vector<128x512xf32> to vector<128xf32>
      %45 = vector.shape_cast %44 : vector<128xf32> to vector<128x1xf32>
      %46 = vector.broadcast %45 : vector<128x1xf32> to vector<128x512xf32>
      %47 = arith.subf %43, %46 : vector<128x512xf32>
      %48 = math.exp %47 : vector<128x512xf32>
      %cst_32 = arith.constant dense<0.000000e+00> : vector<128xf32>
      %49 = vector.multi_reduction <add>, %48, %cst_32 [1] : vector<128x512xf32> to vector<128xf32>
      %50 = vector.shape_cast %49 : vector<128xf32> to vector<128x1xf32>
      %51 = tpu.reciprocal %50 {approx = true} : vector<128x1xf32> -> vector<128x1xf32>
      %52 = vector.broadcast %51 : vector<128x1xf32> to vector<128x512xf32>
      %53 = arith.mulf %48, %52 : vector<128x512xf32>
      %54 = arith.truncf %53 : vector<128x512xf32> to vector<128x512xbf16>
      %c128 = arith.constant 128 : index
      %c0_33 = arith.constant 0 : index
      %55 = vector.load %arg11[%c128, %c0_33] : memref<512x512xbf16, #tpu.memory_space<vmem>>, vector<128x512xbf16>
      tpu.vector_store %arg11[%c128, %c0_33], %54 {strides = array<i32>} : memref<512x512xbf16, #tpu.memory_space<vmem>>, vector<128x512xbf16>,
      %56 = vector.extract_strided_slice %27 {offsets = [0, 16], sizes = [128, 8], strides = [1, 1]} : vector<128x32xbf16> to vector<128x8xbf16>
      %cst_34 = arith.constant dense<0.000000e+00> : vector<128x512xf32>
      %57 = tpu.matmul %56, %25, %cst_34 {dimension_numbers = #tpu.dot_dimension_numbers<[1], [0], [0], [1], [0, 0, 1, 1], [], []>} : vector<128x8xbf16>, vector<8x512xbf16>, vector<128x512xf32> -> vector<128x512xf32>
      %cst_35 = arith.constant dense<0xFF800000> : vector<128xf32>
      %58 = vector.multi_reduction <maximumf>, %57, %cst_35 [1] : vector<128x512xf32> to vector<128xf32>
      %59 = vector.shape_cast %58 : vector<128xf32> to vector<128x1xf32>
      %60 = vector.broadcast %59 : vector<128x1xf32> to vector<128x512xf32>
      %61 = arith.subf %57, %60 : vector<128x512xf32>
      %62 = math.exp %61 : vector<128x512xf32>
      %cst_36 = arith.constant dense<0.000000e+00> : vector<128xf32>
      %63 = vector.multi_reduction <add>, %62, %cst_36 [1] : vector<128x512xf32> to vector<128xf32>
      %64 = vector.shape_cast %63 : vector<128xf32> to vector<128x1xf32>
      %65 = tpu.reciprocal %64 {approx = true} : vector<128x1xf32> -> vector<128x1xf32>
      %66 = vector.broadcast %65 : vector<128x1xf32> to vector<128x512xf32>
      %67 = arith.mulf %62, %66 : vector<128x512xf32>
      %68 = arith.truncf %67 : vector<128x512xf32> to vector<128x512xbf16>
      %c256 = arith.constant 256 : index
      %c0_37 = arith.constant 0 : index
      %69 = vector.load %arg11[%c256, %c0_37] : memref<512x512xbf16, #tpu.memory_space<vmem>>, vector<128x512xbf16>
      tpu.vector_store %arg11[%c256, %c0_37], %68 {strides = array<i32>} : memref<512x512xbf16, #tpu.memory_space<vmem>>, vector<128x512xbf16>,
      %70 = vector.extract_strided_slice %27 {offsets = [0, 24], sizes = [128, 8], strides = [1, 1]} : vector<128x32xbf16> to vector<128x8xbf16>
      %cst_38 = arith.constant dense<0.000000e+00> : vector<128x512xf32>
      %71 = tpu.matmul %70, %25, %cst_38 {dimension_numbers = #tpu.dot_dimension_numbers<[1], [0], [0], [1], [0, 0, 1, 1], [], []>} : vector<128x8xbf16>, vector<8x512xbf16>, vector<128x512xf32> -> vector<128x512xf32>
      %cst_39 = arith.constant dense<0xFF800000> : vector<128xf32>
      %72 = vector.multi_reduction <maximumf>, %71, %cst_39 [1] : vector<128x512xf32> to vector<128xf32>
      %73 = vector.shape_cast %72 : vector<128xf32> to vector<128x1xf32>
      %74 = vector.broadcast %73 : vector<128x1xf32> to vector<128x512xf32>
      %75 = arith.subf %71, %74 : vector<128x512xf32>
      %76 = math.exp %75 : vector<128x512xf32>
      %cst_40 = arith.constant dense<0.000000e+00> : vector<128xf32>
      %77 = vector.multi_reduction <add>, %76, %cst_40 [1] : vector<128x512xf32> to vector<128xf32>
      %78 = vector.shape_cast %77 : vector<128xf32> to vector<128x1xf32>
      %79 = tpu.reciprocal %78 {approx = true} : vector<128x1xf32> -> vector<128x1xf32>
      %80 = vector.broadcast %79 : vector<128x1xf32> to vector<128x512xf32>
      %81 = arith.mulf %76, %80 : vector<128x512xf32>
      %82 = arith.truncf %81 : vector<128x512xf32> to vector<128x512xbf16>
      %c384 = arith.constant 384 : index
      %c0_41 = arith.constant 0 : index
      %83 = vector.load %arg11[%c384, %c0_41] : memref<512x512xbf16, #tpu.memory_space<vmem>>, vector<128x512xbf16>
      tpu.vector_store %arg11[%c384, %c0_41], %82 {strides = array<i32>} : memref<512x512xbf16, #tpu.memory_space<vmem>>, vector<128x512xbf16>,
    } else {
    }
    %c0 = arith.constant 0 : index
    %c0_1 = arith.constant 0 : index
    %3 = vector.load %arg3[%c0, %c0_1] : memref<8x26xbf16, #tpu.memory_space<vmem>>, vector<8x26xbf16>
    %c0_2 = arith.constant 0 : index
    %c0_3 = arith.constant 0 : index
    %4 = vector.load %arg8[%c0_2, %c0_3] : memref<26x512xbf16, #tpu.memory_space<vmem>>, vector<26x512xbf16>
    %cst = arith.constant dense<0.000000e+00> : vector<8x512xf32>
    %5 = tpu.matmul %3, %4, %cst {dimension_numbers = #tpu.dot_dimension_numbers<[1], [0], [0], [1], [0, 0, 1, 1], [], []>} : vector<8x26xbf16>, vector<26x512xbf16>, vector<8x512xf32> -> vector<8x512xf32>
    %c0_4 = arith.constant 0 : index
    %c0_5 = arith.constant 0 : index
    %6 = vector.load %arg9[%c0_4, %c0_5] : memref<1x512xf32, #tpu.memory_space<vmem>>, vector<1x512xf32>
    %7 = vector.broadcast %6 : vector<1x512xf32> to vector<8x512xf32>
    %8 = arith.addf %5, %7 : vector<8x512xf32>
    %9 = arith.truncf %8 : vector<8x512xf32> to vector<8x512xbf16>
    %c0_6 = arith.constant 0 : index
    %c0_7 = arith.constant 0 : index
    %10 = vector.load %arg11[%c0_6, %c0_7] : memref<512x512xbf16, #tpu.memory_space<vmem>>, vector<512x512xbf16>
    %cst_8 = arith.constant dense<0.000000e+00> : vector<8x512xf32>
    %11 = tpu.matmul %9, %10, %cst_8 {dimension_numbers = #tpu.dot_dimension_numbers<[1], [0], [0], [1], [0, 0, 1, 1], [], []>} : vector<8x512xbf16>, vector<512x512xbf16>, vector<8x512xf32> -> vector<8x512xf32>
    %c0_9 = arith.constant 0 : index
    %c0_10 = arith.constant 0 : index
    %12 = vector.load %arg10[%c0_9, %c0_10] : memref<8x512xf32, #tpu.memory_space<vmem>>, vector<8x512xf32>
    tpu.vector_store %arg10[%c0_9, %c0_10], %11 {strides = array<i32>} : memref<8x512xf32, #tpu.memory_space<vmem>>, vector<8x512xf32>,
    return
  }
  func.func @transform_0(%arg0: i32) -> (i32, i32) {
    %c0_i32 = arith.constant 0 : i32
    %c0_i32_0 = arith.constant 0 : i32
    %c0_i32_1 = arith.constant 0 : i32
    return %c0_i32, %c0_i32_0 : i32, i32
  }
  func.func @transform_1(%arg0: i32) -> (i32, i32) {
    %c0_i32 = arith.constant 0 : i32
    %c0_i32_0 = arith.constant 0 : i32
    %c0_i32_1 = arith.constant 0 : i32
    return %c0_i32, %c0_i32_0 : i32, i32
  }
  func.func @transform_2(%arg0: i32) -> (i32, i32) {
    %c0_i32 = arith.constant 0 : i32
    %c0_i32_0 = arith.constant 0 : i32
    return %arg0, %c0_i32 : i32, i32
  }
  func.func @transform_3(%arg0: i32) -> (i32, i32) {
    %c0_i32 = arith.constant 0 : i32
    %c0_i32_0 = arith.constant 0 : i32
    %c0_i32_1 = arith.constant 0 : i32
    return %c0_i32, %c0_i32_0 : i32, i32
  }
  func.func @transform_4(%arg0: i32) -> (i32, i32) {
    %c0_i32 = arith.constant 0 : i32
    %c0_i32_0 = arith.constant 0 : i32
    %c0_i32_1 = arith.constant 0 : i32
    return %c0_i32, %c0_i32_0 : i32, i32
  }
  func.func @transform_5(%arg0: i32) -> (i32, i32) {
    %c0_i32 = arith.constant 0 : i32
    %c0_i32_0 = arith.constant 0 : i32
    %c0_i32_1 = arith.constant 0 : i32
    return %c0_i32, %c0_i32_0 : i32, i32
  }
  func.func @transform_6(%arg0: i32) -> (i32, i32) {
    %c0_i32 = arith.constant 0 : i32
    %c0_i32_0 = arith.constant 0 : i32
    %c0_i32_1 = arith.constant 0 : i32
    return %c0_i32, %c0_i32_0 : i32, i32
  }
  func.func @transform_7(%arg0: i32) -> (i32, i32) {
    %c0_i32 = arith.constant 0 : i32
    %c0_i32_0 = arith.constant 0 : i32
    %c0_i32_1 = arith.constant 0 : i32
    return %c0_i32, %c0_i32_0 : i32, i32
  }
  func.func @transform_8(%arg0: i32) -> (i32, i32) {
    %c0_i32 = arith.constant 0 : i32
    %c0_i32_0 = arith.constant 0 : i32
    %c0_i32_1 = arith.constant 0 : i32
    return %c0_i32, %c0_i32_0 : i32, i32
  }
  func.func @transform_9(%arg0: i32) -> (i32, i32) {
    %c0_i32 = arith.constant 0 : i32
    %c0_i32_0 = arith.constant 0 : i32
    return %arg0, %c0_i32 : i32, i32
  }
}

</mosaic_0001>

<bundles_post_ra>
// kernel: tpu_custom_call.1
= control target key start
LH: loop header
LB: loop body
LE: loop exit
PB: predicated region body
PF: predicated region fallthrough
CT: control target
= control target key end

     0   :  { %14 = vsyncpa [#allocation4], 0  ;;  %s11022_s0 = inlined_call_operand.hbm [shape: bf16[32,512], index: 0, kind: input, shape index: {}]   ;;  %s11023_s1 = inlined_call_operand.hbm [shape: bf16[8,512], index: 1, kind: input, shape index: {}]   ;;  %s11024_s2 = inlined_call_operand.hbm [shape: bf16[8,26], index: 2, kind: input, shape index: {}]   ;;  %s11025_s3 = inlined_call_operand.hbm [shape: bf16[512,128], index: 3, kind: input, shape index: {}]   ;;  %s11026_s4 = inlined_call_operand.vmem [shape: f32[1,128], index: 4, kind: input, shape index: {}]   ;;  %s11027_s5 = inlined_call_operand.hbm [shape: bf16[512,512], index: 5, kind: input, shape index: {}]   ;;  %s11028_s6 = inlined_call_operand.vmem [shape: f32[1,512], index: 6, kind: input, shape index: {}]   ;;  %s11029_s7 = inlined_call_operand.hbm [shape: bf16[26,512], index: 7, kind: input, shape index: {}]   ;;  %s11030_s8 = inlined_call_operand.hbm [shape: f32[1,512], index: 8, kind: input, shape index: {}]   ;;  %s11031_s9 = inlined_call_operand.hbm [shape: f32[8,512], index: 9, kind: output, shape index: {}]  }
   0x1   :  { %15 = vsyncpa [#allocation7], 0 }
   0x2   :  { %16 = vsyncpa [#allocation10], 0 }
   0x3   :  { %17 = vsyncpa [#allocation13], 0  ;;  %s37_s11 = sshll.u32 %s11023_s1, 4  ;;  %s38_s11 = int_to_ptr.hbm [resolvable:$true] %s37_s11 }
   0x4   :  { %18 = vsyncpa [#allocation5], 0  ;;  %s8186_s12 = smov [#allocation6]   ;;  %s58_s16 = sshll.u32 %s11025_s3, 4  ;;  %s59_s16 = int_to_ptr.hbm [resolvable:$true] %s58_s16 }
   0x5   :  { %s39_s13 = sshll.u32 %s8186_s12, 4  ;;  %s8187_s17 = smov [#allocation9]   ;;  %s40_s13 = int_to_ptr.vmem [resolvable:$true] %s39_s13 }
   0x6   :  { %42 = dma.hbm_to_vmem [thread:$0]  %s38_s11, 256, %s40_s13, [#allocation7]  }
   0x7   :  { %s60_s18 = sshll.u32 %s8187_s17, 4  ;;  %s8188_s19 = smov 64   ;;  %s61_s18 = int_to_ptr.vmem [resolvable:$true] %s60_s18 }
   0x8   :  { %s8189_s20 = smov 4   ;;  %s88_s1 = sshll.u32 %s11029_s7, 4  ;;  %s89_s1 = int_to_ptr.hbm [resolvable:$true] %s88_s1 }
   0x9   :  { %66 = dma.hbm_to_vmem [thread:$0]  %s59_s16, 4096, %s61_s18, [#allocation10], %s8188_s19, %s8188_s19, %s8189_s20  }
   0xa   :  { %s8190_s23 = smov [#allocation12]   ;;  %s23_s3 = sshll.u32 %s11022_s0, 4  ;;  %s24_s3 = int_to_ptr.hbm [resolvable:$true] %s23_s3 }
   0xb   :  { %s90_s24 = sshll.u32 %s8190_s23, 4  ;;  %s8191_s27 = smov 256   ;;  %s91_s24 = int_to_ptr.vmem [resolvable:$true] %s90_s24 }
   0xc   :  { %s8192_s28 = smov 16   ;;  %s8193_s29 = smov [#allocation3]  }
   0xd   :  { %96 = dma.hbm_to_vmem [thread:$0]  %s89_s1, 1024, %s91_s24, [#allocation13], %s8191_s27, %s8191_s27, %s8192_s28  }
   0xe   :  { %s25_s30 = sshll.u32 %s8193_s29, 4  ;;  %s48_s12 = sshll.u32 %s11024_s2, 4  ;;  %s26_s30 = int_to_ptr.vmem [resolvable:$true] %s25_s30  ;;  %s49_s12 = int_to_ptr.hbm [resolvable:$true] %s48_s12 }
   0xf   :  { %31 = dma.hbm_to_vmem [thread:$0]  %s24_s3, 1024, %s26_s30, [#allocation4], %s8191_s27, %s8191_s27, %s8192_s28  }
  0x10   :  { %s73_s14 = sshll.u32 %s11027_s5, 4  ;;  %s8194_s15 = smov [#allocation8]   ;;  %s74_s14 = int_to_ptr.hbm [resolvable:$true] %s73_s14 }
  0x11   :  { %s50_s16 = sshll.u32 %s8194_s15, 4  ;;  %s8195_s0 = smov [#allocation11]   ;;  %s51_s16 = int_to_ptr.vmem [resolvable:$true] %s50_s16 }
  0x12   :  { %53 = dma.hbm_to_vmem [thread:$0]  %s49_s12, 64, %s51_s16, [#allocation7]  }
  0x13   :  { %s75_s17 = sshll.u32 %s8195_s0, 4  ;;  %s102_s20 = sshll.u32 %s11030_s8, 4  ;;  %s76_s17 = int_to_ptr.vmem [resolvable:$true] %s75_s17  ;;  %s103_s20 = int_to_ptr.hbm [resolvable:$true] %s102_s20 }
  0x14   :  { %81 = dma.hbm_to_vmem [thread:$0]  %s74_s14, 16384, %s76_s17, [#allocation10], %s8191_s27, %s8191_s27, %s8192_s28  }
  0x15   :  { %s8196_s2 = smov [#allocation14]  }
  0x16   :  { %s104_s21 = sshll.u32 %s8196_s2, 4  ;;  %s105_s21 = int_to_ptr.vmem [resolvable:$true] %s104_s21 }
  0x17   :  { %107 = dma.hbm_to_vmem [thread:$0]  %s103_s20, 64, %s105_s21, [#allocation13]  }
  0x18   :  { %8176 = dma.done.wait [#allocation4], 1024  }
  0x19   :  { %8177 = vsyncadd [#allocation4], 4294966272 }
  0x1a   :  { %8178 = dma.done.wait [#allocation7], 320  }
  0x1b   :  { %8179 = vsyncadd [#allocation7], 4294966976 }
  0x1c   :  { %8180 = dma.done.wait [#allocation10], 20480  }
  0x1d   :  { %8181 = vsyncadd [#allocation10], 4294946816 }
  0x1e   :  { %8182 = dma.done.wait [#allocation13], 1088  }
  0x1f   :  { %8183 = vsyncadd [#allocation13], 4294966208  ;;  %v7036_v0 = vld [vmem:[#allocation9 + $0x38] sm:$0xff]  ;;  %v7035_v4 = vld [vmem:[#allocation9 + $0x30] sm:$0xff]  ;;  %vm1644_vm0 = vcmask 1043456   ;;  %vm1619_vm1 = vcmask 64512  }
  0x20   :  { %v7044_v1 = vld [vmem:[#allocation9 + $0x78] sm:$0xff]  ;;  %449 = vmatpush.bf16.msra.mxu0 %v7036_v0  ;;  %v7043_v5 = vld [vmem:[#allocation9 + $0x70] sm:$0xff]  ;;  %v7034_v8 = vld [vmem:[#allocation9 + $0x28] sm:$0xff]  ;;  %s8198_s1 = smov 112   ;;  %s8199_s23 = smov 104   ;;  %vm4604_vm2 = vcmask 1044480  }
  0x21   :  { %v7052_v2 = vld [vmem:[#allocation9 + $0xb8] sm:$0xff]  ;;  %468 = vmatpush.bf16.msra.mxu1 %v7044_v1  ;;  %v7051_v6 = vld [vmem:[#allocation9 + $0xb0] sm:$0xff]  ;;  %v7042_v9 = vld [vmem:[#allocation9 + $0x68] sm:$0xff]  ;;  %vm4600_vm3 = vcmask 211968   ;;  %s8200_s24 = smov [#allocation15]   ;;  %s5660_s27 = sshll.u32 %s11031_s9, 4  ;;  %s5661_s27 = int_to_ptr.hbm [resolvable:$true] %s5660_s27 }
  0x22   :  { %v7060_v3 = vld [vmem:[#allocation9 + $0xf8] sm:$0xff]  ;;  %487 = vmatpush.bf16.msra.mxu2 %v7052_v2  ;;  %v7059_v7 = vld [vmem:[#allocation9 + $0xf0] sm:$0xff]  ;;  %v7050_v10 = vld [vmem:[#allocation9 + $0xa8] sm:$0xff]  ;;  %s5658_s25 = sshll.u32 %s8200_s24, 4  ;;  %s5659_s25 = int_to_ptr.vmem [resolvable:$true] %s5658_s25 }
  0x23   :  { %506 = vmatpush.bf16.msra.mxu3 %v7060_v3  ;;  %v7058_v11 = vld [vmem:[#allocation9 + $0xe8] sm:$0xff]  ;;  %v7033_v12 = vld [vmem:[#allocation9 + $0x20] sm:$0xff]  ;;  %v7032_v16 = vld [vmem:[#allocation9 + $0x18] sm:$0xff] }
  0x24   :  { %450 = vmatpush.bf16.msra.mxu0 %v7035_v4  ;;  %v7041_v13 = vld [vmem:[#allocation9 + $0x60] sm:$0xff]  ;;  %v7040_v17 = vld [vmem:[#allocation9 + $0x58] sm:$0xff]  ;;  %v7031_v20 = vld [vmem:[#allocation9 + $0x10] sm:$0xff] }
  0x25   :  { %469 = vmatpush.bf16.msra.mxu1 %v7043_v5  ;;  %v7049_v14 = vld [vmem:[#allocation9 + $0xa0] sm:$0xff]  ;;  %v7048_v18 = vld [vmem:[#allocation9 + $0x98] sm:$0xff]  ;;  %v7039_v21 = vld [vmem:[#allocation9 + $0x50] sm:$0xff] }
  0x26   :  { %488 = vmatpush.bf16.msra.mxu2 %v7051_v6  ;;  %v7057_v15 = vld [vmem:[#allocation9 + $0xe0] sm:$0xff]  ;;  %v7056_v19 = vld [vmem:[#allocation9 + $0xd8] sm:$0xff]  ;;  %v7047_v22 = vld [vmem:[#allocation9 + $0x90] sm:$0xff] }
  0x27   :  { %507 = vmatpush.bf16.msra.mxu3 %v7059_v7  ;;  %v7055_v23 = vld [vmem:[#allocation9 + $0xd0] sm:$0xff]  ;;  %v7030_v24 = vld [vmem:[#allocation9 + $0x8] sm:$0xff]  ;;  %v7029_v28 = vld [vmem:[#allocation9] sm:$0xff] }
  0x28   :  { %451 = vmatpush.bf16.msra.mxu0 %v7034_v8  ;;  %v7038_v25 = vld [vmem:[#allocation9 + $0x48] sm:$0xff]  ;;  %v7037_v29 = vld [vmem:[#allocation9 + $0x40] sm:$0xff]  ;;  %v7023_v31 = vld [vmem:[#allocation3 + $0xc] sm:$0xf0] }
  0x29   :  { %470 = vmatpush.bf16.msra.mxu1 %v7042_v9  ;;  %v7046_v26 = vld [vmem:[#allocation9 + $0x88] sm:$0xff]  ;;  %v7021_v32 = vld [vmem:[#allocation3 + $0x4] sm:$0xf]  ;;  %v5677_v33 = vld [vmem:[#allocation3 + $0x10] sm:$0xf0] }
  0x2a   :  { %489 = vmatpush.bf16.msra.mxu2 %v7050_v10  ;;  %v7054_v27 = vld [vmem:[#allocation9 + $0xc8] sm:$0xff]  ;;  %v6203_v34 = vld [vmem:[#allocation11 + $0x2e0] sm:$0xf]  ;;  %v7155_v37 = vld [vmem:[#allocation11 + $0x2ec] sm:$0xf0]  ;;  %v5680_v52 = vor.u32 %v7021_v32, %v5677_v33 }
  0x2b   :  { %508 = vmatpush.bf16.msra.mxu3 %v7058_v11  ;;  %v5675_v30 = vld [vmem:[#allocation3] sm:$0xf]  ;;  %v7045_v35 = vld [vmem:[#allocation9 + $0x80] sm:$0xff]  ;;  %v7091_v39 = vld [vmem:[#allocation11 + $0xec] sm:$0xf0]  ;;  %v6204_v46 = vor.u32 %v7155_v37, %v6203_v34 }
  0x2c   :  { %452 = vmatpush.bf16.msra.mxu0 %v7033_v12  ;;  %v7053_v36 = vld [vmem:[#allocation9 + $0xc0] sm:$0xff]  ;;  %v5683_v40 = vld [vmem:[#allocation3 + $0x8] sm:$0xf]  ;;  %v7022_v42 = vld [vmem:[#allocation3 + $0xc] sm:$0xf]  ;;  %v5676_v51 = vor.u32 %v7023_v31, %v5675_v30 }
  0x2d   :  { %471 = vmatpush.bf16.msra.mxu1 %v7041_v13  ;;  %v5947_v38 = vld [vmem:[#allocation11 + $0xe0] sm:$0xf]  ;;  %v7024_v41 = vld [vmem:[#allocation3 + $0x14] sm:$0xf0]  ;;  %v5685_v43 = vld [vmem:[#allocation3 + $0x18] sm:$0xf0] }
  0x2e   :  { %490 = vmatpush.bf16.msra.mxu2 %v7049_v14  ;;  %v6331_v44 = vld [vmem:[#allocation11 + $0x3e0] sm:$0xf]  ;;  %v7187_v45 = vld [vmem:[#allocation11 + $0x3ec] sm:$0xf0]  ;;  %v5948_v47 = vor.u32 %v7091_v39, %v5947_v38  ;;  %v5684_v56 = vor.u32 %v7024_v41, %v5683_v40  ;;  %v5688_v57 = vor.u32 %v7022_v42, %v5685_v43  ;;  %v5699_v34 = vld [vmem:[#allocation3 + $0x28] sm:$0xf] }
  0x2f   :  { %509 = vmatpush.bf16.msra.mxu3 %v7057_v15  ;;  %v6075_v48 = vld [vmem:[#allocation11 + $0x1e0] sm:$0xf]  ;;  %v7123_v49 = vld [vmem:[#allocation11 + $0x1ec] sm:$0xf0]  ;;  %v6332_v58 = vor.u32 %v7187_v45, %v6331_v44  ;;  %v5701_v37 = vld [vmem:[#allocation3 + $0x38] sm:$0xf0] }
  0x30   :  { %453 = vmatpush.bf16.msra.mxu0 %v7032_v16  ;;  %v6187_v50 = vld [vmem:[#allocation11 + $0x2c0] sm:$0xf]  ;;  %v7151_v53 = vld [vmem:[#allocation11 + $0x2cc] sm:$0xf0]  ;;  %v6076_v59 = vor.u32 %v7123_v49, %v6075_v48 }
  0x31   :  { %472 = vmatpush.bf16.msra.mxu1 %v7040_v17  ;;  %v5931_v54 = vld [vmem:[#allocation11 + $0xc0] sm:$0xf]  ;;  %v7087_v55 = vld [vmem:[#allocation11 + $0xcc] sm:$0xf0]  ;;  %v6188_v62 = vor.u32 %v7151_v53, %v6187_v50 }
  0x32   :  { %491 = vmatpush.bf16.msra.mxu2 %v7048_v18  ;;  %v6315_v60 = vld [vmem:[#allocation11 + $0x3c0] sm:$0xf]  ;;  %v7183_v61 = vld [vmem:[#allocation11 + $0x3cc] sm:$0xf0]  ;;  %v5932_v63 = vor.u32 %v7087_v55, %v5931_v54 }
  0x33   :  { %510 = vmatpush.bf16.msra.mxu3 %v7056_v19  ;;  %v6059_v0 = vld [vmem:[#allocation11 + $0x1c0] sm:$0xf]  ;;  %v7119_v1 = vld [vmem:[#allocation11 + $0x1cc] sm:$0xf0]  ;;  %v6316_v6 = vor.u32 %v7183_v61, %v6315_v60 }
  0x34   :  { %454 = vmatpush.bf16.msra.mxu0 %v7031_v20  ;;  %v6171_v2 = vld [vmem:[#allocation11 + $0x2a0] sm:$0xf]  ;;  %v7147_v3 = vld [vmem:[#allocation11 + $0x2ac] sm:$0xf0]  ;;  %v6060_v7 = vor.u32 %v7119_v1, %v6059_v0 }
  0x35   :  { %473 = vmatpush.bf16.msra.mxu1 %v7039_v21  ;;  %v5915_v4 = vld [vmem:[#allocation11 + $0xa0] sm:$0xf]  ;;  %v7083_v5 = vld [vmem:[#allocation11 + $0xac] sm:$0xf0]  ;;  %v6172_v10 = vor.u32 %v7147_v3, %v6171_v2 }
  0x36   :  { %492 = vmatpush.bf16.msra.mxu2 %v7047_v22  ;;  %v6299_v8 = vld [vmem:[#allocation11 + $0x3a0] sm:$0xf]  ;;  %v7179_v9 = vld [vmem:[#allocation11 + $0x3ac] sm:$0xf0]  ;;  %v5916_v11 = vor.u32 %v7083_v5, %v5915_v4  ;;  %v5691_v22 = vld [vmem:[#allocation3 + $0x20] sm:$0xf] }
  0x37   :  { %511 = vmatpush.bf16.msra.mxu3 %v7055_v23  ;;  %v6043_v12 = vld [vmem:[#allocation11 + $0x1a0] sm:$0xf]  ;;  %v7115_v13 = vld [vmem:[#allocation11 + $0x1ac] sm:$0xf0]  ;;  %v6300_v18 = vor.u32 %v7179_v9, %v6299_v8  ;;  %v7027_v23 = vld [vmem:[#allocation3 + $0x2c] sm:$0xf0] }
  0x38   :  { %455 = vmatpush.bf16.msra.mxu0 %v7030_v24  ;;  %v6155_v14 = vld [vmem:[#allocation11 + $0x280] sm:$0xf]  ;;  %v7143_v15 = vld [vmem:[#allocation11 + $0x28c] sm:$0xf0]  ;;  %v6044_v19 = vor.u32 %v7115_v13, %v6043_v12  ;;  %v7153_v12 = vld [vmem:[#allocation11 + $0x2e4] sm:$0xf] }
  0x39   :  { %474 = vmatpush.bf16.msra.mxu1 %v7038_v25  ;;  %v5899_v16 = vld [vmem:[#allocation11 + $0x80] sm:$0xf]  ;;  %v7079_v17 = vld [vmem:[#allocation11 + $0x8c] sm:$0xf0]  ;;  %v6205_v13 = vld [vmem:[#allocation11 + $0x2f0] sm:$0xf0] }
  0x3a   :  { %493 = vmatpush.bf16.msra.mxu2 %v7046_v26  ;;  %v6283_v20 = vld [vmem:[#allocation11 + $0x380] sm:$0xf]  ;;  %v7175_v21 = vld [vmem:[#allocation11 + $0x38c] sm:$0xf0]  ;;  %v6156_v26 = vor.u32 %v7143_v15, %v6155_v14 }
  0x3b   :  { %512 = vmatpush.bf16.msra.mxu3 %v7054_v27  ;;  %v7025_v24 = vld [vmem:[#allocation3 + $0x24] sm:$0xf]  ;;  %v5693_v25 = vld [vmem:[#allocation3 + $0x30] sm:$0xf0]  ;;  %v5900_v27 = vor.u32 %v7079_v17, %v5899_v16  ;;  %v6284_v38 = vor.u32 %v7175_v21, %v6283_v20  ;;  %v7089_v17 = vld [vmem:[#allocation11 + $0xe4] sm:$0xf] }
  0x3c   :  { %456 = vmatpush.bf16.msra.mxu0 %v7029_v28  ;;  %v6027_v28 = vld [vmem:[#allocation11 + $0x180] sm:$0xf]  ;;  %v7139_v31 = vld [vmem:[#allocation11 + $0x26c] sm:$0xf0]  ;;  %v5696_v48 = vor.u32 %v7025_v24, %v5693_v25 }
  0x3d   :  { %475 = vmatpush.bf16.msra.mxu1 %v7037_v29  ;;  %v7111_v29 = vld [vmem:[#allocation11 + $0x18c] sm:$0xf0]  ;;  %v6139_v30 = vld [vmem:[#allocation11 + $0x260] sm:$0xf] }
  0x3e   :  { %494 = vmatpush.bf16.msra.mxu2 %v7045_v35  ;;  %v5883_v32 = vld [vmem:[#allocation11 + $0x60] sm:$0xf]  ;;  %v7075_v33 = vld [vmem:[#allocation11 + $0x6c] sm:$0xf0]  ;;  %v7028_v35 = vld [vmem:[#allocation3 + $0x34] sm:$0xf0]  ;;  %v6028_v39 = vor.u32 %v7111_v29, %v6027_v28  ;;  %v6140_v42 = vor.u32 %v7139_v31, %v6139_v30  ;;  %v6208_v29 = vor.u32 %v7153_v12, %v6205_v13 }
  0x3f   :  { %513 = vmatpush.bf16.msra.mxu3 %v7053_v36  ;;  %457 = vmatmul.bf16.vlgmr.msra.gmra.mxu0 %v5676_v51  ;;  %v7026_v36 = vld [vmem:[#allocation3 + $0x2c] sm:$0xf]  ;;  %v6267_v40 = vld [vmem:[#allocation11 + $0x360] sm:$0xf]  ;;  %v7171_v41 = vld [vmem:[#allocation11 + $0x36c] sm:$0xf0]  ;;  %v5884_v43 = vor.u32 %v7075_v33, %v5883_v32 }
  0x40   :  { %1319 = vmatpush.bf16.msrb.mxu0 %v5948_v47  ;;  %476 = vmatmul.bf16.vlgmr.msra.gmra.mxu1 %v5680_v52  ;;  %v6011_v44 = vld [vmem:[#allocation11 + $0x160] sm:$0xf]  ;;  %v7107_v45 = vld [vmem:[#allocation11 + $0x16c] sm:$0xf0]  ;;  %v5692_v47 = vor.u32 %v7027_v23, %v5691_v22  ;;  %v5700_v52 = vor.u32 %v7028_v35, %v5699_v34  ;;  %v5704_v53 = vor.u32 %v7026_v36, %v5701_v37  ;;  %v7185_v22 = vld [vmem:[#allocation11 + $0x3e4] sm:$0xf] }
  0x41   :  { %495 = vmatmul.bf16.vlgmr.msra.gmra.mxu2 %v5684_v56  ;;  %1332 = vmatpush.bf16.msrb.mxu1 %v6076_v59  ;;  %v7135_v49 = vld [vmem:[#allocation11 + $0x24c] sm:$0xf0]  ;;  %v5867_v50 = vld [vmem:[#allocation11 + $0x40] sm:$0xf]  ;;  %v6268_v54 = vor.u32 %v7171_v41, %v6267_v40  ;;  %v6012_v55 = vor.u32 %v7107_v45, %v6011_v44  ;;  %v6333_v23 = vld [vmem:[#allocation11 + $0x3f0] sm:$0xf0] }
  0x42   :  { %1345 = vmatpush.bf16.msrb.mxu2 %v6204_v46  ;;  %514 = vmatmul.bf16.vlgmr.msra.gmra.mxu3 %v5688_v57  ;;  %v6123_v46 = vld [vmem:[#allocation11 + $0x240] sm:$0xf]  ;;  %v7071_v51 = vld [vmem:[#allocation11 + $0x4c] sm:$0xf0]  ;;  %v7121_v28 = vld [vmem:[#allocation11 + $0x1e4] sm:$0xf]  ;;  %v6336_v40 = vor.u32 %v7185_v22, %v6333_v23 }
  0x43   :  { %1358 = vmatpush.bf16.msrb.mxu3 %v6332_v58  ;;  %v6251_v56 = vld [vmem:[#allocation11 + $0x340] sm:$0xf]  ;;  %v7167_v57 = vld [vmem:[#allocation11 + $0x34c] sm:$0xf0]  ;;  %v6124_v58 = vor.u32 %v7135_v49, %v6123_v46  ;;  %v5868_v59 = vor.u32 %v7071_v51, %v5867_v50  ;;  %v6077_v31 = vld [vmem:[#allocation11 + $0x1f0] sm:$0xf0] }
  0x44   :  { %1320 = vmatpush.bf16.msrb.mxu0 %v5932_v63  ;;  %v5995_v60 = vld [vmem:[#allocation11 + $0x140] sm:$0xf]  ;;  %v7103_v61 = vld [vmem:[#allocation11 + $0x14c] sm:$0xf0]  ;;  %v6252_v3 = vor.u32 %v7167_v57, %v6251_v56  ;;  %v7149_v32 = vld [vmem:[#allocation11 + $0x2c4] sm:$0xf]  ;;  %v6080_v41 = vor.u32 %v7121_v28, %v6077_v31 }
  0x45   :  { %1333 = vmatpush.bf16.msrb.mxu1 %v6060_v7  ;;  %v7131_v63 = vld [vmem:[#allocation11 + $0x22c] sm:$0xf0]  ;;  %v5851_v0 = vld [vmem:[#allocation11 + $0x20] sm:$0xf]  ;;  %v5996_v4 = vor.u32 %v7103_v61, %v5995_v60  ;;  %v6189_v33 = vld [vmem:[#allocation11 + $0x2d0] sm:$0xf0] }
  0x46   :  { %1346 = vmatpush.bf16.msrb.mxu2 %v6188_v62  ;;  %v6107_v62 = vld [vmem:[#allocation11 + $0x220] sm:$0xf]  ;;  %v7067_v1 = vld [vmem:[#allocation11 + $0x2c] sm:$0xf0]  ;;  %v7085_v34 = vld [vmem:[#allocation11 + $0xc4] sm:$0xf]  ;;  %v6192_v46 = vor.u32 %v7149_v32, %v6189_v33 }
  0x47   :  { %1359 = vmatpush.bf16.msrb.mxu3 %v6316_v6  ;;  %v6235_v2 = vld [vmem:[#allocation11 + $0x320] sm:$0xf]  ;;  %v7163_v5 = vld [vmem:[#allocation11 + $0x32c] sm:$0xf0]  ;;  %v6108_v8 = vor.u32 %v7131_v63, %v6107_v62  ;;  %v5852_v9 = vor.u32 %v7067_v1, %v5851_v0  ;;  %v5933_v35 = vld [vmem:[#allocation11 + $0xd0] sm:$0xf0] }
  0x48   :  { %1321 = vmatpush.bf16.msrb.mxu0 %v5916_v11  ;;  %v5979_v6 = vld [vmem:[#allocation11 + $0x120] sm:$0xf]  ;;  %v7099_v7 = vld [vmem:[#allocation11 + $0x12c] sm:$0xf0]  ;;  %v526_v36 = vld [vmem:[#allocation6 + $0x8] sm:$0xff] }
  0x49   :  { %1334 = vmatpush.bf16.msrb.mxu1 %v6044_v19  ;;  %v7127_v11 = vld [vmem:[#allocation11 + $0x20c] sm:$0xf0]  ;;  %v5835_v14 = vld [vmem:[#allocation11] sm:$0xf]  ;;  %v6236_v19 = vor.u32 %v7163_v5, %v6235_v2  ;;  %v5980_v20 = vor.u32 %v7099_v7, %v5979_v6  ;;  %v7117_v44 = vld [vmem:[#allocation11 + $0x1c4] sm:$0xf]  ;;  %v670_v45 = vunpack.c.h.b16 %v526_v36 }
  0x4a   :  { %1347 = vmatpush.bf16.msrb.mxu2 %v6172_v10  ;;  %v6091_v10 = vld [vmem:[#allocation11 + $0x200] sm:$0xf]  ;;  %v7063_v15 = vld [vmem:[#allocation11 + $0xc] sm:$0xf0]  ;;  %v7145_v49 = vld [vmem:[#allocation11 + $0x2a4] sm:$0xf] }
  0x4b   :  { %1360 = vmatpush.bf16.msrb.mxu3 %v6300_v18  ;;  %v6219_v16 = vld [vmem:[#allocation11 + $0x300] sm:$0xf]  ;;  %v5949_v18 = vld [vmem:[#allocation11 + $0xf0] sm:$0xf0]  ;;  %v7159_v21 = vld [vmem:[#allocation11 + $0x30c] sm:$0xf0]  ;;  %v6092_v24 = vor.u32 %v7127_v11, %v6091_v10  ;;  %v5836_v25 = vor.u32 %v7063_v15, %v5835_v14 }
  0x4c   :  { %1322 = vmatpush.bf16.msrb.mxu0 %v5900_v27  ;;  %v7095_v27 = vld [vmem:[#allocation11 + $0x10c] sm:$0xf0]  ;;  %v5952_v30 = vor.u32 %v7089_v17, %v5949_v18  ;;  %v6220_v37 = vor.u32 %v7159_v21, %v6219_v16  ;;  %v6173_v51 = vld [vmem:[#allocation11 + $0x2b0] sm:$0xf0]  ;;  %v7177_v60 = vld [vmem:[#allocation11 + $0x3a4] sm:$0xf] }
  0x4d   :  { %1335 = vmatpush.bf16.msrb.mxu1 %v6028_v39  ;;  %v669_v39 = vunpack.c.l.b16 %v526_v36  ;;  %v525_v50 = vld [vmem:[#allocation6] sm:$0xff]  ;;  %v6301_v61 = vld [vmem:[#allocation11 + $0x3b0] sm:$0xf0]  ;;  %v6176_v0 = vor.u32 %v7145_v49, %v6173_v51  ;;  %v7113_v2 = vld [vmem:[#allocation11 + $0x1a4] sm:$0xf] }
  0x4e   :  { %1348 = vmatpush.bf16.msrb.mxu2 %v6156_v26  ;;  %v5963_v26 = vld [vmem:[#allocation11 + $0x100] sm:$0xf]  ;;  %v668_v56 = vunpack.c.h.b16 %v525_v50  ;;  %v6157_v5 = vld [vmem:[#allocation11 + $0x290] sm:$0xf0]  ;;  %v7077_v6 = vld [vmem:[#allocation11 + $0x84] sm:$0xf] }
  0x4f   :  { %1361 = vmatpush.bf16.msrb.mxu3 %v6284_v38  ;;  %462 = vmatmul.bf16.gmra.mxu0 %v5692_v47  ;;  %v5964_v38 = vor.u32 %v7095_v27, %v5963_v26  ;;  %v5936_v47 = vor.u32 %v7085_v34, %v5933_v35  ;;  %v5901_v7 = vld [vmem:[#allocation11 + $0x90] sm:$0xf0]  ;;  %v7173_v10 = vld [vmem:[#allocation11 + $0x384] sm:$0xf] }
  0x50   :  { %1323 = vmatpush.bf16.msrb.mxu0 %v5884_v43  ;;  %481 = vmatmul.bf16.gmra.mxu1 %v5696_v48  ;;  %v6317_v43 = vld [vmem:[#allocation11 + $0x3d0] sm:$0xf0]  ;;  %v8278_v63 = vpack.c.b16 %v668_v56, %v668_v56  ;;  %v5904_v13 = vor.u32 %v7077_v6, %v5901_v7  ;;  %v7109_v14 = vld [vmem:[#allocation11 + $0x184] sm:$0xf]  ;;  %v7188_v7 = vld [vmem:[#allocation11 + $0x3f4] sm:$0xf0] }
  0x51   :  { %500 = vmatmul.bf16.gmra.mxu2 %v5700_v52  ;;  %1336 = vmatpush.bf16.msrb.mxu1 %v6012_v55  ;;  %v6061_v48 = vld [vmem:[#allocation11 + $0x1d0] sm:$0xf0]  ;;  %v7081_v52 = vld [vmem:[#allocation11 + $0xa4] sm:$0xf]  ;;  %v667_v55 = vunpack.c.l.b16 %v525_v50 }
  0x52   :  { %1349 = vmatpush.bf16.msrb.mxu2 %v6140_v42  ;;  %519 = vmatmul.bf16.gmra.mxu3 %v5704_v53  ;;  %v7181_v42 = vld [vmem:[#allocation11 + $0x3c4] sm:$0xf]  ;;  %v5917_v53 = vld [vmem:[#allocation11 + $0xb0] sm:$0xf0] }
  0x53   :  { %1362 = vmatpush.bf16.msrb.mxu3 %v6268_v54  ;;  %v8272_v54 = vpack.c.b16 %v669_v39, %v669_v39  ;;  %v6320_v57 = vor.u32 %v7181_v42, %v6317_v43  ;;  %v8276_v62 = vpack.c.b16 %v667_v55, %v667_v55  ;;  %v5920_v1 = vor.u32 %v7081_v52, %v5917_v53  ;;  %v6285_v11 = vld [vmem:[#allocation11 + $0x390] sm:$0xf0]  ;;  %v7137_v16 = vld [vmem:[#allocation11 + $0x264] sm:$0xf]  ;;  %v6211_v55 = vld [vmem:[#allocation11 + $0x2e8] sm:$0xf] }
  0x54   :  { %1324 = vmatpush.bf16.msrb.mxu0 %v5868_v59  ;;  %v6064_v59 = vor.u32 %v7117_v44, %v6061_v48  ;;  %v6029_v15 = vld [vmem:[#allocation11 + $0x190] sm:$0xf0]  ;;  %v7073_v18 = vld [vmem:[#allocation11 + $0x64] sm:$0xf] }
  0x55   :  { %1337 = vmatpush.bf16.msrb.mxu1 %v5996_v4  ;;  %v7141_v4 = vld [vmem:[#allocation11 + $0x284] sm:$0xf]  ;;  %v6141_v17 = vld [vmem:[#allocation11 + $0x270] sm:$0xf0]  ;;  %v6032_v21 = vor.u32 %v7109_v14, %v6029_v15  ;;  %v6195_v14 = vld [vmem:[#allocation11 + $0x2c8] sm:$0xf] }
  0x56   :  { %1350 = vmatpush.bf16.msrb.mxu2 %v6124_v58  ;;  %v8274_v58 = vpack.c.b16 %v670_v45, %v670_v45  ;;  %v6160_v12 = vor.u32 %v7141_v4, %v6157_v5  ;;  %v7169_v22 = vld [vmem:[#allocation11 + $0x364] sm:$0xf]  ;;  %v6269_v23 = vld [vmem:[#allocation11 + $0x370] sm:$0xf0]  ;;  %v6339_v4 = vld [vmem:[#allocation11 + $0x3e8] sm:$0xf] }
  0x57   :  { %1363 = vmatpush.bf16.msrb.mxu3 %v6252_v3  ;;  %v6045_v3 = vld [vmem:[#allocation11 + $0x1b0] sm:$0xf0]  ;;  %v7105_v26 = vld [vmem:[#allocation11 + $0x164] sm:$0xf]  ;;  %v6272_v32 = vor.u32 %v7169_v22, %v6269_v23  ;;  %v7152_v15 = vld [vmem:[#allocation11 + $0x2d4] sm:$0xf0] }
  0x58   :  { %1325 = vmatpush.bf16.msrb.mxu0 %v5852_v9  ;;  %v6048_v9 = vor.u32 %v7113_v2, %v6045_v3  ;;  %v6013_v27 = vld [vmem:[#allocation11 + $0x170] sm:$0xf0]  ;;  %v7133_v28 = vld [vmem:[#allocation11 + $0x244] sm:$0xf]  ;;  %v6323_v22 = vld [vmem:[#allocation11 + $0x3c8] sm:$0xf] }
  0x59   :  { %1338 = vmatpush.bf16.msrb.mxu1 %v5980_v20  ;;  %v6288_v20 = vor.u32 %v7173_v10, %v6285_v11  ;;  %v5869_v31 = vld [vmem:[#allocation11 + $0x50] sm:$0xf0]  ;;  %v6016_v33 = vor.u32 %v7105_v26, %v6013_v27  ;;  %v7165_v34 = vld [vmem:[#allocation11 + $0x344] sm:$0xf]  ;;  %v7184_v23 = vld [vmem:[#allocation11 + $0x3d4] sm:$0xf0] }
  0x5a   :  { %1351 = vmatpush.bf16.msrb.mxu2 %v6108_v8  ;;  %v6304_v8 = vor.u32 %v7177_v60, %v6301_v61  ;;  %v6253_v35 = vld [vmem:[#allocation11 + $0x350] sm:$0xf0]  ;;  %v7065_v42 = vld [vmem:[#allocation11 + $0x24] sm:$0xf]  ;;  %v5955_v60 = vld [vmem:[#allocation11 + $0xe8] sm:$0xf] }
  0x5b   :  { %1364 = vmatpush.bf16.msrb.mxu3 %v6236_v19  ;;  %v5885_v19 = vld [vmem:[#allocation11 + $0x70] sm:$0xf0]  ;;  %v6256_v44 = vor.u32 %v7165_v34, %v6253_v35  ;;  %v7097_v48 = vld [vmem:[#allocation11 + $0x124] sm:$0xf]  ;;  %v7092_v61 = vld [vmem:[#allocation11 + $0xf4] sm:$0xf0] }
  0x5c   :  { %1326 = vmatpush.bf16.msrb.mxu0 %v5836_v25  ;;  %v5888_v25 = vor.u32 %v7073_v18, %v5885_v19  ;;  %v5997_v39 = vld [vmem:[#allocation11 + $0x150] sm:$0xf0]  ;;  %v7125_v52 = vld [vmem:[#allocation11 + $0x204] sm:$0xf]  ;;  %v5956_v11 = vor.u32 %v7092_v61, %v5955_v60  ;;  %v6067_v26 = vld [vmem:[#allocation11 + $0x1c8] sm:$0xf] }
  0x5d   :  { %1339 = vmatpush.bf16.msrb.mxu1 %v5964_v38  ;;  %v7101_v38 = vld [vmem:[#allocation11 + $0x144] sm:$0xf]  ;;  %v5853_v43 = vld [vmem:[#allocation11 + $0x30] sm:$0xf0]  ;;  %v7120_v27 = vld [vmem:[#allocation11 + $0x1d4] sm:$0xf0] }
  0x5e   :  { %1352 = vmatpush.bf16.msrb.mxu2 %v6092_v24  ;;  %v6144_v24 = vor.u32 %v7137_v16, %v6141_v17  ;;  %v6000_v45 = vor.u32 %v7101_v38, %v5997_v39  ;;  %v5856_v50 = vor.u32 %v7065_v42, %v5853_v43  ;;  %v5981_v51 = vld [vmem:[#allocation11 + $0x130] sm:$0xf0]  ;;  %v7061_v56 = vld [vmem:[#allocation11 + $0x4] sm:$0xf]  ;;  %v5939_v16 = vld [vmem:[#allocation11 + $0xc8] sm:$0xf] }
  0x5f   :  { %1365 = vmatpush.bf16.msrb.mxu3 %v6220_v37  ;;  %1327 = vmatmul.bf16.vlgmr.msrb.gmra.mxu0 %v8276_v62  ;;  %v6093_v53 = vld [vmem:[#allocation11 + $0x210] sm:$0xf0]  ;;  %v7157_v2 = vld [vmem:[#allocation11 + $0x304] sm:$0xf]  ;;  %v7088_v17 = vld [vmem:[#allocation11 + $0xd4] sm:$0xf0] }
  0x60   :  { %1371 = vmatpush.bf16.msra.mxu0 %v5952_v30  ;;  %1340 = vmatmul.bf16.vlgmr.msrb.gmra.mxu1 %v8278_v63  ;;  %v7069_v30 = vld [vmem:[#allocation11 + $0x44] sm:$0xf]  ;;  %v6221_v3 = vld [vmem:[#allocation11 + $0x310] sm:$0xf0]  ;;  %v6096_v5 = vor.u32 %v7125_v52, %v6093_v53  ;;  %v6051_v39 = vld [vmem:[#allocation11 + $0x1a8] sm:$0xf] }
  0x61   :  { %1384 = vmatpush.bf16.msra.mxu1 %v6080_v41  ;;  %1353 = vmatmul.bf16.vlgmr.msrb.gmra.mxu2 %v8272_v54  ;;  %v5872_v37 = vor.u32 %v7069_v30, %v5869_v31  ;;  %v6109_v41 = vld [vmem:[#allocation11 + $0x230] sm:$0xf0]  ;;  %v6224_v18 = vor.u32 %v7157_v2, %v6221_v3  ;;  %v5923_v30 = vld [vmem:[#allocation11 + $0xa8] sm:$0xf]  ;;  %v7084_v31 = vld [vmem:[#allocation11 + $0xb4] sm:$0xf0] }
  0x62   :  { %1397 = vmatpush.bf16.msra.mxu2 %v6208_v29  ;;  %1366 = vmatmul.bf16.vlgmr.msrb.gmra.mxu3 %v8274_v58  ;;  %v6125_v29 = vld [vmem:[#allocation11 + $0x250] sm:$0xf0]  ;;  %v5924_v35 = vor.u32 %v7084_v31, %v5923_v30  ;;  %v7144_v43 = vld [vmem:[#allocation11 + $0x294] sm:$0xf0]  ;;  %v6147_v53 = vld [vmem:[#allocation11 + $0x268] sm:$0xf] }
  0x63   :  { %1410 = vmatpush.bf16.msra.mxu3 %v6336_v40  ;;  %v6128_v36 = vor.u32 %v7133_v28, %v6125_v29  ;;  %v7129_v40 = vld [vmem:[#allocation11 + $0x224] sm:$0xf]  ;;  %v6179_v28 = vld [vmem:[#allocation11 + $0x2a8] sm:$0xf]  ;;  %v7148_v29 = vld [vmem:[#allocation11 + $0x2b4] sm:$0xf0] }
  0x64   :  { %1372 = vmatpush.bf16.msra.mxu0 %v5936_v47  ;;  %v6237_v47 = vld [vmem:[#allocation11 + $0x330] sm:$0xf0]  ;;  %v6112_v49 = vor.u32 %v7129_v40, %v6109_v41  ;;  %v6180_v34 = vor.u32 %v7148_v29, %v6179_v28  ;;  %v7116_v40 = vld [vmem:[#allocation11 + $0x1b4] sm:$0xf0]  ;;  %v6163_v41 = vld [vmem:[#allocation11 + $0x288] sm:$0xf] }
  0x65   :  { %1385 = vmatpush.bf16.msra.mxu1 %v6064_v59  ;;  %v7156_v59 = vld [vmem:[#allocation11 + $0x2f4] sm:$0xf0]  ;;  %v6052_v42 = vor.u32 %v7116_v40, %v6051_v39  ;;  %v6275_v61 = vld [vmem:[#allocation11 + $0x368] sm:$0xf] }
  0x66   :  { %1398 = vmatpush.bf16.msra.mxu2 %v6192_v46  ;;  %v7161_v46 = vld [vmem:[#allocation11 + $0x324] sm:$0xf]  ;;  %v6212_v10 = vor.u32 %v7156_v59, %v6211_v55  ;;  %v7112_v52 = vld [vmem:[#allocation11 + $0x194] sm:$0xf0]  ;;  %v5891_v59 = vld [vmem:[#allocation11 + $0x68] sm:$0xf] }
  0x67   :  { %1411 = vmatpush.bf16.msra.mxu3 %v6320_v57  ;;  %v5837_v57 = vld [vmem:[#allocation11 + $0x10] sm:$0xf0]  ;;  %v7076_v60 = vld [vmem:[#allocation11 + $0x74] sm:$0xf0]  ;;  %v6019_v3 = vld [vmem:[#allocation11 + $0x168] sm:$0xf] }
  0x68   :  { %1373 = vmatpush.bf16.msra.mxu0 %v5920_v1  ;;  %v5984_v1 = vor.u32 %v7097_v48, %v5981_v51  ;;  %v5840_v6 = vor.u32 %v7061_v56, %v5837_v57  ;;  %v6035_v51 = vld [vmem:[#allocation11 + $0x188] sm:$0xf]  ;;  %v7140_v56 = vld [vmem:[#allocation11 + $0x274] sm:$0xf0] }
  0x69   :  { %1386 = vmatpush.bf16.msra.mxu1 %v6048_v9  ;;  %v5965_v9 = vld [vmem:[#allocation11 + $0x110] sm:$0xf0]  ;;  %v6036_v55 = vor.u32 %v7112_v52, %v6035_v51  ;;  %v6148_v57 = vor.u32 %v7140_v56, %v6147_v53  ;;  %v7100_v28 = vld [vmem:[#allocation11 + $0x134] sm:$0xf0]  ;;  %v6099_v29 = vld [vmem:[#allocation11 + $0x208] sm:$0xf] }
  0x6a   :  { %1399 = vmatpush.bf16.msra.mxu2 %v6176_v0  ;;  %v6240_v0 = vor.u32 %v7161_v46, %v6237_v47  ;;  %v7080_v46 = vld [vmem:[#allocation11 + $0x94] sm:$0xf0]  ;;  %v6291_v47 = vld [vmem:[#allocation11 + $0x388] sm:$0xf]  ;;  %v6085_v51 = vld [vmem:[#allocation11 + $0x1f8] sm:$0xf0] }
  0x6b   :  { %1412 = vmatpush.bf16.msra.mxu3 %v6304_v8  ;;  %v7093_v8 = vld [vmem:[#allocation11 + $0x104] sm:$0xf]  ;;  %v7128_v31 = vld [vmem:[#allocation11 + $0x214] sm:$0xf0]  ;;  %v6197_v56 = vld [vmem:[#allocation11 + $0x2d8] sm:$0xf0] }
  0x6c   :  { %1374 = vmatpush.bf16.msra.mxu0 %v5904_v13  ;;  %v7124_v13 = vld [vmem:[#allocation11 + $0x1f4] sm:$0xf0]  ;;  %v5968_v19 = vor.u32 %v7093_v8, %v5965_v9  ;;  %v5875_v9 = vld [vmem:[#allocation11 + $0x48] sm:$0xf] }
  0x6d   :  { %1387 = vmatpush.bf16.msra.mxu1 %v6032_v21  ;;  %v7160_v40 = vld [vmem:[#allocation11 + $0x314] sm:$0xf0] }
  0x6e   :  { %1400 = vmatpush.bf16.msra.mxu2 %v6160_v12  ;;  %v6083_v12 = vld [vmem:[#allocation11 + $0x1e8] sm:$0xf] }
  0x6f   :  { %1413 = vmatpush.bf16.msra.mxu3 %v6288_v20  ;;  %v6340_v20 = vor.u32 %v7188_v7, %v6339_v4  ;;  %v6084_v21 = vor.u32 %v7124_v13, %v6083_v12  ;;  %v7108_v4 = vld [vmem:[#allocation11 + $0x174] sm:$0xf0] }
  0x70   :  { %1375 = vmatpush.bf16.msra.mxu0 %v5888_v25  ;;  %v5940_v25 = vor.u32 %v7088_v17, %v5939_v16  ;;  %v7136_v7 = vld [vmem:[#allocation11 + $0x254] sm:$0xf0]  ;;  %v6115_v17 = vld [vmem:[#allocation11 + $0x228] sm:$0xf] }
  0x71   :  { %1388 = vmatpush.bf16.msra.mxu1 %v6016_v33  ;;  %v6068_v33 = vor.u32 %v7120_v27, %v6067_v26  ;;  %v7168_v13 = vld [vmem:[#allocation11 + $0x354] sm:$0xf0]  ;;  %v5987_v27 = vld [vmem:[#allocation11 + $0x128] sm:$0xf] }
  0x72   :  { %1401 = vmatpush.bf16.msra.mxu2 %v6144_v24  ;;  %v6196_v24 = vor.u32 %v7152_v15, %v6195_v14  ;;  %v6003_v15 = vld [vmem:[#allocation11 + $0x148] sm:$0xf]  ;;  %v7104_v16 = vld [vmem:[#allocation11 + $0x154] sm:$0xf0]  ;;  %v5988_v30 = vor.u32 %v7100_v28, %v5987_v27  ;;  %v7110_v28 = vld [vmem:[#allocation11 + $0x18c] sm:$0xf] }
  0x73   :  { %1414 = vmatpush.bf16.msra.mxu3 %v6272_v32  ;;  %v6324_v32 = vor.u32 %v7184_v23, %v6323_v22  ;;  %v7068_v22 = vld [vmem:[#allocation11 + $0x34] sm:$0xf0]  ;;  %v6243_v23 = vld [vmem:[#allocation11 + $0x328] sm:$0xf] }
  0x74   :  { %1376 = vmatpush.bf16.msra.mxu0 %v5872_v37  ;;  %v7180_v37 = vld [vmem:[#allocation11 + $0x3b4] sm:$0xf0] }
  0x75   :  { %1389 = vmatpush.bf16.msra.mxu1 %v6000_v45  ;;  %v5907_v45 = vld [vmem:[#allocation11 + $0x88] sm:$0xf] }
  0x76   :  { %1402 = vmatpush.bf16.msra.mxu2 %v6128_v36  ;;  %v6307_v36 = vld [vmem:[#allocation11 + $0x3a8] sm:$0xf]  ;;  %v5908_v48 = vor.u32 %v7080_v46, %v5907_v45  ;;  %v7186_v45 = vld [vmem:[#allocation11 + $0x3ec] sm:$0xf]  ;;  %v6341_v46 = vld [vmem:[#allocation11 + $0x3f8] sm:$0xf0] }
  0x77   :  { %1415 = vmatpush.bf16.msra.mxu3 %v6256_v44  ;;  %v6308_v38 = vor.u32 %v7180_v37, %v6307_v36  ;;  %v6164_v44 = vor.u32 %v7144_v43, %v6163_v41  ;;  %v5843_v36 = vld [vmem:[#allocation11 + $0x8] sm:$0xf]  ;;  %v7064_v37 = vld [vmem:[#allocation11 + $0x14] sm:$0xf0]  ;;  %v7090_v41 = vld [vmem:[#allocation11 + $0xec] sm:$0xf] }
  0x78   :  { %1377 = vmatpush.bf16.msra.mxu0 %v5856_v50  ;;  %v5844_v39 = vor.u32 %v7064_v37, %v5843_v36  ;;  %v5893_v36 = vld [vmem:[#allocation11 + $0x78] sm:$0xf0] }
  0x79   :  { %1390 = vmatpush.bf16.msra.mxu1 %v5984_v1  ;;  %v7172_v1 = vld [vmem:[#allocation11 + $0x374] sm:$0xf0] }
  0x7a   :  { %1403 = vmatpush.bf16.msra.mxu2 %v6112_v49  ;;  %v7176_v49 = vld [vmem:[#allocation11 + $0x394] sm:$0xf0]  ;;  %v6276_v2 = vor.u32 %v7172_v1, %v6275_v61  ;;  %v7182_v61 = vld [vmem:[#allocation11 + $0x3cc] sm:$0xf]  ;;  %v6325_v1 = vld [vmem:[#allocation11 + $0x3d8] sm:$0xf0] }
  0x7b   :  { %1416 = vmatpush.bf16.msra.mxu3 %v6240_v0  ;;  %v6292_v50 = vor.u32 %v7176_v49, %v6291_v47  ;;  %v5892_v0 = vor.u32 %v7076_v60, %v5891_v59  ;;  %v5971_v47 = vld [vmem:[#allocation11 + $0x108] sm:$0xf]  ;;  %v7096_v49 = vld [vmem:[#allocation11 + $0x114] sm:$0xf0]  ;;  %v7086_v59 = vld [vmem:[#allocation11 + $0xcc] sm:$0xf] }
  0x7c   :  { %1378 = vmatpush.bf16.msra.mxu0 %v5840_v6  ;;  %v6020_v6 = vor.u32 %v7108_v4, %v6019_v3  ;;  %v5972_v52 = vor.u32 %v7096_v49, %v5971_v47  ;;  %v5941_v60 = vld [vmem:[#allocation11 + $0xd8] sm:$0xf0]  ;;  %v7118_v3 = vld [vmem:[#allocation11 + $0x1cc] sm:$0xf] }
  0x7d   :  { %1391 = vmatpush.bf16.msra.mxu1 %v5968_v19  ;;  %v7132_v19 = vld [vmem:[#allocation11 + $0x234] sm:$0xf0]  ;;  %v6069_v4 = vld [vmem:[#allocation11 + $0x1d8] sm:$0xf0]  ;;  %v7070_v49 = vld [vmem:[#allocation11 + $0x4c] sm:$0xf] }
  0x7e   :  { %1404 = vmatpush.bf16.msra.mxu2 %v6096_v5  ;;  %v6131_v5 = vld [vmem:[#allocation11 + $0x248] sm:$0xf] }
  0x7f   :  { %1417 = vmatpush.bf16.msra.mxu3 %v6224_v18  ;;  %1379 = vmatmul.bf16.vlgmr.msra.gmra.mxu0 %v8276_v62  ;;  %v6132_v8 = vor.u32 %v7136_v7, %v6131_v5  ;;  %v6004_v18 = vor.u32 %v7104_v16, %v6003_v15  ;;  %v7146_v5 = vld [vmem:[#allocation11 + $0x2ac] sm:$0xf]  ;;  %v6181_v7 = vld [vmem:[#allocation11 + $0x2b8] sm:$0xf0] }
  0x80   :  { %1423 = vmatpush.bf16.msrb.mxu0 %v5956_v11  ;;  %1392 = vmatmul.bf16.vlgmr.msra.gmra.mxu1 %v8278_v63  ;;  %v6259_v11 = vld [vmem:[#allocation11 + $0x348] sm:$0xf]  ;;  %v7114_v15 = vld [vmem:[#allocation11 + $0x1ac] sm:$0xf]  ;;  %v6053_v16 = vld [vmem:[#allocation11 + $0x1b8] sm:$0xf0] }
  0x81   :  { %1436 = vmatpush.bf16.msrb.mxu1 %v6084_v21  ;;  %1405 = vmatmul.bf16.vlgmr.msra.gmra.mxu2 %v8272_v54  ;;  %v6260_v14 = vor.u32 %v7168_v13, %v6259_v11  ;;  %v5859_v21 = vld [vmem:[#allocation11 + $0x28] sm:$0xf]  ;;  %v7178_v11 = vld [vmem:[#allocation11 + $0x3ac] sm:$0xf]  ;;  %v6309_v13 = vld [vmem:[#allocation11 + $0x3b8] sm:$0xf0] }
  0x82   :  { %1449 = vmatpush.bf16.msrb.mxu2 %v6212_v10  ;;  %1418 = vmatmul.bf16.vlgmr.msra.gmra.mxu3 %v8274_v58  ;;  %v7072_v10 = vld [vmem:[#allocation11 + $0x54] sm:$0xf0] }
  0x83   :  { %1462 = vmatpush.bf16.msrb.mxu3 %v6340_v20  ;;  %v5876_v12 = vor.u32 %v7072_v10, %v5875_v9  ;;  %v6116_v20 = vor.u32 %v7132_v19, %v6115_v17  ;;  %v7082_v9 = vld [vmem:[#allocation11 + $0xac] sm:$0xf]  ;;  %v5925_v10 = vld [vmem:[#allocation11 + $0xb8] sm:$0xf0]  ;;  %v6056_v19 = vor.u32 %v7114_v15, %v6053_v16 }
  0x84   :  { %1424 = vmatpush.bf16.msrb.mxu0 %v5940_v25  ;;  %v7164_v25 = vld [vmem:[#allocation11 + $0x334] sm:$0xf0]  ;;  %v7142_v17 = vld [vmem:[#allocation11 + $0x28c] sm:$0xf]  ;;  %v6101_v16 = vld [vmem:[#allocation11 + $0x218] sm:$0xf0] }
  0x85   :  { %1437 = vmatpush.bf16.msrb.mxu1 %v6068_v33  ;;  %v6244_v26 = vor.u32 %v7164_v25, %v6243_v23  ;;  %v6213_v33 = vld [vmem:[#allocation11 + $0x2f8] sm:$0xf0]  ;;  %v7126_v15 = vld [vmem:[#allocation11 + $0x20c] sm:$0xf] }
  0x86   :  { %1450 = vmatpush.bf16.msrb.mxu2 %v6196_v24  ;;  %v5860_v24 = vor.u32 %v7068_v22, %v5859_v21  ;;  %v7078_v22 = vld [vmem:[#allocation11 + $0x8c] sm:$0xf]  ;;  %v5909_v23 = vld [vmem:[#allocation11 + $0x98] sm:$0xf0] }
  0x87   :  { %1463 = vmatpush.bf16.msrb.mxu3 %v6324_v32  ;;  %v7154_v32 = vld [vmem:[#allocation11 + $0x2ec] sm:$0xf]  ;;  %v5912_v25 = vor.u32 %v7078_v22, %v5909_v23  ;;  %v6229_v23 = vld [vmem:[#allocation11 + $0x318] sm:$0xf0] }
  0x88   :  { %1425 = vmatpush.bf16.msrb.mxu0 %v5924_v35  ;;  %v6216_v35 = vor.u32 %v7154_v32, %v6213_v33  ;;  %v7158_v22 = vld [vmem:[#allocation11 + $0x30c] sm:$0xf] }
  0x89   :  { %1438 = vmatpush.bf16.msrb.mxu1 %v6052_v42  ;;  %v5957_v42 = vld [vmem:[#allocation11 + $0xf8] sm:$0xf0] }
  0x8a   :  { %1451 = vmatpush.bf16.msrb.mxu2 %v6180_v34  ;;  %v6100_v34 = vor.u32 %v7128_v31, %v6099_v29  ;;  %v6037_v29 = vld [vmem:[#allocation11 + $0x198] sm:$0xf0] }
  0x8b   :  { %1464 = vmatpush.bf16.msrb.mxu3 %v6308_v38  ;;  %v6227_v38 = vld [vmem:[#allocation11 + $0x308] sm:$0xf]  ;;  %v6040_v33 = vor.u32 %v7110_v28, %v6037_v29  ;;  %v5973_v28 = vld [vmem:[#allocation11 + $0x118] sm:$0xf0]  ;;  %v6232_v29 = vor.u32 %v7158_v22, %v6229_v23 }
  0x8c   :  { %1426 = vmatpush.bf16.msrb.mxu0 %v5908_v48  ;;  %v6228_v43 = vor.u32 %v7160_v40, %v6227_v38  ;;  %v6344_v48 = vor.u32 %v7186_v45, %v6341_v46  ;;  %v7170_v40 = vld [vmem:[#allocation11 + $0x36c] sm:$0xf] }
  0x8d   :  { %1439 = vmatpush.bf16.msrb.mxu1 %v6036_v55  ;;  %v7150_v55 = vld [vmem:[#allocation11 + $0x2cc] sm:$0xf] }
  0x8e   :  { %1452 = vmatpush.bf16.msrb.mxu2 %v6164_v44  ;;  %v5960_v44 = vor.u32 %v7090_v41, %v5957_v42  ;;  %v6277_v41 = vld [vmem:[#allocation11 + $0x378] sm:$0xf0]  ;;  %v7134_v45 = vld [vmem:[#allocation11 + $0x24c] sm:$0xf] }
  0x8f   :  { %1465 = vmatpush.bf16.msrb.mxu3 %v6292_v50  ;;  %v7122_v50 = vld [vmem:[#allocation11 + $0x1ec] sm:$0xf]  ;;  %v6280_v42 = vor.u32 %v7170_v40, %v6277_v41 }
  0x90   :  { %1427 = vmatpush.bf16.msrb.mxu0 %v5892_v0  ;;  %v6088_v53 = vor.u32 %v7122_v50, %v6085_v51  ;;  %v5944_v0 = vor.u32 %v7086_v59, %v5941_v60  ;;  %v5877_v50 = vld [vmem:[#allocation11 + $0x58] sm:$0xf0]  ;;  %v7130_v60 = vld [vmem:[#allocation11 + $0x22c] sm:$0xf] }
  0x91   :  { %1440 = vmatpush.bf16.msrb.mxu1 %v6020_v6  ;;  %v6072_v6 = vor.u32 %v7118_v3, %v6069_v4  ;;  %v6005_v59 = vld [vmem:[#allocation11 + $0x158] sm:$0xf0]  ;;  %v7066_v4 = vld [vmem:[#allocation11 + $0x2c] sm:$0xf] }
  0x92   :  { %1453 = vmatpush.bf16.msrb.mxu2 %v6148_v57  ;;  %v6200_v57 = vor.u32 %v7150_v55, %v6197_v56  ;;  %v6261_v55 = vld [vmem:[#allocation11 + $0x358] sm:$0xf0]  ;;  %v7102_v56 = vld [vmem:[#allocation11 + $0x14c] sm:$0xf] }
  0x93   :  { %1466 = vmatpush.bf16.msrb.mxu3 %v6276_v2  ;;  %v6328_v2 = vor.u32 %v7182_v61, %v6325_v1  ;;  %v6117_v61 = vld [vmem:[#allocation11 + $0x238] sm:$0xf0] }
  0x94   :  { %1428 = vmatpush.bf16.msrb.mxu0 %v5876_v12  ;;  %v5928_v12 = vor.u32 %v7082_v9, %v5925_v10  ;;  %v6120_v3 = vor.u32 %v7130_v60, %v6117_v61 }
  0x95   :  { %1441 = vmatpush.bf16.msrb.mxu1 %v6004_v18  ;;  %v8295_v18 = vld [vmem:[%s11026_s4] ss:$0 sm:$0xff] }
  0x96   :  { %1454 = vmatpush.bf16.msrb.mxu2 %v6132_v8  ;;  %v6184_v8 = vor.u32 %v7146_v5, %v6181_v7  ;;  %v5861_v5 = vld [vmem:[#allocation11 + $0x38] sm:$0xf0] }
  0x97   :  { %1467 = vmatpush.bf16.msrb.mxu3 %v6260_v14  ;;  %v6312_v14 = vor.u32 %v7178_v11, %v6309_v13  ;;  %v5864_v10 = vor.u32 %v7066_v4, %v5861_v5  ;;  %v6245_v11 = vld [vmem:[#allocation11 + $0x338] sm:$0xf0] }
  0x98   :  { %1429 = vmatpush.bf16.msrb.mxu0 %v5860_v24  ;;  %v7174_v24 = vld [vmem:[#allocation11 + $0x38c] sm:$0xf]  ;;  %v5989_v13 = vld [vmem:[#allocation11 + $0x138] sm:$0xf0] }
  0x99   :  { %1442 = vmatpush.bf16.msrb.mxu1 %v5988_v30  ;;  %v7138_v30 = vld [vmem:[#allocation11 + $0x26c] sm:$0xf] }
  0x9a   :  { %1455 = vmatpush.bf16.msrb.mxu2 %v6116_v20  ;;  %v6165_v20 = vld [vmem:[#allocation11 + $0x298] sm:$0xf0] }
  0x9b   :  { %1468 = vmatpush.bf16.msrb.mxu3 %v6244_v26  ;;  %v6168_v21 = vor.u32 %v7142_v17, %v6165_v20  ;;  %v6293_v26 = vld [vmem:[#allocation11 + $0x398] sm:$0xf0]  ;;  %v7062_v17 = vld [vmem:[#allocation11 + $0xc] sm:$0xf] }
  0x9c   :  { %1430 = vmatpush.bf16.msrb.mxu0 %v5844_v39  ;;  %v6296_v27 = vor.u32 %v7174_v24, %v6293_v26 }
  0x9d   :  { %1443 = vmatpush.bf16.msrb.mxu1 %v5972_v52  ;;  %v5880_v52 = vor.u32 %v7070_v49, %v5877_v50 }
  0x9e   :  { %1456 = vmatpush.bf16.msrb.mxu2 %v6100_v34  ;;  %v6149_v34 = vld [vmem:[#allocation11 + $0x278] sm:$0xf0] }
  0x9f   :  { %1469 = vmatpush.bf16.msrb.mxu3 %v6228_v43  ;;  %1431 = vmatmul.bf16.vlgmr.msrb.gmra.mxu0 %v8276_v62  ;;  %v6152_v38 = vor.u32 %v7138_v30, %v6149_v34  ;;  %v7106_v43 = vld [vmem:[#allocation11 + $0x16c] sm:$0xf] }
  0xa0   :  { %1475 = vmatpush.bf16.msra.mxu0 %v5960_v44  ;;  %1444 = vmatmul.bf16.vlgmr.msrb.gmra.mxu1 %v8278_v63  ;;  %v6021_v44 = vld [vmem:[#allocation11 + $0x178] sm:$0xf0] }
  0xa1   :  { %1457 = vmatmul.bf16.vlgmr.msrb.gmra.mxu2 %v8272_v54  ;;  %1488 = vmatpush.bf16.msra.mxu1 %v6088_v53  ;;  %v6024_v47 = vor.u32 %v7106_v43, %v6021_v44  ;;  %v7166_v53 = vld [vmem:[#allocation11 + $0x34c] sm:$0xf] }
  0xa2   :  { %1501 = vmatpush.bf16.msra.mxu2 %v6216_v35  ;;  %1470 = vmatmul.bf16.vlgmr.msrb.gmra.mxu3 %v8274_v58  ;;  %v7074_v35 = vld [vmem:[#allocation11 + $0x6c] sm:$0xf] }
  0xa3   :  { %1514 = vmatpush.bf16.msra.mxu3 %v6344_v48  ;;  %v5896_v39 = vor.u32 %v7074_v35, %v5893_v36  ;;  %v6133_v48 = vld [vmem:[#allocation11 + $0x258] sm:$0xf0] }
  0xa4   :  { %1476 = vmatpush.bf16.msra.mxu0 %v5944_v0  ;;  %v6136_v51 = vor.u32 %v7134_v45, %v6133_v48 }
  0xa5   :  { %1489 = vmatpush.bf16.msra.mxu1 %v6072_v6  ;;  %v7162_v6 = vld [vmem:[#allocation11 + $0x32c] sm:$0xf] }
  0xa6   :  { %1502 = vmatpush.bf16.msra.mxu2 %v6200_v57  ;;  %v6264_v57 = vor.u32 %v7166_v53, %v6261_v55 }
  0xa7   :  { %1515 = vmatpush.bf16.msra.mxu3 %v6328_v2  ;;  %v6008_v2 = vor.u32 %v7102_v56, %v6005_v59 }
  0xa8   :  { %1477 = vmatpush.bf16.msra.mxu0 %v5928_v12  ;;  %v7098_v12 = vld [vmem:[#allocation11 + $0x12c] sm:$0xf] }
  0xa9   :  { %1490 = vmatpush.bf16.msra.mxu1 %v6056_v19  ;;  %v5992_v24 = vor.u32 %v7098_v12, %v5989_v13 }
  0xaa   :  { %1503 = vmatpush.bf16.msra.mxu2 %v6184_v8 }
  0xab   :  { %1516 = vmatpush.bf16.msra.mxu3 %v6312_v14  ;;  %v6248_v14 = vor.u32 %v7162_v6, %v6245_v11 }
  0xac   :  { %1478 = vmatpush.bf16.msra.mxu0 %v5912_v25  ;;  %v6104_v25 = vor.u32 %v7126_v15, %v6101_v16 }
  0xad   :  { %1491 = vmatpush.bf16.msra.mxu1 %v6040_v33 }
  0xae   :  { %1504 = vmatpush.bf16.msra.mxu2 %v6168_v21  ;;  %v5845_v21 = vld [vmem:[#allocation11 + $0x18] sm:$0xf0] }
  0xaf   :  { %1517 = vmatpush.bf16.msra.mxu3 %v6296_v27  ;;  %v5848_v26 = vor.u32 %v7062_v17, %v5845_v21  ;;  %v7094_v27 = vld [vmem:[#allocation11 + $0x10c] sm:$0xf] }
  0xb0   :  { %1479 = vmatpush.bf16.msra.mxu0 %v5896_v39  ;;  %v5976_v33 = vor.u32 %v7094_v27, %v5973_v28 }
  0xb1   :  { %1492 = vmatpush.bf16.msra.mxu1 %v6024_v47 }
  0xb2   :  { %1505 = vmatpush.bf16.msra.mxu2 %v6152_v38 }
  0xb3   :  { %1518 = vmatpush.bf16.msra.mxu3 %v6280_v42 }
  0xb4   :  { %1480 = vmatpush.bf16.msra.mxu0 %v5880_v52 }
  0xb5   :  { %1493 = vmatpush.bf16.msra.mxu1 %v6008_v2 }
  0xb6   :  { %1506 = vmatpush.bf16.msra.mxu2 %v6136_v51 }
  0xb7   :  { %1519 = vmatpush.bf16.msra.mxu3 %v6264_v57 }
  0xb8   :  { %1481 = vmatpush.bf16.msra.mxu0 %v5864_v10 }
  0xb9   :  { %1494 = vmatpush.bf16.msra.mxu1 %v5992_v24 }
  0xba   :  { %1507 = vmatpush.bf16.msra.mxu2 %v6120_v3 }
  0xbb   :  { %1520 = vmatpush.bf16.msra.mxu3 %v6248_v14 }
  0xbc   :  { %v458_v31 = vpop.f32.mrf.mxu0  ;;  %1482 = vmatpush.bf16.msra.mxu0 %v5848_v26 }
  0xbd   :  { %v477_v32 = vpop.f32.mrf.mxu1  ;;  %v459_v37 = vadd.f32 %v8295_v18, %v458_v31  ;;  %1495 = vmatpush.bf16.msra.mxu1 %v5976_v33 }
  0xbe   :  { %1508 = vmatpush.bf16.msra.mxu2 %v6104_v25 }
  0xbf   :  { %v478_v46 = vadd.f32 %v477_v32, %v459_v37  ;;  %1521 = vmatpush.bf16.msra.mxu3 %v6232_v29  ;;  %1483 = vmatmul.bf16.vlgmr.msra.gmra.mxu0 %v8276_v62 }
  0xc0   :  { %1496 = vmatmul.bf16.vlgmr.msra.gmra.mxu1 %v8278_v63 }
  0xc1   :  { %1509 = vmatmul.bf16.vlgmr.msra.gmra.mxu2 %v8272_v54  ;;  %v8308_v54 = vld [vmem:[%s11028_s6] sm:$0xf]  ;;  %s8197_s6 = smov 120  }
  0xc2   :  { %1522 = vmatmul.bf16.vlgmr.msra.gmra.mxu3 %v8274_v58  ;;  %v657_v47 = vperm.slane %v8308_v54, 0  ;;  %v658_v3 = vperm.slane %v8308_v54, 1 }
  0xc4   :  { %v496_v0 = vpop.f32.mrf.mxu2  ;;  %v460_v8 = vpop.f32.mrf.mxu0 }
  0xc5   :  { %v515_v1 = vpop.f32.mrf.mxu3  ;;  %v497_v7 = vadd.f32 %v496_v0, %v478_v46  ;;  %v479_v9 = vpop.f32.mrf.mxu1  ;;  %v461_v19 = vadd.f32 %v8295_v18, %v460_v8 }
  0xc7   :  { %v516_v20 = vadd.f32 %v515_v1, %v497_v7  ;;  %v480_v30 = vadd.f32 %v479_v9, %v461_v19  ;;  %v659_v19 = vperm.slane %v8308_v54, 2 }
  0xc9   :  { %1531 = vxpose.xlu0.b32.start [1/4] (short) %v516_v20, 128 }
  0xcc   :  { %v498_v31 = vpop.f32.mrf.mxu2  ;;  %v463_v35 = vpop.f32.mrf.mxu0 }
  0xcd   :  { %v517_v32 = vpop.f32.mrf.mxu3  ;;  %v499_v34 = vadd.f32 %v498_v31, %v480_v30  ;;  %v482_v36 = vpop.f32.mrf.mxu1  ;;  %v464_v37 = vadd.f32 %v8295_v18, %v463_v35 }
  0xcf   :  { %v518_v38 = vadd.f32 %v517_v32, %v499_v34  ;;  %v483_v39 = vadd.f32 %v482_v36, %v464_v37  ;;  %v660_v34 = vperm.slane %v8308_v54, 3 }
  0xd1   :  { %1532 = vxpose.xlu0.b32.cont [2/4] (short) %v518_v38, 128 }
  0xd4   :  { %v501_v40 = vpop.f32.mrf.mxu2  ;;  %v465_v43 = vpop.f32.mrf.mxu0 }
  0xd5   :  { %v520_v41 = vpop.f32.mrf.mxu3  ;;  %v502_v42 = vadd.f32 %v501_v40, %v483_v39  ;;  %v466_v45 = vadd.f32 %v8295_v18, %v465_v43  ;;  %v484_v46 = vpop.f32.mrf.mxu1 }
  0xd7   :  { %v521_v44 = vadd.f32 %v520_v41, %v502_v42  ;;  %v485_v62 = vadd.f32 %v484_v46, %v466_v45 }
  0xd9   :  { %1533 = vxpose.xlu0.b32.cont [3/4] (short) %v521_v44, 128 }
  0xdc   :  { %v503_v58 = vpop.f32.mrf.mxu2  ;;  %v1328_v49 = vpop.f32.mrf.mxu0 }
  0xdd   :  { %v504_v48 = vadd.f32 %v503_v58, %v485_v62  ;;  %v522_v63 = vpop.f32.mrf.mxu3  ;;  %v1329_v51 = vadd.f32 %v1328_v49, %v657_v47  ;;  %v1341_v52 = vpop.f32.mrf.mxu1 }
  0xdf   :  { %v523_v50 = vadd.f32 %v522_v63, %v504_v48  ;;  %v1342_v53 = vadd.f32 %v1341_v52, %v1329_v51 }
  0xe1   :  { %1534 = vxpose.xlu0.b32.end [4/4] (short) %v523_v50, 128 }
  0xe4   :  { %v1354_v18 = vpop.f32.mrf.mxu2  ;;  %v1330_v57 = vpop.f32.mrf.mxu0 }
  0xe5   :  { %v1355_v55 = vadd.f32 %v1354_v18, %v1342_v53  ;;  %v1367_v56 = vpop.f32.mrf.mxu3  ;;  %v1343_v60 = vpop.f32.mrf.mxu1 }
  0xe7   :  { %v1368_v59 = vadd.f32 %v1367_v56, %v1355_v55 }
  0xe9   :  { %v1527_v61 = vpack.c.bf16 %v1368_v59, %v1368_v59 }
  0xeb   :  { %v8312_v0 = vsel %vm1644_vm0, %v1527_v61, 0 }
  0xec   :  { %v1356_v1 = vpop.f32.mrf.mxu2  ;;  %1664 = vmatpush.bf16.msrb.mxu0 %v8312_v0 }
  0xed   :  { %v1369_v2 = vpop.f32.mrf.mxu3 }
  0xf0   :  { %2396 = vmatpush.bf16.msra.mxu0 %v8312_v0 }
  0xfc   :  { %v1380_v4 = vpop.f32.mrf.mxu0 }
  0xfd   :  { %v1381_v5 = vadd.f32 %v1380_v4, %v658_v3  ;;  %v1393_v6 = vpop.f32.mrf.mxu1 }
  0xff   :  { %v1394_v7 = vadd.f32 %v1393_v6, %v1381_v5 }
 0x104   :  { %v1406_v8 = vpop.f32.mrf.mxu2  ;;  %v1382_v11 = vpop.f32.mrf.mxu0 }
 0x105   :  { %v1407_v9 = vadd.f32 %v1406_v8, %v1394_v7  ;;  %v1419_v10 = vpop.f32.mrf.mxu3  ;;  %v1395_v13 = vpop.f32.mrf.mxu1 }
 0x107   :  { %v1420_v12 = vadd.f32 %v1419_v10, %v1407_v9 }
 0x109   :  { %v1528_v14 = vpack.c.bf16 %v1420_v12, %v1420_v12 }
 0x10b   :  { %v8318_v15 = vsel %vm1644_vm0, %v1528_v14, 0 }
 0x10c   :  { %v1408_v16 = vpop.f32.mrf.mxu2  ;;  %1713 = vmatpush.bf16.msrb.mxu1 %v8318_v15 }
 0x10d   :  { %v1421_v17 = vpop.f32.mrf.mxu3 }
 0x110   :  { %2445 = vmatpush.bf16.msra.mxu1 %v8318_v15 }
 0x11c   :  { %v1432_v20 = vpop.f32.mrf.mxu0 }
 0x11d   :  { %v1433_v21 = vadd.f32 %v1432_v20, %v659_v19  ;;  %v1445_v22 = vpop.f32.mrf.mxu1 }
 0x11f   :  { %v1446_v23 = vadd.f32 %v1445_v22, %v1433_v21 }
 0x124   :  { %v1458_v24 = vpop.f32.mrf.mxu2  ;;  %v1434_v27 = vpop.f32.mrf.mxu0 }
 0x125   :  { %v1459_v25 = vadd.f32 %v1458_v24, %v1446_v23  ;;  %v1471_v26 = vpop.f32.mrf.mxu3  ;;  %v1447_v30 = vpop.f32.mrf.mxu1 }
 0x127   :  { %v1472_v28 = vadd.f32 %v1471_v26, %v1459_v25 }
 0x129   :  { %v1529_v29 = vpack.c.bf16 %v1472_v28, %v1472_v28 }
 0x12b   :  { %v8324_v31 = vsel %vm1644_vm0, %v1529_v29, 0 }
 0x12c   :  { %v1460_v32 = vpop.f32.mrf.mxu2  ;;  %1762 = vmatpush.bf16.msrb.mxu2 %v8324_v31 }
 0x12d   :  { %v1473_v33 = vpop.f32.mrf.mxu3 }
 0x130   :  { %2494 = vmatpush.bf16.msra.mxu2 %v8324_v31 }
 0x13c   :  { %v1484_v35 = vpop.f32.mrf.mxu0 }
 0x13d   :  { %v1485_v36 = vadd.f32 %v1484_v35, %v660_v34  ;;  %v1497_v37 = vpop.f32.mrf.mxu1 }
 0x13f   :  { %v1498_v38 = vadd.f32 %v1497_v37, %v1485_v36 }
 0x144   :  { %v1510_v39 = vpop.f32.mrf.mxu2  ;;  %v1486_v43 = vpop.f32.mrf.mxu0 }
 0x145   :  { %v1511_v40 = vadd.f32 %v1510_v39, %v1498_v38  ;;  %v1523_v41 = vpop.f32.mrf.mxu3  ;;  %v1499_v45 = vpop.f32.mrf.mxu1 }
 0x147   :  { %v1524_v42 = vadd.f32 %v1523_v41, %v1511_v40 }
 0x149   :  { %v1530_v44 = vpack.c.bf16 %v1524_v42, %v1524_v42 }
 0x14b   :  { %v8330_v46 = vsel %vm1644_vm0, %v1530_v44, 0 }
 0x14c   :  { %1811 = vmatpush.bf16.msrb.mxu3 %v8330_v46  ;;  %v1512_v62 = vpop.f32.mrf.mxu2 }
 0x14d   :  { %v1525_v54 = vpop.f32.mrf.mxu3 }
 0x150   :  { %2543 = vmatpush.bf16.msra.mxu3 %v8330_v46 }
 0x16d   :  { %v1547_v47 = vpop.trf.xlu0 }
 0x16e   :  { %v1563_v58 = vpack.c.bf16 %v1547_v47, %v1547_v47 }
 0x170   :  { %v1595_v49 = vunpack.c.l.b16 %v1563_v58 }
 0x175   :  { %v1548_v48 = vpop.trf.xlu0 }
 0x176   :  { %v1564_v63 = vpack.c.bf16 %v1548_v48, %v1548_v48 }
 0x178   :  { %v1596_v50 = vunpack.c.l.b16 %v1564_v63 }
 0x17a   :  { %v8334_v51 = vpack.c.b16 %v1596_v50, %v1595_v49 }
 0x17c   :  { %2349 = vrot.lane.b32.xlu1 %v8334_v51, %s8197_s6  ;;  %6345 = vmatmul.msk.bf16.vlgmr.msrb.gmra.mxu0 %vm1619_vm1, %v8334_v51 }
 0x17d   :  { %6353 = vmatmul.msk.bf16.vlgmr.msrb.gmra.mxu1 %vm1619_vm1, %v8334_v51  ;;  %6361 = vmatmul.msk.bf16.vlgmr.msrb.gmra.mxu2 %vm1619_vm1, %v8334_v51  ;;  %v1549_v52 = vpop.trf.xlu0 }
 0x17e   :  { %6369 = vmatmul.msk.bf16.vlgmr.msrb.gmra.mxu3 %vm1619_vm1, %v8334_v51  ;;  %3128 = vmatpush.bf16.msrb.mxu0 %v8312_v0  ;;  %v1565_v53 = vpack.c.bf16 %v1549_v52, %v1549_v52 }
 0x17f   :  { %3177 = vmatpush.bf16.msrb.mxu1 %v8318_v15  ;;  %3226 = vmatpush.bf16.msrb.mxu2 %v8324_v31 }
 0x180   :  { %3275 = vmatpush.bf16.msrb.mxu3 %v8330_v46  ;;  %v1597_v56 = vunpack.c.l.b16 %v1565_v53 }
 0x185   :  { %v1550_v18 = vpop.trf.xlu0 }
 0x186   :  { %v1566_v55 = vpack.c.bf16 %v1550_v18, %v1550_v18 }
 0x188   :  { %v1598_v57 = vunpack.c.l.b16 %v1566_v55 }
 0x18a   :  { %v8350_v59 = vpack.c.b16 %v1598_v57, %v1597_v56 }
 0x18c   :  { %2351 = vrot.lane.b32.xlu1 %v8350_v59, %s8197_s6  ;;  %6346 = vmatmul.msk.bf16.gmra.mxu0 %vm1619_vm1, %v8350_v59 }
 0x18d   :  { %6354 = vmatmul.msk.bf16.gmra.mxu1 %vm1619_vm1, %v8350_v59  ;;  %6362 = vmatmul.msk.bf16.gmra.mxu2 %vm1619_vm1, %v8350_v59  ;;  %v1551_v60 = vpop.trf.xlu0 }
 0x18e   :  { %6370 = vmatmul.msk.bf16.gmra.mxu3 %vm1619_vm1, %v8350_v59  ;;  %v1567_v61 = vpack.c.bf16 %v1551_v60, %v1551_v60 }
 0x190   :  { %v1599_v3 = vunpack.c.l.b16 %v1567_v61 }
 0x195   :  { %v1552_v1 = vpop.trf.xlu0 }
 0x196   :  { %v1568_v2 = vpack.c.bf16 %v1552_v1, %v1552_v1 }
 0x198   :  { %v1600_v4 = vunpack.c.l.b16 %v1568_v2 }
 0x19a   :  { %v8362_v5 = vpack.c.b16 %v1600_v4, %v1599_v3 }
 0x19c   :  { %2353 = vrot.lane.b32.xlu2 %v8362_v5, %s8197_s6  ;;  %6347 = vmatmul.msk.bf16.gmra.mxu0 %vm1619_vm1, %v8362_v5 }
 0x19d   :  { %6355 = vmatmul.msk.bf16.gmra.mxu1 %vm1619_vm1, %v8362_v5  ;;  %6363 = vmatmul.msk.bf16.gmra.mxu2 %vm1619_vm1, %v8362_v5  ;;  %v1553_v6 = vpop.trf.xlu0 }
 0x19e   :  { %6371 = vmatmul.msk.bf16.gmra.mxu3 %vm1619_vm1, %v8362_v5  ;;  %v1569_v7 = vpack.c.bf16 %v1553_v6, %v1553_v6 }
 0x1a0   :  { %v1601_v10 = vunpack.c.l.b16 %v1569_v7 }
 0x1a5   :  { %v1554_v8 = vpop.trf.xlu0 }
 0x1a6   :  { %v1570_v9 = vpack.c.bf16 %v1554_v8, %v1554_v8 }
 0x1a8   :  { %v1602_v11 = vunpack.c.l.b16 %v1570_v9 }
 0x1aa   :  { %v8374_v12 = vpack.c.b16 %v1602_v11, %v1601_v10 }
 0x1ac   :  { %2355 = vrot.lane.b32.xlu2 %v8374_v12, %s8197_s6  ;;  %6348 = vmatmul.msk.bf16.gmra.mxu0 %vm1619_vm1, %v8374_v12 }
 0x1ad   :  { %6356 = vmatmul.msk.bf16.gmra.mxu1 %vm1619_vm1, %v8374_v12  ;;  %6364 = vmatmul.msk.bf16.gmra.mxu2 %vm1619_vm1, %v8374_v12  ;;  %v1555_v13 = vpop.trf.xlu0 }
 0x1ae   :  { %6372 = vmatmul.msk.bf16.gmra.mxu3 %vm1619_vm1, %v8374_v12  ;;  %v1571_v14 = vpack.c.bf16 %v1555_v13, %v1555_v13 }
 0x1af   :  { %3081 = vrot.lane.b32.xlu0 %v8334_v51, %s8198_s1 }
 0x1b0   :  { %v1603_v19 = vunpack.c.l.b16 %v1571_v14 }
 0x1b5   :  { %v1556_v16 = vpop.trf.xlu0 }
 0x1b6   :  { %v1572_v17 = vpack.c.bf16 %v1556_v16, %v1556_v16 }
 0x1b8   :  { %v1604_v20 = vunpack.c.l.b16 %v1572_v17 }
 0x1ba   :  { %v8388_v21 = vpack.c.b16 %v1604_v20, %v1603_v19 }
 0x1bc   :  { %2357 = vrot.lane.b32.xlu1 %v8388_v21, %s8197_s6  ;;  %6349 = vmatmul.msk.bf16.gmra.mxu0 %vm1619_vm1, %v8388_v21 }
 0x1bd   :  { %6357 = vmatmul.msk.bf16.gmra.mxu1 %vm1619_vm1, %v8388_v21  ;;  %6365 = vmatmul.msk.bf16.gmra.mxu2 %vm1619_vm1, %v8388_v21  ;;  %v1557_v22 = vpop.trf.xlu0 }
 0x1be   :  { %6373 = vmatmul.msk.bf16.gmra.mxu3 %vm1619_vm1, %v8388_v21  ;;  %v1573_v23 = vpack.c.bf16 %v1557_v22, %v1557_v22 }
 0x1c0   :  { %v1605_v26 = vunpack.c.l.b16 %v1573_v23 }
 0x1c5   :  { %v1558_v24 = vpop.trf.xlu0 }
 0x1c6   :  { %v1574_v25 = vpack.c.bf16 %v1558_v24, %v1558_v24 }
 0x1c8   :  { %v1606_v27 = vunpack.c.l.b16 %v1574_v25 }
 0x1ca   :  { %v1616_v28 = vpack.c.b16 %v1606_v27, %v1605_v26 }
 0x1cc   :  { %2359 = vrot.lane.b32.xlu2 %v1616_v28, %s8197_s6  ;;  %6350 = vmatmul.msk.bf16.gmra.mxu0 %vm1619_vm1, %v1616_v28 }
 0x1cd   :  { %6358 = vmatmul.msk.bf16.gmra.mxu1 %vm1619_vm1, %v1616_v28  ;;  %6366 = vmatmul.msk.bf16.gmra.mxu2 %vm1619_vm1, %v1616_v28  ;;  %v1559_v29 = vpop.trf.xlu0 }
 0x1ce   :  { %6374 = vmatmul.msk.bf16.gmra.mxu3 %vm1619_vm1, %v1616_v28  ;;  %v1575_v30 = vpack.c.bf16 %v1559_v29, %v1559_v29 }
 0x1d0   :  { %v1607_v34 = vunpack.c.l.b16 %v1575_v30 }
 0x1d5   :  { %v1560_v32 = vpop.trf.xlu0 }
 0x1d6   :  { %v1576_v33 = vpack.c.bf16 %v1560_v32, %v1560_v32 }
 0x1d8   :  { %v1608_v35 = vunpack.c.l.b16 %v1576_v33 }
 0x1da   :  { %v8405_v36 = vpack.c.b16 %v1608_v35, %v1607_v34 }
 0x1dc   :  { %2361 = vrot.lane.b32.xlu1 %v8405_v36, %s8197_s6  ;;  %6351 = vmatmul.msk.bf16.gmra.mxu0 %vm1619_vm1, %v8405_v36 }
 0x1dd   :  { %6359 = vmatmul.msk.bf16.gmra.mxu1 %vm1619_vm1, %v8405_v36  ;;  %6367 = vmatmul.msk.bf16.gmra.mxu2 %vm1619_vm1, %v8405_v36  ;;  %v1561_v37 = vpop.trf.xlu0 }
 0x1de   :  { %6375 = vmatmul.msk.bf16.gmra.mxu3 %vm1619_vm1, %v8405_v36  ;;  %v1577_v38 = vpack.c.bf16 %v1561_v37, %v1561_v37 }
 0x1e0   :  { %v1609_v41 = vunpack.c.l.b16 %v1577_v38 }
 0x1e4   :  { %3083 = vrot.lane.b32.xlu1 %v8350_v59, %s8198_s1 }
 0x1e5   :  { %v1562_v39 = vpop.trf.xlu0 }
 0x1e6   :  { %v1578_v40 = vpack.c.bf16 %v1562_v39, %v1562_v39 }
 0x1e8   :  { %v1610_v42 = vunpack.c.l.b16 %v1578_v40 }
 0x1ea   :  { %v1618_v43 = vpack.c.b16 %v1610_v42, %v1609_v41 }
 0x1ec   :  { %3087 = vrot.lane.b32.xlu1 %v8374_v12, %s8198_s1  ;;  %2363 = vrot.lane.b32.xlu2 %v1618_v43, %s8197_s6 }
 0x1ed   :  { %6352 = vmatmul.msk.bf16.gmra.mxu0 %vm1619_vm1, %v1618_v43  ;;  %6360 = vmatmul.msk.bf16.gmra.mxu1 %vm1619_vm1, %v1618_v43 }
 0x1ee   :  { %6368 = vmatmul.msk.bf16.gmra.mxu2 %vm1619_vm1, %v1618_v43  ;;  %6376 = vmatmul.msk.bf16.gmra.mxu3 %vm1619_vm1, %v1618_v43  ;;  %v2350_v62 = vpop.permute.xlu1 %2349 }
 0x1f4   :  { %3091 = vrot.lane.b32.xlu1 %v1616_v28, %s8198_s1  ;;  %3085 = vrot.lane.b32.xlu2 %v8362_v5, %s8198_s1 }
 0x1f6   :  { %v2354_v57 = vpop.permute.xlu2 %2353 }
 0x1f9   :  { %v8429_v44 = vpop.f32.mrf.mxu0 }
 0x1fa   :  { %v8431_v45 = vpop.f32.mrf.mxu1 }
 0x1fb   :  { %v1853_v25 = vmax.f32 %v8429_v44, %v8431_v45 }
 0x1fc   :  { %3815 = vrot.lane.b32.xlu1 %v8350_v59, %s8199_s23  ;;  %3089 = vrot.lane.b32.xlu2 %v8388_v21, %s8198_s1 }
 0x1fd   :  { %6377 = vmatmul.msk.bf16.vlgmr.msra.gmra.mxu0 %vm1619_vm1, %v2350_v62  ;;  %6385 = vmatmul.msk.bf16.vlgmr.msra.gmra.mxu1 %vm1619_vm1, %v2350_v62 }
 0x1fe   :  { %6393 = vmatmul.msk.bf16.vlgmr.msra.gmra.mxu2 %vm1619_vm1, %v2350_v62  ;;  %6401 = vmatmul.msk.bf16.vlgmr.msra.gmra.mxu3 %vm1619_vm1, %v2350_v62  ;;  %v2352_v63 = vpop.permute.xlu1 %2351 }
 0x1ff   :  { %3860 = vmatpush.bf16.msra.mxu0 %v8312_v0  ;;  %3909 = vmatpush.bf16.msra.mxu1 %v8318_v15 }
 0x200   :  { %3958 = vmatpush.bf16.msra.mxu2 %v8324_v31  ;;  %4007 = vmatpush.bf16.msra.mxu3 %v8330_v46  ;;  %v8445_v54 = vpop.f32.mrf.mxu2 }
 0x201   :  { %v8447_v47 = vpop.f32.mrf.mxu3  ;;  %v8449_v58 = vpop.f32.mrf.mxu0 }
 0x202   :  { %v8451_v48 = vpop.f32.mrf.mxu1 }
 0x203   :  { %v1858_v17 = vmax.f32 %v8449_v58, %v8451_v48 }
 0x204   :  { %3819 = vrot.lane.b32.xlu1 %v8374_v12, %s8199_s23  ;;  %3093 = vrot.lane.b32.xlu2 %v8405_v36, %s8198_s1 }
 0x206   :  { %v2356_v6 = vpop.permute.xlu2 %2355 }
 0x208   :  { %v8457_v0 = vpop.f32.mrf.mxu2 }
 0x209   :  { %v8459_v15 = vpop.f32.mrf.mxu3  ;;  %v8461_v31 = vpop.f32.mrf.mxu0  ;;  %v1859_v20 = vmax.f32 %v1858_v17, %v8457_v0 }
 0x20a   :  { %v8463_v46 = vpop.f32.mrf.mxu1 }
 0x20b   :  { %v1860_v24 = vmax.f32 %v1859_v20, %v8459_v15  ;;  %v1863_v37 = vmax.f32 %v8461_v31, %v8463_v46 }
 0x20c   :  { %3823 = vrot.lane.b32.xlu1 %v1616_v28, %s8199_s23  ;;  %3813 = vrot.lane.b32.xlu2 %v8334_v51, %s8199_s23  ;;  %v1854_v28 = vmax.f32 %v1853_v25, %v8445_v54 }
 0x20d   :  { %6378 = vmatmul.msk.bf16.gmra.mxu0 %vm1619_vm1, %v2352_v63  ;;  %6386 = vmatmul.msk.bf16.gmra.mxu1 %vm1619_vm1, %v2352_v63 }
 0x20e   :  { %6394 = vmatmul.msk.bf16.gmra.mxu2 %vm1619_vm1, %v2352_v63  ;;  %6402 = vmatmul.msk.bf16.gmra.mxu3 %vm1619_vm1, %v2352_v63  ;;  %v1855_v35 = vmax.f32 %v1854_v28, %v8447_v47 }
 0x210   :  { %v8472_v49 = vpop.f32.mrf.mxu2 }
 0x211   :  { %v8474_v50 = vpop.f32.mrf.mxu3  ;;  %v8476_v52 = vpop.f32.mrf.mxu0  ;;  %v1864_v40 = vmax.f32 %v1863_v37, %v8472_v49 }
 0x212   :  { %v8478_v53 = vpop.f32.mrf.mxu1 }
 0x213   :  { %v1865_v63 = vmax.f32 %v1864_v40, %v8474_v50 }
 0x214   :  { %3095 = vrot.lane.b32.xlu1 %v1618_v43, %s8198_s1  ;;  %3817 = vrot.lane.b32.xlu2 %v8362_v5, %s8199_s23 }
 0x218   :  { %v8483_v51 = vpop.f32.mrf.mxu2 }
 0x219   :  { %v8485_v18 = vpop.f32.mrf.mxu3  ;;  %v8487_v55 = vpop.f32.mrf.mxu0 }
 0x21a   :  { %v8489_v56 = vpop.f32.mrf.mxu1 }
 0x21b   :  { %v1873_v26 = vmax.f32 %v8487_v55, %v8489_v56 }
 0x21c   :  { %3827 = vrot.lane.b32.xlu1 %v1618_v43, %s8199_s23  ;;  %3821 = vrot.lane.b32.xlu2 %v8388_v21, %s8199_s23 }
 0x21d   :  { %6379 = vmatmul.msk.bf16.gmra.mxu0 %vm1619_vm1, %v2354_v57  ;;  %6387 = vmatmul.msk.bf16.gmra.mxu1 %vm1619_vm1, %v2354_v57 }
 0x21e   :  { %6395 = vmatmul.msk.bf16.gmra.mxu2 %vm1619_vm1, %v2354_v57  ;;  %6403 = vmatmul.msk.bf16.gmra.mxu3 %vm1619_vm1, %v2354_v57 }
 0x220   :  { %v8498_v59 = vpop.f32.mrf.mxu2 }
 0x221   :  { %v8500_v60 = vpop.f32.mrf.mxu3  ;;  %v8502_v61 = vpop.f32.mrf.mxu0  ;;  %v1874_v29 = vmax.f32 %v1873_v26, %v8498_v59 }
 0x222   :  { %v8504_v1 = vpop.f32.mrf.mxu1 }
 0x224   :  { %3825 = vrot.lane.b32.xlu2 %v8405_v36, %s8199_s23  ;;  %v1875_v36 = vmax.f32 %v1874_v29, %v8500_v60 }
 0x226   :  { %v2360_v34 = vpop.permute.xlu2 %2359 }
 0x228   :  { %v8508_v2 = vpop.f32.mrf.mxu2 }
 0x229   :  { %v8510_v3 = vpop.f32.mrf.mxu3  ;;  %v8512_v4 = vpop.f32.mrf.mxu0 }
 0x22a   :  { %v8514_v5 = vpop.f32.mrf.mxu1 }
 0x22b   :  { %11451 = vst [vmem:[#allocation21_spill] sm:$0xff] %v8514_v5  ;;  %v1883_v38 = vmax.f32 %v8512_v4, %v8514_v5 }
 0x22d   :  { %6380 = vmatmul.msk.bf16.gmra.mxu0 %vm1619_vm1, %v2356_v6  ;;  %6388 = vmatmul.msk.bf16.gmra.mxu1 %vm1619_vm1, %v2356_v6 }
 0x22e   :  { %6396 = vmatmul.msk.bf16.gmra.mxu2 %vm1619_vm1, %v2356_v6  ;;  %6404 = vmatmul.msk.bf16.gmra.mxu3 %vm1619_vm1, %v2356_v6  ;;  %v2358_v16 = vpop.permute.xlu1 %2357  ;;  %v1868_v6 = vmax.f32 %v8476_v52, %v8478_v53 }
 0x230   :  { %v8520_v7 = vpop.f32.mrf.mxu2  ;;  %v1869_v26 = vmax.f32 %v1868_v6, %v8483_v51 }
 0x231   :  { %11452 = vst [vmem:[#allocation22_spill] sm:$0xff] %v8520_v7  ;;  %v8522_v8 = vpop.f32.mrf.mxu3  ;;  %v8524_v9 = vpop.f32.mrf.mxu0  ;;  %v1884_v41 = vmax.f32 %v1883_v38, %v8520_v7 }
 0x232   :  { %11453 = vst [vmem:[#allocation23_spill] sm:$0xff] %v8522_v8  ;;  %v8526_v10 = vpop.f32.mrf.mxu1 }
 0x233   :  { %v1885_v57 = vmax.f32 %v1884_v41, %v8522_v8 }
 0x238   :  { %v8528_v11 = vpop.f32.mrf.mxu2 }
 0x239   :  { %v8530_v12 = vpop.f32.mrf.mxu3  ;;  %v8532_v13 = vpop.f32.mrf.mxu0 }
 0x23a   :  { %11454 = vst [vmem:[#allocation24_spill] sm:$0xff] %v8532_v13  ;;  %v8534_v14 = vpop.f32.mrf.mxu1 }
 0x23b   :  { %11455 = vst [vmem:[#allocation25_spill] sm:$0xff] %v8534_v14 }
 0x23d   :  { %6381 = vmatmul.msk.bf16.gmra.mxu0 %vm1619_vm1, %v2358_v16  ;;  %6389 = vmatmul.msk.bf16.gmra.mxu1 %vm1619_vm1, %v2358_v16 }
 0x23e   :  { %6397 = vmatmul.msk.bf16.gmra.mxu2 %vm1619_vm1, %v2358_v16  ;;  %6405 = vmatmul.msk.bf16.gmra.mxu3 %vm1619_vm1, %v2358_v16  ;;  %v1893_v16 = vmax.f32 %v8532_v13, %v8534_v14 }
 0x240   :  { %v8542_v19 = vpop.f32.mrf.mxu2 }
 0x241   :  { %11456 = vst [vmem:[#allocation26_spill] sm:$0xff] %v8542_v19  ;;  %v8545_v21 = vpop.f32.mrf.mxu3  ;;  %v8547_v22 = vpop.f32.mrf.mxu0  ;;  %v1894_v20 = vmax.f32 %v1893_v16, %v8542_v19 }
 0x242   :  { %11457 = vst [vmem:[#allocation27_spill] sm:$0xff] %v8545_v21  ;;  %v8549_v23 = vpop.f32.mrf.mxu1 }
 0x246   :  { %1861 = vmax.xlane.f32.xlu1 %v1860_v24 }
 0x248   :  { %v8556_v27 = vpop.f32.mrf.mxu2 }
 0x249   :  { %v8560_v30 = vpop.f32.mrf.mxu3  ;;  %v8562_v32 = vpop.f32.mrf.mxu0 }
 0x24a   :  { %11458 = vst [vmem:[#allocation28_spill] sm:$0xff] %v8562_v32  ;;  %v8564_v33 = vpop.f32.mrf.mxu1 }
 0x24b   :  { %11459 = vst [vmem:[#allocation29_spill] sm:$0xff] %v8564_v33  ;;  %v1903_v37 = vmax.f32 %v8562_v32, %v8564_v33 }
 0x24d   :  { %6382 = vmatmul.msk.bf16.gmra.mxu0 %vm1619_vm1, %v2360_v34  ;;  %6390 = vmatmul.msk.bf16.gmra.mxu1 %vm1619_vm1, %v2360_v34 }
 0x24e   :  { %6398 = vmatmul.msk.bf16.gmra.mxu2 %vm1619_vm1, %v2360_v34  ;;  %6406 = vmatmul.msk.bf16.gmra.mxu3 %vm1619_vm1, %v2360_v34  ;;  %v2362_v29 = vpop.permute.xlu1 %2361  ;;  %v1870_v34 = vmax.f32 %v1869_v26, %v8485_v18 }
 0x24f   :  { %1856 = vmax.xlane.f32.xlu2 %v1855_v35  ;;  %1876 = vmax.xlane.f32.xlu1 %v1875_v36  ;;  %v1895_v35 = vmax.f32 %v1894_v20, %v8545_v21  ;;  %v1878_v36 = vmax.f32 %v8502_v61, %v8504_v1 }
 0x250   :  { %v8576_v39 = vpop.f32.mrf.mxu2 }
 0x251   :  { %11460 = vst [vmem:[#allocation30_spill] sm:$0xff] %v8576_v39  ;;  %v8580_v42 = vpop.f32.mrf.mxu3  ;;  %v8582_v43 = vpop.f32.mrf.mxu0  ;;  %v1904_v40 = vmax.f32 %v1903_v37, %v8576_v39 }
 0x252   :  { %11461 = vst [vmem:[#allocation31_spill] sm:$0xff] %v8580_v42  ;;  %v8584_v62 = vpop.f32.mrf.mxu1 }
 0x253   :  { %v1905_v20 = vmax.f32 %v1904_v40, %v8580_v42  ;;  %v2364_v42 = vpop.permute.xlu2 %2363  ;;  %v1908_v14 = vmax.f32 %v8582_v43, %v8584_v62 }
 0x256   :  { %v8624_v26 = vpop.permute.xlu1 %3083 }
 0x257   :  { %1866 = vmax.xlane.f32.xlu2 %v1865_v63  ;;  %1886 = vmax.xlane.f32.xlu1 %v1885_v57  ;;  %v1879_v57 = vmax.f32 %v1878_v36, %v8508_v2 }
 0x258   :  { %v8592_v17 = vpop.f32.mrf.mxu2 }
 0x259   :  { %v8595_v24 = vpop.f32.mrf.mxu3  ;;  %v8597_v25 = vpop.f32.mrf.mxu0  ;;  %v1880_v16 = vmax.f32 %v1879_v57, %v8510_v3 }
 0x25a   :  { %11462 = vst [vmem:[#allocation32_spill] sm:$0xff] %v8595_v24  ;;  %v8600_v28 = vpop.f32.mrf.mxu1 }
 0x25b   :  { %11463 = vst [vmem:[#allocation33_spill] sm:$0xff] %v8597_v25 }
 0x25c   :  { %11464 = vst [vmem:[#allocation34_spill] sm:$0xff] %v8600_v28 }
 0x25d   :  { %6383 = vmatmul.msk.bf16.gmra.mxu0 %vm1619_vm1, %v2362_v29  ;;  %6391 = vmatmul.msk.bf16.gmra.mxu1 %vm1619_vm1, %v2362_v29 }
 0x25e   :  { %6399 = vmatmul.msk.bf16.gmra.mxu2 %vm1619_vm1, %v2362_v29  ;;  %6407 = vmatmul.msk.bf16.gmra.mxu3 %vm1619_vm1, %v2362_v29  ;;  %v1888_v29 = vmax.f32 %v8524_v9, %v8526_v10 }
 0x25f   :  { %1871 = vmax.xlane.f32.xlu2 %v1870_v34  ;;  %1896 = vmax.xlane.f32.xlu1 %v1895_v35  ;;  %v1913_v34 = vmax.f32 %v8597_v25, %v8600_v28 }
 0x260   :  { %v8612_v38 = vpop.f32.mrf.mxu2  ;;  %v1889_v57 = vmax.f32 %v1888_v29, %v8528_v11  ;;  %v1898_v29 = vmax.f32 %v8547_v22, %v8549_v23 }
 0x261   :  { %11465 = vst [vmem:[#allocation35_spill] sm:$0xff] %v8612_v38  ;;  %v8615_v41 = vpop.f32.mrf.mxu3  ;;  %v8617_v63 = vpop.f32.mrf.mxu0  ;;  %v1914_v36 = vmax.f32 %v1913_v34, %v8612_v38 }
 0x262   :  { %11466 = vst [vmem:[#allocation36_spill] sm:$0xff] %v8615_v41  ;;  %v8620_v6 = vpop.f32.mrf.mxu1  ;;  %v8648_v34 = vpop.permute.xlu1 %3087 }
 0x263   :  { %11467 = vst [vmem:[#allocation37_spill] sm:$0xff] %v8617_v63 }
 0x264   :  { %11468 = vst [vmem:[#allocation38_spill] sm:$0xff] %v8620_v6 }
 0x267   :  { %1881 = vmax.xlane.f32.xlu2 %v1880_v16  ;;  %1906 = vmax.xlane.f32.xlu1 %v1905_v20  ;;  %v1890_v16 = vmax.f32 %v1889_v57, %v8530_v12  ;;  %v1915_v20 = vmax.f32 %v1914_v36, %v8615_v41  ;;  %v1899_v36 = vmax.f32 %v1898_v29, %v8556_v27  ;;  %v3082_v41 = vpop.permute.xlu0 %3081 }
 0x268   :  { %v8630_v35 = vpop.f32.mrf.mxu2 }
 0x269   :  { %11469 = vst [vmem:[#allocation39_spill] sm:$0xff] %v8630_v35  ;;  %v8633_v37 = vpop.f32.mrf.mxu3 }
 0x26a   :  { %11470 = vst [vmem:[#allocation40_spill] sm:$0xff] %v8633_v37  ;;  %v8636_v39 = vpop.f32.mrf.mxu0  ;;  %v8638_v40 = vpop.f32.mrf.mxu1 }
 0x26b   :  { %11471 = vst [vmem:[#allocation41_spill] sm:$0xff] %v8636_v39  ;;  %v1923_v33 = vmax.f32 %v8636_v39, %v8638_v40 }
 0x26c   :  { %11472 = vst [vmem:[#allocation42_spill] sm:$0xff] %v8638_v40  ;;  %v3086_v40 = vpop.permute.xlu2 %3085 }
 0x26d   :  { %6384 = vmatmul.msk.bf16.gmra.mxu0 %vm1619_vm1, %v2364_v42  ;;  %6392 = vmatmul.msk.bf16.gmra.mxu1 %vm1619_vm1, %v2364_v42 }
 0x26e   :  { %6400 = vmatmul.msk.bf16.gmra.mxu2 %vm1619_vm1, %v2364_v42  ;;  %6408 = vmatmul.msk.bf16.gmra.mxu3 %vm1619_vm1, %v2364_v42 }
 0x26f   :  { %1891 = vmax.xlane.f32.xlu2 %v1890_v16  ;;  %1916 = vmax.xlane.f32.xlu1 %v1915_v20  ;;  %v1900_v16 = vmax.f32 %v1899_v36, %v8560_v30  ;;  %v8675_v36 = vpop.permute.xlu1 %3091 }
 0x271   :  { %v8652_v32 = vpop.f32.mrf.mxu2  ;;  %v8654_v21 = vpop.f32.mrf.mxu3 }
 0x272   :  { %11473 = vst [vmem:[#allocation43_spill] sm:$0xff] %v8652_v32  ;;  %v1924_v57 = vmax.f32 %v1923_v33, %v8652_v32  ;;  %v8658_v19 = vpop.f32.mrf.mxu0  ;;  %v8660_v42 = vpop.f32.mrf.mxu1  ;;  %v1909_v33 = vmax.f32 %v1908_v14, %v8592_v17  ;;  %v1918_v14 = vmax.f32 %v8617_v63, %v8620_v6 }
 0x273   :  { %11474 = vst [vmem:[#allocation44_spill] sm:$0xff] %v8654_v21 }
 0x274   :  { %11475 = vst [vmem:[#allocation45_spill] sm:$0xff] %v8658_v19  ;;  %v1925_v20 = vmax.f32 %v1924_v57, %v8654_v21  ;;  %v1910_v57 = vmax.f32 %v1909_v33, %v8595_v24  ;;  %v1919_v21 = vmax.f32 %v1918_v14, %v8630_v35  ;;  %v8693_v7 = vpop.permute.xlu2 %3089 }
 0x275   :  { %11476 = vst [vmem:[#allocation46_spill] sm:$0xff] %v8660_v42 }
 0x276   :  { %v1920_v33 = vmax.f32 %v1919_v21, %v8633_v37 }
 0x277   :  { %1901 = vmax.xlane.f32.xlu2 %v1900_v16  ;;  %1926 = vmax.xlane.f32.xlu1 %v1925_v20  ;;  %v8696_v24 = vpop.permute.xlu1 %3815 }
 0x278   :  { %11485 = vst [vmem:[#allocation55_spill] sm:$0xff] %v8696_v24 }
 0x279   :  { %v8666_v39 = vpop.f32.mrf.mxu2  ;;  %v8668_v13 = vpop.f32.mrf.mxu3 }
 0x27a   :  { %11477 = vst [vmem:[#allocation47_spill] sm:$0xff] %v8666_v39  ;;  %v8671_v29 = vpop.f32.mrf.mxu0  ;;  %v8673_v32 = vpop.f32.mrf.mxu1 }
 0x27b   :  { %11478 = vst [vmem:[#allocation48_spill] sm:$0xff] %v8668_v13 }
 0x27c   :  { %11479 = vst [vmem:[#allocation49_spill] sm:$0xff] %v8671_v29  ;;  %v8714_v37 = vpop.permute.xlu2 %3093 }
 0x27d   :  { %11480 = vst [vmem:[#allocation50_spill] sm:$0xff] %v8673_v32  ;;  %6409 = vmatmul.msk.bf16.vlgmr.msrb.gmra.mxu0 %vm1619_vm1, %v3082_v41  ;;  %6417 = vmatmul.msk.bf16.vlgmr.msrb.gmra.mxu1 %vm1619_vm1, %v3082_v41 }
 0x27e   :  { %6425 = vmatmul.msk.bf16.vlgmr.msrb.gmra.mxu2 %vm1619_vm1, %v3082_v41  ;;  %6433 = vmatmul.msk.bf16.vlgmr.msrb.gmra.mxu3 %vm1619_vm1, %v3082_v41  ;;  %v1928_v41 = vmax.f32 %v8658_v19, %v8660_v42 }
 0x27f   :  { %1911 = vmax.xlane.f32.xlu2 %v1910_v57 }
 0x280   :  { %v1929_v14 = vmax.f32 %v1928_v41, %v8666_v39  ;;  %v8722_v41 = vpop.permute.xlu1 %3819 }
 0x281   :  { %v8684_v16 = vpop.f32.mrf.mxu2  ;;  %v8686_v20 = vpop.f32.mrf.mxu3  ;;  %11490 = vst [vmem:[#allocation60_spill] sm:$0xff] %v8722_v41 }
 0x282   :  { %11481 = vst [vmem:[#allocation51_spill] sm:$0xff] %v8684_v16  ;;  %v8689_v8 = vpop.f32.mrf.mxu0  ;;  %v8691_v38 = vpop.f32.mrf.mxu1  ;;  %v1930_v21 = vmax.f32 %v1929_v14, %v8668_v13 }
 0x283   :  { %11482 = vst [vmem:[#allocation52_spill] sm:$0xff] %v8686_v20 }
 0x284   :  { %11483 = vst [vmem:[#allocation53_spill] sm:$0xff] %v8689_v8 }
 0x285   :  { %11484 = vst [vmem:[#allocation54_spill] sm:$0xff] %v8691_v38 }
 0x287   :  { %1921 = vmax.xlane.f32.xlu2 %v1920_v33  ;;  %v2585_v33 = vmax.f32 %v8671_v29, %v8673_v32 }
 0x288   :  { %v8747_v28 = vpop.permute.xlu1 %3823 }
 0x289   :  { %v8700_v57 = vpop.f32.mrf.mxu2  ;;  %v8702_v6 = vpop.f32.mrf.mxu3  ;;  %v2586_v24 = vmax.f32 %v2585_v33, %v8684_v16  ;;  %11500 = vst [vmem:[#allocation70_spill] sm:$0xff] %v8747_v28 }
 0x28a   :  { %11486 = vst [vmem:[#allocation56_spill] sm:$0xff] %v8700_v57  ;;  %v8705_v35 = vpop.f32.mrf.mxu0  ;;  %v8707_v63 = vpop.f32.mrf.mxu1 }
 0x28b   :  { %11487 = vst [vmem:[#allocation57_spill] sm:$0xff] %v8702_v6  ;;  %v2587_v19 = vmax.f32 %v2586_v24, %v8686_v20 }
 0x28c   :  { %11488 = vst [vmem:[#allocation58_spill] sm:$0xff] %v8705_v35 }
 0x28d   :  { %11489 = vst [vmem:[#allocation59_spill] sm:$0xff] %v8707_v63  ;;  %6410 = vmatmul.msk.bf16.gmra.mxu0 %vm1619_vm1, %v8624_v26  ;;  %6418 = vmatmul.msk.bf16.gmra.mxu1 %vm1619_vm1, %v8624_v26 }
 0x28e   :  { %6426 = vmatmul.msk.bf16.gmra.mxu2 %vm1619_vm1, %v8624_v26  ;;  %6434 = vmatmul.msk.bf16.gmra.mxu3 %vm1619_vm1, %v8624_v26  ;;  %v8734_v26 = vpop.permute.xlu2 %3813 }
 0x28f   :  { %1931 = vmax.xlane.f32.xlu2 %v1930_v21  ;;  %11495 = vst [vmem:[#allocation65_spill] sm:$0xff] %v8734_v26 }
 0x291   :  { %v8725_v39 = vpop.f32.mrf.mxu2  ;;  %v8727_v42 = vpop.f32.mrf.mxu3 }
 0x292   :  { %11491 = vst [vmem:[#allocation61_spill] sm:$0xff] %v8725_v39  ;;  %v8729_v14 = vpop.f32.mrf.mxu0  ;;  %v8731_v13 = vpop.f32.mrf.mxu1 }
 0x293   :  { %11492 = vst [vmem:[#allocation62_spill] sm:$0xff] %v8727_v42  ;;  %v2600_v21 = vmax.f32 %v8729_v14, %v8731_v13 }
 0x294   :  { %11493 = vst [vmem:[#allocation63_spill] sm:$0xff] %v8729_v14 }
 0x295   :  { %11494 = vst [vmem:[#allocation64_spill] sm:$0xff] %v8731_v13 }
 0x297   :  { %2588 = vmax.xlane.f32.xlu2 %v2587_v19 }
 0x299   :  { %v8738_v32 = vpop.f32.mrf.mxu2  ;;  %v8740_v29 = vpop.f32.mrf.mxu3 }
 0x29a   :  { %11496 = vst [vmem:[#allocation66_spill] sm:$0xff] %v8738_v32  ;;  %v8742_v33 = vpop.f32.mrf.mxu0  ;;  %v8744_v16 = vpop.f32.mrf.mxu1  ;;  %v2601_v41 = vmax.f32 %v2600_v21, %v8738_v32 }
 0x29b   :  { %11497 = vst [vmem:[#allocation67_spill] sm:$0xff] %v8740_v29  ;;  %v8762_v32 = vpop.permute.xlu2 %3817 }
 0x29c   :  { %11498 = vst [vmem:[#allocation68_spill] sm:$0xff] %v8742_v33  ;;  %v2602_v24 = vmax.f32 %v2601_v41, %v8740_v29  ;;  %v8764_v41 = vpop.permute.xlu1 %3095 }
 0x29d   :  { %11499 = vst [vmem:[#allocation69_spill] sm:$0xff] %v8744_v16  ;;  %6411 = vmatmul.msk.bf16.gmra.mxu0 %vm1619_vm1, %v3086_v40  ;;  %6419 = vmatmul.msk.bf16.gmra.mxu1 %vm1619_vm1, %v3086_v40 }
 0x29e   :  { %2603 = vmax.xlane.f32.xlu0 %v2602_v24  ;;  %6427 = vmatmul.msk.bf16.gmra.mxu2 %vm1619_vm1, %v3086_v40  ;;  %11505 = vst [vmem:[#allocation75_spill] sm:$0xff] %v8762_v32 }
 0x29f   :  { %6435 = vmatmul.msk.bf16.gmra.mxu3 %vm1619_vm1, %v3086_v40 }
 0x2a1   :  { %v8754_v19 = vpop.f32.mrf.mxu2  ;;  %v8756_v20 = vpop.f32.mrf.mxu3 }
 0x2a2   :  { %11501 = vst [vmem:[#allocation71_spill] sm:$0xff] %v8754_v19  ;;  %v8758_v13 = vpop.f32.mrf.mxu0  ;;  %v8760_v21 = vpop.f32.mrf.mxu1 }
 0x2a3   :  { %11502 = vst [vmem:[#allocation72_spill] sm:$0xff] %v8756_v20  ;;  %v2610_v29 = vmax.f32 %v8758_v13, %v8760_v21  ;;  %v8782_v32 = vpop.permute.xlu2 %3821 }
 0x2a4   :  { %11503 = vst [vmem:[#allocation73_spill] sm:$0xff] %v8758_v13 }
 0x2a5   :  { %11504 = vst [vmem:[#allocation74_spill] sm:$0xff] %v8760_v21  ;;  %v8788_v21 = vpop.permute.xlu1 %3827 }
 0x2a6   :  { %11510 = vst [vmem:[#allocation80_spill] sm:$0xff] %v8782_v32 }
 0x2a7   :  { %11511 = vst [vmem:[#allocation81_spill] sm:$0xff] %v8788_v21 }
 0x2a9   :  { %v8768_v24 = vpop.f32.mrf.mxu2  ;;  %v8770_v14 = vpop.f32.mrf.mxu3 }
 0x2aa   :  { %11506 = vst [vmem:[#allocation76_spill] sm:$0xff] %v8768_v24  ;;  %v8772_v40 = vpop.f32.mrf.mxu0  ;;  %v8774_v28 = vpop.f32.mrf.mxu1  ;;  %v2611_v26 = vmax.f32 %v2610_v29, %v8768_v24 }
 0x2ab   :  { %11507 = vst [vmem:[#allocation77_spill] sm:$0xff] %v8770_v14  ;;  %v8798_v13 = vpop.permute.xlu2 %3825 }
 0x2ac   :  { %11508 = vst [vmem:[#allocation78_spill] sm:$0xff] %v8772_v40  ;;  %v2612_v20 = vmax.f32 %v2611_v26, %v8770_v14 }
 0x2ad   :  { %11509 = vst [vmem:[#allocation79_spill] sm:$0xff] %v8774_v28  ;;  %6412 = vmatmul.msk.bf16.gmra.mxu0 %vm1619_vm1, %v8648_v34  ;;  %6420 = vmatmul.msk.bf16.gmra.mxu1 %vm1619_vm1, %v8648_v34 }
 0x2ae   :  { %2613 = vmax.xlane.f32.xlu0 %v2612_v20  ;;  %6428 = vmatmul.msk.bf16.gmra.mxu2 %vm1619_vm1, %v8648_v34  ;;  %11516 = vst [vmem:[#allocation86_spill] sm:$0xff] %v8798_v13 }
 0x2af   :  { %6436 = vmatmul.msk.bf16.gmra.mxu3 %vm1619_vm1, %v8648_v34 }
 0x2b1   :  { %v8790_v29 = vpop.f32.mrf.mxu2  ;;  %v8792_v26 = vpop.f32.mrf.mxu3 }
 0x2b2   :  { %11512 = vst [vmem:[#allocation82_spill] sm:$0xff] %v8790_v29  ;;  %v8794_v14 = vpop.f32.mrf.mxu0  ;;  %v8796_v24 = vpop.f32.mrf.mxu1 }
 0x2b3   :  { %11513 = vst [vmem:[#allocation83_spill] sm:$0xff] %v8792_v26  ;;  %v2620_v20 = vmax.f32 %v8794_v14, %v8796_v24 }
 0x2b4   :  { %11514 = vst [vmem:[#allocation84_spill] sm:$0xff] %v8794_v14 }
 0x2b5   :  { %11515 = vst [vmem:[#allocation85_spill] sm:$0xff] %v8796_v24 }
 0x2b9   :  { %v8802_v32 = vpop.f32.mrf.mxu2  ;;  %v8804_v40 = vpop.f32.mrf.mxu3 }
 0x2ba   :  { %11517 = vst [vmem:[#allocation87_spill] sm:$0xff] %v8802_v32  ;;  %v1862_v34 = vpop.xlane.xlu1 %1861  ;;  %v8806_v28 = vpop.f32.mrf.mxu0  ;;  %v2621_v21 = vmax.f32 %v2620_v20, %v8802_v32 }
 0x2bb   :  { %11518 = vst [vmem:[#allocation88_spill] sm:$0xff] %v8804_v40  ;;  %v1937_v26 = vsub.f32 %v8449_v58, %v1862_v34  ;;  %v1938_v29 = vsub.f32 %v8451_v48, %v1862_v34  ;;  %v8811_v25 = vpop.f32.mrf.mxu1  ;;  %v1939_v5 = vsub.f32 %v8457_v0, %v1862_v34  ;;  %v1940_v58 = vsub.f32 %v8459_v15, %v1862_v34 }
 0x2bc   :  { %11519 = vst [vmem:[#allocation89_spill] sm:$0xff] %v8806_v28  ;;  %v2622_v13 = vmax.f32 %v2621_v21, %v8804_v40 }
 0x2bd   :  { %11520 = vst [vmem:[#allocation90_spill] sm:$0xff] %v8811_v25  ;;  %v2005_v24 = vmul.f32 1.442695, %v1937_v26  ;;  %v2007_v14 = vmul.f32 1.442695, %v1938_v29  ;;  %6413 = vmatmul.msk.bf16.gmra.mxu0 %vm1619_vm1, %v8693_v7  ;;  %6421 = vmatmul.msk.bf16.gmra.mxu1 %vm1619_vm1, %v8693_v7 }
 0x2be   :  { %2623 = vmax.xlane.f32.xlu0 %v2622_v13  ;;  %6429 = vmatmul.msk.bf16.gmra.mxu2 %vm1619_vm1, %v8693_v7  ;;  %v2009_v48 = vmul.f32 1.442695, %v1939_v5 }
 0x2bf   :  { %7342 = vpow2.f32 %v2005_v24  ;;  %6437 = vmatmul.msk.bf16.gmra.mxu3 %vm1619_vm1, %v8693_v7  ;;  %v2011_v7 = vmul.f32 1.442695, %v1940_v58 }
 0x2c0   :  { %7344 = vpow2.f32 %v2007_v14 }
 0x2c1   :  { %v8824_v0 = vpop.f32.mrf.mxu2  ;;  %v8826_v21 = vpop.f32.mrf.mxu3  ;;  %7346 = vpow2.f32 %v2009_v48 }
 0x2c2   :  { %11521 = vst [vmem:[#allocation91_spill] sm:$0xff] %v8824_v0  ;;  %v1857_v29 = vpop.xlane.xlu2 %1856  ;;  %v8830_v20 = vpop.f32.mrf.mxu0  ;;  %7348 = vpow2.f32 %v2011_v7 }
 0x2c3   :  { %11522 = vst [vmem:[#allocation92_spill] sm:$0xff] %v8826_v21  ;;  %v1933_v26 = vsub.f32 %v8429_v44, %v1857_v29  ;;  %v1934_v13 = vsub.f32 %v8431_v45, %v1857_v29  ;;  %v8832_v40 = vpop.f32.mrf.mxu1  ;;  %v1935_v44 = vsub.f32 %v8445_v54, %v1857_v29  ;;  %v1936_v58 = vsub.f32 %v8447_v47, %v1857_v29  ;;  %v8856_v54 = vpop.xlane.xlu1 %1876 }
 0x2c4   :  { %11523 = vst [vmem:[#allocation93_spill] sm:$0xff] %v8830_v20  ;;  %v2630_v48 = vmax.f32 %v8830_v20, %v8832_v40 }
 0x2c5   :  { %11524 = vst [vmem:[#allocation94_spill] sm:$0xff] %v8832_v40  ;;  %v8834_v24 = vpop.eup %7342  ;;  %v1997_v15 = vmul.f32 1.442695, %v1933_v26  ;;  %v1999_v5 = vmul.f32 1.442695, %v1934_v13 }
 0x2c6   :  { %11525 = vst [vmem:[#allocation95_spill] sm:$0xff] %v8834_v24  ;;  %v8836_v14 = vpop.eup %7344  ;;  %v2003_v29 = vmul.f32 1.442695, %v1936_v58 }
 0x2c7   :  { %11526 = vst [vmem:[#allocation96_spill] sm:$0xff] %v8836_v14  ;;  %v2130_v34 = vadd.f32 %v8836_v14, %v8834_v24  ;;  %7350 = vpow2.f32 %v1997_v15  ;;  %v8847_v0 = vpop.eup %7346  ;;  %v2001_v14 = vmul.f32 1.442695, %v1935_v44 }
 0x2c8   :  { %11529 = vst [vmem:[#allocation99_spill] sm:$0xff] %v8847_v0  ;;  %7352 = vpow2.f32 %v1999_v5  ;;  %v8866_v47 = vpop.eup %7348 }
 0x2c9   :  { %v8841_v32 = vpop.f32.mrf.mxu2  ;;  %v8843_v45 = vpop.f32.mrf.mxu3  ;;  %v2131_v7 = vadd.f32 %v8847_v0, %v2130_v34  ;;  %11531 = vst [vmem:[#allocation101_spill] sm:$0xff] %v8866_v47  ;;  %7354 = vpow2.f32 %v2001_v14 }
 0x2ca   :  { %11527 = vst [vmem:[#allocation97_spill] sm:$0xff] %v8841_v32  ;;  %v8845_v21 = vpop.xlane.xlu2 %1866  ;;  %v8852_v26 = vpop.f32.mrf.mxu0  ;;  %v2631_v15 = vmax.f32 %v2630_v48, %v8841_v32  ;;  %7356 = vpow2.f32 %v2003_v29 }
 0x2cb   :  { %11528 = vst [vmem:[#allocation98_spill] sm:$0xff] %v8843_v45  ;;  %v8854_v13 = vpop.f32.mrf.mxu1  ;;  %v2132_v34 = vadd.f32 %v8866_v47, %v2131_v7 }
 0x2cc   :  { %11530 = vst [vmem:[#allocation100_spill] sm:$0xff] %v8854_v13  ;;  %v2632_v48 = vmax.f32 %v2631_v15, %v8843_v45  ;;  %v1941_v15 = vsub.f32 %v8461_v31, %v8845_v21  ;;  %v8890_v45 = vpop.xlane.xlu1 %1886 }
 0x2cd   :  { %6414 = vmatmul.msk.bf16.gmra.mxu0 %vm1619_vm1, %v8675_v36  ;;  %6422 = vmatmul.msk.bf16.gmra.mxu1 %vm1619_vm1, %v8675_v36  ;;  %v8870_v5 = vpop.eup %7350 }
 0x2ce   :  { %6430 = vmatmul.msk.bf16.gmra.mxu2 %vm1619_vm1, %v8675_v36  ;;  %11532 = vst [vmem:[#allocation102_spill] sm:$0xff] %v8870_v5  ;;  %v8873_v44 = vpop.eup %7352  ;;  %2133 = vadd.xlane.f32.xlu2 %v2132_v34 }
 0x2cf   :  { %6438 = vmatmul.msk.bf16.gmra.mxu3 %vm1619_vm1, %v8675_v36  ;;  %11533 = vst [vmem:[#allocation103_spill] sm:$0xff] %v8873_v44  ;;  %2633 = vmax.xlane.f32.xlu0 %v2632_v48  ;;  %v2125_v14 = vadd.f32 %v8873_v44, %v8870_v5  ;;  %v8892_v47 = vpop.eup %7354 }
 0x2d0   :  { %11536 = vst [vmem:[#allocation106_spill] sm:$0xff] %v8892_v47  ;;  %v8898_v24 = vpop.eup %7356 }
 0x2d1   :  { %v8876_v32 = vpop.f32.mrf.mxu2  ;;  %v8878_v40 = vpop.f32.mrf.mxu3  ;;  %v2126_v48 = vadd.f32 %v8892_v47, %v2125_v14 }
 0x2d2   :  { %11534 = vst [vmem:[#allocation104_spill] sm:$0xff] %v8876_v32  ;;  %v1872_v20 = vpop.xlane.xlu2 %1871  ;;  %v8882_v0 = vpop.f32.mrf.mxu0 }
 0x2d3   :  { %11535 = vst [vmem:[#allocation105_spill] sm:$0xff] %v8878_v40  ;;  %v1945_v58 = vsub.f32 %v8476_v52, %v1872_v20  ;;  %v1946_v36 = vsub.f32 %v8478_v53, %v1872_v20  ;;  %v8884_v7 = vpop.f32.mrf.mxu1  ;;  %v1942_v52 = vsub.f32 %v8463_v46, %v8845_v21  ;;  %v1947_v53 = vsub.f32 %v8483_v51, %v1872_v20 }
 0x2d4   :  { %v1948_v44 = vsub.f32 %v8485_v18, %v1872_v20  ;;  %v2013_v40 = vmul.f32 1.442695, %v1941_v15  ;;  %v2127_v46 = vadd.f32 %v8898_v24, %v2126_v48  ;;  %v2590_v20 = vmax.f32 %v8689_v8, %v8691_v38 }
 0x2d5   :  { %v2021_v34 = vmul.f32 1.442695, %v1945_v58  ;;  %v2023_v29 = vmul.f32 1.442695, %v1946_v36  ;;  %v2640_v58 = vmax.f32 %v8882_v0, %v8884_v7  ;;  %v2015_v32 = vmul.f32 1.442695, %v1942_v52 }
 0x2d6   :  { %v2025_v15 = vmul.f32 1.442695, %v1947_v53  ;;  %2128 = vadd.xlane.f32.xlu1 %v2127_v46  ;;  %v1949_v48 = vsub.f32 %v8487_v55, %v8856_v54  ;;  %v2027_v52 = vmul.f32 1.442695, %v1948_v44  ;;  %v8932_v44 = vpop.xlane.xlu1 %1896 }
 0x2d7   :  { %7358 = vpow2.f32 %v2021_v34 }
 0x2d8   :  { %7360 = vpow2.f32 %v2023_v29  ;;  %v2591_v29 = vmax.f32 %v2590_v20, %v8700_v57  ;;  %v2029_v46 = vmul.f32 1.442695, %v1949_v48 }
 0x2d9   :  { %v8901_v5 = vpop.f32.mrf.mxu2  ;;  %v8903_v31 = vpop.f32.mrf.mxu3  ;;  %7362 = vpow2.f32 %v2013_v40  ;;  %v2595_v40 = vmax.f32 %v8705_v35, %v8707_v63 }
 0x2da   :  { %v1882_v36 = vpop.xlane.xlu2 %1881  ;;  %v8910_v47 = vpop.f32.mrf.mxu0  ;;  %v2641_v34 = vmax.f32 %v2640_v58, %v8901_v5  ;;  %7364 = vpow2.f32 %v2015_v32 }
 0x2db   :  { %v1953_v51 = vsub.f32 %v8502_v61, %v1882_v36  ;;  %v1954_v14 = vsub.f32 %v8504_v1, %v1882_v36  ;;  %v8912_v18 = vpop.f32.mrf.mxu1  ;;  %v1943_v61 = vsub.f32 %v8472_v49, %v8845_v21  ;;  %7366 = vpow2.f32 %v2025_v15 }
 0x2dc   :  { %v2642_v58 = vmax.f32 %v2641_v34, %v8903_v31  ;;  %7368 = vpow2.f32 %v2027_v52  ;;  %v1955_v32 = vsub.f32 %v8508_v2, %v1882_v36  ;;  %v2592_v15 = vmax.f32 %v2591_v29, %v8702_v6 }
 0x2dd   :  { %6415 = vmatmul.msk.bf16.gmra.mxu0 %vm1619_vm1, %v8714_v37  ;;  %6423 = vmatmul.msk.bf16.gmra.mxu1 %vm1619_vm1, %v8714_v37  ;;  %v2037_v1 = vmul.f32 1.442695, %v1953_v51  ;;  %v2039_v53 = vmul.f32 1.442695, %v1954_v14  ;;  %v8930_v55 = vpop.eup %7358  ;;  %v2017_v20 = vmul.f32 1.442695, %v1943_v61  ;;  %v1956_v57 = vsub.f32 %v8510_v3, %v1882_v36 }
 0x2de   :  { %6431 = vmatmul.msk.bf16.gmra.mxu2 %vm1619_vm1, %v8714_v37  ;;  %v8935_v49 = vpop.eup %7360  ;;  %2643 = vmax.xlane.f32.xlu0 %v2642_v58  ;;  %v1950_v29 = vsub.f32 %v8489_v56, %v8856_v54 }
 0x2df   :  { %6439 = vmatmul.msk.bf16.gmra.mxu3 %vm1619_vm1, %v8714_v37  ;;  %v1944_v37 = vsub.f32 %v8474_v50, %v8845_v21  ;;  %7370 = vpow2.f32 %v2037_v1  ;;  %v8954_v35 = vpop.eup %7362  ;;  %v2596_v50 = vmax.f32 %v2595_v40, %v8725_v39  ;;  %2593 = vmax.xlane.f32.xlu1 %v2592_v15  ;;  %v2140_v61 = vadd.f32 %v8935_v49, %v8930_v55 }
 0x2e0   :  { %7372 = vpow2.f32 %v2039_v53  ;;  %11538 = vst [vmem:[#allocation108_spill] sm:$0xff] %v8954_v35  ;;  %v8960_v3 = vpop.eup %7364  ;;  %v2043_v40 = vmul.f32 1.442695, %v1956_v57  ;;  %v8979_v57 = vpop.xlane.xlu1 %1906 }
 0x2e1   :  { %v8940_v51 = vpop.f32.mrf.mxu2  ;;  %v8942_v14 = vpop.f32.mrf.mxu3  ;;  %11539 = vst [vmem:[#allocation109_spill] sm:$0xff] %v8960_v3  ;;  %7374 = vpow2.f32 %v2029_v46  ;;  %v2019_v53 = vmul.f32 1.442695, %v1944_v37 }
 0x2e2   :  { %11537 = vst [vmem:[#allocation107_spill] sm:$0xff] %v8942_v14  ;;  %v1892_v34 = vpop.xlane.xlu2 %1891  ;;  %v8950_v52 = vpop.f32.mrf.mxu0  ;;  %7376 = vpow2.f32 %v2017_v20  ;;  %v2031_v20 = vmul.f32 1.442695, %v1950_v29 }
 0x2e3   :  { %v1961_v48 = vsub.f32 %v8524_v9, %v1892_v34  ;;  %v1962_v2 = vsub.f32 %v8526_v10, %v1892_v34  ;;  %v8952_v63 = vpop.f32.mrf.mxu1  ;;  %v1963_v21 = vsub.f32 %v8528_v11, %v1892_v34  ;;  %v2041_v9 = vmul.f32 1.442695, %v1955_v32  ;;  %v8962_v1 = vpop.eup %7366 }
 0x2e4   :  { %11540 = vst [vmem:[#allocation110_spill] sm:$0xff] %v8962_v1  ;;  %v8966_v58 = vpop.eup %7368  ;;  %v1964_v15 = vsub.f32 %v8530_v12, %v1892_v34  ;;  %v2141_v32 = vadd.f32 %v8962_v1, %v2140_v61  ;;  %v2135_v34 = vadd.f32 %v8960_v3, %v8954_v35  ;;  %v11591_v35 = vld [vmem:[#allocation82_spill] sm:$0xff] }
 0x2e5   :  { %v2053_v36 = vmul.f32 1.442695, %v1961_v48  ;;  %v2055_v10 = vmul.f32 1.442695, %v1962_v2  ;;  %11541 = vst [vmem:[#allocation111_spill] sm:$0xff] %v8966_v58  ;;  %v8968_v11 = vpop.eup %7370  ;;  %v2597_v2 = vmax.f32 %v2596_v50, %v8727_v42  ;;  %v2650_v50 = vmax.f32 %v8950_v52, %v8952_v63 }
 0x2e6   :  { %11542 = vst [vmem:[#allocation112_spill] sm:$0xff] %v8968_v11  ;;  %v2057_v46 = vmul.f32 1.442695, %v1963_v21  ;;  %v8972_v48 = vpop.eup %7372 }
 0x2e7   :  { %7378 = vpow2.f32 %v2053_v36  ;;  %11543 = vst [vmem:[#allocation113_spill] sm:$0xff] %v8972_v48  ;;  %v2142_v36 = vadd.f32 %v8966_v58, %v2141_v32  ;;  %v8984_v21 = vpop.eup %7374  ;;  %v2059_v32 = vmul.f32 1.442695, %v1964_v15  ;;  %2598 = vmax.xlane.f32.xlu1 %v2597_v2 }
 0x2e8   :  { %7380 = vpow2.f32 %v2055_v10  ;;  %11545 = vst [vmem:[#allocation115_spill] sm:$0xff] %v8984_v21 }
 0x2e9   :  { %7382 = vpow2.f32 %v2041_v9  ;;  %v8975_v56 = vpop.f32.mrf.mxu2  ;;  %v8977_v37 = vpop.f32.mrf.mxu3  ;;  %2143 = vadd.xlane.f32.xlu2 %v2142_v36 }
 0x2ea   :  { %11544 = vst [vmem:[#allocation114_spill] sm:$0xff] %v8977_v37  ;;  %7384 = vpow2.f32 %v2019_v53  ;;  %v1902_v12 = vpop.xlane.xlu2 %1901  ;;  %v8992_v29 = vpop.f32.mrf.mxu0 }
 0x2eb   :  { %7386 = vpow2.f32 %v2043_v40  ;;  %v1969_v61 = vsub.f32 %v8547_v22, %v1902_v12  ;;  %v1970_v9 = vsub.f32 %v8549_v23, %v1902_v12  ;;  %v8990_v10 = vpop.f32.mrf.mxu1  ;;  %11547 = vst [vmem:[#allocation117_spill] sm:$0xff] %v8992_v29  ;;  %v8994_v53 = vpop.eup %7376  ;;  %v2150_v40 = vadd.f32 %v8972_v48, %v8968_v11 }
 0x2ec   :  { %11546 = vst [vmem:[#allocation116_spill] sm:$0xff] %v8990_v10  ;;  %7388 = vpow2.f32 %v2057_v46  ;;  %v1971_v42 = vsub.f32 %v8556_v27, %v1902_v12  ;;  %v2651_v23 = vmax.f32 %v2650_v50, %v8975_v56  ;;  %v1951_v46 = vsub.f32 %v8498_v59, %v8856_v54 }
 0x2ed   :  { %11548 = vst [vmem:[#allocation118_spill] sm:$0xff] %v8994_v53  ;;  %v8998_v6 = vpop.eup %7378  ;;  %v2069_v22 = vmul.f32 1.442695, %v1969_v61  ;;  %v2071_v39 = vmul.f32 1.442695, %v1970_v9  ;;  %6416 = vmatmul.msk.bf16.gmra.mxu0 %vm1619_vm1, %v8764_v41  ;;  %6424 = vmatmul.msk.bf16.gmra.mxu1 %vm1619_vm1, %v8764_v41  ;;  %7390 = vpow2.f32 %v2031_v20  ;;  %v2136_v2 = vadd.f32 %v8994_v53, %v2135_v34 }
 0x2ee   :  { %11549 = vst [vmem:[#allocation119_spill] sm:$0xff] %v8998_v6  ;;  %v9006_v15 = vpop.eup %7380  ;;  %6432 = vmatmul.msk.bf16.gmra.mxu2 %vm1619_vm1, %v8764_v41  ;;  %v1972_v50 = vsub.f32 %v8560_v30, %v1902_v12  ;;  %v2073_v20 = vmul.f32 1.442695, %v1971_v42  ;;  %v2652_v34 = vmax.f32 %v2651_v23, %v8977_v37  ;;  %v2033_v8 = vmul.f32 1.442695, %v1951_v46 }
 0x2ef   :  { %11550 = vst [vmem:[#allocation120_spill] sm:$0xff] %v9006_v15  ;;  %v9013_v27 = vpop.eup %7382  ;;  %7392 = vpow2.f32 %v2069_v22  ;;  %6440 = vmatmul.msk.bf16.gmra.mxu3 %vm1619_vm1, %v8764_v41  ;;  %v2160_v41 = vadd.f32 %v9006_v15, %v8998_v6  ;;  %v1952_v42 = vsub.f32 %v8500_v60, %v8856_v54 }
 0x2f0   :  { %11551 = vst [vmem:[#allocation121_spill] sm:$0xff] %v9013_v27  ;;  %v9017_v36 = vpop.eup %7384  ;;  %7394 = vpow2.f32 %v2071_v39  ;;  %v2151_v61 = vadd.f32 %v9013_v27, %v2150_v40  ;;  %2653 = vmax.xlane.f32.xlu0 %v2652_v34  ;;  %v2075_v60 = vmul.f32 1.442695, %v1972_v50 }
 0x2f1   :  { %11552 = vst [vmem:[#allocation122_spill] sm:$0xff] %v9017_v36  ;;  %v9021_v59 = vpop.eup %7386  ;;  %7396 = vpow2.f32 %v2059_v32  ;;  %v9024_v9 = vpop.f32.mrf.mxu2  ;;  %v2137_v30 = vadd.f32 %v9017_v36, %v2136_v2  ;;  %v1957_v32 = vsub.f32 %v8512_v4, %v8890_v45  ;;  %v2605_v2 = vmax.f32 %v8742_v33, %v8744_v16  ;;  %v11559_v16 = vld [vmem:[#allocation21_spill] sm:$0xff] }
 0x2f2   :  { %11553 = vst [vmem:[#allocation123_spill] sm:$0xff] %v9021_v59  ;;  %v9026_v38 = vpop.f32.mrf.mxu3  ;;  %v9030_v22 = vpop.eup %7388  ;;  %v2152_v39 = vadd.f32 %v9021_v59, %v2151_v61  ;;  %7398 = vpow2.f32 %v2073_v20  ;;  %v1958_v33 = vsub.f32 %v11559_v16, %v8890_v45 }
 0x2f3   :  { %11554 = vst [vmem:[#allocation124_spill] sm:$0xff] %v9030_v22  ;;  %v1912_v12 = vpop.xlane.xlu2 %1911  ;;  %v9040_v15 = vpop.f32.mrf.mxu0  ;;  %2138 = vadd.xlane.f32.xlu1 %v2137_v30  ;;  %v2161_v4 = vadd.f32 %v9030_v22, %v2160_v41  ;;  %v2606_v27 = vmax.f32 %v2605_v2, %v8754_v19  ;;  %7400 = vpow2.f32 %v2033_v8  ;;  %v2035_v30 = vmul.f32 1.442695, %v1952_v42  ;;  %v11561_v41 = vld [vmem:[#allocation33_spill] sm:$0xff] }
 0x2f4   :  { %v1977_v40 = vsub.f32 %v8582_v43, %v1912_v12  ;;  %v1978_v23 = vsub.f32 %v8584_v62, %v1912_v12  ;;  %v9042_v6 = vpop.f32.mrf.mxu1  ;;  %v9044_v46 = vpop.eup %7390  ;;  %2153 = vadd.xlane.f32.xlu2 %v2152_v39  ;;  %v1979_v43 = vsub.f32 %v8592_v17, %v1912_v12  ;;  %v2045_v39 = vmul.f32 1.442695, %v1957_v32  ;;  %v11562_v17 = vld [vmem:[#allocation34_spill] sm:$0xff] }
 0x2f5   :  { %11555 = vst [vmem:[#allocation125_spill] sm:$0xff] %v9042_v6  ;;  %v9048_v61 = vpop.xlane.xlu1 %1916  ;;  %v9051_v54 = vpop.eup %7392  ;;  %v2047_v32 = vmul.f32 1.442695, %v1958_v33 }
 0x2f6   :  { %11556 = vst [vmem:[#allocation126_spill] sm:$0xff] %v9044_v46  ;;  %v2085_v62 = vmul.f32 1.442695, %v1977_v40  ;;  %v2087_v34 = vmul.f32 1.442695, %v1978_v23  ;;  %v9054_v59 = vpop.eup %7394  ;;  %v1981_v22 = vsub.f32 %v11561_v41, %v9048_v61  ;;  %v1982_v20 = vsub.f32 %v11562_v17, %v9048_v61  ;;  %v11563_v23 = vld [vmem:[#allocation32_spill] sm:$0xff] }
 0x2f7   :  { %11557 = vst [vmem:[#allocation127_spill] sm:$0xff] %v9051_v54  ;;  %v9059_v50 = vpop.eup %7396  ;;  %v2170_v8 = vadd.f32 %v9054_v59, %v9051_v54  ;;  %v1980_v16 = vsub.f32 %v11563_v23, %v1912_v12  ;;  %v2089_v2 = vmul.f32 1.442695, %v1979_v43  ;;  %v11566_v41 = vld [vmem:[#allocation72_spill] sm:$0xff] }
 0x2f8   :  { %11558 = vst [vmem:[#allocation128_spill] sm:$0xff] %v9054_v59  ;;  %7402 = vpow2.f32 %v2085_v62  ;;  %v2162_v40 = vadd.f32 %v9059_v50, %v2161_v4  ;;  %v2607_v62 = vmax.f32 %v2606_v27, %v11566_v41  ;;  %v9078_v4 = vpop.eup %7398  ;;  %v2093_v17 = vmul.f32 1.442695, %v1981_v22  ;;  %v11572_v41 = vld [vmem:[#allocation22_spill] sm:$0xff]  ;;  %v11573_v22 = vld [vmem:[#allocation65_spill] sm:$0xff] }
 0x2f9   :  { %11560 = vst [vmem:[#allocation21_spill] sm:$0xff] %v9059_v50  ;;  %7404 = vpow2.f32 %v2087_v34  ;;  %v9069_v19 = vpop.f32.mrf.mxu2  ;;  %v2145_v34 = vadd.f32 %v9044_v46, %v8984_v21  ;;  %v9084_v43 = vpop.eup %7400  ;;  %v2095_v23 = vmul.f32 1.442695, %v1982_v20  ;;  %v2171_v33 = vadd.f32 %v9078_v4, %v2170_v8 }
 0x2fa   :  { %7406 = vpow2.f32 %v2075_v60  ;;  %11564 = vst [vmem:[#allocation33_spill] sm:$0xff] %v9069_v19  ;;  %v9071_v42 = vpop.f32.mrf.mxu3  ;;  %v1959_v59 = vsub.f32 %v11572_v41, %v8890_v45 }
 0x2fb   :  { %11565 = vst [vmem:[#allocation34_spill] sm:$0xff] %v9071_v42  ;;  %v9074_v48 = vpop.xlane.xlu2 %1921  ;;  %7408 = vpow2.f32 %v2035_v30  ;;  %v9080_v60 = vpop.f32.mrf.mxu0  ;;  %2608 = vmax.xlane.f32.xlu1 %v2607_v62  ;;  %v2091_v30 = vmul.f32 1.442695, %v1980_v16  ;;  %v11577_v16 = vld [vmem:[#allocation23_spill] sm:$0xff] }
 0x2fc   :  { %11567 = vst [vmem:[#allocation32_spill] sm:$0xff] %v9078_v4  ;;  %v9082_v12 = vpop.f32.mrf.mxu1  ;;  %7410 = vpow2.f32 %v2045_v39  ;;  %2163 = vadd.xlane.f32.xlu2 %v2162_v40  ;;  %v11575_v39 = vld [vmem:[#allocation35_spill] sm:$0xff]  ;;  %v2146_v40 = vadd.f32 %v9084_v43, %v2145_v34  ;;  %v2049_v34 = vmul.f32 1.442695, %v1959_v59 }
 0x2fd   :  { %11568 = vst [vmem:[#allocation129_spill] sm:$0xff] %v9080_v60  ;;  %7412 = vpow2.f32 %v2089_v2  ;;  %6441 = vmatmul.msk.bf16.vlgmr.msra.gmra.mxu0 %vm1619_vm1, %v11573_v22  ;;  %6449 = vmatmul.msk.bf16.vlgmr.msra.gmra.mxu1 %vm1619_vm1, %v11573_v22  ;;  %v1983_v20 = vsub.f32 %v11575_v39, %v9048_v61  ;;  %v1960_v2 = vsub.f32 %v11577_v16, %v8890_v45 }
 0x2fe   :  { %11569 = vst [vmem:[#allocation130_spill] sm:$0xff] %v9082_v12  ;;  %v9087_v27 = vpop.eup %7402  ;;  %7414 = vpow2.f32 %v2047_v32  ;;  %6457 = vmatmul.msk.bf16.vlgmr.msra.gmra.mxu2 %vm1619_vm1, %v11573_v22 }
 0x2ff   :  { %11570 = vst [vmem:[#allocation131_spill] sm:$0xff] %v9084_v43  ;;  %v9095_v54 = vpop.eup %7404  ;;  %7416 = vpow2.f32 %v2093_v17  ;;  %6465 = vmatmul.msk.bf16.vlgmr.msra.gmra.mxu3 %vm1619_vm1, %v11573_v22  ;;  %v2097_v22 = vmul.f32 1.442695, %v1983_v20  ;;  %v11587_v20 = vld [vmem:[#allocation79_spill] sm:$0xff]  ;;  %v2051_v36 = vmul.f32 1.442695, %v1960_v2 }
 0x300   :  { %11571 = vst [vmem:[#allocation132_spill] sm:$0xff] %v9087_v27  ;;  %v9102_v8 = vpop.eup %7406  ;;  %7418 = vpow2.f32 %v2095_v23  ;;  %v2180_v41 = vadd.f32 %v9095_v54, %v9087_v27 }
 0x301   :  { %11574 = vst [vmem:[#allocation22_spill] sm:$0xff] %v9095_v54  ;;  %v2172_v32 = vadd.f32 %v9102_v8, %v2171_v33  ;;  %v9111_v62 = vpop.eup %7408  ;;  %7420 = vpow2.f32 %v2091_v30  ;;  %v9113_v39 = vpop.f32.mrf.mxu2  ;;  %v11581_v33 = vld [vmem:[#allocation36_spill] sm:$0xff]  ;;  %v11582_v54 = vld [vmem:[#allocation45_spill] sm:$0xff]  ;;  %v11584_v30 = vld [vmem:[#allocation47_spill] sm:$0xff] }
 0x302   :  { %11576 = vst [vmem:[#allocation65_spill] sm:$0xff] %v9102_v8  ;;  %v9115_v4 = vpop.f32.mrf.mxu3  ;;  %v9117_v17 = vpop.eup %7410  ;;  %v2147_v43 = vadd.f32 %v9111_v62, %v2146_v40  ;;  %v1984_v16 = vsub.f32 %v11581_v33, %v9048_v61  ;;  %v11583_v8 = vld [vmem:[#allocation46_spill] sm:$0xff]  ;;  %7422 = vpow2.f32 %v2049_v34 }
 0x303   :  { %11578 = vst [vmem:[#allocation35_spill] sm:$0xff] %v9111_v62  ;;  %v1932_v45 = vpop.xlane.xlu2 %1931  ;;  %v9120_v23 = vpop.eup %7412  ;;  %v11588_v40 = vld [vmem:[#allocation78_spill] sm:$0xff]  ;;  %7424 = vpow2.f32 %v2097_v22 }
 0x304   :  { %11579 = vst [vmem:[#allocation23_spill] sm:$0xff] %v9113_v39  ;;  %v1993_v27 = vsub.f32 %v11582_v54, %v1932_v45  ;;  %v1994_v59 = vsub.f32 %v11583_v8, %v1932_v45  ;;  %v1995_v46 = vsub.f32 %v11584_v30, %v1932_v45  ;;  %v9127_v21 = vpop.f32.mrf.mxu0  ;;  %v9129_v50 = vpop.f32.mrf.mxu1  ;;  %v2615_v62 = vmax.f32 %v11588_v40, %v11587_v20  ;;  %v11589_v54 = vld [vmem:[#allocation48_spill] sm:$0xff] }
 0x305   :  { %11580 = vst [vmem:[#allocation133_spill] sm:$0xff] %v9115_v4  ;;  %v9131_v11 = vpop.eup %7414  ;;  %2148 = vadd.xlane.f32.xlu1 %v2147_v43  ;;  %2173 = vadd.xlane.f32.xlu2 %v2172_v32  ;;  %v2181_v61 = vadd.f32 %v9120_v23, %v2180_v41  ;;  %v1996_v8 = vsub.f32 %v11589_v54, %v1932_v45  ;;  %v2099_v2 = vmul.f32 1.442695, %v1984_v16  ;;  %v11592_v43 = vld [vmem:[#allocation24_spill] sm:$0xff] }
 0x306   :  { %11585 = vst [vmem:[#allocation36_spill] sm:$0xff] %v9127_v21  ;;  %v9136_v33 = vpop.eup %7416  ;;  %v2117_v30 = vmul.f32 1.442695, %v1993_v27  ;;  %v2119_v53 = vmul.f32 1.442695, %v1994_v59  ;;  %v2616_v37 = vmax.f32 %v2615_v62, %v11591_v35  ;;  %v1965_v32 = vsub.f32 %v11592_v43, %v8932_v44  ;;  %v11593_v27 = vld [vmem:[#allocation25_spill] sm:$0xff] }
 0x307   :  { %11586 = vst [vmem:[#allocation45_spill] sm:$0xff] %v9129_v50  ;;  %v9139_v3 = vpop.eup %7418  ;;  %v2121_v58 = vmul.f32 1.442695, %v1995_v46  ;;  %v1966_v34 = vsub.f32 %v11593_v27, %v8932_v44  ;;  %v2123_v45 = vmul.f32 1.442695, %v1996_v8  ;;  %v11596_v46 = vld [vmem:[#allocation83_spill] sm:$0xff]  ;;  %v2155_v16 = vadd.f32 %v9131_v11, %v9117_v17 }
 0x308   :  { %11590 = vst [vmem:[#allocation46_spill] sm:$0xff] %v9139_v3  ;;  %v9142_v1 = vpop.eup %7420  ;;  %7426 = vpow2.f32 %v2117_v30  ;;  %v2617_v22 = vmax.f32 %v2616_v37, %v11596_v46  ;;  %v2061_v30 = vmul.f32 1.442695, %v1965_v32  ;;  %v11601_v43 = vld [vmem:[#allocation55_spill] sm:$0xff] }
 0x309   :  { %7428 = vpow2.f32 %v2119_v53  ;;  %v2182_v41 = vadd.f32 %v9142_v1, %v2181_v61  ;;  %v9149_v59 = vpop.f32.mrf.mxu2  ;;  %v2185_v53 = vadd.f32 %v9139_v3, %v9136_v33  ;;  %v9158_v54 = vpop.eup %7422  ;;  %v2063_v37 = vmul.f32 1.442695, %v1966_v34 }
 0x30a   :  { %7430 = vpow2.f32 %v2051_v36  ;;  %11594 = vst [vmem:[#allocation47_spill] sm:$0xff] %v9149_v59  ;;  %v9151_v62 = vpop.f32.mrf.mxu3  ;;  %v9164_v8 = vpop.eup %7424  ;;  %v2156_v27 = vadd.f32 %v9158_v54, %v2155_v16 }
 0x30b   :  { %11595 = vst [vmem:[#allocation48_spill] sm:$0xff] %v9151_v62  ;;  %7432 = vpow2.f32 %v2121_v58  ;;  %v2186_v46 = vadd.f32 %v9164_v8, %v2185_v53 }
 0x30c   :  { %7434 = vpow2.f32 %v2099_v2  ;;  %v9160_v36 = vpop.f32.mrf.mxu0  ;;  %v9162_v61 = vpop.f32.mrf.mxu1  ;;  %11599 = vst [vmem:[#allocation134_spill] sm:$0xff] %v9164_v8 }
 0x30d   :  { %11597 = vst [vmem:[#allocation24_spill] sm:$0xff] %v9160_v36  ;;  %2618 = vmax.xlane.f32.xlu1 %v2617_v22  ;;  %2183 = vadd.xlane.f32.xlu2 %v2182_v41  ;;  %7436 = vpow2.f32 %v2123_v45  ;;  %v11603_v41 = vld [vmem:[#allocation26_spill] sm:$0xff] }
 0x30e   :  { %11598 = vst [vmem:[#allocation25_spill] sm:$0xff] %v9162_v61  ;;  %v9166_v58 = vpop.eup %7426  ;;  %6442 = vmatmul.msk.bf16.gmra.mxu0 %vm1619_vm1, %v11601_v43  ;;  %6450 = vmatmul.msk.bf16.gmra.mxu1 %vm1619_vm1, %v11601_v43  ;;  %v1967_v34 = vsub.f32 %v11603_v41, %v8932_v44  ;;  %7438 = vpow2.f32 %v2061_v30 }
 0x30f   :  { %11600 = vst [vmem:[#allocation135_spill] sm:$0xff] %v9166_v58  ;;  %v9172_v2 = vpop.eup %7428  ;;  %6458 = vmatmul.msk.bf16.gmra.mxu2 %vm1619_vm1, %v11601_v43  ;;  %6466 = vmatmul.msk.bf16.gmra.mxu3 %vm1619_vm1, %v11601_v43  ;;  %7440 = vpow2.f32 %v2063_v37  ;;  %v2625_v37 = vmax.f32 %v8806_v28, %v8811_v25  ;;  %v11615_v25 = vld [vmem:[#allocation28_spill] sm:$0xff] }
 0x310   :  { %11602 = vst [vmem:[#allocation55_spill] sm:$0xff] %v9172_v2  ;;  %v9178_v32 = vpop.eup %7430  ;;  %v2200_v45 = vadd.f32 %v9172_v2, %v9166_v58  ;;  %v11609_v2 = vld [vmem:[#allocation27_spill] sm:$0xff]  ;;  %v2065_v8 = vmul.f32 1.442695, %v1967_v34  ;;  %v1973_v28 = vsub.f32 %v11615_v25, %v8979_v57 }
 0x311   :  { %v9186_v22 = vpop.eup %7432  ;;  %v9190_v53 = vpop.f32.mrf.mxu2  ;;  %v2157_v41 = vadd.f32 %v9178_v32, %v2156_v27  ;;  %v1968_v58 = vsub.f32 %v11609_v2, %v8932_v44 }
 0x312   :  { %11604 = vst [vmem:[#allocation26_spill] sm:$0xff] %v9186_v22  ;;  %v9188_v16 = vpop.eup %7434  ;;  %v9192_v35 = vpop.f32.mrf.mxu3  ;;  %v2201_v20 = vadd.f32 %v9186_v22, %v2200_v45  ;;  %v2655_v45 = vmax.f32 %v8992_v29, %v8990_v10  ;;  %v11613_v22 = vld [vmem:[#allocation91_spill] sm:$0xff]  ;;  %7442 = vpow2.f32 %v2065_v8  ;;  %v11616_v10 = vld [vmem:[#allocation29_spill] sm:$0xff]  ;;  %v2077_v25 = vmul.f32 1.442695, %v1973_v28  ;;  %v11624_v28 = vld [vmem:[#allocation30_spill] sm:$0xff] }
 0x313   :  { %11605 = vst [vmem:[#allocation136_spill] sm:$0xff] %v9188_v16  ;;  %v2187_v40 = vadd.f32 %v9188_v16, %v2186_v46  ;;  %v9197_v43 = vpop.eup %7436  ;;  %v2626_v16 = vmax.f32 %v2625_v37, %v11613_v22  ;;  %v2067_v34 = vmul.f32 1.442695, %v1968_v58 }
 0x314   :  { %11606 = vst [vmem:[#allocation137_spill] sm:$0xff] %v9190_v53  ;;  %v9201_v30 = vpop.f32.mrf.mxu0  ;;  %v9203_v3 = vpop.f32.mrf.mxu1  ;;  %v2202_v46 = vadd.f32 %v9197_v43, %v2201_v20  ;;  %v2656_v44 = vmax.f32 %v2655_v45, %v9024_v9 }
 0x315   :  { %11607 = vst [vmem:[#allocation138_spill] sm:$0xff] %v9192_v35  ;;  %2158 = vadd.xlane.f32.xlu1 %v2157_v41  ;;  %2188 = vadd.xlane.f32.xlu2 %v2187_v40  ;;  %v9210_v27 = vpop.eup %7438  ;;  %v1974_v41 = vsub.f32 %v11616_v10, %v8979_v57  ;;  %7444 = vpow2.f32 %v2067_v34  ;;  %v3317_v10 = vmax.f32 %v9080_v60, %v9082_v12 }
 0x316   :  { %11608 = vst [vmem:[#allocation139_spill] sm:$0xff] %v9197_v43  ;;  %2203 = vadd.xlane.f32.xlu0 %v2202_v46  ;;  %v9214_v2 = vpop.eup %7440  ;;  %v11619_v43 = vld [vmem:[#allocation92_spill] sm:$0xff]  ;;  %v2657_v37 = vmax.f32 %v2656_v44, %v9026_v38  ;;  %7446 = vpow2.f32 %v2077_v25  ;;  %v2635_v25 = vmax.f32 %v8852_v26, %v8854_v13 }
 0x317   :  { %11610 = vst [vmem:[#allocation27_spill] sm:$0xff] %v9201_v30  ;;  %v2627_v29 = vmax.f32 %v2626_v16, %v11619_v43  ;;  %v2165_v45 = vadd.f32 %v9214_v2, %v9210_v27  ;;  %v2079_v22 = vmul.f32 1.442695, %v1974_v41  ;;  %v11623_v16 = vld [vmem:[#allocation75_spill] sm:$0xff]  ;;  %v3318_v44 = vmax.f32 %v3317_v10, %v9113_v39 }
 0x318   :  { %11611 = vst [vmem:[#allocation140_spill] sm:$0xff] %v9203_v3  ;;  %v9234_v46 = vpop.eup %7442  ;;  %v11628_v39 = vld [vmem:[#allocation31_spill] sm:$0xff] }
 0x319   :  { %11612 = vst [vmem:[#allocation141_spill] sm:$0xff] %v9210_v27  ;;  %v9220_v40 = vpop.f32.mrf.mxu2  ;;  %v2166_v34 = vadd.f32 %v9234_v46, %v2165_v45  ;;  %7448 = vpow2.f32 %v2079_v22  ;;  %v3319_v10 = vmax.f32 %v3318_v44, %v9115_v4  ;;  %v1976_v60 = vsub.f32 %v11628_v39, %v8979_v57  ;;  %v11632_v44 = vld [vmem:[#allocation104_spill] sm:$0xff] }
 0x31a   :  { %11614 = vst [vmem:[#allocation142_spill] sm:$0xff] %v9214_v2  ;;  %v9222_v20 = vpop.f32.mrf.mxu3  ;;  %v3327_v22 = vmax.f32 %v9160_v36, %v9162_v61  ;;  %v11635_v2 = vld [vmem:[#allocation38_spill] sm:$0xff] }
 0x31b   :  { %11617 = vst [vmem:[#allocation28_spill] sm:$0xff] %v9220_v40  ;;  %v9248_v41 = vpop.eup %7444  ;;  %v2083_v39 = vmul.f32 1.442695, %v1976_v60  ;;  %v1986_v27 = vsub.f32 %v11635_v2, %v9074_v48 }
 0x31c   :  { %11618 = vst [vmem:[#allocation29_spill] sm:$0xff] %v9222_v20  ;;  %v9228_v8 = vpop.f32.mrf.mxu0  ;;  %v9230_v58 = vpop.f32.mrf.mxu1  ;;  %v2167_v12 = vadd.f32 %v9248_v41, %v2166_v34  ;;  %v2636_v34 = vmax.f32 %v2635_v25, %v11632_v44  ;;  %v3328_v4 = vmax.f32 %v3327_v22, %v9190_v53 }
 0x31d   :  { %11620 = vst [vmem:[#allocation143_spill] sm:$0xff] %v9228_v8  ;;  %2628 = vmax.xlane.f32.xlu1 %v2627_v29  ;;  %2658 = vmax.xlane.f32.xlu2 %v2657_v37  ;;  %v1975_v29 = vsub.f32 %v11624_v28, %v8979_v57  ;;  %v3337_v2 = vmax.f32 %v9228_v8, %v9230_v58  ;;  %v11646_v8 = vld [vmem:[#allocation42_spill] sm:$0xff] }
 0x31e   :  { %11621 = vst [vmem:[#allocation144_spill] sm:$0xff] %v9230_v58  ;;  %6443 = vmatmul.msk.bf16.gmra.mxu0 %vm1619_vm1, %v11623_v16  ;;  %6451 = vmatmul.msk.bf16.gmra.mxu1 %vm1619_vm1, %v11623_v16  ;;  %v3329_v61 = vmax.f32 %v3328_v4, %v9192_v35  ;;  %v2103_v4 = vmul.f32 1.442695, %v1986_v27  ;;  %v11642_v35 = vld [vmem:[#allocation60_spill] sm:$0xff]  ;;  %v11644_v27 = vld [vmem:[#allocation41_spill] sm:$0xff] }
 0x31f   :  { %11622 = vst [vmem:[#allocation145_spill] sm:$0xff] %v9234_v46  ;;  %6459 = vmatmul.msk.bf16.gmra.mxu2 %vm1619_vm1, %v11623_v16  ;;  %6467 = vmatmul.msk.bf16.gmra.mxu3 %vm1619_vm1, %v11623_v16  ;;  %v2081_v43 = vmul.f32 1.442695, %v1975_v29  ;;  %v9266_v16 = vpop.eup %7446  ;;  %v11634_v29 = vld [vmem:[#allocation37_spill] sm:$0xff] }
 0x320   :  { %11625 = vst [vmem:[#allocation75_spill] sm:$0xff] %v9248_v41  ;;  %v9270_v57 = vpop.eup %7448  ;;  %v1985_v41 = vsub.f32 %v11634_v29, %v9074_v48 }
 0x321   :  { %v9250_v37 = vpop.f32.mrf.mxu2  ;;  %11631 = vst [vmem:[#allocation148_spill] sm:$0xff] %v9266_v16  ;;  %7450 = vpow2.f32 %v2081_v43  ;;  %v2175_v25 = vadd.f32 %v9270_v57, %v9266_v16 }
 0x322   :  { %11626 = vst [vmem:[#allocation30_spill] sm:$0xff] %v9250_v37  ;;  %v9254_v45 = vpop.f32.mrf.mxu3  ;;  %7452 = vpow2.f32 %v2083_v39  ;;  %v2101_v22 = vmul.f32 1.442695, %v1985_v41  ;;  %v3338_v39 = vmax.f32 %v3337_v2, %v9250_v37  ;;  %v11643_v41 = vld [vmem:[#allocation39_spill] sm:$0xff] }
 0x323   :  { %11627 = vst [vmem:[#allocation146_spill] sm:$0xff] %v9254_v45 }
 0x324   :  { %v9258_v28 = vpop.f32.mrf.mxu0  ;;  %v9260_v46 = vpop.f32.mrf.mxu1  ;;  %11633 = vst [vmem:[#allocation104_spill] sm:$0xff] %v9270_v57  ;;  %7454 = vpow2.f32 %v2101_v22 }
 0x325   :  { %11629 = vst [vmem:[#allocation31_spill] sm:$0xff] %v9258_v28  ;;  %2168 = vadd.xlane.f32.xlu1 %v2167_v12  ;;  %3320 = vmax.xlane.f32.xlu2 %v3319_v10  ;;  %v11637_v12 = vld [vmem:[#allocation105_spill] sm:$0xff]  ;;  %7456 = vpow2.f32 %v2103_v4 }
 0x326   :  { %11630 = vst [vmem:[#allocation147_spill] sm:$0xff] %v9260_v46  ;;  %v2637_v10 = vmax.f32 %v2636_v34, %v11637_v12  ;;  %v1927_v34 = vpop.xlane.xlu1 %1926 }
 0x327   :  { %v9290_v29 = vpop.eup %7450  ;;  %v1990_v57 = vsub.f32 %v11646_v8, %v1927_v34  ;;  %v2645_v8 = vmax.f32 %v8910_v47, %v8912_v18 }
 0x328   :  { %11641 = vst [vmem:[#allocation151_spill] sm:$0xff] %v9290_v29  ;;  %v2176_v53 = vadd.f32 %v9290_v29, %v2175_v25  ;;  %v9305_v58 = vpop.eup %7452 }
 0x329   :  { %v9276_v13 = vpop.f32.mrf.mxu2  ;;  %11645 = vst [vmem:[#allocation60_spill] sm:$0xff] %v9305_v58 }
 0x32a   :  { %11636 = vst [vmem:[#allocation37_spill] sm:$0xff] %v9276_v13  ;;  %v9280_v36 = vpop.f32.mrf.mxu3  ;;  %v2177_v37 = vadd.f32 %v9305_v58, %v2176_v53 }
 0x32b   :  { %11638 = vst [vmem:[#allocation38_spill] sm:$0xff] %v9280_v36 }
 0x32c   :  { %v9284_v43 = vpop.f32.mrf.mxu0  ;;  %v9286_v60 = vpop.f32.mrf.mxu1 }
 0x32d   :  { %11639 = vst [vmem:[#allocation149_spill] sm:$0xff] %v9284_v43  ;;  %2638 = vmax.xlane.f32.xlu1 %v2637_v10  ;;  %3330 = vmax.xlane.f32.xlu2 %v3329_v61  ;;  %v1987_v61 = vsub.f32 %v11643_v41, %v9074_v48  ;;  %v1989_v10 = vsub.f32 %v11644_v27, %v1927_v34 }
 0x32e   :  { %11640 = vst [vmem:[#allocation150_spill] sm:$0xff] %v9286_v60  ;;  %6444 = vmatmul.msk.bf16.gmra.mxu0 %vm1619_vm1, %v11642_v35  ;;  %6452 = vmatmul.msk.bf16.gmra.mxu1 %vm1619_vm1, %v11642_v35  ;;  %v3347_v25 = vmax.f32 %v9284_v43, %v9286_v60  ;;  %v3339_v41 = vmax.f32 %v3338_v39, %v9254_v45  ;;  %v2111_v60 = vmul.f32 1.442695, %v1990_v57  ;;  %v9325_v39 = vpop.xlane.xlu0 %2603  ;;  %v9327_v45 = vpop.eup %7454 }
 0x32f   :  { %6460 = vmatmul.msk.bf16.gmra.mxu2 %vm1619_vm1, %v11642_v35  ;;  %6468 = vmatmul.msk.bf16.gmra.mxu3 %vm1619_vm1, %v11642_v35  ;;  %v11649_v35 = vld [vmem:[#allocation40_spill] sm:$0xff]  ;;  %v2105_v22 = vmul.f32 1.442695, %v1987_v61  ;;  %v2109_v4 = vmul.f32 1.442695, %v1989_v10  ;;  %11652 = vst [vmem:[#allocation152_spill] sm:$0xff] %v9325_v39  ;;  %v9330_v61 = vpop.eup %7456 }
 0x330   :  { %v1988_v27 = vsub.f32 %v11649_v35, %v9074_v48  ;;  %11653 = vst [vmem:[#allocation153_spill] sm:$0xff] %v9327_v45  ;;  %v2646_v48 = vmax.f32 %v2645_v8, %v8940_v51  ;;  %v11655_v35 = vld [vmem:[#allocation43_spill] sm:$0xff]  ;;  %v11658_v8 = vld [vmem:[#allocation44_spill] sm:$0xff] }
 0x331   :  { %v9308_v2 = vpop.f32.mrf.mxu2  ;;  %11654 = vst [vmem:[#allocation154_spill] sm:$0xff] %v9330_v61  ;;  %v1991_v43 = vsub.f32 %v11655_v35, %v1927_v34  ;;  %7458 = vpow2.f32 %v2105_v22  ;;  %v9348_v22 = vpop.xlane.xlu2 %2588 }
 0x332   :  { %11647 = vst [vmem:[#allocation39_spill] sm:$0xff] %v9308_v2  ;;  %v9314_v29 = vpop.f32.mrf.mxu3  ;;  %v3348_v53 = vmax.f32 %v3347_v25, %v9308_v2  ;;  %v2107_v58 = vmul.f32 1.442695, %v1988_v27  ;;  %7460 = vpow2.f32 %v2109_v4  ;;  %v2647_v57 = vmax.f32 %v2646_v48, %v8942_v14 }
 0x333   :  { %11648 = vst [vmem:[#allocation41_spill] sm:$0xff] %v9314_v29  ;;  %7462 = vpow2.f32 %v2111_v60  ;;  %v1992_v2 = vsub.f32 %v11658_v8, %v1927_v34  ;;  %v2113_v39 = vmul.f32 1.442695, %v1991_v43 }
 0x334   :  { %v9318_v16 = vpop.f32.mrf.mxu0  ;;  %v9320_v12 = vpop.f32.mrf.mxu1  ;;  %v3349_v10 = vmax.f32 %v3348_v53, %v9314_v29  ;;  %7464 = vpow2.f32 %v2107_v58  ;;  %11662 = vst [vmem:[#allocation158_spill] sm:$0xff] %v9348_v22  ;;  %v11664_v53 = vld [vmem:[#allocation80_spill] sm:$0xff] }
 0x335   :  { %11650 = vst [vmem:[#allocation42_spill] sm:$0xff] %v9318_v16  ;;  %2178 = vadd.xlane.f32.xlu1 %v2177_v37  ;;  %3340 = vmax.xlane.f32.xlu2 %v3339_v41  ;;  %v2190_v41 = vadd.f32 %v9330_v61, %v9327_v45  ;;  %7466 = vpow2.f32 %v2113_v39  ;;  %v2115_v48 = vmul.f32 1.442695, %v1992_v2  ;;  %v11678_v61 = vld [vmem:[#allocation101_spill] sm:$0xff] }
 0x336   :  { %11651 = vst [vmem:[#allocation40_spill] sm:$0xff] %v9320_v12  ;;  %v9350_v4 = vpop.xlane.xlu0 %2613 }
 0x337   :  { %v9346_v60 = vpop.eup %7458  ;;  %11663 = vst [vmem:[#allocation159_spill] sm:$0xff] %v9350_v4  ;;  %7468 = vpow2.f32 %v2115_v48 }
 0x338   :  { %11661 = vst [vmem:[#allocation157_spill] sm:$0xff] %v9346_v60  ;;  %v9356_v43 = vpop.eup %7460  ;;  %v2191_v58 = vadd.f32 %v9346_v60, %v2190_v41 }
 0x339   :  { %v9334_v37 = vpop.f32.mrf.mxu2  ;;  %11665 = vst [vmem:[#allocation80_spill] sm:$0xff] %v9356_v43  ;;  %v9361_v34 = vpop.eup %7462 }
 0x33a   :  { %11656 = vst [vmem:[#allocation43_spill] sm:$0xff] %v9334_v37  ;;  %v9337_v25 = vpop.f32.mrf.mxu3  ;;  %v2195_v39 = vadd.f32 %v9361_v34, %v9356_v43 }
 0x33b   :  { %11657 = vst [vmem:[#allocation155_spill] sm:$0xff] %v9337_v25 }
 0x33c   :  { %v9342_v35 = vpop.f32.mrf.mxu0  ;;  %v9344_v27 = vpop.f32.mrf.mxu1  ;;  %11666 = vst [vmem:[#allocation160_spill] sm:$0xff] %v9361_v34 }
 0x33d   :  { %11659 = vst [vmem:[#allocation44_spill] sm:$0xff] %v9342_v35  ;;  %2648 = vmax.xlane.f32.xlu1 %v2647_v57  ;;  %3350 = vmax.xlane.f32.xlu2 %v3349_v10  ;;  %v3357_v10 = vmax.f32 %v9342_v35, %v9344_v27  ;;  %v9367_v57 = vpop.eup %7464 }
 0x33e   :  { %11660 = vst [vmem:[#allocation156_spill] sm:$0xff] %v9344_v27  ;;  %6445 = vmatmul.msk.bf16.gmra.mxu0 %vm1619_vm1, %v11664_v53  ;;  %6453 = vmatmul.msk.bf16.gmra.mxu1 %vm1619_vm1, %v11664_v53  ;;  %v2192_v29 = vadd.f32 %v9367_v57, %v2191_v58  ;;  %v9382_v27 = vpop.eup %7466  ;;  %v9384_v35 = vpop.xlane.xlu0 %2623 }
 0x33f   :  { %6461 = vmatmul.msk.bf16.gmra.mxu2 %vm1619_vm1, %v11664_v53  ;;  %6469 = vmatmul.msk.bf16.gmra.mxu3 %vm1619_vm1, %v11664_v53  ;;  %11667 = vst [vmem:[#allocation161_spill] sm:$0xff] %v9367_v57  ;;  %v11677_v57 = vld [vmem:[#allocation99_spill] sm:$0xff] }
 0x340   :  { %11670 = vst [vmem:[#allocation164_spill] sm:$0xff] %v9382_v27 }
 0x341   :  { %v9369_v8 = vpop.f32.mrf.mxu2  ;;  %11671 = vst [vmem:[#allocation165_spill] sm:$0xff] %v9384_v35  ;;  %v2134_v58 = vpop.xlane.xlu2 %2133  ;;  %v2660_v35 = vmax.f32 %v9040_v15, %v9042_v6 }
 0x342   :  { %11668 = vst [vmem:[#allocation162_spill] sm:$0xff] %v9369_v8  ;;  %v3358_v41 = vmax.f32 %v3357_v10, %v9369_v8  ;;  %v9373_v4 = vpop.f32.mrf.mxu3  ;;  %7470 = vrcp.f32 %v2134_v58  ;;  %v2196_v10 = vadd.f32 %v9382_v27, %v2195_v39  ;;  %v9387_v8 = vpop.eup %7468  ;;  %v11675_v58 = vld [vmem:[#allocation95_spill] sm:$0xff] }
 0x343   :  { %11669 = vst [vmem:[#allocation163_spill] sm:$0xff] %v9373_v4  ;;  %v2661_v14 = vmax.f32 %v2660_v35, %v9069_v19 }
 0x344   :  { %v9377_v2 = vpop.f32.mrf.mxu0  ;;  %v9379_v53 = vpop.f32.mrf.mxu1  ;;  %v3359_v22 = vmax.f32 %v3358_v41, %v9373_v4  ;;  %11672 = vst [vmem:[#allocation166_spill] sm:$0xff] %v9387_v8  ;;  %v2197_v48 = vadd.f32 %v9387_v8, %v2196_v10  ;;  %v11680_v8 = vld [vmem:[#allocation70_spill] sm:$0xff] }
 0x345   :  { %2193 = vadd.xlane.f32.xlu1 %v2192_v29  ;;  %v2662_v35 = vmax.f32 %v2661_v14, %v9071_v42 }
 0x346   :  { %3360 = vmax.xlane.f32.xlu2 %v3359_v22  ;;  %v11676_v22 = vld [vmem:[#allocation96_spill] sm:$0xff]  ;;  %v9404_v10 = vpop.xlane.xlu0 %2633 }
 0x347   :  { %11679 = vst [vmem:[#allocation95_spill] sm:$0xff] %v9404_v10 }
 0x348   :  { %v7471_v4 = vpop.eup %7470 }
 0x349   :  { %v9389_v34 = vpop.f32.mrf.mxu2  ;;  %v2225_v39 = vmul.f32 %v7471_v4, %v11675_v58  ;;  %v2226_v27 = vmul.f32 %v7471_v4, %v11676_v22  ;;  %v2227_v60 = vmul.f32 %v7471_v4, %v11677_v57  ;;  %v2228_v45 = vmul.f32 %v7471_v4, %v11678_v61  ;;  %v2129_v22 = vpop.xlane.xlu1 %2128 }
 0x34a   :  { %v9392_v43 = vpop.f32.mrf.mxu3  ;;  %7472 = vrcp.f32 %v2129_v22  ;;  %v11683_v22 = vld [vmem:[#allocation102_spill] sm:$0xff] }
 0x34b   :  { %v2288_v58 = vpack.c.bf16 %v2228_v45, %v2227_v60  ;;  %v3322_v60 = vmax.f32 %v9127_v21, %v9129_v50 }
 0x34c   :  { %v9394_v29 = vpop.f32.mrf.mxu0  ;;  %v9396_v41 = vpop.f32.mrf.mxu1 }
 0x34d   :  { %11673 = vst [vmem:[#allocation167_spill] sm:$0xff] %v9394_v29  ;;  %2198 = vadd.xlane.f32.xlu1 %v2197_v48  ;;  %v2287_v48 = vpack.c.bf16 %v2226_v27, %v2225_v39  ;;  %v3367_v61 = vmax.f32 %v9394_v29, %v9396_v41  ;;  %v3323_v14 = vmax.f32 %v3322_v60, %v9149_v59  ;;  %v11685_v29 = vld [vmem:[#allocation106_spill] sm:$0xff] }
 0x34e   :  { %11674 = vst [vmem:[#allocation168_spill] sm:$0xff] %v9396_v41  ;;  %6446 = vmatmul.msk.bf16.gmra.mxu0 %vm1619_vm1, %v11680_v8  ;;  %6454 = vmatmul.msk.bf16.gmra.mxu1 %vm1619_vm1, %v11680_v8 }
 0x34f   :  { %6462 = vmatmul.msk.bf16.gmra.mxu2 %vm1619_vm1, %v11680_v8  ;;  %6470 = vmatmul.msk.bf16.gmra.mxu3 %vm1619_vm1, %v11680_v8  ;;  %2319 = vst [vmem:[#allocation2 + $0x10] sm:$0xff] %v2287_v48 }
 0x350   :  { %2320 = vst [vmem:[#allocation2 + $0x18] sm:$0xff] %v2288_v58  ;;  %v7473_v48 = vpop.eup %7472 }
 0x351   :  { %v9417_v4 = vpop.f32.mrf.mxu2  ;;  %v2644_v39 = vpop.xlane.xlu0 %2643  ;;  %v2223_v42 = vmul.f32 %v7473_v48, %v11685_v29  ;;  %v2224_v19 = vmul.f32 %v7473_v48, %v8898_v24  ;;  %v3332_v24 = vmax.f32 %v9201_v30, %v9203_v3  ;;  %v11697_v3 = vld [vmem:[#allocation111_spill] sm:$0xff] }
 0x352   :  { %11681 = vst [vmem:[#allocation96_spill] sm:$0xff] %v9417_v4  ;;  %v3368_v57 = vmax.f32 %v3367_v61, %v9417_v4  ;;  %v9421_v10 = vpop.f32.mrf.mxu3  ;;  %v2709_v58 = vsub.f32 %v8882_v0, %v2644_v39  ;;  %v2221_v61 = vmul.f32 %v7473_v48, %v11683_v22  ;;  %v11684_v4 = vld [vmem:[#allocation103_spill] sm:$0xff]  ;;  %v9436_v6 = vpop.xlane.xlu1 %2593  ;;  %v3324_v0 = vmax.f32 %v3323_v14, %v9151_v62 }
 0x353   :  { %11682 = vst [vmem:[#allocation99_spill] sm:$0xff] %v9421_v10  ;;  %v2222_v41 = vmul.f32 %v7473_v48, %v11684_v4  ;;  %v2286_v50 = vpack.c.bf16 %v2224_v19, %v2223_v42  ;;  %v11690_v19 = vld [vmem:[#allocation86_spill] sm:$0xff]  ;;  %v2712_v42 = vsub.f32 %v8903_v31, %v2644_v39  ;;  %v3342_v31 = vmax.f32 %v9258_v28, %v9260_v46  ;;  %v11709_v28 = vld [vmem:[#allocation113_spill] sm:$0xff] }
 0x354   :  { %v9423_v27 = vpop.f32.mrf.mxu0  ;;  %v9425_v45 = vpop.f32.mrf.mxu1  ;;  %v3369_v8 = vmax.f32 %v3368_v57, %v9421_v10  ;;  %11686 = vst [vmem:[#allocation101_spill] sm:$0xff] %v9436_v6  ;;  %v11702_v6 = vld [vmem:[#allocation81_spill] sm:$0xff] }
 0x355   :  { %2663 = vmax.xlane.f32.xlu1 %v2662_v35  ;;  %v2710_v35 = vsub.f32 %v8884_v7, %v2644_v39  ;;  %v2285_v57 = vpack.c.bf16 %v2222_v41, %v2221_v61  ;;  %2318 = vst [vmem:[#allocation2 + $0x8] sm:$0xff] %v2286_v50  ;;  %v2711_v7 = vsub.f32 %v8901_v5, %v2644_v39  ;;  %v2823_v39 = vmul.f32 1.442695, %v2712_v42  ;;  %v11737_v10 = vld [vmem:[#allocation65_spill] sm:$0xff] }
 0x356   :  { %3370 = vmax.xlane.f32.xlu2 %v3369_v8  ;;  %v2817_v8 = vmul.f32 1.442695, %v2709_v58  ;;  %v3333_v41 = vmax.f32 %v3332_v24, %v9220_v40 }
 0x357   :  { %2317 = vst [vmem:[#allocation2] sm:$0xff] %v2285_v57  ;;  %v2819_v29 = vmul.f32 1.442695, %v2710_v35  ;;  %v2821_v5 = vmul.f32 1.442695, %v2711_v7 }
 0x358   :  { %7474 = vpow2.f32 %v2817_v8  ;;  %v3334_v14 = vmax.f32 %v3333_v41, %v9222_v20 }
 0x359   :  { %v9439_v21 = vpop.f32.mrf.mxu2  ;;  %7476 = vpow2.f32 %v2819_v29 }
 0x35a   :  { %11687 = vst [vmem:[#allocation70_spill] sm:$0xff] %v9439_v21  ;;  %v9442_v60 = vpop.f32.mrf.mxu3  ;;  %v9459_v48 = vpop.xlane.xlu1 %2598 }
 0x35b   :  { %11691 = vst [vmem:[#allocation106_spill] sm:$0xff] %v9459_v48 }
 0x35c   :  { %v9444_v22 = vpop.f32.mrf.mxu0  ;;  %v9446_v4 = vpop.f32.mrf.mxu1 }
 0x35d   :  { %11688 = vst [vmem:[#allocation102_spill] sm:$0xff] %v9444_v22  ;;  %3325 = vmax.xlane.f32.xlu1 %v3324_v0  ;;  %v2144_v50 = vpop.xlane.xlu2 %2143  ;;  %v3343_v0 = vmax.f32 %v3342_v31, %v9276_v13 }
 0x35e   :  { %11689 = vst [vmem:[#allocation103_spill] sm:$0xff] %v9446_v4  ;;  %6447 = vmatmul.msk.bf16.gmra.mxu0 %vm1619_vm1, %v11690_v19  ;;  %6455 = vmatmul.msk.bf16.gmra.mxu1 %vm1619_vm1, %v11690_v19  ;;  %7478 = vrcp.f32 %v2144_v50  ;;  %v9475_v8 = vpop.eup %7474 }
 0x35f   :  { %6463 = vmatmul.msk.bf16.gmra.mxu2 %vm1619_vm1, %v11690_v19  ;;  %6471 = vmatmul.msk.bf16.gmra.mxu3 %vm1619_vm1, %v11690_v19  ;;  %7480 = vpow2.f32 %v2821_v5  ;;  %v9477_v24 = vpop.eup %7476  ;;  %v3344_v5 = vmax.f32 %v3343_v0, %v9280_v36  ;;  %v3377_v36 = vmax.f32 %v9444_v22, %v9446_v4  ;;  %v11711_v4 = vld [vmem:[#allocation123_spill] sm:$0xff] }
 0x360   :  { %7482 = vpow2.f32 %v2823_v39  ;;  %v2912_v50 = vadd.f32 %v9477_v24, %v9475_v8 }
 0x361   :  { %v9463_v58 = vpop.f32.mrf.mxu2 }
 0x362   :  { %11692 = vst [vmem:[#allocation86_spill] sm:$0xff] %v9463_v58  ;;  %v9468_v61 = vpop.f32.mrf.mxu3 }
 0x363   :  { %11693 = vst [vmem:[#allocation169_spill] sm:$0xff] %v9468_v61  ;;  %v2654_v7 = vpop.xlane.xlu0 %2653 }
 0x364   :  { %v9470_v35 = vpop.f32.mrf.mxu0  ;;  %v9472_v57 = vpop.f32.mrf.mxu1  ;;  %v2717_v42 = vsub.f32 %v8950_v52, %v2654_v7  ;;  %v2718_v41 = vsub.f32 %v8952_v63, %v2654_v7  ;;  %v2719_v31 = vsub.f32 %v8975_v56, %v2654_v7 }
 0x365   :  { %11694 = vst [vmem:[#allocation170_spill] sm:$0xff] %v9472_v57  ;;  %3335 = vmax.xlane.f32.xlu1 %v3334_v14  ;;  %v7479_v14 = vpop.eup %7478 }
 0x366   :  { %v2139_v29 = vpop.xlane.xlu1 %2138  ;;  %v2833_v62 = vmul.f32 1.442695, %v2717_v42  ;;  %v2835_v59 = vmul.f32 1.442695, %v2718_v41  ;;  %v9487_v20 = vpop.eup %7480  ;;  %v2233_v52 = vmul.f32 %v7479_v14, %v8930_v55  ;;  %v2234_v63 = vmul.f32 %v7479_v14, %v8935_v49 }
 0x367   :  { %v2154_v19 = vpop.xlane.xlu2 %2153  ;;  %7484 = vrcp.f32 %v2139_v29  ;;  %v11696_v29 = vld [vmem:[#allocation110_spill] sm:$0xff]  ;;  %v2236_v30 = vmul.f32 %v7479_v14, %v11697_v3  ;;  %v2913_v0 = vadd.f32 %v9487_v20, %v2912_v50  ;;  %v9500_v42 = vpop.eup %7482  ;;  %v3352_v55 = vmax.f32 %v9318_v16, %v9320_v12  ;;  %v11710_v12 = vld [vmem:[#allocation121_spill] sm:$0xff] }
 0x368   :  { %7486 = vrcp.f32 %v2154_v19  ;;  %v2235_v40 = vmul.f32 %v7479_v14, %v11696_v29  ;;  %v2291_v41 = vpack.c.bf16 %v2234_v63, %v2233_v52  ;;  %v11701_v29 = vld [vmem:[#allocation114_spill] sm:$0xff]  ;;  %v2837_v14 = vmul.f32 1.442695, %v2719_v31 }
 0x369   :  { %v9485_v39 = vpop.f32.mrf.mxu2  ;;  %7488 = vpow2.f32 %v2833_v62  ;;  %v2720_v3 = vsub.f32 %v11701_v29, %v2654_v7  ;;  %v2914_v62 = vadd.f32 %v9500_v42, %v2913_v0  ;;  %v3353_v13 = vmax.f32 %v3352_v55, %v9334_v37  ;;  %v11704_v7 = vld [vmem:[#allocation109_spill] sm:$0xff]  ;;  %v11705_v31 = vld [vmem:[#allocation118_spill] sm:$0xff]  ;;  %v11708_v55 = vld [vmem:[#allocation112_spill] sm:$0xff] }
 0x36a   :  { %11695 = vst [vmem:[#allocation171_spill] sm:$0xff] %v9485_v39  ;;  %v9493_v48 = vpop.f32.mrf.mxu3  ;;  %v2292_v49 = vpack.c.bf16 %v2236_v30, %v2235_v40  ;;  %7490 = vpow2.f32 %v2835_v59  ;;  %v11703_v30 = vld [vmem:[#allocation108_spill] sm:$0xff]  ;;  %v11706_v63 = vld [vmem:[#allocation122_spill] sm:$0xff] }
 0x36b   :  { %11698 = vst [vmem:[#allocation110_spill] sm:$0xff] %v9493_v48  ;;  %2915 = vadd.xlane.f32.xlu2 %v2914_v62  ;;  %7492 = vpow2.f32 %v2837_v14 }
 0x36c   :  { %v9496_v56 = vpop.f32.mrf.mxu0  ;;  %v9498_v19 = vpop.f32.mrf.mxu1  ;;  %2323 = vst [vmem:[#allocation2 + $0x30] sm:$0xff] %v2291_v41 }
 0x36d   :  { %11699 = vst [vmem:[#allocation111_spill] sm:$0xff] %v9496_v56  ;;  %3345 = vmax.xlane.f32.xlu1 %v3344_v5  ;;  %v7485_v50 = vpop.eup %7484 }
 0x36e   :  { %11700 = vst [vmem:[#allocation172_spill] sm:$0xff] %v9498_v19  ;;  %6448 = vmatmul.msk.bf16.gmra.mxu0 %vm1619_vm1, %v11702_v6  ;;  %6456 = vmatmul.msk.bf16.gmra.mxu1 %vm1619_vm1, %v11702_v6  ;;  %v7487_v59 = vpop.eup %7486  ;;  %v2229_v40 = vmul.f32 %v7485_v50, %v11703_v30  ;;  %v2230_v5 = vmul.f32 %v7485_v50, %v11704_v7  ;;  %v9519_v41 = vpop.xlane.xlu1 %2608 }
 0x36f   :  { %6464 = vmatmul.msk.bf16.gmra.mxu2 %vm1619_vm1, %v11702_v6  ;;  %2324 = vst [vmem:[#allocation2 + $0x38] sm:$0xff] %v2292_v49  ;;  %v2231_v52 = vmul.f32 %v7485_v50, %v11705_v31  ;;  %v2232_v0 = vmul.f32 %v7485_v50, %v11706_v63  ;;  %v2164_v29 = vpop.xlane.xlu2 %2163  ;;  %v2241_v46 = vmul.f32 %v7487_v59, %v11708_v55  ;;  %v9525_v49 = vpop.eup %7488  ;;  %v2839_v31 = vmul.f32 1.442695, %v2720_v3 }
 0x370   :  { %11707 = vst [vmem:[#allocation114_spill] sm:$0xff] %v9519_v41  ;;  %v2242_v37 = vmul.f32 %v7487_v59, %v11709_v28  ;;  %v2243_v16 = vmul.f32 %v7487_v59, %v11710_v12  ;;  %v2244_v22 = vmul.f32 %v7487_v59, %v11711_v4  ;;  %v2289_v30 = vpack.c.bf16 %v2230_v5, %v2229_v40  ;;  %v9531_v63 = vpop.eup %7490  ;;  %v6491_v59 = vld [vmem:[#allocation12 + $0x20] sm:$0xf]  ;;  %v7195_v40 = vld [vmem:[#allocation12 + $0x2c] sm:$0x10] }
 0x371   :  { %11712 = vst [vmem:[#allocation81_spill] sm:$0xff] %v9525_v49  ;;  %v2290_v7 = vpack.c.bf16 %v2232_v0, %v2231_v52  ;;  %6472 = vmatmul.msk.bf16.gmra.mxu3 %vm1619_vm1, %v11702_v6  ;;  %v9529_v50 = vpop.f32.mrf.mxu2  ;;  %v3378_v12 = vmax.f32 %v3377_v36, %v9463_v58  ;;  %v3354_v4 = vmax.f32 %v3353_v13, %v9337_v25  ;;  %7494 = vrcp.f32 %v2164_v29  ;;  %v9547_v5 = vpop.eup %7492  ;;  %v11723_v25 = vld [vmem:[#allocation21_spill] sm:$0xff] }
 0x372   :  { %11713 = vst [vmem:[#allocation108_spill] sm:$0xff] %v9529_v50  ;;  %v2295_v55 = vpack.c.bf16 %v2242_v37, %v2241_v46  ;;  %v2296_v28 = vpack.c.bf16 %v2244_v22, %v2243_v16  ;;  %v9535_v62 = vpop.f32.mrf.mxu3  ;;  %v3362_v3 = vmax.f32 %v9377_v2, %v9379_v53  ;;  %v2922_v36 = vadd.f32 %v9531_v63, %v9525_v49  ;;  %v6475_v16 = vld [vmem:[#allocation12] sm:$0xf]  ;;  %v7191_v37 = vld [vmem:[#allocation12 + $0xc] sm:$0xf0] }
 0x373   :  { %11714 = vst [vmem:[#allocation109_spill] sm:$0xff] %v9531_v63  ;;  %7496 = vpow2.f32 %v2839_v31  ;;  %v6492_v46 = vor.u32 %v7195_v40, %v6491_v59  ;;  %v3379_v22 = vmax.f32 %v3378_v12, %v9468_v61  ;;  %v11721_v12 = vld [vmem:[#allocation120_spill] sm:$0xff] }
 0x374   :  { %11715 = vst [vmem:[#allocation118_spill] sm:$0xff] %v9535_v62  ;;  %v9539_v6 = vpop.f32.mrf.mxu0  ;;  %v9541_v14 = vpop.f32.mrf.mxu1  ;;  %v3363_v13 = vmax.f32 %v3362_v3, %v9389_v34  ;;  %v11722_v3 = vld [vmem:[#allocation124_spill] sm:$0xff] }
 0x375   :  { %2321 = vst [vmem:[#allocation2 + $0x20] sm:$0xff] %v2289_v30  ;;  %3355 = vmax.xlane.f32.xlu1 %v3354_v4  ;;  %v4606_v29 = vsel %vm4604_vm2, %v6492_v46, 0  ;;  %3380 = vmax.xlane.f32.xlu2 %v3379_v22  ;;  %v2923_v30 = vadd.f32 %v9547_v5, %v2922_v36  ;;  %v3372_v36 = vmax.f32 %v9423_v27, %v9425_v45  ;;  %v11734_v63 = vld [vmem:[#allocation128_spill] sm:$0xff] }
 0x376   :  { %11716 = vst [vmem:[#allocation122_spill] sm:$0xff] %v9539_v6  ;;  %4623 = vmatpush.bf16.msrb.mxu0 %v4606_v29 }
 0x377   :  { %11717 = vst [vmem:[#allocation112_spill] sm:$0xff] %v9541_v14  ;;  %v7495_v31 = vpop.eup %7494 }
 0x378   :  { %2322 = vst [vmem:[#allocation2 + $0x28] sm:$0xff] %v2290_v7  ;;  %v2149_v52 = vpop.xlane.xlu1 %2148  ;;  %v2174_v0 = vpop.xlane.xlu2 %2173  ;;  %v6476_v7 = vor.u32 %v7191_v37, %v6475_v16  ;;  %v2250_v40 = vmul.f32 %v7495_v31, %v11721_v12  ;;  %v2251_v41 = vmul.f32 %v7495_v31, %v11722_v3  ;;  %v2252_v61 = vmul.f32 %v7495_v31, %v11723_v25  ;;  %v11728_v3 = vld [vmem:[#allocation115_spill] sm:$0xff] }
 0x379   :  { %2327 = vst [vmem:[#allocation2 + $0x50] sm:$0xff] %v2295_v55  ;;  %7498 = vrcp.f32 %v2149_v52  ;;  %v3364_v55 = vmax.f32 %v3363_v13, %v9392_v43  ;;  %v9552_v4 = vpop.f32.mrf.mxu2  ;;  %v9560_v22 = vpop.eup %7496  ;;  %v3373_v25 = vmax.f32 %v3372_v36, %v9439_v21 }
 0x37a   :  { %2328 = vst [vmem:[#allocation2 + $0x58] sm:$0xff] %v2296_v28  ;;  %v11720_v28 = vld [vmem:[#allocation119_spill] sm:$0xff]  ;;  %v9558_v46 = vpop.f32.mrf.mxu3  ;;  %7500 = vrcp.f32 %v2174_v0  ;;  %v2300_v52 = vpack.c.bf16 %v2252_v61, %v2251_v41  ;;  %v2924_v29 = vadd.f32 %v9560_v22, %v2923_v30  ;;  %4624 = vmatpush.bf16.msrb.mxu0 %v6476_v7 }
 0x37b   :  { %11718 = vst [vmem:[#allocation113_spill] sm:$0xff] %v9547_v5  ;;  %v2249_v59 = vmul.f32 %v7495_v31, %v11720_v28  ;;  %v4545_v28 = vld [vmem:[#allocation8] sm:$0xf]  ;;  %v11730_v41 = vld [vmem:[#allocation131_spill] sm:$0xff]  ;;  %v3374_v36 = vmax.f32 %v3373_v25, %v9442_v60  ;;  %v3382_v25 = vmax.f32 %v9470_v35, %v9472_v57 }
 0x37c   :  { %11719 = vst [vmem:[#allocation121_spill] sm:$0xff] %v9552_v4  ;;  %v9564_v16 = vpop.f32.mrf.mxu0  ;;  %v9566_v13 = vpop.f32.mrf.mxu1 }
 0x37d   :  { %11724 = vst [vmem:[#allocation123_spill] sm:$0xff] %v9560_v22  ;;  %v2299_v37 = vpack.c.bf16 %v2250_v40, %v2249_v59  ;;  %3365 = vmax.xlane.f32.xlu1 %v3364_v55  ;;  %v11729_v59 = vld [vmem:[#allocation126_spill] sm:$0xff]  ;;  %v11731_v55 = vld [vmem:[#allocation35_spill] sm:$0xff]  ;;  %2925 = vadd.xlane.f32.xlu2 %v2924_v29 }
 0x37e   :  { %11725 = vst [vmem:[#allocation119_spill] sm:$0xff] %v9564_v16  ;;  %6505 = vmatmul.msk.bf16.vlgmr.msrb.gmra.mxu0 %vm4600_vm3, %v4545_v28 }
 0x37f   :  { %11726 = vst [vmem:[#allocation120_spill] sm:$0xff] %v9566_v13  ;;  %v7499_v31 = vpop.eup %7498 }
 0x380   :  { %2331 = vst [vmem:[#allocation2 + $0x70] sm:$0xff] %v2299_v37  ;;  %v9570_v12 = vpop.xlane.xlu1 %2618  ;;  %v2184_v0 = vpop.xlane.xlu2 %2183  ;;  %v2237_v58 = vmul.f32 %v7499_v31, %v11728_v3  ;;  %v2238_v61 = vmul.f32 %v7499_v31, %v11729_v59  ;;  %v2239_v30 = vmul.f32 %v7499_v31, %v11730_v41  ;;  %v2240_v7 = vmul.f32 %v7499_v31, %v11731_v55  ;;  %v11736_v3 = vld [vmem:[#allocation32_spill] sm:$0xff] }
 0x381   :  { %2332 = vst [vmem:[#allocation2 + $0x78] sm:$0xff] %v2300_v52  ;;  %v7501_v40 = vpop.eup %7500  ;;  %v9578_v37 = vpop.f32.mrf.mxu2  ;;  %7502 = vrcp.f32 %v2184_v0 }
 0x382   :  { %11727 = vst [vmem:[#allocation124_spill] sm:$0xff] %v9570_v12  ;;  %v2293_v52 = vpack.c.bf16 %v2238_v61, %v2237_v58  ;;  %v2294_v22 = vpack.c.bf16 %v2240_v7, %v2239_v30  ;;  %v11733_v12 = vld [vmem:[#allocation127_spill] sm:$0xff]  ;;  %v2258_v28 = vmul.f32 %v7501_v40, %v11734_v63  ;;  %v9582_v49 = vpop.f32.mrf.mxu3  ;;  %v2259_v59 = vmul.f32 %v7501_v40, %v11736_v3 }
 0x383   :  { %11732 = vst [vmem:[#allocation21_spill] sm:$0xff] %v9578_v37  ;;  %v2257_v5 = vmul.f32 %v7501_v40, %v11733_v12  ;;  %v2260_v41 = vmul.f32 %v7501_v40, %v11737_v10  ;;  %v3383_v63 = vmax.f32 %v3382_v25, %v9485_v39 }
 0x384   :  { %11735 = vst [vmem:[#allocation115_spill] sm:$0xff] %v9582_v49  ;;  %v9586_v21 = vpop.f32.mrf.mxu0  ;;  %v9588_v29 = vpop.f32.mrf.mxu1 }
 0x385   :  { %11738 = vst [vmem:[#allocation126_spill] sm:$0xff] %v9586_v21  ;;  %v2303_v58 = vpack.c.bf16 %v2258_v28, %v2257_v5  ;;  %3375 = vmax.xlane.f32.xlu1 %v3374_v36  ;;  %v2304_v31 = vpack.c.bf16 %v2260_v41, %v2259_v59  ;;  %v3384_v55 = vmax.f32 %v3383_v63, %v9493_v48  ;;  %v11742_v5 = vld [vmem:[#allocation132_spill] sm:$0xff] }
 0x386   :  { %11739 = vst [vmem:[#allocation131_spill] sm:$0xff] %v9588_v29  ;;  %v3387_v41 = vmax.f32 %v9496_v56, %v9498_v19 }
 0x387   :  { %2325 = vst [vmem:[#allocation2 + $0x40] sm:$0xff] %v2293_v52  ;;  %v7503_v30 = vpop.eup %7502 }
 0x388   :  { %2326 = vst [vmem:[#allocation2 + $0x48] sm:$0xff] %v2294_v22  ;;  %v2159_v12 = vpop.xlane.xlu1 %2158  ;;  %v2189_v61 = vpop.xlane.xlu2 %2188  ;;  %v2265_v0 = vmul.f32 %v7503_v30, %v11742_v5  ;;  %v11743_v22 = vld [vmem:[#allocation22_spill] sm:$0xff]  ;;  %v2267_v52 = vmul.f32 %v7503_v30, %v9120_v23  ;;  %v2268_v28 = vmul.f32 %v7503_v30, %v9142_v1 }
 0x389   :  { %2335 = vst [vmem:[#allocation2 + $0x90] sm:$0xff] %v2303_v58  ;;  %7504 = vrcp.f32 %v2159_v12  ;;  %v9593_v10 = vpop.f32.mrf.mxu2  ;;  %v2204_v7 = vpop.xlane.xlu0 %2203  ;;  %v2266_v36 = vmul.f32 %v7503_v30, %v11743_v22  ;;  %v11748_v22 = vld [vmem:[#allocation134_spill] sm:$0xff] }
 0x38a   :  { %2336 = vst [vmem:[#allocation2 + $0x98] sm:$0xff] %v2304_v31  ;;  %7506 = vrcp.f32 %v2189_v61  ;;  %v9596_v40 = vpop.f32.mrf.mxu3  ;;  %v2308_v58 = vpack.c.bf16 %v2268_v28, %v2267_v52  ;;  %v3388_v31 = vmax.f32 %v3387_v41, %v9529_v50  ;;  %v11749_v52 = vld [vmem:[#allocation136_spill] sm:$0xff] }
 0x38b   :  { %11740 = vst [vmem:[#allocation35_spill] sm:$0xff] %v9593_v10  ;;  %v2307_v25 = vpack.c.bf16 %v2266_v36, %v2265_v0  ;;  %7508 = vrcp.f32 %v2204_v7  ;;  %v11747_v0 = vld [vmem:[#allocation46_spill] sm:$0xff] }
 0x38c   :  { %11741 = vst [vmem:[#allocation127_spill] sm:$0xff] %v9596_v40  ;;  %v9602_v3 = vpop.f32.mrf.mxu0  ;;  %v9604_v59 = vpop.f32.mrf.mxu1 }
 0x38d   :  { %11744 = vst [vmem:[#allocation128_spill] sm:$0xff] %v9602_v3  ;;  %3385 = vmax.xlane.f32.xlu1 %v3384_v55 }
 0x38e   :  { %11745 = vst [vmem:[#allocation32_spill] sm:$0xff] %v9604_v59 }
 0x38f   :  { %v7505_v63 = vpop.eup %7504  ;;  %2339 = vst [vmem:[#allocation2 + $0xb0] sm:$0xff] %v2307_v25 }
 0x390   :  { %v9609_v12 = vpop.xlane.xlu1 %2628  ;;  %v7507_v23 = vpop.eup %7506  ;;  %2340 = vst [vmem:[#allocation2 + $0xb8] sm:$0xff] %v2308_v58  ;;  %v2245_v1 = vmul.f32 %v7505_v63, %v9117_v17  ;;  %v2246_v61 = vmul.f32 %v7505_v63, %v9131_v11  ;;  %v2247_v30 = vmul.f32 %v7505_v63, %v9158_v54  ;;  %v2248_v5 = vmul.f32 %v7505_v63, %v9178_v32 }
 0x391   :  { %11746 = vst [vmem:[#allocation65_spill] sm:$0xff] %v9609_v12  ;;  %v2269_v55 = vmul.f32 %v7507_v23, %v9136_v33  ;;  %v2270_v7 = vmul.f32 %v7507_v23, %v11747_v0  ;;  %v2271_v36 = vmul.f32 %v7507_v23, %v11748_v22  ;;  %v2272_v28 = vmul.f32 %v7507_v23, %v11749_v52  ;;  %v2659_v41 = vpop.xlane.xlu2 %2658  ;;  %v7509_v54 = vpop.eup %7508  ;;  %v11754_v0 = vld [vmem:[#allocation117_spill] sm:$0xff]  ;;  %v11755_v23 = vld [vmem:[#allocation116_spill] sm:$0xff] }
 0x392   :  { %v9619_v25 = vpop.f32.mrf.mxu2  ;;  %v2297_v58 = vpack.c.bf16 %v2246_v61, %v2245_v1  ;;  %v2298_v50 = vpack.c.bf16 %v2248_v5, %v2247_v30  ;;  %v3389_v17 = vmax.f32 %v3388_v31, %v9535_v62  ;;  %v9622_v11 = vpop.f32.mrf.mxu3  ;;  %v2721_v22 = vsub.f32 %v11754_v0, %v2659_v41  ;;  %v11756_v61 = vld [vmem:[#allocation135_spill] sm:$0xff] }
 0x393   :  { %11750 = vst [vmem:[#allocation132_spill] sm:$0xff] %v9619_v25  ;;  %v2309_v19 = vpack.c.bf16 %v2270_v7, %v2269_v55  ;;  %v2310_v32 = vpack.c.bf16 %v2272_v28, %v2271_v36  ;;  %v2722_v52 = vsub.f32 %v11755_v23, %v2659_v41  ;;  %v2281_v31 = vmul.f32 %v7509_v54, %v11756_v61  ;;  %v11757_v55 = vld [vmem:[#allocation55_spill] sm:$0xff]  ;;  %v11758_v28 = vld [vmem:[#allocation26_spill] sm:$0xff] }
 0x394   :  { %11751 = vst [vmem:[#allocation22_spill] sm:$0xff] %v9622_v11  ;;  %v9624_v63 = vpop.f32.mrf.mxu0  ;;  %v9626_v33 = vpop.f32.mrf.mxu1  ;;  %v2841_v1 = vmul.f32 1.442695, %v2721_v22  ;;  %v2723_v30 = vsub.f32 %v9024_v9, %v2659_v41  ;;  %v2282_v7 = vmul.f32 %v7509_v54, %v11757_v55  ;;  %v2283_v62 = vmul.f32 %v7509_v54, %v11758_v28 }
 0x395   :  { %11752 = vst [vmem:[#allocation46_spill] sm:$0xff] %v9624_v63  ;;  %3390 = vmax.xlane.f32.xlu1 %v3389_v17  ;;  %v2843_v5 = vmul.f32 1.442695, %v2722_v52  ;;  %v2724_v0 = vsub.f32 %v9026_v38, %v2659_v41 }
 0x396   :  { %11753 = vst [vmem:[#allocation134_spill] sm:$0xff] %v9626_v33  ;;  %v2315_v23 = vpack.c.bf16 %v2282_v7, %v2281_v31  ;;  %7510 = vpow2.f32 %v2841_v1 }
 0x397   :  { %2329 = vst [vmem:[#allocation2 + $0x60] sm:$0xff] %v2297_v58  ;;  %v11759_v58 = vld [vmem:[#allocation139_spill] sm:$0xff]  ;;  %7512 = vpow2.f32 %v2843_v5  ;;  %v2847_v52 = vmul.f32 1.442695, %v2724_v0  ;;  %v11769_v5 = vld [vmem:[#allocation105_spill] sm:$0xff] }
 0x398   :  { %2330 = vst [vmem:[#allocation2 + $0x68] sm:$0xff] %v2298_v50  ;;  %v2169_v36 = vpop.xlane.xlu1 %2168  ;;  %v2284_v56 = vmul.f32 %v7509_v54, %v11759_v58 }
 0x399   :  { %2341 = vst [vmem:[#allocation2 + $0xc0] sm:$0xff] %v2309_v19  ;;  %7514 = vrcp.f32 %v2169_v36  ;;  %v9644_v54 = vpop.xlane.xlu2 %3320 }
 0x39a   :  { %2342 = vst [vmem:[#allocation2 + $0xc8] sm:$0xff] %v2310_v32  ;;  %v9636_v17 = vpop.f32.mrf.mxu2  ;;  %v2316_v19 = vpack.c.bf16 %v2284_v56, %v2283_v62  ;;  %v9638_v50 = vpop.f32.mrf.mxu3  ;;  %v2845_v32 = vmul.f32 1.442695, %v2723_v30  ;;  %v11766_v62 = vld [vmem:[#allocation100_spill] sm:$0xff] }
 0x39b   :  { %11760 = vst [vmem:[#allocation136_spill] sm:$0xff] %v9636_v17 }
 0x39c   :  { %11761 = vst [vmem:[#allocation117_spill] sm:$0xff] %v9638_v50  ;;  %v9640_v9 = vpop.f32.mrf.mxu0  ;;  %v9642_v22 = vpop.f32.mrf.mxu1  ;;  %7516 = vpow2.f32 %v2845_v32  ;;  %v11774_v32 = vld [vmem:[#allocation141_spill] sm:$0xff] }
 0x39d   :  { %2347 = vst [vmem:[#allocation2 + $0xf0] sm:$0xff] %v2315_v23  ;;  %v9646_v41 = vpop.eup %7510  ;;  %7518 = vpow2.f32 %v2847_v52 }
 0x39e   :  { %11762 = vst [vmem:[#allocation116_spill] sm:$0xff] %v9640_v9  ;;  %v9651_v31 = vpop.eup %7512 }
 0x39f   :  { %11763 = vst [vmem:[#allocation135_spill] sm:$0xff] %v9642_v22 }
 0x3a0   :  { %2348 = vst [vmem:[#allocation2 + $0xf8] sm:$0xff] %v2316_v19  ;;  %v2639_v38 = vpop.xlane.xlu1 %2638 }
 0x3a1   :  { %11764 = vst [vmem:[#allocation55_spill] sm:$0xff] %v9644_v54  ;;  %v2705_v56 = vsub.f32 %v8852_v26, %v2639_v38  ;;  %v2706_v1 = vsub.f32 %v11766_v62, %v2639_v38  ;;  %v2707_v61 = vsub.f32 %v11632_v44, %v2639_v38  ;;  %v2708_v55 = vsub.f32 %v11769_v5, %v2639_v38  ;;  %v7515_v26 = vpop.eup %7514  ;;  %v11775_v62 = vld [vmem:[#allocation142_spill] sm:$0xff]  ;;  %v11777_v5 = vld [vmem:[#allocation75_spill] sm:$0xff] }
 0x3a2   :  { %11765 = vst [vmem:[#allocation26_spill] sm:$0xff] %v9646_v41  ;;  %v9653_v30 = vpop.f32.mrf.mxu2  ;;  %v9656_v28 = vpop.f32.mrf.mxu3  ;;  %v2927_v44 = vadd.f32 %v9651_v31, %v9646_v41  ;;  %v2253_v52 = vmul.f32 %v7515_v26, %v11774_v32  ;;  %v2254_v38 = vmul.f32 %v7515_v26, %v11775_v62  ;;  %v2256_v54 = vmul.f32 %v7515_v26, %v11777_v5 }
 0x3a3   :  { %11767 = vst [vmem:[#allocation139_spill] sm:$0xff] %v9651_v31  ;;  %v2809_v7 = vmul.f32 1.442695, %v2705_v56  ;;  %v2811_v36 = vmul.f32 1.442695, %v2706_v1  ;;  %v9664_v19 = vpop.eup %7516  ;;  %v11776_v56 = vld [vmem:[#allocation145_spill] sm:$0xff]  ;;  %v9673_v31 = vpop.xlane.xlu2 %3330 }
 0x3a4   :  { %11768 = vst [vmem:[#allocation100_spill] sm:$0xff] %v9653_v30  ;;  %v9658_v58 = vpop.f32.mrf.mxu0  ;;  %v9660_v0 = vpop.f32.mrf.mxu1  ;;  %v2813_v23 = vmul.f32 1.442695, %v2707_v61  ;;  %v2255_v1 = vmul.f32 %v7515_v26, %v11776_v56  ;;  %v2815_v12 = vmul.f32 1.442695, %v2708_v55  ;;  %v2928_v48 = vadd.f32 %v9664_v19, %v2927_v44 }
 0x3a5   :  { %11770 = vst [vmem:[#allocation105_spill] sm:$0xff] %v9656_v28  ;;  %7520 = vpow2.f32 %v2809_v7  ;;  %v9671_v39 = vpop.eup %7518  ;;  %v2301_v61 = vpack.c.bf16 %v2254_v38, %v2253_v52  ;;  %v4054_v55 = vmax.f32 %v9586_v21, %v9588_v29 }
 0x3a6   :  { %11771 = vst [vmem:[#allocation173_spill] sm:$0xff] %v9658_v58  ;;  %7522 = vpow2.f32 %v2811_v36  ;;  %v2302_v7 = vpack.c.bf16 %v2256_v54, %v2255_v1  ;;  %v2929_v32 = vadd.f32 %v9671_v39, %v2928_v48 }
 0x3a7   :  { %11772 = vst [vmem:[#allocation174_spill] sm:$0xff] %v9660_v0  ;;  %7524 = vpow2.f32 %v2813_v23  ;;  %v4055_v48 = vmax.f32 %v4054_v55, %v9593_v10 }
 0x3a8   :  { %11773 = vst [vmem:[#allocation175_spill] sm:$0xff] %v9664_v19  ;;  %v2179_v57 = vpop.xlane.xlu1 %2178  ;;  %7526 = vpow2.f32 %v2815_v12  ;;  %2930 = vadd.xlane.f32.xlu2 %v2929_v32 }
 0x3a9   :  { %11778 = vst [vmem:[#allocation141_spill] sm:$0xff] %v9671_v39  ;;  %7528 = vrcp.f32 %v2179_v57  ;;  %v4056_v5 = vmax.f32 %v4055_v48, %v9596_v40  ;;  %v4064_v57 = vmax.f32 %v9624_v63, %v9626_v33 }
 0x3aa   :  { %11779 = vst [vmem:[#allocation142_spill] sm:$0xff] %v9673_v31  ;;  %v9676_v62 = vpop.f32.mrf.mxu2  ;;  %v9682_v36 = vpop.f32.mrf.mxu3 }
 0x3ab   :  { %2333 = vst [vmem:[#allocation2 + $0x80] sm:$0xff] %v2301_v61  ;;  %v9678_v56 = vpop.eup %7520  ;;  %v9707_v29 = vpop.xlane.xlu2 %3340 }
 0x3ac   :  { %11780 = vst [vmem:[#allocation145_spill] sm:$0xff] %v9676_v62  ;;  %v9684_v54 = vpop.f32.mrf.mxu0  ;;  %v9686_v26 = vpop.f32.mrf.mxu1 }
 0x3ad   :  { %11781 = vst [vmem:[#allocation75_spill] sm:$0xff] %v9678_v56  ;;  %v9688_v23 = vpop.eup %7522 }
 0x3ae   :  { %2334 = vst [vmem:[#allocation2 + $0x88] sm:$0xff] %v2302_v7  ;;  %v2907_v44 = vadd.f32 %v9688_v23, %v9678_v56  ;;  %v9693_v52 = vpop.eup %7524 }
 0x3af   :  { %11782 = vst [vmem:[#allocation176_spill] sm:$0xff] %v9682_v36  ;;  %v9696_v1 = vpop.eup %7526 }
 0x3b0   :  { %11783 = vst [vmem:[#allocation177_spill] sm:$0xff] %v9684_v54  ;;  %v2649_v38 = vpop.xlane.xlu1 %2648  ;;  %v2908_v12 = vadd.f32 %v9693_v52, %v2907_v44  ;;  %4057 = vmax.xlane.f32.xlu2 %v4056_v5  ;;  %v11790_v44 = vld [vmem:[#allocation107_spill] sm:$0xff] }
 0x3b1   :  { %11784 = vst [vmem:[#allocation178_spill] sm:$0xff] %v9686_v26  ;;  %v2713_v61 = vsub.f32 %v8910_v47, %v2649_v38  ;;  %v2714_v7 = vsub.f32 %v8912_v18, %v2649_v38  ;;  %v2715_v32 = vsub.f32 %v8940_v51, %v2649_v38  ;;  %v2716_v21 = vsub.f32 %v11790_v44, %v2649_v38  ;;  %v7529_v47 = vpop.eup %7528  ;;  %v11796_v5 = vld [vmem:[#allocation151_spill] sm:$0xff]  ;;  %v11797_v38 = vld [vmem:[#allocation60_spill] sm:$0xff] }
 0x3b2   :  { %11785 = vst [vmem:[#allocation179_spill] sm:$0xff] %v9688_v23  ;;  %v2909_v55 = vadd.f32 %v9696_v1, %v2908_v12  ;;  %v9705_v10 = vpop.f32.mrf.mxu2  ;;  %v9710_v40 = vpop.f32.mrf.mxu3  ;;  %v4065_v18 = vmax.f32 %v4064_v57, %v9636_v17  ;;  %v11794_v12 = vld [vmem:[#allocation148_spill] sm:$0xff]  ;;  %v2263_v56 = vmul.f32 %v7529_v47, %v11796_v5 }
 0x3b3   :  { %11786 = vst [vmem:[#allocation180_spill] sm:$0xff] %v9693_v52  ;;  %v2825_v31 = vmul.f32 1.442695, %v2713_v61  ;;  %v2827_v48 = vmul.f32 1.442695, %v2714_v7  ;;  %v2261_v63 = vmul.f32 %v7529_v47, %v11794_v12  ;;  %v2264_v61 = vmul.f32 %v7529_v47, %v11797_v38  ;;  %v9726_v12 = vpop.xlane.xlu2 %3350 }
 0x3b4   :  { %11787 = vst [vmem:[#allocation181_spill] sm:$0xff] %v9696_v1  ;;  %v2829_v51 = vmul.f32 1.442695, %v2715_v32  ;;  %2910 = vadd.xlane.f32.xlu0 %v2909_v55  ;;  %v9713_v52 = vpop.f32.mrf.mxu0  ;;  %v9715_v33 = vpop.f32.mrf.mxu1  ;;  %v11795_v1 = vld [vmem:[#allocation104_spill] sm:$0xff]  ;;  %v2831_v39 = vmul.f32 1.442695, %v2716_v21  ;;  %v4066_v32 = vmax.f32 %v4065_v18, %v9638_v50  ;;  %v3392_v50 = vmax.f32 %v9539_v6, %v9541_v14 }
 0x3b5   :  { %11788 = vst [vmem:[#allocation182_spill] sm:$0xff] %v9705_v10  ;;  %v2262_v23 = vmul.f32 %v7529_v47, %v11795_v1  ;;  %7530 = vpow2.f32 %v2825_v31  ;;  %v2306_v44 = vpack.c.bf16 %v2264_v61, %v2263_v56  ;;  %v4074_v1 = vmax.f32 %v9658_v58, %v9660_v0  ;;  %v11814_v6 = vld [vmem:[#allocation156_spill] sm:$0xff] }
 0x3b6   :  { %11789 = vst [vmem:[#allocation183_spill] sm:$0xff] %v9707_v29  ;;  %7532 = vpow2.f32 %v2827_v48  ;;  %v4084_v61 = vmax.f32 %v9713_v52, %v9715_v33 }
 0x3b7   :  { %11791 = vst [vmem:[#allocation107_spill] sm:$0xff] %v9710_v40  ;;  %v2305_v7 = vpack.c.bf16 %v2262_v23, %v2261_v63  ;;  %7534 = vpow2.f32 %v2829_v51  ;;  %v4075_v48 = vmax.f32 %v4074_v1, %v9676_v62 }
 0x3b8   :  { %11792 = vst [vmem:[#allocation184_spill] sm:$0xff] %v9713_v52  ;;  %v2194_v57 = vpop.xlane.xlu1 %2193  ;;  %7536 = vpow2.f32 %v2831_v39  ;;  %4067 = vmax.xlane.f32.xlu2 %v4066_v32 }
 0x3b9   :  { %11793 = vst [vmem:[#allocation185_spill] sm:$0xff] %v9715_v33  ;;  %7538 = vrcp.f32 %v2194_v57  ;;  %v4076_v38 = vmax.f32 %v4075_v48, %v9682_v36  ;;  %v11810_v33 = vld [vmem:[#allocation154_spill] sm:$0xff] }
 0x3ba   :  { %2337 = vst [vmem:[#allocation2 + $0xa0] sm:$0xff] %v2305_v7  ;;  %v9722_v55 = vpop.f32.mrf.mxu2  ;;  %v9728_v31 = vpop.f32.mrf.mxu3 }
 0x3bb   :  { %2338 = vst [vmem:[#allocation2 + $0xa8] sm:$0xff] %v2306_v44  ;;  %v9730_v63 = vpop.eup %7530  ;;  %v4085_v57 = vmax.f32 %v4084_v61, %v9722_v55  ;;  %v9753_v32 = vpop.xlane.xlu2 %3360  ;;  %v11812_v61 = vld [vmem:[#allocation161_spill] sm:$0xff] }
 0x3bc   :  { %11798 = vst [vmem:[#allocation148_spill] sm:$0xff] %v9722_v55  ;;  %v9732_v21 = vpop.f32.mrf.mxu0  ;;  %v9734_v56 = vpop.f32.mrf.mxu1  ;;  %v3430_v62 = vsub.f32 %v11814_v6, %v9753_v32 }
 0x3bd   :  { %11799 = vst [vmem:[#allocation104_spill] sm:$0xff] %v9730_v63  ;;  %v9736_v23 = vpop.eup %7532  ;;  %v4086_v0 = vmax.f32 %v4085_v57, %v9728_v31 }
 0x3be   :  { %11800 = vst [vmem:[#allocation151_spill] sm:$0xff] %v9732_v21  ;;  %v2917_v47 = vadd.f32 %v9736_v23, %v9730_v63  ;;  %v9741_v39 = vpop.eup %7534  ;;  %v3393_v63 = vmax.f32 %v3392_v50, %v9552_v4 }
 0x3bf   :  { %11801 = vst [vmem:[#allocation60_spill] sm:$0xff] %v9734_v56  ;;  %v9744_v5 = vpop.eup %7536 }
 0x3c0   :  { %11802 = vst [vmem:[#allocation186_spill] sm:$0xff] %v9736_v23  ;;  %v2199_v18 = vpop.xlane.xlu1 %2198  ;;  %v2918_v51 = vadd.f32 %v9741_v39, %v2917_v47  ;;  %4077 = vmax.xlane.f32.xlu2 %v4076_v38  ;;  %v7539_v47 = vpop.eup %7538  ;;  %v11811_v38 = vld [vmem:[#allocation157_spill] sm:$0xff] }
 0x3c1   :  { %11803 = vst [vmem:[#allocation187_spill] sm:$0xff] %v9741_v39  ;;  %7540 = vrcp.f32 %v2199_v18  ;;  %v11809_v18 = vld [vmem:[#allocation153_spill] sm:$0xff]  ;;  %v2274_v52 = vmul.f32 %v7539_v47, %v11810_v33  ;;  %v2276_v55 = vmul.f32 %v7539_v47, %v11812_v61  ;;  %v11813_v39 = vld [vmem:[#allocation44_spill] sm:$0xff] }
 0x3c2   :  { %11804 = vst [vmem:[#allocation188_spill] sm:$0xff] %v9744_v5  ;;  %v2919_v7 = vadd.f32 %v9744_v5, %v2918_v51  ;;  %v9750_v44 = vpop.f32.mrf.mxu2  ;;  %v9755_v1 = vpop.f32.mrf.mxu3  ;;  %v2273_v51 = vmul.f32 %v7539_v47, %v11809_v18  ;;  %v2275_v5 = vmul.f32 %v7539_v47, %v11811_v38  ;;  %v3429_v23 = vsub.f32 %v11813_v39, %v9753_v32  ;;  %v11815_v18 = vld [vmem:[#allocation80_spill] sm:$0xff]  ;;  %v11818_v47 = vld [vmem:[#allocation166_spill] sm:$0xff]  ;;  %v11819_v39 = vld [vmem:[#allocation125_spill] sm:$0xff] }
 0x3c3   :  { %11805 = vst [vmem:[#allocation189_spill] sm:$0xff] %v9750_v44  ;;  %v11816_v33 = vld [vmem:[#allocation160_spill] sm:$0xff] }
 0x3c4   :  { %11806 = vst [vmem:[#allocation190_spill] sm:$0xff] %v9755_v1  ;;  %2920 = vadd.xlane.f32.xlu0 %v2919_v7  ;;  %v9759_v48 = vpop.f32.mrf.mxu0  ;;  %v9761_v17 = vpop.f32.mrf.mxu1  ;;  %v2311_v14 = vpack.c.bf16 %v2274_v52, %v2273_v51  ;;  %v2312_v7 = vpack.c.bf16 %v2276_v55, %v2275_v5  ;;  %v11817_v38 = vld [vmem:[#allocation164_spill] sm:$0xff]  ;;  %v11820_v55 = vld [vmem:[#allocation33_spill] sm:$0xff] }
 0x3c5   :  { %11807 = vst [vmem:[#allocation191_spill] sm:$0xff] %v9759_v48  ;;  %v4094_v6 = vmax.f32 %v9759_v48, %v9761_v17 }
 0x3c6   :  { %11808 = vst [vmem:[#allocation192_spill] sm:$0xff] %v9761_v17 }
 0x3c7   :  { %v7541_v36 = vpop.eup %7540  ;;  %2343 = vst [vmem:[#allocation2 + $0xd0] sm:$0xff] %v2311_v14 }
 0x3c8   :  { %v2277_v58 = vmul.f32 %v7541_v36, %v11815_v18  ;;  %v2278_v19 = vmul.f32 %v7541_v36, %v11816_v33  ;;  %v2279_v41 = vmul.f32 %v7541_v36, %v11817_v38  ;;  %v2280_v61 = vmul.f32 %v7541_v36, %v11818_v47  ;;  %v2664_v29 = vpop.xlane.xlu1 %2663  ;;  %2344 = vst [vmem:[#allocation2 + $0xd8] sm:$0xff] %v2312_v7  ;;  %v11822_v36 = vld [vmem:[#allocation34_spill] sm:$0xff] }
 0x3c9   :  { %v2725_v50 = vsub.f32 %v9040_v15, %v2664_v29  ;;  %v2726_v52 = vsub.f32 %v11819_v39, %v2664_v29  ;;  %v2727_v5 = vsub.f32 %v11820_v55, %v2664_v29  ;;  %v3525_v18 = vmul.f32 1.442695, %v3429_v23  ;;  %4087 = vmax.xlane.f32.xlu2 %v4086_v0 }
 0x3ca   :  { %v2313_v57 = vpack.c.bf16 %v2278_v19, %v2277_v58  ;;  %v2314_v51 = vpack.c.bf16 %v2280_v61, %v2279_v41  ;;  %v3394_v33 = vmax.f32 %v3393_v63, %v9558_v46  ;;  %v9783_v38 = vpop.f32.mrf.mxu2  ;;  %v2728_v14 = vsub.f32 %v11822_v36, %v2664_v29  ;;  %v9787_v4 = vpop.f32.mrf.mxu3  ;;  %v11826_v63 = vld [vmem:[#allocation162_spill] sm:$0xff] }
 0x3cb   :  { %11821 = vst [vmem:[#allocation153_spill] sm:$0xff] %v9783_v38  ;;  %v2849_v47 = vmul.f32 1.442695, %v2725_v50  ;;  %v2851_v15 = vmul.f32 1.442695, %v2726_v52  ;;  %v4095_v39 = vmax.f32 %v4094_v6, %v9783_v38  ;;  %v4049_v55 = vmax.f32 %v9564_v16, %v9566_v13  ;;  %v11830_v6 = vld [vmem:[#allocation163_spill] sm:$0xff] }
 0x3cc   :  { %11823 = vst [vmem:[#allocation154_spill] sm:$0xff] %v9787_v4  ;;  %v2853_v58 = vmul.f32 1.442695, %v2727_v5  ;;  %3395 = vmax.xlane.f32.xlu0 %v3394_v33  ;;  %v9791_v41 = vpop.f32.mrf.mxu0  ;;  %v9793_v19 = vpop.f32.mrf.mxu1  ;;  %v3527_v0 = vmul.f32 1.442695, %v3430_v62  ;;  %v3431_v23 = vsub.f32 %v11826_v63, %v9753_v32  ;;  %v4059_v36 = vmax.f32 %v9602_v3, %v9604_v59  ;;  %v11840_v13 = vld [vmem:[#allocation49_spill] sm:$0xff] }
 0x3cd   :  { %2345 = vst [vmem:[#allocation2 + $0xe0] sm:$0xff] %v2313_v57  ;;  %7542 = vpow2.f32 %v2849_v47  ;;  %v4050_v29 = vmax.f32 %v4049_v55, %v9578_v37  ;;  %v2855_v7 = vmul.f32 1.442695, %v2728_v14  ;;  %v4096_v61 = vmax.f32 %v4095_v39, %v9787_v4  ;;  %v7227_v47 = vld [vmem:[#allocation2 + $0xec] sm:$0xf0]  ;;  %v11839_v37 = vld [vmem:[#allocation158_spill] sm:$0xff] }
 0x3ce   :  { %11824 = vst [vmem:[#allocation157_spill] sm:$0xff] %v9791_v41  ;;  %7544 = vpow2.f32 %v2851_v15  ;;  %v3432_v57 = vsub.f32 %v11830_v6, %v9753_v32  ;;  %v7223_v63 = vld [vmem:[#allocation2 + $0xcc] sm:$0xf0]  ;;  %v6607_v6 = vld [vmem:[#allocation2 + $0xc0] sm:$0xf]  ;;  %v11843_v59 = vld [vmem:[#allocation63_spill] sm:$0xff] }
 0x3cf   :  { %11825 = vst [vmem:[#allocation161_spill] sm:$0xff] %v9793_v19  ;;  %7546 = vpow2.f32 %v3525_v18  ;;  %v4051_v52 = vmax.f32 %v4050_v29, %v9582_v49  ;;  %v4060_v29 = vmax.f32 %v4059_v36, %v9619_v25  ;;  %v2665_v36 = vsub.f32 %v11840_v13, %v11839_v37  ;;  %v11842_v16 = vld [vmem:[#allocation152_spill] sm:$0xff]  ;;  %v11891_v38 = vld [vmem:[#allocation123_spill] sm:$0xff] }
 0x3d0   :  { %2346 = vst [vmem:[#allocation2 + $0xe8] sm:$0xff] %v2314_v51  ;;  %7548 = vpow2.f32 %v2853_v58  ;;  %v9799_v50 = vpop.xlane.xlu1 %3325  ;;  %v3529_v51 = vmul.f32 1.442695, %v3431_v23  ;;  %v2677_v3 = vsub.f32 %v11843_v59, %v11842_v16  ;;  %v4069_v37 = vmax.f32 %v9640_v9, %v9642_v22 }
 0x3d1   :  { %11827 = vst [vmem:[#allocation44_spill] sm:$0xff] %v9799_v50  ;;  %7550 = vpow2.f32 %v3527_v0  ;;  %4097 = vmax.xlane.f32.xlu2 %v4096_v61  ;;  %v2729_v50 = vmul.f32 1.442695, %v2665_v36  ;;  %v7215_v36 = vld [vmem:[#allocation2 + $0x8c] sm:$0xf0] }
 0x3d2   :  { %v9802_v5 = vpop.f32.mrf.mxu2  ;;  %7552 = vpow2.f32 %v2855_v7  ;;  %v9808_v18 = vpop.f32.mrf.mxu3  ;;  %v3531_v7 = vmul.f32 1.442695, %v3432_v57  ;;  %v6591_v57 = vld [vmem:[#allocation2 + $0xa0] sm:$0xf] }
 0x3d3   :  { %11828 = vst [vmem:[#allocation156_spill] sm:$0xff] %v9802_v5  ;;  %v9804_v62 = vpop.eup %7542  ;;  %7554 = vpow2.f32 %v3529_v51  ;;  %v4061_v51 = vmax.f32 %v4060_v29, %v9622_v11  ;;  %v7219_v11 = vld [vmem:[#allocation2 + $0xac] sm:$0xf0] }
 0x3d4   :  { %11829 = vst [vmem:[#allocation80_spill] sm:$0xff] %v9804_v62  ;;  %v9810_v33 = vpop.eup %7544  ;;  %4052 = vmax.xlane.f32.xlu0 %v4051_v52  ;;  %v6623_v14 = vld [vmem:[#allocation2 + $0xe0] sm:$0xf]  ;;  %v9814_v15 = vpop.f32.mrf.mxu0  ;;  %7556 = vpow2.f32 %v3531_v7 }
 0x3d5   :  { %11831 = vst [vmem:[#allocation160_spill] sm:$0xff] %v9810_v33  ;;  %v9816_v39 = vpop.f32.mrf.mxu1  ;;  %v9818_v55 = vpop.eup %7546  ;;  %v6624_v32 = vor.u32 %v7227_v47, %v6623_v14  ;;  %v2932_v58 = vadd.f32 %v9810_v33, %v9804_v62  ;;  %v6608_v14 = vor.u32 %v7223_v63, %v6607_v6  ;;  %v2753_v33 = vmul.f32 1.442695, %v2677_v3 }
 0x3d6   :  { %11832 = vst [vmem:[#allocation164_spill] sm:$0xff] %v9814_v15  ;;  %v9822_v0 = vpop.eup %7548  ;;  %v4104_v47 = vmax.f32 %v9814_v15, %v9816_v39  ;;  %v9844_v63 = vpop.xlane.xlu2 %3370  ;;  %7558 = vpow2.f32 %v2729_v50  ;;  %v7211_v50 = vld [vmem:[#allocation2 + $0x6c] sm:$0xf0] }
 0x3d7   :  { %11833 = vst [vmem:[#allocation166_spill] sm:$0xff] %v9816_v39  ;;  %v9825_v23 = vpop.eup %7550  ;;  %5441 = vmatpush.bf16.msra.mxu0 %v6624_v32  ;;  %v2933_v61 = vadd.f32 %v9822_v0, %v2932_v58  ;;  %7560 = vpow2.f32 %v2753_v33 }
 0x3d8   :  { %11834 = vst [vmem:[#allocation125_spill] sm:$0xff] %v9818_v55  ;;  %v9828_v52 = vpop.xlane.xlu1 %3335  ;;  %v9830_v49 = vpop.eup %7552  ;;  %v3629_v58 = vadd.f32 %v9825_v23, %v9818_v55 }
 0x3d9   :  { %11835 = vst [vmem:[#allocation33_spill] sm:$0xff] %v9822_v0  ;;  %v2934_v25 = vadd.f32 %v9830_v49, %v2933_v61  ;;  %v11845_v61 = vld [vmem:[#allocation64_spill] sm:$0xff]  ;;  %v9857_v7 = vpop.eup %7554 }
 0x3da   :  { %11836 = vst [vmem:[#allocation34_spill] sm:$0xff] %v9825_v23  ;;  %v9838_v32 = vpop.f32.mrf.mxu2  ;;  %v9847_v13 = vpop.f32.mrf.mxu3  ;;  %v2678_v29 = vsub.f32 %v11845_v61, %v11842_v16  ;;  %v11847_v23 = vld [vmem:[#allocation66_spill] sm:$0xff]  ;;  %v4070_v61 = vmax.f32 %v4069_v37, %v9653_v30 }
 0x3db   :  { %11837 = vst [vmem:[#allocation162_spill] sm:$0xff] %v9828_v52  ;;  %5442 = vmatpush.bf16.msra.mxu0 %v6608_v14  ;;  %v4105_v6 = vmax.f32 %v4104_v47, %v9838_v32  ;;  %2935 = vadd.xlane.f32.xlu1 %v2934_v25  ;;  %v6592_v14 = vor.u32 %v7219_v11, %v6591_v57  ;;  %v6575_v25 = vld [vmem:[#allocation2 + $0x80] sm:$0xf]  ;;  %v11850_v11 = vld [vmem:[#allocation73_spill] sm:$0xff] }
 0x3dc   :  { %11838 = vst [vmem:[#allocation163_spill] sm:$0xff] %v9830_v49  ;;  %4062 = vmax.xlane.f32.xlu0 %v4061_v51  ;;  %v9853_v52 = vpop.f32.mrf.mxu0  ;;  %v2679_v55 = vsub.f32 %v11847_v23, %v11842_v16  ;;  %v3630_v49 = vadd.f32 %v9857_v7, %v3629_v58  ;;  %v11848_v51 = vld [vmem:[#allocation67_spill] sm:$0xff]  ;;  %v2755_v62 = vmul.f32 1.442695, %v2678_v29  ;;  %v11852_v37 = vld [vmem:[#allocation74_spill] sm:$0xff]  ;;  %v6576_v58 = vor.u32 %v7215_v36, %v6575_v25  ;;  %v11854_v25 = vld [vmem:[#allocation165_spill] sm:$0xff] }
 0x3dd   :  { %11841 = vst [vmem:[#allocation49_spill] sm:$0xff] %v9838_v32  ;;  %v9855_v59 = vpop.f32.mrf.mxu1  ;;  %v4106_v47 = vmax.f32 %v4105_v6, %v9847_v13  ;;  %v2680_v0 = vsub.f32 %v11848_v51, %v11842_v16  ;;  %v11849_v32 = vld [vmem:[#allocation159_spill] sm:$0xff]  ;;  %v4071_v3 = vmax.f32 %v4070_v61, %v9656_v28  ;;  %v11855_v61 = vld [vmem:[#allocation84_spill] sm:$0xff] }
 0x3de   :  { %11844 = vst [vmem:[#allocation152_spill] sm:$0xff] %v9847_v13  ;;  %v2685_v57 = vsub.f32 %v11850_v11, %v11849_v32  ;;  %v9870_v13 = vpop.eup %7556  ;;  %v2686_v23 = vsub.f32 %v11852_v37, %v11849_v32  ;;  %7562 = vpow2.f32 %v2755_v62  ;;  %v4079_v11 = vmax.f32 %v9684_v54, %v9686_v26  ;;  %v2916_v30 = vpop.xlane.xlu2 %2915  ;;  %v11856_v62 = vld [vmem:[#allocation85_spill] sm:$0xff] }
 0x3df   :  { %11846 = vst [vmem:[#allocation63_spill] sm:$0xff] %v9857_v7  ;;  %5443 = vmatpush.bf16.msra.mxu0 %v6592_v14  ;;  %4107 = vmax.xlane.f32.xlu2 %v4106_v47  ;;  %v2757_v7 = vmul.f32 1.442695, %v2679_v55  ;;  %v3631_v16 = vadd.f32 %v9870_v13, %v3630_v49  ;;  %v6559_v14 = vld [vmem:[#allocation2 + $0x60] sm:$0xf]  ;;  %v2693_v36 = vsub.f32 %v11855_v61, %v11854_v25  ;;  %7564 = vrcp.f32 %v2916_v30 }
 0x3e0   :  { %v9868_v6 = vpop.xlane.xlu1 %3345  ;;  %11851 = vst [vmem:[#allocation64_spill] sm:$0xff] %v9870_v13  ;;  %v2759_v47 = vmul.f32 1.442695, %v2680_v0  ;;  %v2769_v51 = vmul.f32 1.442695, %v2685_v57  ;;  %v6560_v37 = vor.u32 %v7211_v50, %v6559_v14  ;;  %v2694_v0 = vsub.f32 %v11856_v62, %v11854_v25  ;;  %v11857_v57 = vld [vmem:[#allocation87_spill] sm:$0xff] }
 0x3e1   :  { %v2771_v49 = vmul.f32 1.442695, %v2686_v23  ;;  %7566 = vpow2.f32 %v2757_v7  ;;  %v9893_v23 = vpop.eup %7558  ;;  %v7207_v14 = vld [vmem:[#allocation2 + $0x4c] sm:$0xf0]  ;;  %v2785_v50 = vmul.f32 1.442695, %v2693_v36 }
 0x3e2   :  { %v9876_v29 = vpop.f32.mrf.mxu2  ;;  %v9884_v33 = vpop.f32.mrf.mxu3  ;;  %7568 = vpow2.f32 %v2759_v47  ;;  %11859 = vst [vmem:[#allocation159_spill] sm:$0xff] %v9893_v23  ;;  %v11862_v47 = vld [vmem:[#allocation95_spill] sm:$0xff]  ;;  %v6527_v23 = vld [vmem:[#allocation2 + $0x20] sm:$0xf] }
 0x3e3   :  { %5444 = vmatpush.bf16.msra.mxu0 %v6576_v58  ;;  %3632 = vadd.xlane.f32.xlu1 %v3631_v16  ;;  %v2695_v58 = vsub.f32 %v11857_v57, %v11854_v25  ;;  %v4080_v16 = vmax.f32 %v4079_v11, %v9705_v10  ;;  %7570 = vpow2.f32 %v2769_v51  ;;  %v9897_v7 = vpop.eup %7560  ;;  %v2787_v57 = vmul.f32 1.442695, %v2694_v0 }
 0x3e4   :  { %4072 = vmax.xlane.f32.xlu0 %v4071_v3  ;;  %v9880_v55 = vpop.f32.mrf.mxu0  ;;  %v6543_v3 = vld [vmem:[#allocation2 + $0x40] sm:$0xf]  ;;  %11860 = vst [vmem:[#allocation73_spill] sm:$0xff] %v9897_v7  ;;  %7572 = vpow2.f32 %v2771_v49  ;;  %v9901_v11 = vpop.eup %7562 }
 0x3e5   :  { %11853 = vst [vmem:[#allocation66_spill] sm:$0xff] %v9880_v55  ;;  %v9891_v26 = vpop.f32.mrf.mxu1  ;;  %v6544_v61 = vor.u32 %v7207_v14, %v6543_v3  ;;  %v2789_v10 = vmul.f32 1.442695, %v2695_v58  ;;  %v4081_v51 = vmax.f32 %v4080_v16, %v9710_v40  ;;  %v7565_v28 = vpop.eup %7564  ;;  %v11865_v49 = vld [vmem:[#allocation94_spill] sm:$0xff]  ;;  %v11866_v3 = vld [vmem:[#allocation97_spill] sm:$0xff]  ;;  %7574 = vpow2.f32 %v2785_v50 }
 0x3e6   :  { %11858 = vst [vmem:[#allocation67_spill] sm:$0xff] %v9891_v26  ;;  %v4114_v62 = vmax.f32 %v9880_v55, %v9891_v26  ;;  %v2702_v36 = vsub.f32 %v11865_v49, %v11862_v47  ;;  %v2703_v14 = vsub.f32 %v11866_v3, %v11862_v47  ;;  %v2997_v16 = vmul.f32 %v7565_v28, %v9475_v8  ;;  %v7203_v3 = vld [vmem:[#allocation2 + $0x2c] sm:$0xf0]  ;;  %v6511_v8 = vld [vmem:[#allocation2] sm:$0xf] }
 0x3e7   :  { %5445 = vmatpush.bf16.msra.mxu0 %v6560_v37  ;;  %11861 = vst [vmem:[#allocation74_spill] sm:$0xff] %v9901_v11  ;;  %v11863_v37 = vld [vmem:[#allocation93_spill] sm:$0xff]  ;;  %v4089_v11 = vmax.f32 %v9732_v21, %v9734_v56  ;;  %v9915_v58 = vpop.eup %7566  ;;  %v2999_v7 = vmul.f32 %v7565_v28, %v9487_v20  ;;  %v3000_v26 = vmul.f32 %v7565_v28, %v9500_v42  ;;  %7576 = vpow2.f32 %v2787_v57  ;;  %v7199_v50 = vld [vmem:[#allocation2 + $0xc] sm:$0xf0] }
 0x3e8   :  { %v9895_v30 = vpop.xlane.xlu1 %3355  ;;  %v2701_v54 = vsub.f32 %v11863_v37, %v11862_v47  ;;  %11867 = vst [vmem:[#allocation84_spill] sm:$0xff] %v9915_v58  ;;  %v2998_v37 = vmul.f32 %v7565_v28, %v9477_v24  ;;  %v9921_v49 = vpop.xlane.xlu2 %3380  ;;  %v6528_v58 = vor.u32 %v7203_v3, %v6527_v23  ;;  %7578 = vpow2.f32 %v2789_v10 }
 0x3e9   :  { %v9925_v56 = vpop.eup %7568  ;;  %v4090_v20 = vmax.f32 %v4089_v11, %v9750_v44  ;;  %v3040_v28 = vpack.c.bf16 %v3000_v26, %v2999_v7  ;;  %v6512_v3 = vor.u32 %v7199_v50, %v6511_v8  ;;  %v11873_v11 = vld [vmem:[#allocation150_spill] sm:$0xff]  ;;  %v6593_v44 = vld [vmem:[#allocation2 + $0xb0] sm:$0xf0] }
 0x3ea   :  { %v9906_v13 = vpop.f32.mrf.mxu2  ;;  %11868 = vst [vmem:[#allocation85_spill] sm:$0xff] %v9925_v56  ;;  %v2801_v24 = vmul.f32 1.442695, %v2701_v54  ;;  %v3039_v42 = vpack.c.bf16 %v2998_v37, %v2997_v16  ;;  %v9934_v40 = vpop.f32.mrf.mxu3  ;;  %v7225_v56 = vld [vmem:[#allocation2 + $0xe4] sm:$0xf]  ;;  %v3422_v16 = vsub.f32 %v11873_v11, %v9726_v12 }
 0x3eb   :  { %11864 = vst [vmem:[#allocation165_spill] sm:$0xff] %v9906_v13  ;;  %5446 = vmatpush.bf16.msra.mxu0 %v6544_v61  ;;  %v4115_v0 = vmax.f32 %v4114_v62, %v9906_v13  ;;  %v11869_v61 = vld [vmem:[#allocation149_spill] sm:$0xff]  ;;  %v9929_v13 = vpop.eup %7570  ;;  %v9944_v8 = vld [vmem:[#allocation2 + $0x4] sm:$0xf] }
 0x3ec   :  { %4082 = vmax.xlane.f32.xlu0 %v4081_v51  ;;  %v9923_v55 = vpop.f32.mrf.mxu0  ;;  %v3421_v62 = vsub.f32 %v11869_v61, %v9726_v12  ;;  %11870 = vst [vmem:[#allocation87_spill] sm:$0xff] %v9929_v13  ;;  %v9932_v21 = vpop.eup %7572  ;;  %v2803_v51 = vmul.f32 1.442695, %v2702_v36  ;;  %v2805_v61 = vmul.f32 1.442695, %v2703_v14  ;;  %7580 = vpow2.f32 %v2801_v24 }
 0x3ed   :  { %11871 = vst [vmem:[#allocation95_spill] sm:$0xff] %v9932_v21  ;;  %v4116_v54 = vmax.f32 %v4115_v0, %v9934_v40  ;;  %v6625_v36 = vld [vmem:[#allocation2 + $0xf0] sm:$0xf0]  ;;  %v4091_v14 = vmax.f32 %v4090_v20, %v9755_v1  ;;  %v9951_v24 = vld [vmem:[#allocation2 + $0x24] sm:$0xf] }
 0x3ee   :  { %11872 = vst [vmem:[#allocation93_spill] sm:$0xff] %v9934_v40  ;;  %v3509_v26 = vmul.f32 1.442695, %v3421_v62  ;;  %v6628_v37 = vor.u32 %v7225_v56, %v6625_v36  ;;  %v9946_v0 = vld [vmem:[#allocation2 + $0x10] sm:$0xf0]  ;;  %7582 = vpow2.f32 %v2803_v51 }
 0x3ef   :  { %5447 = vmatpush.bf16.msra.mxu0 %v6528_v58  ;;  %3071 = vst [vmem:[#allocation2 + $0x1b0] sm:$0xff] %v3039_v42  ;;  %v11874_v58 = vld [vmem:[#allocation167_spill] sm:$0xff]  ;;  %4117 = vmax.xlane.f32.xlu1 %v4116_v54  ;;  %v9948_v42 = vpop.eup %7574  ;;  %7584 = vpow2.f32 %v2805_v61  ;;  %v9954_v50 = vld [vmem:[#allocation2 + $0x84] sm:$0xf]  ;;  %v9964_v61 = vld [vmem:[#allocation2 + $0x30] sm:$0xf0] }
 0x3f0   :  { %v3366_v23 = vpop.xlane.xlu1 %3365  ;;  %3072 = vst [vmem:[#allocation2 + $0x1b8] sm:$0xff] %v3040_v28  ;;  %v3437_v10 = vsub.f32 %v11874_v58, %v9844_v63  ;;  %v2926_v28 = vpop.xlane.xlu2 %2925  ;;  %v9956_v54 = vld [vmem:[#allocation2 + $0x64] sm:$0xf]  ;;  %7586 = vpow2.f32 %v3509_v26 }
 0x3f1   :  { %v3433_v7 = vsub.f32 %v9377_v2, %v3366_v23  ;;  %v3434_v57 = vsub.f32 %v9379_v53, %v3366_v23  ;;  %11875 = vst [vmem:[#allocation94_spill] sm:$0xff] %v9948_v42  ;;  %v3435_v2 = vsub.f32 %v9389_v34, %v3366_v23  ;;  %v6609_v53 = vld [vmem:[#allocation2 + $0xd0] sm:$0xf0]  ;;  %v3436_v20 = vsub.f32 %v9392_v43, %v3366_v23  ;;  %v9958_v11 = vpop.eup %7576  ;;  %v7217_v51 = vld [vmem:[#allocation2 + $0xa4] sm:$0xf] }
 0x3f2   :  { %11876 = vst [vmem:[#allocation97_spill] sm:$0xff] %v9958_v11  ;;  %v11877_v34 = vld [vmem:[#allocation88_spill] sm:$0xff]  ;;  %v9968_v23 = vpop.eup %7578  ;;  %7588 = vrcp.f32 %v2926_v28  ;;  %v11883_v26 = vld [vmem:[#allocation70_spill] sm:$0xff] }
 0x3f3   :  { %v3533_v62 = vmul.f32 1.442695, %v3433_v7  ;;  %5448 = vmatpush.bf16.msra.mxu0 %v6512_v3  ;;  %v3535_v56 = vmul.f32 1.442695, %v3434_v57  ;;  %v3511_v3 = vmul.f32 1.442695, %v3422_v16  ;;  %v9977_v40 = vpop.eup %7580 }
 0x3f4   :  { %4092 = vmax.xlane.f32.xlu0 %v4091_v14  ;;  %v7221_v7 = vld [vmem:[#allocation2 + $0xc4] sm:$0xf]  ;;  %v9962_v36 = vpop.f32.mrf.mxu0  ;;  %11878 = vst [vmem:[#allocation149_spill] sm:$0xff] %v9968_v23  ;;  %v3541_v57 = vmul.f32 1.442695, %v3437_v10  ;;  %v11880_v10 = vld [vmem:[#allocation168_spill] sm:$0xff] }
 0x3f5   :  { %v6612_v58 = vor.u32 %v7221_v7, %v6609_v53  ;;  %v6577_v14 = vld [vmem:[#allocation2 + $0x90] sm:$0xf0]  ;;  %7590 = vpow2.f32 %v3533_v62  ;;  %v3537_v16 = vmul.f32 1.442695, %v3435_v2  ;;  %11879 = vst [vmem:[#allocation150_spill] sm:$0xff] %v9977_v40  ;;  %v3438_v53 = vsub.f32 %v11880_v10, %v9844_v63  ;;  %v9983_v2 = vpop.eup %7582 }
 0x3f6   :  { %v6580_v21 = vor.u32 %v9954_v50, %v6577_v14  ;;  %v4554_v43 = vld [vmem:[#allocation14] sm:$0xf]  ;;  %7592 = vpow2.f32 %v3535_v56  ;;  %v3539_v1 = vmul.f32 1.442695, %v3436_v20  ;;  %11882 = vst [vmem:[#allocation167_spill] sm:$0xff] %v9983_v2  ;;  %v9988_v22 = vpop.eup %7584 }
 0x3f7   :  { %5493 = vmatpush.bf16.msrb.mxu0 %v6628_v37  ;;  %v9970_v37 = vld [vmem:[#allocation2 + $0x70] sm:$0xf0]  ;;  %7594 = vpow2.f32 %v3511_v3  ;;  %11884 = vst [vmem:[#allocation88_spill] sm:$0xff] %v9988_v22  ;;  %v4556_v56 = vperm.slane %v4554_v43, 0  ;;  %v9991_v20 = vpop.eup %7586  ;;  %v11890_v43 = vld [vmem:[#allocation113_spill] sm:$0xff] }
 0x3f8   :  { %v11881_v28 = vld [vmem:[#allocation96_spill] sm:$0xff]  ;;  %v3376_v62 = vpop.xlane.xlu1 %3375  ;;  %7596 = vpow2.f32 %v3541_v57  ;;  %11885 = vst [vmem:[#allocation168_spill] sm:$0xff] %v9991_v20  ;;  %v7589_v39 = vpop.eup %7588  ;;  %v11888_v57 = vld [vmem:[#allocation81_spill] sm:$0xff] }
 0x3f9   :  { %v3439_v7 = vsub.f32 %v11881_v28, %v9844_v63  ;;  %v3441_v50 = vsub.f32 %v9423_v27, %v3376_v62  ;;  %v3442_v14 = vsub.f32 %v9425_v45, %v3376_v62  ;;  %v3443_v13 = vsub.f32 %v11883_v26, %v3376_v62 }
 0x3fa   :  { %v3444_v10 = vsub.f32 %v9442_v60, %v3376_v62  ;;  %v6596_v28 = vor.u32 %v7217_v51, %v6593_v44  ;;  %7598 = vpow2.f32 %v3537_v16  ;;  %v3543_v45 = vmul.f32 1.442695, %v3438_v53  ;;  %v11889_v44 = vld [vmem:[#allocation109_spill] sm:$0xff] }
 0x3fb   :  { %5494 = vmatpush.bf16.msrb.mxu0 %v6612_v58  ;;  %v11886_v58 = vld [vmem:[#allocation99_spill] sm:$0xff]  ;;  %v3549_v3 = vmul.f32 1.442695, %v3441_v50  ;;  %v3551_v27 = vmul.f32 1.442695, %v3442_v14  ;;  %7600 = vpow2.f32 %v3539_v1  ;;  %v9995_v4 = vpop.eup %7590  ;;  %v3005_v60 = vmul.f32 %v7589_v39, %v11888_v57  ;;  %v11893_v50 = vld [vmem:[#allocation102_spill] sm:$0xff] }
 0x3fc   :  { %v3440_v9 = vsub.f32 %v11886_v58, %v9844_v63  ;;  %v3545_v15 = vmul.f32 1.442695, %v3439_v7  ;;  %v3553_v26 = vmul.f32 1.442695, %v3443_v13  ;;  %11887 = vst [vmem:[#allocation96_spill] sm:$0xff] %v9995_v4  ;;  %v3006_v51 = vmul.f32 %v7589_v39, %v11889_v44  ;;  %v4626_v63 = vpop.f32.mrf.mxu0  ;;  %v10001_v16 = vpop.eup %7592 }
 0x3fd   :  { %v3007_v62 = vmul.f32 %v7589_v39, %v11890_v43  ;;  %v3008_v17 = vmul.f32 %v7589_v39, %v11891_v38  ;;  %11892 = vst [vmem:[#allocation70_spill] sm:$0xff] %v10001_v16  ;;  %v3445_v53 = vsub.f32 %v11893_v50, %v9921_v49  ;;  %7602 = vpow2.f32 %v3549_v3  ;;  %v10005_v7 = vpop.eup %7594  ;;  %v11896_v39 = vld [vmem:[#allocation103_spill] sm:$0xff]  ;;  %v7205_v50 = vld [vmem:[#allocation2 + $0x44] sm:$0xf] }
 0x3fe   :  { %v3555_v1 = vmul.f32 1.442695, %v3444_v10  ;;  %v4627_v13 = vadd.f32 %v4626_v63, %v4556_v56  ;;  %11894 = vst [vmem:[#allocation99_spill] sm:$0xff] %v10005_v7  ;;  %v3043_v14 = vpack.c.bf16 %v3006_v51, %v3005_v60  ;;  %7604 = vpow2.f32 %v3551_v27  ;;  %v10009_v57 = vpop.eup %7596  ;;  %v11898_v56 = vld [vmem:[#allocation170_spill] sm:$0xff]  ;;  %v11899_v60 = vld [vmem:[#allocation171_spill] sm:$0xff] }
 0x3ff   :  { %5495 = vmatpush.bf16.msrb.mxu0 %v6596_v28  ;;  %v3044_v28 = vpack.c.bf16 %v3008_v17, %v3007_v62  ;;  %v3634_v58 = vadd.f32 %v10001_v16, %v9995_v4  ;;  %11895 = vst [vmem:[#allocation81_spill] sm:$0xff] %v10009_v57  ;;  %7606 = vpow2.f32 %v3543_v45  ;;  %v3547_v38 = vmul.f32 1.442695, %v3440_v9 }
 0x400   :  { %v3446_v44 = vsub.f32 %v11896_v39, %v9921_v49  ;;  %v3386_v43 = vpop.xlane.xlu1 %3385  ;;  %v10013_v3 = vpack.c.bf16 %v4627_v13, %v4627_v13  ;;  %v10015_v10 = vpop.eup %7598  ;;  %3075 = vst [vmem:[#allocation2 + $0x1d0] sm:$0xff] %v3043_v14  ;;  %7608 = vpow2.f32 %v3553_v26  ;;  %v4099_v9 = vmax.f32 %v9791_v41, %v9793_v19  ;;  %v11916_v41 = vld [vmem:[#allocation108_spill] sm:$0xff] }
 0x401   :  { %11897 = vst [vmem:[#allocation109_spill] sm:$0xff] %v10015_v10  ;;  %v3449_v17 = vsub.f32 %v9470_v35, %v3386_v43  ;;  %v3450_v27 = vsub.f32 %v11898_v56, %v3386_v43  ;;  %v3451_v51 = vsub.f32 %v11899_v60, %v3386_v43  ;;  %v10020_v62 = vpop.eup %7600  ;;  %7610 = vpow2.f32 %v3545_v15  ;;  %v11903_v15 = vld [vmem:[#allocation42_spill] sm:$0xff] }
 0x402   :  { %11900 = vst [vmem:[#allocation113_spill] sm:$0xff] %v10020_v62  ;;  %v3635_v63 = vadd.f32 %v10015_v10, %v3634_v58  ;;  %5449 = vmatmul.bf16.vlgmr.msra.gmra.mxu0 %v10013_v3  ;;  %v3557_v26 = vmul.f32 1.442695, %v3445_v53  ;;  %7612 = vpow2.f32 %v3555_v1  ;;  %v3425_v39 = vsub.f32 %v11903_v15, %v9895_v30  ;;  %v6545_v58 = vld [vmem:[#allocation2 + $0x50] sm:$0xf0]  ;;  %v11906_v53 = vld [vmem:[#allocation65_spill] sm:$0xff]  ;;  %v10042_v15 = vpop.f32.mrf.mxu1 }
 0x403   :  { %5496 = vmatpush.bf16.msrb.mxu0 %v6580_v21  ;;  %3076 = vst [vmem:[#allocation2 + $0x1d8] sm:$0xff] %v3044_v28  ;;  %v11901_v21 = vld [vmem:[#allocation110_spill] sm:$0xff]  ;;  %v3565_v35 = vmul.f32 1.442695, %v3449_v17  ;;  %v3567_v13 = vmul.f32 1.442695, %v3450_v27  ;;  %v10027_v14 = vpop.eup %7602  ;;  %7614 = vpow2.f32 %v3547_v38  ;;  %v10058_v17 = vpop.f32.mrf.mxu2 }
 0x404   :  { %v3452_v45 = vsub.f32 %v11901_v21, %v3386_v43  ;;  %11902 = vst [vmem:[#allocation123_spill] sm:$0xff] %v10027_v14  ;;  %v3569_v56 = vmul.f32 1.442695, %v3451_v51  ;;  %v3636_v28 = vadd.f32 %v10020_v62, %v3635_v63  ;;  %v11904_v43 = vor.u32 %v9956_v54, %v9970_v37  ;;  %v10035_v60 = vpop.eup %7604  ;;  %v11907_v1 = vld [vmem:[#allocation89_spill] sm:$0xff]  ;;  %v4628_v38 = vpop.f32.mrf.mxu0 }
 0x405   :  { %11905 = vst [vmem:[#allocation102_spill] sm:$0xff] %v10035_v60  ;;  %v3559_v27 = vmul.f32 1.442695, %v3446_v44  ;;  %7616 = vpow2.f32 %v3565_v35  ;;  %v6548_v21 = vor.u32 %v7205_v50, %v6545_v58  ;;  %v10039_v19 = vpop.eup %7606  ;;  %v4100_v51 = vmax.f32 %v4099_v9, %v9802_v5  ;;  %v11911_v50 = vld [vmem:[#allocation91_spill] sm:$0xff]  ;;  %v11912_v58 = vld [vmem:[#allocation86_spill] sm:$0xff] }
 0x406   :  { %11908 = vst [vmem:[#allocation103_spill] sm:$0xff] %v10039_v19  ;;  %7618 = vpow2.f32 %v3567_v13  ;;  %v3571_v63 = vmul.f32 1.442695, %v3452_v45  ;;  %3637 = vadd.xlane.f32.xlu0 %v3636_v28  ;;  %v3644_v54 = vadd.f32 %v10035_v60, %v10027_v14  ;;  %v10046_v37 = vpop.eup %7608  ;;  %v3447_v38 = vsub.f32 %v11912_v58, %v9921_v49  ;;  %v11913_v45 = vld [vmem:[#allocation40_spill] sm:$0xff]  ;;  %v11914_v35 = vld [vmem:[#allocation111_spill] sm:$0xff] }
 0x407   :  { %5497 = vmatpush.bf16.msrb.mxu0 %v11904_v43  ;;  %11909 = vst [vmem:[#allocation170_spill] sm:$0xff] %v10046_v37  ;;  %v11910_v43 = vld [vmem:[#allocation90_spill] sm:$0xff]  ;;  %7620 = vpow2.f32 %v3557_v26  ;;  %v10054_v9 = vpop.eup %7610  ;;  %v3426_v13 = vsub.f32 %v11913_v45, %v9895_v30  ;;  %v3517_v28 = vmul.f32 1.442695, %v3425_v39  ;;  %v11915_v58 = vld [vmem:[#allocation172_spill] sm:$0xff]  ;;  %v11917_v39 = vld [vmem:[#allocation169_spill] sm:$0xff] }
 0x408   :  { %7622 = vpow2.f32 %v3569_v56  ;;  %v3391_v60 = vpop.xlane.xlu1 %3390  ;;  %v3645_v44 = vadd.f32 %v10046_v37, %v3644_v54  ;;  %v10061_v14 = vpop.eup %7612  ;;  %v3448_v45 = vsub.f32 %v11917_v39, %v9921_v49  ;;  %v4101_v56 = vmax.f32 %v4100_v51, %v9808_v18  ;;  %v6631_v51 = vld [vmem:[#allocation2 + $0xe8] sm:$0xf] }
 0x409   :  { %7624 = vpow2.f32 %v3559_v27  ;;  %v3453_v5 = vsub.f32 %v11914_v35, %v3391_v60  ;;  %v3454_v26 = vsub.f32 %v11915_v58, %v3391_v60  ;;  %v3455_v62 = vsub.f32 %v11916_v41, %v3391_v60  ;;  %v10066_v10 = vpop.eup %7614  ;;  %v11919_v27 = vld [vmem:[#allocation118_spill] sm:$0xff]  ;;  %v11925_v39 = vld [vmem:[#allocation39_spill] sm:$0xff] }
 0x40a   :  { %7626 = vpow2.f32 %v3571_v63  ;;  %v3561_v37 = vmul.f32 1.442695, %v3447_v38  ;;  %v3456_v16 = vsub.f32 %v11919_v27, %v3391_v60  ;;  %v4109_v41 = vmax.f32 %v9853_v52, %v9855_v59  ;;  %v11924_v60 = vld [vmem:[#allocation143_spill] sm:$0xff]  ;;  %v10095_v27 = vpop.f32.mrf.mxu3 }
 0x40b   :  { %5498 = vmatpush.bf16.msrb.mxu0 %v6548_v21  ;;  %v3646_v21 = vadd.f32 %v10061_v14, %v3645_v44  ;;  %v10072_v54 = vpop.eup %7616  ;;  %v3573_v35 = vmul.f32 1.442695, %v3453_v5  ;;  %v3575_v4 = vmul.f32 1.442695, %v3454_v26  ;;  %7628 = vpow2.f32 %v3517_v28  ;;  %v11923_v5 = vld [vmem:[#allocation183_spill] sm:$0xff] }
 0x40c   :  { %11918 = vst [vmem:[#allocation171_spill] sm:$0xff] %v10072_v54  ;;  %v10075_v58 = vpop.eup %7618  ;;  %v3577_v48 = vmul.f32 1.442695, %v3455_v62  ;;  %v11921_v49 = vor.u32 %v9951_v24, %v9964_v61  ;;  %v3639_v63 = vadd.f32 %v10039_v19, %v10009_v57  ;;  %v3413_v38 = vsub.f32 %v11924_v60, %v11923_v5 }
 0x40d   :  { %11920 = vst [vmem:[#allocation110_spill] sm:$0xff] %v10075_v58  ;;  %3647 = vadd.xlane.f32.xlu2 %v3646_v21  ;;  %v10084_v44 = vpop.eup %7620  ;;  %v3519_v26 = vmul.f32 1.442695, %v3426_v13  ;;  %7630 = vpow2.f32 %v3573_v35  ;;  %v3654_v28 = vadd.f32 %v10075_v58, %v10072_v54  ;;  %v3423_v24 = vsub.f32 %v11925_v39, %v9726_v12  ;;  %v10107_v54 = vpop.f32.mrf.mxu1 }
 0x40e   :  { %11922 = vst [vmem:[#allocation42_spill] sm:$0xff] %v10084_v44  ;;  %v10090_v62 = vpop.eup %7622  ;;  %v3563_v61 = vmul.f32 1.442695, %v3448_v45  ;;  %v4110_v21 = vmax.f32 %v4109_v41, %v9876_v29  ;;  %7632 = vpow2.f32 %v3575_v4  ;;  %4102 = vmax.xlane.f32.xlu0 %v4101_v56  ;;  %v3579_v13 = vmul.f32 1.442695, %v3456_v16  ;;  %v11928_v41 = vld [vmem:[#allocation144_spill] sm:$0xff] }
 0x40f   :  { %5499 = vmatpush.bf16.msrb.mxu0 %v11921_v49  ;;  %v7228_v49 = vld [vmem:[#allocation2 + $0xf4] sm:$0xf0]  ;;  %v10097_v19 = vpop.eup %7624  ;;  %7634 = vpow2.f32 %v3561_v37  ;;  %v3655_v60 = vadd.f32 %v10090_v62, %v3654_v28  ;;  %v11927_v39 = vsub.f32 %v11907_v1, %v11906_v53  ;;  %v3414_v58 = vsub.f32 %v11928_v41, %v11923_v5  ;;  %v11931_v28 = vld [vmem:[#allocation43_spill] sm:$0xff]  ;;  %v10120_v41 = vpop.f32.mrf.mxu2 }
 0x410   :  { %11926 = vst [vmem:[#allocation65_spill] sm:$0xff] %v10097_v19  ;;  %v6632_v35 = vor.u32 %v7228_v49, %v6631_v51  ;;  %v10100_v57 = vpop.eup %7626  ;;  %7636 = vpow2.f32 %v3577_v48  ;;  %v11929_v4 = vor.u32 %v9944_v8, %v9946_v0  ;;  %v3640_v16 = vadd.f32 %v10054_v9, %v3639_v63  ;;  %v7224_v37 = vld [vmem:[#allocation2 + $0xd4] sm:$0xf0]  ;;  %v6615_v0 = vld [vmem:[#allocation2 + $0xc8] sm:$0xf] }
 0x411   :  { %v2793_v45 = vmul.f32 1.442695, %v11927_v39  ;;  %v11930_v56 = vld [vmem:[#allocation41_spill] sm:$0xff]  ;;  %v3427_v1 = vsub.f32 %v11931_v28, %v9895_v30  ;;  %7638 = vpow2.f32 %v3519_v26  ;;  %v3656_v49 = vadd.f32 %v10100_v57, %v3655_v60  ;;  %v10118_v39 = vpop.eup %7628  ;;  %v6599_v28 = vld [vmem:[#allocation2 + $0xa8] sm:$0xf] }
 0x412   :  { %v3424_v51 = vsub.f32 %v11930_v56, %v9726_v12  ;;  %11932 = vst [vmem:[#allocation89_spill] sm:$0xff] %v10118_v39  ;;  %v3513_v48 = vmul.f32 1.442695, %v3423_v24  ;;  %7640 = vpow2.f32 %v3563_v61  ;;  %v4111_v8 = vmax.f32 %v4110_v21, %v9884_v33  ;;  %v11935_v61 = vld [vmem:[#allocation30_spill] sm:$0xff] }
 0x413   :  { %5500 = vmatpush.bf16.msrb.mxu0 %v11929_v4  ;;  %v3649_v63 = vadd.f32 %v10097_v19, %v10084_v44  ;;  %v10125_v12 = vpop.eup %7630  ;;  %v3493_v4 = vmul.f32 1.442695, %v3413_v38  ;;  %v4124_v26 = vmax.f32 %v9962_v36, %v10107_v54  ;;  %7642 = vpow2.f32 %v3579_v13  ;;  %3657 = vadd.xlane.f32.xlu1 %v3656_v49  ;;  %v11936_v19 = vld [vmem:[#allocation155_spill] sm:$0xff] }
 0x414   :  { %11933 = vst [vmem:[#allocation90_spill] sm:$0xff] %v10125_v12  ;;  %v10130_v24 = vpop.eup %7632  ;;  %7644 = vpow2.f32 %v2793_v45  ;;  %v3415_v21 = vsub.f32 %v11935_v61, %v11923_v5  ;;  %v3495_v60 = vmul.f32 1.442695, %v3414_v58  ;;  %v3641_v56 = vadd.f32 %v10066_v10, %v3640_v16  ;;  %v7220_v61 = vld [vmem:[#allocation2 + $0xb4] sm:$0xf0] }
 0x415   :  { %11934 = vst [vmem:[#allocation91_spill] sm:$0xff] %v10130_v24  ;;  %4112 = vmax.xlane.f32.xlu2 %v4111_v8  ;;  %v10135_v38 = vpop.eup %7634  ;;  %v3428_v13 = vsub.f32 %v11936_v19, %v9895_v30  ;;  %v3521_v49 = vmul.f32 1.442695, %v3427_v1  ;;  %v3659_v45 = vadd.f32 %v10130_v24, %v10125_v12  ;;  %v11937_v58 = vsub.f32 %v11910_v43, %v11906_v53  ;;  %v11940_v43 = vld [vmem:[#allocation146_spill] sm:$0xff] }
 0x416   :  { %5501 = vmatmul.bf16.vlgmr.msrb.gmra.mxu0 %v10013_v3  ;;  %7646 = vpow2.f32 %v3513_v48  ;;  %v3515_v8 = vmul.f32 1.442695, %v3424_v51  ;;  %3642 = vadd.xlane.f32.xlu0 %v3641_v56  ;;  %v3650_v44 = vadd.f32 %v10135_v38, %v3649_v63  ;;  %v11939_v30 = vsub.f32 %v11911_v50, %v11906_v53  ;;  %v10158_v56 = vpop.f32.mrf.mxu3  ;;  %v6583_v63 = vld [vmem:[#allocation2 + $0x88] sm:$0xf] }
 0x417   :  { %5545 = vmatpush.bf16.msra.mxu0 %v6632_v35  ;;  %v6616_v35 = vor.u32 %v7224_v37, %v6615_v0  ;;  %v4125_v37 = vmax.f32 %v4124_v26, %v10120_v41  ;;  %v10142_v0 = vpop.eup %7636  ;;  %v2795_v16 = vmul.f32 1.442695, %v11937_v58  ;;  %7648 = vpow2.f32 %v3493_v4  ;;  %v11941_v50 = vld [vmem:[#allocation31_spill] sm:$0xff] }
 0x418   :  { %v10148_v19 = vpop.eup %7638  ;;  %v2797_v1 = vmul.f32 1.442695, %v11939_v30  ;;  %v6600_v26 = vor.u32 %v7220_v61, %v6599_v28  ;;  %v3416_v48 = vsub.f32 %v11940_v43, %v11923_v5  ;;  %7650 = vpow2.f32 %v3495_v60  ;;  %v11943_v5 = vld [vmem:[#allocation147_spill] sm:$0xff]  ;;  %v7216_v43 = vld [vmem:[#allocation2 + $0x94] sm:$0xf0] }
 0x419   :  { %11938 = vst [vmem:[#allocation86_spill] sm:$0xff] %v10148_v19  ;;  %v10154_v24 = vpop.eup %7640  ;;  %v3497_v51 = vmul.f32 1.442695, %v3415_v21  ;;  %v3619_v58 = vadd.f32 %v10005_v7, %v9991_v20  ;;  %v3417_v4 = vsub.f32 %v11941_v50, %v9868_v6  ;;  %7652 = vpow2.f32 %v3521_v49  ;;  %v11944_v7 = vld [vmem:[#allocation98_spill] sm:$0xff]  ;;  %v11947_v50 = vld [vmem:[#allocation92_spill] sm:$0xff] }
 0x41a   :  { %v10162_v12 = vpop.eup %7642  ;;  %v3523_v28 = vmul.f32 1.442695, %v3428_v13  ;;  %7654 = vpow2.f32 %v3515_v8  ;;  %v3418_v21 = vsub.f32 %v11943_v5, %v9868_v6  ;;  %v3651_v30 = vadd.f32 %v10154_v24, %v3650_v44 }
 0x41b   :  { %5546 = vmatpush.bf16.msra.mxu0 %v6616_v35  ;;  %v3660_v35 = vadd.f32 %v10142_v0, %v3659_v45  ;;  %v4126_v45 = vmax.f32 %v4125_v37, %v10158_v56  ;;  %v10167_v61 = vpop.eup %7644  ;;  %v2704_v20 = vsub.f32 %v11944_v7, %v11862_v47  ;;  %7656 = vpow2.f32 %v2795_v16 }
 0x41c   :  { %11942 = vst [vmem:[#allocation40_spill] sm:$0xff] %v10167_v61  ;;  %v6584_v13 = vor.u32 %v7216_v43, %v6583_v63  ;;  %v10175_v49 = vpop.eup %7646  ;;  %7658 = vpow2.f32 %v2797_v1  ;;  %v3499_v37 = vmul.f32 1.442695, %v3416_v48  ;;  %v4119_v8 = vmax.f32 %v9923_v55, %v10042_v15  ;;  %v7212_v43 = vld [vmem:[#allocation2 + $0x74] sm:$0xf0] }
 0x41d   :  { %v3661_v60 = vadd.f32 %v10162_v12, %v3660_v35  ;;  %4127 = vmax.xlane.f32.xlu1 %v4126_v45  ;;  %11945 = vst [vmem:[#allocation111_spill] sm:$0xff] %v10175_v49  ;;  %3652 = vadd.xlane.f32.xlu2 %v3651_v30  ;;  %v3624_v35 = vadd.f32 %v10148_v19, %v10118_v39  ;;  %v10181_v44 = vpop.eup %7648  ;;  %v3501_v7 = vmul.f32 1.442695, %v3417_v4  ;;  %7660 = vpow2.f32 %v3523_v28  ;;  %v2931_v30 = vpop.xlane.xlu2 %2930  ;;  %v11951_v4 = vld [vmem:[#allocation37_spill] sm:$0xff] }
 0x41e   :  { %11946 = vst [vmem:[#allocation172_spill] sm:$0xff] %v10181_v44  ;;  %v2700_v47 = vsub.f32 %v11947_v50, %v11906_v53  ;;  %v3620_v16 = vadd.f32 %v10175_v49, %v3619_v58  ;;  %v10186_v1 = vpop.eup %7650  ;;  %v11949_v48 = vsub.f32 %v11877_v34, %v11854_v25  ;;  %7662 = vpow2.f32 %v3497_v51  ;;  %v11953_v50 = vld [vmem:[#allocation124_spill] sm:$0xff]  ;;  %v11954_v25 = vld [vmem:[#allocation78_spill] sm:$0xff] }
 0x41f   :  { %5547 = vmatpush.bf16.msra.mxu0 %v6600_v26  ;;  %v6567_v26 = vld [vmem:[#allocation2 + $0x68] sm:$0xf]  ;;  %11948 = vst [vmem:[#allocation108_spill] sm:$0xff] %v10186_v1  ;;  %v3503_v45 = vmul.f32 1.442695, %v3418_v21  ;;  %v4120_v5 = vmax.f32 %v4119_v8, %v10058_v17  ;;  %3662 = vadd.xlane.f32.xlu0 %v3661_v60  ;;  %v10192_v19 = vpop.eup %7652  ;;  %v3419_v28 = vsub.f32 %v11951_v4, %v9868_v6  ;;  %7664 = vrcp.f32 %v2931_v30 }
 0x420   :  { %v2791_v63 = vmul.f32 1.442695, %v11949_v48  ;;  %11950 = vst [vmem:[#allocation169_spill] sm:$0xff] %v10192_v19  ;;  %v2807_v53 = vmul.f32 1.442695, %v2704_v20  ;;  %v6568_v58 = vor.u32 %v7212_v43, %v6567_v26  ;;  %v2689_v34 = vsub.f32 %v11954_v25, %v11953_v50 }
 0x421   :  { %7666 = vpow2.f32 %v3499_v37  ;;  %v3625_v51 = vadd.f32 %v10192_v19, %v3624_v35  ;;  %v6551_v21 = vld [vmem:[#allocation2 + $0x48] sm:$0xf]  ;;  %v2902_v60 = vadd.f32 %v9983_v2, %v9977_v40  ;;  %v2799_v20 = vmul.f32 1.442695, %v2700_v47  ;;  %v11957_v37 = vld [vmem:[#allocation76_spill] sm:$0xff]  ;;  %v11958_v35 = vld [vmem:[#allocation77_spill] sm:$0xff] }
 0x422   :  { %7668 = vpow2.f32 %v3501_v7  ;;  %v3609_v26 = vadd.f32 %v10186_v1, %v10181_v44  ;;  %v2687_v43 = vsub.f32 %v11957_v37, %v11849_v32  ;;  %v2688_v4 = vsub.f32 %v11958_v35, %v11849_v32  ;;  %v7208_v2 = vld [vmem:[#allocation2 + $0x54] sm:$0xf0]  ;;  %v11960_v7 = vld [vmem:[#allocation79_spill] sm:$0xff] }
 0x423   :  { %5548 = vmatpush.bf16.msra.mxu0 %v6584_v13  ;;  %v10196_v13 = vpop.eup %7654  ;;  %7670 = vpow2.f32 %v3503_v45  ;;  %v4121_v25 = vmax.f32 %v4120_v5, %v10095_v27  ;;  %v6552_v40 = vor.u32 %v7208_v2, %v6551_v21  ;;  %v6535_v32 = vld [vmem:[#allocation2 + $0x28] sm:$0xf]  ;;  %v2903_v5 = vadd.f32 %v9988_v22, %v2902_v60 }
 0x424   :  { %11952 = vst [vmem:[#allocation118_spill] sm:$0xff] %v10196_v13  ;;  %v10203_v8 = vpop.eup %7656  ;;  %v3621_v48 = vadd.f32 %v10196_v13, %v3620_v16  ;;  %7672 = vpow2.f32 %v2807_v53  ;;  %v2690_v16 = vsub.f32 %v11960_v7, %v11953_v50  ;;  %v2777_v53 = vmul.f32 1.442695, %v2689_v34  ;;  %v11962_v7 = vld [vmem:[#allocation38_spill] sm:$0xff]  ;;  %v11966_v44 = vld [vmem:[#allocation175_spill] sm:$0xff] }
 0x425   :  { %11955 = vst [vmem:[#allocation183_spill] sm:$0xff] %v10203_v8  ;;  %v10208_v30 = vpop.eup %7658  ;;  %7674 = vpow2.f32 %v2791_v63  ;;  %4122 = vmax.xlane.f32.xlu2 %v4121_v25  ;;  %v2897_v45 = vadd.f32 %v10203_v8, %v10167_v61  ;;  %v11964_v63 = vld [vmem:[#allocation26_spill] sm:$0xff]  ;;  %v11967_v8 = vld [vmem:[#allocation141_spill] sm:$0xff]  ;;  %v10234_v60 = vpop.xlane.xlu2 %4057 }
 0x426   :  { %11956 = vst [vmem:[#allocation143_spill] sm:$0xff] %v10208_v30  ;;  %v10215_v47 = vpop.eup %7660  ;;  %3622 = vadd.xlane.f32.xlu1 %v3621_v48  ;;  %7676 = vpow2.f32 %v2799_v20  ;;  %v11965_v48 = vld [vmem:[#allocation139_spill] sm:$0xff]  ;;  %v7204_v34 = vld [vmem:[#allocation2 + $0x34] sm:$0xf0] }
 0x427   :  { %5549 = vmatpush.bf16.msra.mxu0 %v6568_v58  ;;  %11959 = vst [vmem:[#allocation39_spill] sm:$0xff] %v10215_v47  ;;  %v3505_v58 = vmul.f32 1.442695, %v3419_v28  ;;  %v10219_v1 = vpop.eup %7662  ;;  %v3626_v37 = vadd.f32 %v10215_v47, %v3625_v51  ;;  %v3420_v28 = vsub.f32 %v11962_v7, %v9868_v6  ;;  %v2773_v6 = vmul.f32 1.442695, %v2687_v43 }
 0x428   :  { %11961 = vst [vmem:[#allocation144_spill] sm:$0xff] %v10219_v1  ;;  %v7665_v35 = vpop.eup %7664  ;;  %v3610_v2 = vadd.f32 %v10219_v1, %v3609_v26  ;;  %v2911_v26 = vpop.xlane.xlu0 %2910  ;;  %v6536_v7 = vor.u32 %v7204_v34, %v6535_v32  ;;  %v7200_v34 = vld [vmem:[#allocation2 + $0x14] sm:$0xf0] }
 0x429   :  { %v10228_v21 = vpop.eup %7666  ;;  %v3009_v51 = vmul.f32 %v7665_v35, %v11964_v63  ;;  %v3010_v25 = vmul.f32 %v7665_v35, %v11965_v48  ;;  %v3011_v47 = vmul.f32 %v7665_v35, %v11966_v44  ;;  %v3012_v61 = vmul.f32 %v7665_v35, %v11967_v8  ;;  %11968 = vst [vmem:[#allocation43_spill] sm:$0xff] %v10234_v60  ;;  %v6519_v48 = vld [vmem:[#allocation2 + $0x8] sm:$0xf] }
 0x42a   :  { %11963 = vst [vmem:[#allocation41_spill] sm:$0xff] %v10228_v21  ;;  %3627 = vadd.xlane.f32.xlu0 %v3626_v37  ;;  %v10236_v20 = vpop.eup %7668  ;;  %7678 = vpow2.f32 %v3505_v58  ;;  %v2898_v44 = vadd.f32 %v10208_v30, %v2897_v45  ;;  %v11972_v37 = vld [vmem:[#allocation82_spill] sm:$0xff]  ;;  %v3507_v60 = vmul.f32 1.442695, %v3420_v28  ;;  %v3611_v43 = vadd.f32 %v10228_v21, %v3610_v2  ;;  %v12060_v21 = vld [vmem:[#allocation160_spill] sm:$0xff] }
 0x42b   :  { %5550 = vmatpush.bf16.msra.mxu0 %v6552_v40  ;;  %11969 = vst [vmem:[#allocation30_spill] sm:$0xff] %v10236_v20  ;;  %v2779_v40 = vmul.f32 1.442695, %v2690_v16  ;;  %v10238_v22 = vpop.eup %7670  ;;  %v3045_v63 = vpack.c.bf16 %v3010_v25, %v3009_v51  ;;  %v3046_v1 = vpack.c.bf16 %v3012_v61, %v3011_v47  ;;  %7680 = vrcp.f32 %v2911_v26  ;;  %v7226_v16 = vld [vmem:[#allocation2 + $0xec] sm:$0xf]  ;;  %v11974_v47 = vld [vmem:[#allocation101_spill] sm:$0xff] }
 0x42c   :  { %11970 = vst [vmem:[#allocation155_spill] sm:$0xff] %v10238_v22  ;;  %v10241_v8 = vpop.eup %7672  ;;  %v2691_v35 = vsub.f32 %v11972_v37, %v11953_v50  ;;  %v2892_v58 = vadd.f32 %v9958_v11, %v9948_v42  ;;  %v2775_v61 = vmul.f32 1.442695, %v2688_v4  ;;  %v11975_v51 = vld [vmem:[#allocation53_spill] sm:$0xff]  ;;  %7682 = vpow2.f32 %v2777_v53  ;;  %v11977_v28 = vld [vmem:[#allocation54_spill] sm:$0xff]  ;;  %v11979_v11 = vld [vmem:[#allocation83_spill] sm:$0xff] }
 0x42d   :  { %11971 = vst [vmem:[#allocation146_spill] sm:$0xff] %v10241_v8  ;;  %v10248_v32 = vpop.eup %7674  ;;  %v2669_v45 = vsub.f32 %v11975_v51, %v11974_v47  ;;  %v2904_v25 = vadd.f32 %v10241_v8, %v2903_v5  ;;  %v2670_v2 = vsub.f32 %v11977_v28, %v11974_v47  ;;  %7684 = vpow2.f32 %v2779_v40  ;;  %v6633_v37 = vld [vmem:[#allocation2 + $0xf8] sm:$0xf0] }
 0x42e   :  { %11973 = vst [vmem:[#allocation31_spill] sm:$0xff] %v10248_v32  ;;  %v10253_v26 = vpop.eup %7676  ;;  %3612 = vadd.xlane.f32.xlu1 %v3611_v43  ;;  %v3614_v4 = vadd.f32 %v10238_v22, %v10236_v20  ;;  %7686 = vpow2.f32 %v2773_v6  ;;  %v6617_v5 = vld [vmem:[#allocation2 + $0xd8] sm:$0xf0]  ;;  %v2692_v42 = vsub.f32 %v11979_v11, %v11953_v50  ;;  %v2781_v28 = vmul.f32 1.442695, %v2691_v35  ;;  %v11981_v43 = vld [vmem:[#allocation58_spill] sm:$0xff] }
 0x42f   :  { %5551 = vmatpush.bf16.msra.mxu0 %v6536_v7  ;;  %3077 = vst [vmem:[#allocation2 + $0x1e0] sm:$0xff] %v3045_v63  ;;  %v6520_v7 = vor.u32 %v7200_v34, %v6519_v48  ;;  %v2899_v53 = vadd.f32 %v10253_v26, %v2898_v44  ;;  %2905 = vadd.xlane.f32.xlu2 %v2904_v25  ;;  %7688 = vpow2.f32 %v3507_v60  ;;  %v11980_v48 = vld [vmem:[#allocation106_spill] sm:$0xff]  ;;  %v10267_v34 = vpop.xlane.xlu2 %4067  ;;  %v7222_v44 = vld [vmem:[#allocation2 + $0xcc] sm:$0xf]  ;;  %v2739_v25 = vmul.f32 1.442695, %v2670_v2 }
 0x430   :  { %11976 = vst [vmem:[#allocation147_spill] sm:$0xff] %v10253_v26  ;;  %v6636_v63 = vor.u32 %v7226_v16, %v6633_v37  ;;  %v10260_v51 = vpop.eup %7678  ;;  %7690 = vpow2.f32 %v2775_v61  ;;  %v2673_v6 = vsub.f32 %v11981_v43, %v11980_v48  ;;  %v2737_v16 = vmul.f32 1.442695, %v2669_v45  ;;  %v11983_v60 = vld [vmem:[#allocation75_spill] sm:$0xff]  ;;  %v11985_v61 = vld [vmem:[#allocation180_spill] sm:$0xff]  ;;  %v11986_v22 = vld [vmem:[#allocation181_spill] sm:$0xff] }
 0x431   :  { %3078 = vst [vmem:[#allocation2 + $0x1e8] sm:$0xff] %v3046_v1  ;;  %v2893_v1 = vadd.f32 %v9968_v23, %v2892_v58  ;;  %v7681_v40 = vpop.eup %7680  ;;  %v6620_v37 = vor.u32 %v7222_v44, %v6617_v5  ;;  %v3615_v11 = vadd.f32 %v10260_v51, %v3614_v4  ;;  %v11984_v58 = vld [vmem:[#allocation179_spill] sm:$0xff]  ;;  %7692 = vpow2.f32 %v2781_v28  ;;  %v6601_v23 = vld [vmem:[#allocation2 + $0xb8] sm:$0xf0] }
 0x432   :  { %11978 = vst [vmem:[#allocation98_spill] sm:$0xff] %v10260_v51  ;;  %2900 = vadd.xlane.f32.xlu0 %v2899_v53  ;;  %v10270_v50 = vpop.eup %7682  ;;  %v2993_v35 = vmul.f32 %v7681_v40, %v11983_v60  ;;  %v2995_v47 = vmul.f32 %v7681_v40, %v11985_v61  ;;  %v2996_v43 = vmul.f32 %v7681_v40, %v11986_v22  ;;  %v11988_v45 = vld [vmem:[#allocation59_spill] sm:$0xff]  ;;  %v2745_v60 = vmul.f32 1.442695, %v2673_v6  ;;  %v11990_v51 = vld [vmem:[#allocation68_spill] sm:$0xff] }
 0x433   :  { %5552 = vmatpush.bf16.msra.mxu0 %v6520_v7  ;;  %11982 = vst [vmem:[#allocation92_spill] sm:$0xff] %v10270_v50  ;;  %v2994_v7 = vmul.f32 %v7681_v40, %v11984_v58  ;;  %v10277_v53 = vpop.eup %7684  ;;  %v2674_v2 = vsub.f32 %v11988_v45, %v11980_v48  ;;  %v2894_v4 = vadd.f32 %v10248_v32, %v2893_v1  ;;  %v7218_v5 = vld [vmem:[#allocation2 + $0xac] sm:$0xf]  ;;  %v11989_v58 = vld [vmem:[#allocation114_spill] sm:$0xff]  ;;  %7694 = vpow2.f32 %v2737_v16 }
 0x434   :  { %11987 = vst [vmem:[#allocation37_spill] sm:$0xff] %v10277_v53  ;;  %v10282_v44 = vpop.eup %7686  ;;  %v2681_v61 = vsub.f32 %v11990_v51, %v11989_v58  ;;  %v3038_v22 = vpack.c.bf16 %v2996_v43, %v2995_v47  ;;  %7696 = vpow2.f32 %v2739_v25  ;;  %v6604_v28 = vor.u32 %v7218_v5, %v6601_v23  ;;  %v7214_v47 = vld [vmem:[#allocation2 + $0x8c] sm:$0xf]  ;;  %v11993_v25 = vld [vmem:[#allocation173_spill] sm:$0xff]  ;;  %v11996_v43 = vld [vmem:[#allocation176_spill] sm:$0xff] }
 0x435   :  { %v3037_v20 = vpack.c.bf16 %v2994_v7, %v2993_v35  ;;  %v10286_v40 = vpop.eup %7688  ;;  %v2887_v1 = vadd.f32 %v10277_v53, %v10270_v50  ;;  %v2747_v6 = vmul.f32 1.442695, %v2674_v2  ;;  %v11994_v35 = vld [vmem:[#allocation174_spill] sm:$0xff]  ;;  %v11995_v7 = vld [vmem:[#allocation145_spill] sm:$0xff]  ;;  %v12012_v53 = vld [vmem:[#allocation148_spill] sm:$0xff] }
 0x436   :  { %5553 = vmatmul.bf16.vlgmr.msra.gmra.mxu0 %v10013_v3  ;;  %11991 = vst [vmem:[#allocation124_spill] sm:$0xff] %v10286_v40  ;;  %v10288_v26 = vpop.eup %7690  ;;  %v2761_v51 = vmul.f32 1.442695, %v2681_v61  ;;  %v6585_v2 = vld [vmem:[#allocation2 + $0x98] sm:$0xf0] }
 0x437   :  { %5597 = vmatpush.bf16.msrb.mxu0 %v6636_v63  ;;  %v2783_v63 = vmul.f32 1.442695, %v2692_v42  ;;  %3069 = vst [vmem:[#allocation2 + $0x1a0] sm:$0xff] %v3037_v20  ;;  %v3616_v42 = vadd.f32 %v10286_v40, %v3615_v11  ;;  %2895 = vadd.xlane.f32.xlu2 %v2894_v4  ;;  %v10293_v16 = vpop.eup %7692  ;;  %v2921_v4 = vpop.xlane.xlu0 %2920 }
 0x438   :  { %3070 = vst [vmem:[#allocation2 + $0x1a8] sm:$0xff] %v3038_v22  ;;  %v2888_v5 = vadd.f32 %v10293_v16, %v2887_v1  ;;  %v6569_v1 = vld [vmem:[#allocation2 + $0x78] sm:$0xf0] }
 0x439   :  { %7698 = vpow2.f32 %v2783_v63  ;;  %11992 = vst [vmem:[#allocation78_spill] sm:$0xff] %v10293_v16  ;;  %v6588_v63 = vor.u32 %v7214_v47, %v6585_v2  ;;  %v10300_v61 = vpop.eup %7694  ;;  %v7206_v2 = vld [vmem:[#allocation2 + $0x4c] sm:$0xf]  ;;  %v12006_v16 = vld [vmem:[#allocation186_spill] sm:$0xff] }
 0x43a   :  { %7700 = vpow2.f32 %v2745_v60  ;;  %3617 = vadd.xlane.f32.xlu0 %v3616_v42  ;;  %v7210_v60 = vld [vmem:[#allocation2 + $0x6c] sm:$0xf]  ;;  %11997 = vst [vmem:[#allocation76_spill] sm:$0xff] %v10300_v61 }
 0x43b   :  { %5598 = vmatpush.bf16.msrb.mxu0 %v6620_v37  ;;  %v4078_v37 = vpop.xlane.xlu2 %4077  ;;  %7702 = vrcp.f32 %v2921_v4 }
 0x43c   :  { %v4149_v20 = vsub.f32 %v11993_v25, %v4078_v37  ;;  %v4150_v11 = vsub.f32 %v11994_v35, %v4078_v37  ;;  %v4151_v23 = vsub.f32 %v11995_v7, %v4078_v37  ;;  %v4152_v45 = vsub.f32 %v11996_v43, %v4078_v37  ;;  %v10302_v25 = vpop.eup %7696  ;;  %v11999_v35 = vld [vmem:[#allocation69_spill] sm:$0xff]  ;;  %v12000_v37 = vld [vmem:[#allocation71_spill] sm:$0xff] }
 0x43d   :  { %7704 = vpow2.f32 %v2747_v6  ;;  %11998 = vst [vmem:[#allocation77_spill] sm:$0xff] %v10302_v25  ;;  %v2682_v7 = vsub.f32 %v11999_v35, %v11989_v58  ;;  %v2683_v43 = vsub.f32 %v12000_v37, %v11989_v58  ;;  %v6553_v25 = vld [vmem:[#allocation2 + $0x58] sm:$0xf0] }
 0x43e   :  { %v4233_v22 = vmul.f32 1.442695, %v4149_v20  ;;  %v4235_v42 = vmul.f32 1.442695, %v4150_v11  ;;  %7706 = vpow2.f32 %v2761_v51  ;;  %v4239_v4 = vmul.f32 1.442695, %v4152_v45 }
 0x43f   :  { %5599 = vmatpush.bf16.msrb.mxu0 %v6604_v28  ;;  %v4237_v28 = vmul.f32 1.442695, %v4151_v23  ;;  %v10308_v47 = vpop.eup %7698  ;;  %v6572_v11 = vor.u32 %v7210_v60, %v6569_v1  ;;  %v12003_v23 = vld [vmem:[#allocation72_spill] sm:$0xff]  ;;  %v2763_v51 = vmul.f32 1.442695, %v2682_v7  ;;  %v12007_v60 = vld [vmem:[#allocation187_spill] sm:$0xff] }
 0x440   :  { %12001 = vst [vmem:[#allocation79_spill] sm:$0xff] %v10308_v47  ;;  %7708 = vpow2.f32 %v4233_v22  ;;  %v10310_v6 = vpop.eup %7700  ;;  %v2889_v20 = vadd.f32 %v10308_v47, %v2888_v5  ;;  %v2684_v35 = vsub.f32 %v12003_v23, %v11989_v58  ;;  %v2765_v45 = vmul.f32 1.442695, %v2683_v43  ;;  %v12008_v47 = vld [vmem:[#allocation188_spill] sm:$0xff] }
 0x441   :  { %12002 = vst [vmem:[#allocation38_spill] sm:$0xff] %v10310_v6  ;;  %7710 = vpow2.f32 %v4235_v42  ;;  %v7703_v37 = vpop.eup %7702  ;;  %v6556_v22 = vor.u32 %v7206_v2, %v6553_v25  ;;  %v12005_v6 = vld [vmem:[#allocation104_spill] sm:$0xff] }
 0x442   :  { %7712 = vpow2.f32 %v4237_v28  ;;  %2890 = vadd.xlane.f32.xlu0 %v2889_v20  ;;  %v3001_v42 = vmul.f32 %v7703_v37, %v12005_v6  ;;  %v3002_v5 = vmul.f32 %v7703_v37, %v12006_v16  ;;  %v3003_v1 = vmul.f32 %v7703_v37, %v12007_v60  ;;  %v3396_v28 = vpop.xlane.xlu0 %3395  ;;  %v12010_v7 = vld [vmem:[#allocation184_spill] sm:$0xff]  ;;  %v12014_v16 = vld [vmem:[#allocation122_spill] sm:$0xff] }
 0x443   :  { %5600 = vmatpush.bf16.msrb.mxu0 %v6588_v63  ;;  %7714 = vpow2.f32 %v4239_v4  ;;  %v4088_v63 = vpop.xlane.xlu2 %4087  ;;  %v10315_v61 = vpop.eup %7704  ;;  %v3004_v58 = vmul.f32 %v7703_v37, %v12008_v47  ;;  %v12011_v4 = vld [vmem:[#allocation185_spill] sm:$0xff]  ;;  %v3457_v50 = vsub.f32 %v12014_v16, %v3396_v28  ;;  %v12015_v60 = vld [vmem:[#allocation112_spill] sm:$0xff]  ;;  %v7202_v47 = vld [vmem:[#allocation2 + $0x2c] sm:$0xf] }
 0x444   :  { %12004 = vst [vmem:[#allocation26_spill] sm:$0xff] %v10315_v61  ;;  %v10321_v23 = vpop.eup %7706  ;;  %v4157_v43 = vsub.f32 %v12010_v7, %v4088_v63  ;;  %v4158_v20 = vsub.f32 %v12011_v4, %v4088_v63  ;;  %v4160_v25 = vsub.f32 %v9728_v31, %v4088_v63  ;;  %v3041_v6 = vpack.c.bf16 %v3002_v5, %v3001_v42  ;;  %v12018_v31 = vld [vmem:[#allocation55_spill] sm:$0xff] }
 0x445   :  { %12009 = vst [vmem:[#allocation139_spill] sm:$0xff] %v10321_v23  ;;  %v3042_v61 = vpack.c.bf16 %v3004_v58, %v3003_v1  ;;  %v3458_v40 = vsub.f32 %v12015_v60, %v3396_v28  ;;  %7716 = vpow2.f32 %v2763_v51  ;;  %v6537_v1 = vld [vmem:[#allocation2 + $0x38] sm:$0xf0]  ;;  %v2767_v60 = vmul.f32 1.442695, %v2684_v35 }
 0x446   :  { %v10327_v2 = vpop.eup %7708  ;;  %v4249_v32 = vmul.f32 1.442695, %v4157_v43  ;;  %v4251_v7 = vmul.f32 1.442695, %v4158_v20  ;;  %7718 = vpow2.f32 %v2765_v45  ;;  %3073 = vst [vmem:[#allocation2 + $0x1c0] sm:$0xff] %v3041_v6  ;;  %v12021_v51 = vld [vmem:[#allocation121_spill] sm:$0xff] }
 0x447   :  { %5601 = vmatpush.bf16.msrb.mxu0 %v6572_v11  ;;  %v4159_v11 = vsub.f32 %v12012_v53, %v4088_v63  ;;  %12013 = vst [vmem:[#allocation175_spill] sm:$0xff] %v10327_v2  ;;  %v10331_v37 = vpop.eup %7710  ;;  %v12019_v53 = vld [vmem:[#allocation129_spill] sm:$0xff]  ;;  %v4255_v42 = vmul.f32 1.442695, %v4160_v25  ;;  %v3459_v43 = vsub.f32 %v12021_v51, %v3396_v28  ;;  %v3581_v20 = vmul.f32 1.442695, %v3457_v50 }
 0x448   :  { %12016 = vst [vmem:[#allocation141_spill] sm:$0xff] %v10331_v37  ;;  %v10333_v4 = vpop.eup %7712  ;;  %v3397_v63 = vsub.f32 %v12019_v53, %v12018_v31  ;;  %v4346_v5 = vadd.f32 %v10331_v37, %v10327_v2  ;;  %7720 = vpow2.f32 %v4249_v32  ;;  %v3583_v16 = vmul.f32 1.442695, %v3458_v40  ;;  %v7198_v25 = vld [vmem:[#allocation2 + $0xc] sm:$0xf]  ;;  %v12024_v51 = vld [vmem:[#allocation24_spill] sm:$0xff] }
 0x449   :  { %v4253_v30 = vmul.f32 1.442695, %v4159_v11  ;;  %12017 = vst [vmem:[#allocation82_spill] sm:$0xff] %v10333_v4  ;;  %v10339_v58 = vpop.eup %7714  ;;  %v12022_v11 = vld [vmem:[#allocation130_spill] sm:$0xff]  ;;  %7722 = vpow2.f32 %v4251_v7  ;;  %v3460_v53 = vsub.f32 %v9558_v46, %v3396_v28  ;;  %v6521_v40 = vld [vmem:[#allocation2 + $0x18] sm:$0xf0] }
 0x44a   :  { %12020 = vst [vmem:[#allocation53_spill] sm:$0xff] %v10339_v58  ;;  %v3398_v45 = vsub.f32 %v12022_v11, %v12018_v31  ;;  %v4347_v6 = vadd.f32 %v10333_v4, %v4346_v5  ;;  %v3461_v32 = vmul.f32 1.442695, %v3397_v63  ;;  %v3585_v35 = vmul.f32 1.442695, %v3459_v43  ;;  %v12026_v46 = vld [vmem:[#allocation191_spill] sm:$0xff] }
 0x44b   :  { %5602 = vmatpush.bf16.msrb.mxu0 %v6556_v22  ;;  %3074 = vst [vmem:[#allocation2 + $0x1c8] sm:$0xff] %v3042_v61  ;;  %v6540_v22 = vor.u32 %v7202_v47, %v6537_v1  ;;  %7724 = vpow2.f32 %v4253_v30  ;;  %v10346_v37 = vpop.xlane.xlu2 %4097  ;;  %v12023_v61 = vld [vmem:[#allocation142_spill] sm:$0xff]  ;;  %v10351_v1 = vpop.xlane.xlu0 %4052  ;;  %v6524_v30 = vor.u32 %v7198_v25, %v6521_v40  ;;  %v7193_v43 = vld [vmem:[#allocation12 + $0x24] sm:$0xf]  ;;  %v6493_v25 = vld [vmem:[#allocation12 + $0x30] sm:$0x10] }
 0x44c   :  { %v3405_v50 = vsub.f32 %v12024_v51, %v12023_v61  ;;  %7726 = vpow2.f32 %v4255_v42  ;;  %v4348_v47 = vadd.f32 %v10339_v58, %v4347_v6  ;;  %v10353_v7 = vpop.eup %7716  ;;  %v4165_v28 = vsub.f32 %v12026_v46, %v10346_v37  ;;  %v12028_v42 = vld [vmem:[#allocation192_spill] sm:$0xff]  ;;  %v12030_v6 = vld [vmem:[#allocation25_spill] sm:$0xff]  ;;  %v6477_v2 = vld [vmem:[#allocation12 + $0x10] sm:$0xf0] }
 0x44d   :  { %12025 = vst [vmem:[#allocation54_spill] sm:$0xff] %v10353_v7  ;;  %7728 = vpow2.f32 %v3581_v20  ;;  %v10357_v5 = vpop.eup %7718  ;;  %v3463_v63 = vmul.f32 1.442695, %v3398_v45  ;;  %v3406_v51 = vsub.f32 %v12030_v6, %v12023_v61  ;;  %v3587_v20 = vmul.f32 1.442695, %v3460_v53  ;;  %v12032_v45 = vld [vmem:[#allocation137_spill] sm:$0xff] }
 0x44e   :  { %12027 = vst [vmem:[#allocation83_spill] sm:$0xff] %v10357_v5  ;;  %7730 = vpow2.f32 %v3583_v16  ;;  %4349 = vadd.xlane.f32.xlu1 %v4348_v47  ;;  %v10361_v11 = vpop.eup %7720  ;;  %v3407_v16 = vsub.f32 %v12032_v45, %v12023_v61  ;;  %v3477_v47 = vmul.f32 1.442695, %v3405_v50  ;;  %v12035_v53 = vld [vmem:[#allocation153_spill] sm:$0xff]  ;;  %v6496_v4 = vor.u32 %v7193_v43, %v6493_v25  ;;  %v2936_v25 = vpop.xlane.xlu1 %2935  ;;  %v12062_v5 = vld [vmem:[#allocation163_spill] sm:$0xff] }
 0x44f   :  { %5603 = vmatpush.bf16.msrb.mxu0 %v6540_v22  ;;  %v4166_v22 = vsub.f32 %v12028_v42, %v10346_v37  ;;  %12029 = vst [vmem:[#allocation106_spill] sm:$0xff] %v10361_v11  ;;  %7732 = vpow2.f32 %v2767_v60  ;;  %v10365_v40 = vpop.eup %7722  ;;  %v4265_v42 = vmul.f32 1.442695, %v4165_v28  ;;  %v3479_v45 = vmul.f32 1.442695, %v3406_v51 }
 0x450   :  { %12031 = vst [vmem:[#allocation58_spill] sm:$0xff] %v10365_v40  ;;  %7734 = vpow2.f32 %v3461_v32  ;;  %v4356_v60 = vadd.f32 %v10365_v40, %v10361_v11  ;;  %v7189_v32 = vld [vmem:[#allocation12 + $0x4] sm:$0xf] }
 0x451   :  { %v10369_v46 = vpop.eup %7724  ;;  %7736 = vpow2.f32 %v3585_v35  ;;  %v4267_v6 = vmul.f32 1.442695, %v4166_v22  ;;  %v12037_v35 = vld [vmem:[#allocation138_spill] sm:$0xff]  ;;  %v6480_v51 = vor.u32 %v7189_v32, %v6477_v2 }
 0x452   :  { %12033 = vst [vmem:[#allocation75_spill] sm:$0xff] %v10369_v46  ;;  %v10373_v58 = vpop.eup %7726  ;;  %7738 = vpow2.f32 %v3463_v63  ;;  %v3408_v28 = vsub.f32 %v12037_v35, %v12023_v61  ;;  %v4357_v40 = vadd.f32 %v10369_v46, %v4356_v60  ;;  %v3481_v63 = vmul.f32 1.442695, %v3407_v16  ;;  %v12039_v22 = vld [vmem:[#allocation154_spill] sm:$0xff] }
 0x453   :  { %5604 = vmatpush.bf16.msrb.mxu0 %v6524_v30  ;;  %12034 = vst [vmem:[#allocation179_spill] sm:$0xff] %v10373_v58  ;;  %v4167_v30 = vsub.f32 %v12035_v53, %v10346_v37  ;;  %v10378_v50 = vpop.eup %7728  ;;  %7740 = vpow2.f32 %v3587_v20  ;;  %v4168_v43 = vsub.f32 %v12039_v22, %v10346_v37  ;;  %v10387_v53 = vpop.xlane.xlu0 %4062  ;;  %v6501_v22 = vld [vmem:[#allocation12 + $0x38] sm:$0x10] }
 0x454   :  { %12036 = vst [vmem:[#allocation180_spill] sm:$0xff] %v10378_v50  ;;  %v10383_v11 = vpop.eup %7730  ;;  %7742 = vpow2.f32 %v3477_v47  ;;  %v4358_v61 = vadd.f32 %v10373_v58, %v4357_v40  ;;  %v3483_v60 = vmul.f32 1.442695, %v3408_v28  ;;  %v12055_v58 = vld [vmem:[#allocation49_spill] sm:$0xff] }
 0x455   :  { %12038 = vst [vmem:[#allocation181_spill] sm:$0xff] %v10383_v11  ;;  %v10390_v8 = vpop.eup %7732  ;;  %7744 = vpow2.f32 %v4265_v42  ;;  %v4269_v47 = vmul.f32 1.442695, %v4167_v30  ;;  %v3664_v16 = vadd.f32 %v10383_v11, %v10378_v50  ;;  %v4271_v40 = vmul.f32 1.442695, %v4168_v43 }
 0x456   :  { %5605 = vmatmul.bf16.vlgmr.msrb.gmra.mxu0 %v10013_v3  ;;  %v4609_v3 = vsel %vm4604_vm2, %v6496_v4, 0  ;;  %12040 = vst [vmem:[#allocation59_spill] sm:$0xff] %v10390_v8  ;;  %v10393_v20 = vpop.eup %7734  ;;  %7746 = vpow2.f32 %v4267_v6  ;;  %4359 = vadd.xlane.f32.xlu1 %v4358_v61  ;;  %v10399_v4 = vpop.xlane.xlu2 %4107  ;;  %v6499_v42 = vld [vmem:[#allocation12 + $0x28] sm:$0xf]  ;;  %v7196_v30 = vld [vmem:[#allocation12 + $0x34] sm:$0x10] }
 0x457   :  { %4636 = vmatpush.bf16.msrb.mxu1 %v4609_v3  ;;  %12041 = vst [vmem:[#allocation114_spill] sm:$0xff] %v10393_v20  ;;  %v10397_v37 = vpop.eup %7736  ;;  %7748 = vpow2.f32 %v3479_v45  ;;  %v7194_v6 = vld [vmem:[#allocation12 + $0x2c] sm:$0xf]  ;;  %v12046_v45 = vld [vmem:[#allocation164_spill] sm:$0xff]  ;;  %v4175_v46 = vsub.f32 %v12055_v58, %v10399_v4  ;;  %v12057_v20 = vld [vmem:[#allocation105_spill] sm:$0xff] }
 0x458   :  { %12042 = vst [vmem:[#allocation68_spill] sm:$0xff] %v10397_v37  ;;  %v10401_v35 = vpop.eup %7738  ;;  %7750 = vpow2.f32 %v3481_v63  ;;  %v3665_v2 = vadd.f32 %v10397_v37, %v3664_v16  ;;  %v4173_v61 = vsub.f32 %v12046_v45, %v10399_v4  ;;  %v6500_v63 = vor.u32 %v7196_v30, %v6499_v42  ;;  %v12049_v37 = vld [vmem:[#allocation166_spill] sm:$0xff]  ;;  %v12053_v45 = vld [vmem:[#allocation135_spill] sm:$0xff]  ;;  %v12059_v58 = vld [vmem:[#allocation80_spill] sm:$0xff] }
 0x459   :  { %12043 = vst [vmem:[#allocation173_spill] sm:$0xff] %v10401_v35  ;;  %v10404_v32 = vpop.eup %7740  ;;  %7752 = vrcp.f32 %v2936_v25  ;;  %v3633_v25 = vpop.xlane.xlu1 %3632  ;;  %v4174_v11 = vsub.f32 %v12049_v37, %v10399_v4  ;;  %v6504_v50 = vor.u32 %v7194_v6, %v6501_v22 }
 0x45a   :  { %12044 = vst [vmem:[#allocation174_spill] sm:$0xff] %v10404_v32  ;;  %v10406_v3 = vpop.eup %7742  ;;  %7754 = vpow2.f32 %v4269_v47  ;;  %v3666_v28 = vadd.f32 %v10404_v32, %v3665_v2  ;;  %v4612_v47 = vsel %vm4604_vm2, %v6500_v63, 0  ;;  %v10418_v2 = vld [vmem:[#allocation8] sm:$0xf]  ;;  %v4281_v6 = vmul.f32 1.442695, %v4173_v61 }
 0x45b   :  { %4637 = vmatpush.bf16.msrb.mxu1 %v6480_v51  ;;  %12045 = vst [vmem:[#allocation145_spill] sm:$0xff] %v10406_v3  ;;  %v10411_v43 = vpop.eup %7744  ;;  %7756 = vpow2.f32 %v3483_v60  ;;  %v4073_v51 = vpop.xlane.xlu0 %4072  ;;  %v12052_v60 = vld [vmem:[#allocation116_spill] sm:$0xff]  ;;  %4649 = vmatpush.bf16.msrb.mxu2 %v4612_v47  ;;  %v4615_v63 = vsel %vm4604_vm2, %v6504_v50, 0 }
 0x45c   :  { %12047 = vst [vmem:[#allocation176_spill] sm:$0xff] %v10411_v43  ;;  %v10413_v16 = vpop.eup %7746  ;;  %7758 = vpow2.f32 %v4271_v40  ;;  %3667 = vadd.xlane.f32.xlu2 %v3666_v28  ;;  %v4145_v30 = vsub.f32 %v12052_v60, %v4073_v51  ;;  %v4146_v40 = vsub.f32 %v12053_v45, %v4073_v51  ;;  %v12054_v28 = vld [vmem:[#allocation100_spill] sm:$0xff]  ;;  %v4148_v60 = vsub.f32 %v12057_v20, %v4073_v51 }
 0x45d   :  { %12048 = vst [vmem:[#allocation69_spill] sm:$0xff] %v10413_v16  ;;  %v10422_v42 = vpop.eup %7748  ;;  %v4147_v32 = vsub.f32 %v12054_v28, %v4073_v51  ;;  %7760 = vrcp.f32 %v3633_v25  ;;  %v4366_v22 = vadd.f32 %v10413_v16, %v10411_v43  ;;  %4662 = vmatpush.bf16.msrb.mxu3 %v4615_v63  ;;  %v12061_v25 = vld [vmem:[#allocation33_spill] sm:$0xff]  ;;  %v6735_v43 = vld [vmem:[#allocation2 + $0x1c0] sm:$0xf] }
 0x45e   :  { %12050 = vst [vmem:[#allocation71_spill] sm:$0xff] %v10418_v2  ;;  %6506 = vmatmul.msk.bf16.vlgmr.msrb.gmra.mxu1 %vm4600_vm3, %v10418_v2  ;;  %v10429_v37 = vpop.eup %7750  ;;  %v4225_v8 = vmul.f32 1.442695, %v4145_v30  ;;  %v4227_v45 = vmul.f32 1.442695, %v4146_v40 }
 0x45f   :  { %12051 = vst [vmem:[#allocation72_spill] sm:$0xff] %v10422_v42  ;;  %v7753_v35 = vpop.eup %7752  ;;  %v4229_v2 = vmul.f32 1.442695, %v4147_v32  ;;  %v4283_v30 = vmul.f32 1.442695, %v4174_v11  ;;  %v12069_v11 = vld [vmem:[#allocation64_spill] sm:$0xff] }
 0x460   :  { %12056 = vst [vmem:[#allocation104_spill] sm:$0xff] %v10429_v37  ;;  %v10435_v28 = vpop.eup %7754  ;;  %v3013_v47 = vmul.f32 %v7753_v35, %v12059_v58  ;;  %v3014_v31 = vmul.f32 %v7753_v35, %v12060_v21  ;;  %v3015_v61 = vmul.f32 %v7753_v35, %v12061_v25  ;;  %v3016_v19 = vmul.f32 %v7753_v35, %v12062_v5  ;;  %v12065_v5 = vld [vmem:[#allocation152_spill] sm:$0xff] }
 0x461   :  { %12058 = vst [vmem:[#allocation186_spill] sm:$0xff] %v10435_v28  ;;  %v10441_v16 = vpop.eup %7756  ;;  %7762 = vpow2.f32 %v4225_v8  ;;  %v4367_v50 = vadd.f32 %v10435_v28, %v4366_v22  ;;  %v4231_v40 = vmul.f32 1.442695, %v4148_v60  ;;  %v4176_v35 = vsub.f32 %v12065_v5, %v10399_v4  ;;  %v12066_v22 = vld [vmem:[#allocation125_spill] sm:$0xff]  ;;  %v12067_v28 = vld [vmem:[#allocation34_spill] sm:$0xff]  ;;  %v12074_v5 = vld [vmem:[#allocation107_spill] sm:$0xff] }
 0x462   :  { %12063 = vst [vmem:[#allocation187_spill] sm:$0xff] %v10441_v16  ;;  %v10444_v20 = vpop.eup %7758  ;;  %v3047_v51 = vpack.c.bf16 %v3014_v31, %v3013_v47  ;;  %v3048_v32 = vpack.c.bf16 %v3016_v19, %v3015_v61  ;;  %7764 = vpow2.f32 %v4227_v45  ;;  %v4285_v58 = vmul.f32 1.442695, %v4175_v46  ;;  %v12068_v19 = vld [vmem:[#allocation63_spill] sm:$0xff]  ;;  %v12071_v61 = vld [vmem:[#allocation178_spill] sm:$0xff] }
 0x463   :  { %12064 = vst [vmem:[#allocation188_spill] sm:$0xff] %v10444_v20  ;;  %7766 = vpow2.f32 %v4281_v6  ;;  %v4368_v63 = vadd.f32 %v10444_v20, %v4367_v50  ;;  %v7761_v21 = vpop.eup %7760  ;;  %v4083_v8 = vpop.xlane.xlu0 %4082  ;;  %v12070_v6 = vld [vmem:[#allocation177_spill] sm:$0xff]  ;;  %v12072_v50 = vld [vmem:[#allocation182_spill] sm:$0xff]  ;;  %v12077_v20 = vld [vmem:[#allocation36_spill] sm:$0xff] }
 0x464   :  { %3079 = vst [vmem:[#allocation2 + $0x1f0] sm:$0xff] %v3047_v51  ;;  %7768 = vpow2.f32 %v4229_v2  ;;  %v3717_v25 = vmul.f32 %v7761_v21, %v12066_v22  ;;  %v3718_v31 = vmul.f32 %v7761_v21, %v12067_v28  ;;  %v3719_v45 = vmul.f32 %v7761_v21, %v12068_v19  ;;  %v12076_v19 = vld [vmem:[#allocation44_spill] sm:$0xff]  ;;  %v12089_v16 = vld [vmem:[#allocation27_spill] sm:$0xff] }
 0x465   :  { %3080 = vst [vmem:[#allocation2 + $0x1f8] sm:$0xff] %v3048_v32  ;;  %v3720_v60 = vmul.f32 %v7761_v21, %v12069_v11  ;;  %7770 = vpow2.f32 %v4283_v30  ;;  %4369 = vadd.xlane.f32.xlu1 %v4368_v63  ;;  %v4153_v47 = vsub.f32 %v12070_v6, %v4083_v8  ;;  %v4154_v2 = vsub.f32 %v12071_v61, %v4083_v8 }
 0x466   :  { %v4155_v51 = vsub.f32 %v12072_v50, %v4083_v8  ;;  %v3765_v46 = vpack.c.bf16 %v3718_v31, %v3717_v25  ;;  %7772 = vpow2.f32 %v4231_v40  ;;  %v4156_v22 = vsub.f32 %v12074_v5, %v4083_v8  ;;  %v10469_v8 = vpop.xlane.xlu1 %4117  ;;  %v12083_v5 = vld [vmem:[#allocation67_spill] sm:$0xff] }
 0x467   :  { %v10456_v4 = vpop.eup %7762  ;;  %v3766_v32 = vpack.c.bf16 %v3720_v60, %v3719_v45  ;;  %v3401_v21 = vsub.f32 %v12077_v20, %v12076_v19  ;;  %v4287_v30 = vmul.f32 1.442695, %v4176_v35  ;;  %v4241_v63 = vmul.f32 1.442695, %v4153_v47  ;;  %v12080_v20 = vld [vmem:[#allocation45_spill] sm:$0xff] }
 0x468   :  { %12073 = vst [vmem:[#allocation184_spill] sm:$0xff] %v10456_v4  ;;  %v10459_v28 = vpop.eup %7764  ;;  %v4243_v11 = vmul.f32 1.442695, %v4154_v2  ;;  %7774 = vpow2.f32 %v4285_v58  ;;  %v4245_v61 = vmul.f32 1.442695, %v4155_v51  ;;  %v3402_v35 = vsub.f32 %v12080_v20, %v12076_v19  ;;  %v12081_v58 = vld [vmem:[#allocation66_spill] sm:$0xff] }
 0x469   :  { %12075 = vst [vmem:[#allocation185_spill] sm:$0xff] %v10459_v28  ;;  %v10463_v6 = vpop.eup %7766  ;;  %v4341_v25 = vadd.f32 %v10459_v28, %v10456_v4  ;;  %7776 = vpow2.f32 %v4241_v63  ;;  %v4247_v40 = vmul.f32 1.442695, %v4156_v22  ;;  %v6751_v45 = vld [vmem:[#allocation2 + $0x1e0] sm:$0xf]  ;;  %v4181_v2 = vsub.f32 %v12081_v58, %v10469_v8  ;;  %v12086_v28 = vld [vmem:[#allocation60_spill] sm:$0xff] }
 0x46a   :  { %12078 = vst [vmem:[#allocation148_spill] sm:$0xff] %v10463_v6  ;;  %v10467_v31 = vpop.eup %7768  ;;  %7778 = vpow2.f32 %v4243_v11  ;;  %v3469_v51 = vmul.f32 1.442695, %v3401_v21  ;;  %v4182_v22 = vsub.f32 %v12083_v5, %v10469_v8  ;;  %v12085_v11 = vld [vmem:[#allocation151_spill] sm:$0xff]  ;;  %v12088_v58 = vld [vmem:[#allocation162_spill] sm:$0xff] }
 0x46b   :  { %3797 = vst [vmem:[#allocation2 + $0x280] sm:$0xff] %v3765_v46  ;;  %v7259_v60 = vld [vmem:[#allocation2 + $0x1ec] sm:$0xf0]  ;;  %v4342_v47 = vadd.f32 %v10467_v31, %v4341_v25  ;;  %v10476_v50 = vpop.eup %7770  ;;  %7780 = vpow2.f32 %v4287_v30  ;;  %v12087_v25 = vld [vmem:[#allocation189_spill] sm:$0xff]  ;;  %v3409_v39 = vsub.f32 %v12089_v16, %v12088_v58  ;;  %v12090_v21 = vld [vmem:[#allocation190_spill] sm:$0xff] }
 0x46c   :  { %12079 = vst [vmem:[#allocation122_spill] sm:$0xff] %v10467_v31  ;;  %v6752_v46 = vor.u32 %v7259_v60, %v6751_v45  ;;  %v10480_v63 = vpop.eup %7772  ;;  %7782 = vpow2.f32 %v4245_v61  ;;  %v7255_v45 = vld [vmem:[#allocation2 + $0x1cc] sm:$0xf0]  ;;  %v3471_v49 = vmul.f32 1.442695, %v3402_v35  ;;  %v12096_v35 = vld [vmem:[#allocation165_spill] sm:$0xff] }
 0x46d   :  { %3798 = vst [vmem:[#allocation2 + $0x288] sm:$0xff] %v3766_v32  ;;  %v4093_v32 = vpop.xlane.xlu0 %4092  ;;  %7784 = vpow2.f32 %v4247_v40  ;;  %v4343_v60 = vadd.f32 %v10480_v63, %v4342_v47  ;;  %v6736_v40 = vor.u32 %v7255_v45, %v6735_v43  ;;  %v3485_v45 = vmul.f32 1.442695, %v3409_v39 }
 0x46e   :  { %12082 = vst [vmem:[#allocation112_spill] sm:$0xff] %v10476_v50  ;;  %v4161_v20 = vsub.f32 %v12085_v11, %v4093_v32  ;;  %v4162_v4 = vsub.f32 %v12086_v28, %v4093_v32  ;;  %v4163_v31 = vsub.f32 %v12087_v25, %v4093_v32  ;;  %5454 = vmatpush.bf16.msra.mxu1 %v6752_v46  ;;  %v10489_v5 = vpop.eup %7774  ;;  %v4297_v11 = vmul.f32 1.442695, %v4181_v2 }
 0x46f   :  { %12084 = vst [vmem:[#allocation129_spill] sm:$0xff] %v10480_v63  ;;  %v4164_v30 = vsub.f32 %v12090_v21, %v4093_v32  ;;  %v4376_v28 = vadd.f32 %v10476_v50, %v10463_v6  ;;  %v10493_v25 = vpop.eup %7776  ;;  %7786 = vpow2.f32 %v3469_v51  ;;  %4344 = vadd.xlane.f32.xlu2 %v4343_v60  ;;  %v12094_v32 = vld [vmem:[#allocation140_spill] sm:$0xff]  ;;  %v4299_v21 = vmul.f32 1.442695, %v4182_v22 }
 0x470   :  { %12091 = vst [vmem:[#allocation121_spill] sm:$0xff] %v10489_v5  ;;  %v4257_v61 = vmul.f32 1.442695, %v4161_v20  ;;  %v4259_v13 = vmul.f32 1.442695, %v4162_v4  ;;  %v10495_v46 = vpop.eup %7778  ;;  %v3410_v47 = vsub.f32 %v12094_v32, %v12088_v58  ;;  %v12098_v60 = vld [vmem:[#allocation128_spill] sm:$0xff] }
 0x471   :  { %12092 = vst [vmem:[#allocation130_spill] sm:$0xff] %v10493_v25  ;;  %v4261_v16 = vmul.f32 1.442695, %v4163_v31  ;;  %v6719_v20 = vld [vmem:[#allocation2 + $0x1a0] sm:$0xf]  ;;  %v4377_v4 = vadd.f32 %v10489_v5, %v4376_v28  ;;  %v10500_v2 = vpop.eup %7780  ;;  %v4183_v31 = vsub.f32 %v12096_v35, %v10469_v8  ;;  %v4351_v43 = vadd.f32 %v10495_v46, %v10493_v25  ;;  %v12134_v5 = vld [vmem:[#allocation113_spill] sm:$0xff] }
 0x472   :  { %12093 = vst [vmem:[#allocation142_spill] sm:$0xff] %v10495_v46  ;;  %7788 = vpow2.f32 %v4257_v61  ;;  %v4263_v50 = vmul.f32 1.442695, %v4164_v30  ;;  %5455 = vmatpush.bf16.msra.mxu1 %v6736_v40  ;;  %v10506_v51 = vpop.eup %7782  ;;  %v4137_v22 = vsub.f32 %v12098_v60, %v10387_v53  ;;  %v7251_v61 = vld [vmem:[#allocation2 + $0x1ac] sm:$0xf0] }
 0x473   :  { %12095 = vst [vmem:[#allocation24_spill] sm:$0xff] %v10500_v2  ;;  %7790 = vpow2.f32 %v4259_v13  ;;  %v4378_v28 = vadd.f32 %v10500_v2, %v4377_v4  ;;  %v10511_v32 = vpop.eup %7784  ;;  %v12100_v13 = vld [vmem:[#allocation32_spill] sm:$0xff]  ;;  %v6720_v40 = vor.u32 %v7251_v61, %v6719_v20  ;;  %v4352_v35 = vadd.f32 %v10506_v51, %v4351_v43 }
 0x474   :  { %12097 = vst [vmem:[#allocation191_spill] sm:$0xff] %v10506_v51  ;;  %7792 = vpow2.f32 %v4297_v11  ;;  %v4138_v30 = vsub.f32 %v12100_v13, %v10387_v53  ;;  %v12101_v46 = vld [vmem:[#allocation28_spill] sm:$0xff]  ;;  %v3487_v39 = vmul.f32 1.442695, %v3410_v47  ;;  %v12102_v11 = vld [vmem:[#allocation93_spill] sm:$0xff]  ;;  %v12132_v51 = vld [vmem:[#allocation70_spill] sm:$0xff] }
 0x475   :  { %12099 = vst [vmem:[#allocation192_spill] sm:$0xff] %v10511_v32  ;;  %7794 = vpow2.f32 %v4261_v16  ;;  %v3411_v25 = vsub.f32 %v12101_v46, %v12088_v58  ;;  %4379 = vadd.xlane.f32.xlu0 %v4378_v28  ;;  %v10518_v60 = vpop.eup %7786  ;;  %v4184_v4 = vsub.f32 %v12102_v11, %v10469_v8  ;;  %v4301_v2 = vmul.f32 1.442695, %v4183_v31  ;;  %v12105_v46 = vld [vmem:[#allocation29_spill] sm:$0xff]  ;;  %v12107_v31 = vld [vmem:[#allocation46_spill] sm:$0xff] }
 0x476   :  { %7796 = vpow2.f32 %v4299_v21  ;;  %5456 = vmatpush.bf16.msra.mxu1 %v6720_v40  ;;  %v4353_v13 = vadd.f32 %v10511_v32, %v4352_v35  ;;  %v4209_v20 = vmul.f32 1.442695, %v4137_v22  ;;  %v3412_v47 = vsub.f32 %v12105_v46, %v12088_v58  ;;  %v12109_v22 = vld [vmem:[#allocation119_spill] sm:$0xff] }
 0x477   :  { %7798 = vpow2.f32 %v4263_v50  ;;  %v4211_v21 = vmul.f32 1.442695, %v4138_v30  ;;  %v3489_v8 = vmul.f32 1.442695, %v3411_v25  ;;  %v4141_v61 = vsub.f32 %v12107_v31, %v10267_v34  ;;  %v12111_v30 = vld [vmem:[#allocation132_spill] sm:$0xff]  ;;  %v12128_v32 = vld [vmem:[#allocation87_spill] sm:$0xff] }
 0x478   :  { %v10523_v16 = vpop.eup %7788  ;;  %7800 = vpow2.f32 %v3471_v49  ;;  %4354 = vadd.xlane.f32.xlu2 %v4353_v13  ;;  %v4129_v40 = vsub.f32 %v12109_v22, %v10351_v1  ;;  %v4303_v58 = vmul.f32 1.442695, %v4184_v4  ;;  %v4139_v35 = vsub.f32 %v12111_v30, %v10387_v53  ;;  %v12113_v13 = vld [vmem:[#allocation120_spill] sm:$0xff] }
 0x479   :  { %12103 = vst [vmem:[#allocation25_spill] sm:$0xff] %v10523_v16  ;;  %v10525_v43 = vpop.eup %7790  ;;  %7802 = vpow2.f32 %v3485_v45  ;;  %v3491_v11 = vmul.f32 1.442695, %v3412_v47  ;;  %v4130_v46 = vsub.f32 %v12113_v13, %v10351_v1  ;;  %v12117_v47 = vld [vmem:[#allocation22_spill] sm:$0xff] }
 0x47a   :  { %12104 = vst [vmem:[#allocation137_spill] sm:$0xff] %v10525_v43  ;;  %v10529_v50 = vpop.eup %7792  ;;  %7804 = vpow2.f32 %v3487_v39  ;;  %v4361_v28 = vadd.f32 %v10525_v43, %v10523_v16  ;;  %v4140_v13 = vsub.f32 %v12117_v47, %v10387_v53  ;;  %v12125_v47 = vld [vmem:[#allocation73_spill] sm:$0xff] }
 0x47b   :  { %12106 = vst [vmem:[#allocation153_spill] sm:$0xff] %v10529_v50  ;;  %v10535_v49 = vpop.eup %7794  ;;  %7806 = vpow2.f32 %v4301_v2  ;;  %v4217_v2 = vmul.f32 1.442695, %v4141_v61 }
 0x47c   :  { %12108 = vst [vmem:[#allocation138_spill] sm:$0xff] %v10535_v49  ;;  %v10539_v45 = vpop.eup %7796  ;;  %7808 = vpow2.f32 %v4209_v20  ;;  %v4362_v25 = vadd.f32 %v10535_v49, %v4361_v28  ;;  %v4193_v20 = vmul.f32 1.442695, %v4129_v40  ;;  %v3638_v28 = vpop.xlane.xlu0 %3637 }
 0x47d   :  { %12110 = vst [vmem:[#allocation154_spill] sm:$0xff] %v10539_v45  ;;  %v10544_v39 = vpop.eup %7798  ;;  %7810 = vpow2.f32 %v4211_v21  ;;  %v4386_v22 = vadd.f32 %v10539_v45, %v10529_v50  ;;  %v4213_v21 = vmul.f32 1.442695, %v4139_v35  ;;  %v4195_v50 = vmul.f32 1.442695, %v4130_v46 }
 0x47e   :  { %12112 = vst [vmem:[#allocation164_spill] sm:$0xff] %v10544_v39  ;;  %v10548_v31 = vpop.eup %7800  ;;  %7812 = vpow2.f32 %v3489_v8  ;;  %v4363_v4 = vadd.f32 %v10544_v39, %v4362_v25  ;;  %v12119_v8 = vld [vmem:[#allocation134_spill] sm:$0xff]  ;;  %v12120_v25 = vld [vmem:[#allocation21_spill] sm:$0xff] }
 0x47f   :  { %12114 = vst [vmem:[#allocation166_spill] sm:$0xff] %v10548_v31  ;;  %v10553_v30 = vpop.eup %7802  ;;  %7814 = vpow2.f32 %v4303_v58  ;;  %v4142_v61 = vsub.f32 %v12119_v8, %v10267_v34  ;;  %v4131_v45 = vsub.f32 %v12120_v25, %v10351_v1  ;;  %v12122_v58 = vld [vmem:[#allocation115_spill] sm:$0xff]  ;;  %v12126_v8 = vld [vmem:[#allocation74_spill] sm:$0xff] }
 0x480   :  { %12115 = vst [vmem:[#allocation116_spill] sm:$0xff] %v10553_v30  ;;  %v10555_v49 = vpop.eup %7804  ;;  %7816 = vrcp.f32 %v3638_v28  ;;  %4364 = vadd.xlane.f32.xlu2 %v4363_v4  ;;  %v4132_v39 = vsub.f32 %v12122_v58, %v10351_v1  ;;  %v4215_v28 = vmul.f32 1.442695, %v4140_v13  ;;  %v2872_v25 = vadd.f32 %v12126_v8, %v12125_v47  ;;  %v3648_v16 = vpop.xlane.xlu2 %3647  ;;  %v12129_v1 = vld [vmem:[#allocation95_spill] sm:$0xff]  ;;  %v12131_v8 = vld [vmem:[#allocation96_spill] sm:$0xff] }
 0x481   :  { %12116 = vst [vmem:[#allocation135_spill] sm:$0xff] %v10555_v49  ;;  %v10559_v43 = vpop.eup %7806  ;;  %7818 = vpow2.f32 %v3491_v11  ;;  %v4219_v4 = vmul.f32 1.442695, %v4142_v61  ;;  %v2882_v58 = vadd.f32 %v12129_v1, %v12128_v32 }
 0x482   :  { %12118 = vst [vmem:[#allocation100_spill] sm:$0xff] %v10559_v43  ;;  %v10565_v40 = vpop.eup %7808  ;;  %7820 = vpow2.f32 %v4217_v2  ;;  %v4387_v53 = vadd.f32 %v10559_v43, %v4386_v22  ;;  %v4197_v2 = vmul.f32 1.442695, %v4131_v45  ;;  %v4199_v43 = vmul.f32 1.442695, %v4132_v39 }
 0x483   :  { %12121 = vst [vmem:[#allocation49_spill] sm:$0xff] %v10565_v40  ;;  %v10570_v35 = vpop.eup %7810  ;;  %7822 = vpow2.f32 %v4193_v20 }
 0x484   :  { %12123 = vst [vmem:[#allocation105_spill] sm:$0xff] %v10570_v35  ;;  %v10572_v11 = vpop.eup %7812  ;;  %7824 = vpow2.f32 %v4213_v21  ;;  %v4331_v13 = vadd.f32 %v10570_v35, %v10565_v40  ;;  %v4103_v63 = vpop.xlane.xlu0 %4102 }
 0x485   :  { %12124 = vst [vmem:[#allocation80_spill] sm:$0xff] %v10572_v11  ;;  %v10576_v46 = vpop.eup %7814  ;;  %7826 = vpow2.f32 %v4195_v50  ;;  %v12133_v50 = vld [vmem:[#allocation109_spill] sm:$0xff] }
 0x486   :  { %12127 = vst [vmem:[#allocation160_spill] sm:$0xff] %v10576_v46  ;;  %v7817_v22 = vpop.eup %7816  ;;  %7828 = vrcp.f32 %v3648_v16  ;;  %v4388_v20 = vadd.f32 %v10576_v46, %v4387_v53  ;;  %v12136_v16 = vld [vmem:[#allocation157_spill] sm:$0xff]  ;;  %v12138_v46 = vld [vmem:[#allocation156_spill] sm:$0xff] }
 0x487   :  { %v10583_v21 = vpop.eup %7818  ;;  %v3721_v47 = vmul.f32 %v7817_v22, %v12131_v8  ;;  %v3722_v61 = vmul.f32 %v7817_v22, %v12132_v51  ;;  %v3723_v45 = vmul.f32 %v7817_v22, %v12133_v50  ;;  %v3724_v6 = vmul.f32 %v7817_v22, %v12134_v5  ;;  %v12137_v53 = vld [vmem:[#allocation161_spill] sm:$0xff] }
 0x488   :  { %12130 = vst [vmem:[#allocation33_spill] sm:$0xff] %v10583_v21  ;;  %v10589_v1 = vpop.eup %7820  ;;  %7830 = vpow2.f32 %v4215_v28  ;;  %v4169_v39 = vsub.f32 %v12136_v16, %v4103_v63  ;;  %v4170_v32 = vsub.f32 %v12137_v53, %v4103_v63  ;;  %v4171_v35 = vsub.f32 %v12138_v46, %v4103_v63  ;;  %4389 = vadd.xlane.f32.xlu2 %v4388_v20  ;;  %v12140_v16 = vld [vmem:[#allocation84_spill] sm:$0xff] }
 0x489   :  { %12135 = vst [vmem:[#allocation163_spill] sm:$0xff] %v10589_v1  ;;  %v10594_v40 = vpop.eup %7822  ;;  %7832 = vpow2.f32 %v4219_v4  ;;  %v3767_v8 = vpack.c.bf16 %v3722_v61, %v3721_v47  ;;  %v3768_v31 = vpack.c.bf16 %v3724_v6, %v3723_v45  ;;  %v2873_v53 = vadd.f32 %v12140_v16, %v2872_v25  ;;  %v3658_v47 = vpop.xlane.xlu1 %3657 }
 0x48a   :  { %v10596_v51 = vpop.eup %7824  ;;  %7834 = vpow2.f32 %v4197_v2  ;;  %v4273_v5 = vmul.f32 1.442695, %v4169_v39  ;;  %v4275_v22 = vmul.f32 1.442695, %v4170_v32  ;;  %v4172_v4 = vsub.f32 %v9808_v18, %v4103_v63  ;;  %v12141_v2 = vld [vmem:[#allocation123_spill] sm:$0xff]  ;;  %v12142_v32 = vld [vmem:[#allocation102_spill] sm:$0xff] }
 0x48b   :  { %12139 = vst [vmem:[#allocation152_spill] sm:$0xff] %v10596_v51  ;;  %v10598_v50 = vpop.eup %7826  ;;  %7836 = vpow2.f32 %v4199_v43  ;;  %v4332_v28 = vadd.f32 %v10596_v51, %v4331_v13  ;;  %v4277_v6 = vmul.f32 1.442695, %v4171_v35  ;;  %v2883_v20 = vadd.f32 %v10282_v44, %v2882_v58  ;;  %v12143_v39 = vld [vmem:[#allocation170_spill] sm:$0xff]  ;;  %v4113_v13 = vpop.xlane.xlu2 %4112 }
 0x48c   :  { %3799 = vst [vmem:[#allocation2 + $0x290] sm:$0xff] %v3767_v8  ;;  %v7829_v46 = vpop.eup %7828  ;;  %7838 = vpow2.f32 %v4273_v5  ;;  %v4178_v18 = vsub.f32 %v9855_v59, %v4113_v13  ;;  %v4179_v63 = vsub.f32 %v9876_v29, %v4113_v13  ;;  %v3643_v5 = vpop.xlane.xlu0 %3642 }
 0x48d   :  { %3800 = vst [vmem:[#allocation2 + $0x298] sm:$0xff] %v3768_v31  ;;  %v3729_v61 = vmul.f32 %v7829_v46, %v12141_v2  ;;  %v3730_v45 = vmul.f32 %v7829_v46, %v12142_v32  ;;  %v3731_v43 = vmul.f32 %v7829_v46, %v12143_v39  ;;  %v3732_v8 = vmul.f32 %v7829_v46, %v10061_v14 }
 0x48e   :  { %v10608_v51 = vpop.eup %7830  ;;  %7840 = vpow2.f32 %v4275_v22  ;;  %v4177_v31 = vsub.f32 %v9853_v52, %v4113_v13  ;;  %v4321_v14 = vadd.f32 %v10598_v50, %v10594_v40  ;;  %v4279_v22 = vmul.f32 1.442695, %v4172_v4  ;;  %v12146_v4 = vld [vmem:[#allocation61_spill] sm:$0xff] }
 0x48f   :  { %v10613_v35 = vpop.eup %7832  ;;  %v3771_v25 = vpack.c.bf16 %v3730_v45, %v3729_v61  ;;  %v3772_v58 = vpack.c.bf16 %v3732_v8, %v3731_v43  ;;  %v4333_v2 = vadd.f32 %v10608_v51, %v4332_v28  ;;  %7842 = vpow2.f32 %v4277_v6  ;;  %v12145_v61 = vld [vmem:[#allocation85_spill] sm:$0xff] }
 0x490   :  { %12144 = vst [vmem:[#allocation125_spill] sm:$0xff] %v10613_v35  ;;  %v10618_v46 = vpop.eup %7834  ;;  %v4289_v32 = vmul.f32 1.442695, %v4177_v31  ;;  %v4291_v52 = vmul.f32 1.442695, %v4178_v18  ;;  %7844 = vrcp.f32 %v3658_v47  ;;  %v4180_v28 = vsub.f32 %v9884_v33, %v4113_v13 }
 0x491   :  { %v10620_v39 = vpop.eup %7836  ;;  %3803 = vst [vmem:[#allocation2 + $0x2b0] sm:$0xff] %v3771_v25  ;;  %v4293_v59 = vmul.f32 1.442695, %v4179_v63  ;;  %4334 = vadd.xlane.f32.xlu2 %v4333_v2  ;;  %v10626_v45 = vadd.f32 %v12145_v61, %v2873_v53  ;;  %v2675_v43 = vsub.f32 %v12146_v4, %v11980_v48  ;;  %v4128_v8 = vpop.xlane.xlu1 %4127  ;;  %v2884_v47 = vadd.f32 %v10288_v26, %v2883_v20  ;;  %v12154_v61 = vld [vmem:[#allocation103_spill] sm:$0xff] }
 0x492   :  { %v10622_v29 = vpop.eup %7838  ;;  %3804 = vst [vmem:[#allocation2 + $0x2b8] sm:$0xff] %v3772_v58  ;;  %7846 = vpow2.f32 %v4289_v32  ;;  %v4322_v31 = vadd.f32 %v10618_v46, %v4321_v14  ;;  %v4189_v18 = vsub.f32 %v9962_v36, %v4128_v8  ;;  %v4190_v33 = vsub.f32 %v10107_v54, %v4128_v8  ;;  %v12147_v54 = vld [vmem:[#allocation171_spill] sm:$0xff] }
 0x493   :  { %7848 = vpow2.f32 %v4291_v52  ;;  %v4191_v13 = vsub.f32 %v10120_v41, %v4128_v8  ;;  %v3653_v53 = vpop.xlane.xlu2 %3652  ;;  %v4295_v25 = vmul.f32 1.442695, %v4180_v28  ;;  %v4192_v58 = vsub.f32 %v10158_v56, %v4128_v8  ;;  %v12150_v8 = vld [vmem:[#allocation62_spill] sm:$0xff] }
 0x494   :  { %v10628_v6 = vpop.eup %7840  ;;  %7850 = vpow2.f32 %v4279_v22  ;;  %v4313_v22 = vmul.f32 1.442695, %v4189_v18  ;;  %v4315_v14 = vmul.f32 1.442695, %v4190_v33  ;;  %v3663_v36 = vpop.xlane.xlu0 %3662  ;;  %v10652_v18 = vmul.f32 1.442695, %v2675_v43 }
 0x495   :  { %7852 = vpow2.f32 %v4293_v59  ;;  %v10637_v63 = vpop.eup %7842  ;;  %v4371_v2 = vadd.f32 %v10628_v6, %v10622_v29  ;;  %v4317_v32 = vmul.f32 1.442695, %v4191_v13  ;;  %v12148_v59 = vld [vmem:[#allocation110_spill] sm:$0xff] }
 0x496   :  { %7854 = vrcp.f32 %v3643_v5  ;;  %v7845_v20 = vpop.eup %7844 }
 0x497   :  { %7856 = vrcp.f32 %v3653_v53  ;;  %v3737_v41 = vmul.f32 %v7845_v20, %v12147_v54  ;;  %v3738_v4 = vmul.f32 %v7845_v20, %v12148_v59  ;;  %v3739_v28 = vmul.f32 %v7845_v20, %v10090_v62 }
 0x498   :  { %v10642_v52 = vpop.eup %7846  ;;  %v3740_v5 = vmul.f32 %v7845_v20, %v10100_v57  ;;  %7858 = vpow2.f32 %v4313_v22  ;;  %v4372_v33 = vadd.f32 %v10637_v63, %v4371_v2  ;;  %v12152_v20 = vld [vmem:[#allocation47_spill] sm:$0xff]  ;;  %v4319_v22 = vmul.f32 1.442695, %v4192_v58 }
 0x499   :  { %v10648_v56 = vpop.eup %7848  ;;  %2885 = vadd.xlane.f32.xlu2 %v2884_v47  ;;  %v3775_v53 = vpack.c.bf16 %v3738_v4, %v3737_v41  ;;  %7860 = vpow2.f32 %v4315_v14  ;;  %v3403_v59 = vsub.f32 %v12152_v20, %v12076_v19  ;;  %v3599_v47 = vadd.f32 %v10422_v42, %v10406_v3  ;;  %v3623_v16 = vpop.xlane.xlu1 %3622  ;;  %v12155_v3 = vld [vmem:[#allocation42_spill] sm:$0xff] }
 0x49a   :  { %12149 = vst [vmem:[#allocation34_spill] sm:$0xff] %v10648_v56  ;;  %v10655_v13 = vpop.eup %7850  ;;  %v3776_v54 = vpack.c.bf16 %v3740_v5, %v3739_v28  ;;  %v4381_v62 = vadd.f32 %v10648_v56, %v10642_v52  ;;  %7862 = vpow2.f32 %v4295_v25  ;;  %v4323_v41 = vadd.f32 %v10620_v39, %v4322_v31  ;;  %v12153_v28 = vld [vmem:[#allocation81_spill] sm:$0xff] }
 0x49b   :  { %v10659_v57 = vpop.eup %7852  ;;  %v4373_v43 = vadd.f32 %v10655_v13, %v4372_v33  ;;  %3807 = vst [vmem:[#allocation2 + $0x2d0] sm:$0xff] %v3775_v53  ;;  %7864 = vpow2.f32 %v4317_v32  ;;  %v4123_v42 = vpop.xlane.xlu2 %4122  ;;  %v12156_v32 = vld [vmem:[#allocation65_spill] sm:$0xff] }
 0x49c   :  { %12151 = vst [vmem:[#allocation63_spill] sm:$0xff] %v10659_v57  ;;  %v7855_v2 = vpop.eup %7854  ;;  %v4382_v14 = vadd.f32 %v10659_v57, %v4381_v62  ;;  %7866 = vrcp.f32 %v3663_v36 }
 0x49d   :  { %v7857_v4 = vpop.eup %7856  ;;  %3808 = vst [vmem:[#allocation2 + $0x2d8] sm:$0xff] %v3776_v54  ;;  %v3725_v5 = vmul.f32 %v7855_v2, %v12153_v28  ;;  %v3726_v20 = vmul.f32 %v7855_v2, %v12154_v61  ;;  %v3727_v25 = vmul.f32 %v7855_v2, %v10054_v9  ;;  %v3728_v33 = vmul.f32 %v7855_v2, %v10066_v10  ;;  %v3628_v61 = vpop.xlane.xlu0 %3627 }
 0x49e   :  { %v3733_v53 = vmul.f32 %v7857_v4, %v12155_v3  ;;  %v3734_v58 = vmul.f32 %v7857_v4, %v12156_v32  ;;  %v3735_v62 = vmul.f32 %v7857_v4, %v10135_v38  ;;  %v3736_v31 = vmul.f32 %v7857_v4, %v10154_v24  ;;  %4374 = vadd.xlane.f32.xlu1 %v4373_v43  ;;  %v10676_v54 = vpop.eup %7858 }
 0x49f   :  { %v3769_v28 = vpack.c.bf16 %v3726_v20, %v3725_v5  ;;  %v3770_v57 = vpack.c.bf16 %v3728_v33, %v3727_v25  ;;  %v4185_v9 = vsub.f32 %v9923_v55, %v4123_v42  ;;  %v10679_v10 = vpop.eup %7860  ;;  %7868 = vrcp.f32 %v3623_v16  ;;  %v12158_v5 = vld [vmem:[#allocation136_spill] sm:$0xff] }
 0x4a0   :  { %v3773_v2 = vpack.c.bf16 %v3734_v58, %v3733_v53  ;;  %v3774_v56 = vpack.c.bf16 %v3736_v31, %v3735_v62  ;;  %v4186_v3 = vsub.f32 %v10042_v15, %v4123_v42  ;;  %v10682_v32 = vpop.eup %7862  ;;  %v4187_v24 = vsub.f32 %v10058_v17, %v4123_v42  ;;  %v12159_v58 = vld [vmem:[#allocation90_spill] sm:$0xff] }
 0x4a1   :  { %3801 = vst [vmem:[#allocation2 + $0x2a0] sm:$0xff] %v3769_v28  ;;  %v4188_v38 = vsub.f32 %v10095_v27, %v4123_v42  ;;  %v4305_v43 = vmul.f32 1.442695, %v4185_v9  ;;  %7870 = vrcp.f32 %v3628_v61  ;;  %4324 = vadd.xlane.f32.xlu2 %v4323_v41  ;;  %v10686_v36 = vpop.eup %7864  ;;  %v4383_v4 = vadd.f32 %v10682_v32, %v4382_v14  ;;  %v12157_v42 = vld [vmem:[#allocation48_spill] sm:$0xff] }
 0x4a2   :  { %3802 = vst [vmem:[#allocation2 + $0x2a8] sm:$0xff] %v3770_v57  ;;  %7872 = vpow2.f32 %v4319_v22  ;;  %v4307_v55 = vmul.f32 1.442695, %v4186_v3  ;;  %v4396_v15 = vadd.f32 %v10679_v10, %v10676_v54  ;;  %v4309_v16 = vmul.f32 1.442695, %v4187_v24  ;;  %v7867_v14 = vpop.eup %7866  ;;  %v12161_v9 = vld [vmem:[#allocation168_spill] sm:$0xff] }
 0x4a3   :  { %3805 = vst [vmem:[#allocation2 + $0x2c0] sm:$0xff] %v3773_v2  ;;  %7874 = vpow2.f32 %v4305_v43  ;;  %v2877_v17 = vadd.f32 %v10353_v7, %v10321_v23  ;;  %v10694_v27 = vadd.f32 %v10429_v37, %v3599_v47  ;;  %v3404_v41 = vsub.f32 %v12157_v42, %v12076_v19  ;;  %4384 = vadd.xlane.f32.xlu0 %v4383_v4  ;;  %v2906_v25 = vpop.xlane.xlu2 %2905  ;;  %v12160_v19 = vld [vmem:[#allocation91_spill] sm:$0xff]  ;;  %v12164_v43 = vld [vmem:[#allocation118_spill] sm:$0xff]  ;;  %v3613_v4 = vpop.xlane.xlu1 %3612 }
 0x4a4   :  { %v3473_v57 = vmul.f32 1.442695, %v3403_v59  ;;  %3806 = vst [vmem:[#allocation2 + $0x2c8] sm:$0xff] %v3774_v56  ;;  %7876 = vpow2.f32 %v4307_v55  ;;  %v4311_v22 = vmul.f32 1.442695, %v4188_v38  ;;  %v4143_v20 = vsub.f32 %v12158_v5, %v10267_v34  ;;  %v12162_v2 = vld [vmem:[#allocation99_spill] sm:$0xff] }
 0x4a5   :  { %7878 = vpow2.f32 %v4309_v16  ;;  %v4397_v33 = vadd.f32 %v10686_v36, %v4396_v15  ;;  %v3604_v47 = vadd.f32 %v10555_v49, %v10553_v30  ;;  %v7869_v53 = vpop.eup %7868  ;;  %v3741_v62 = vmul.f32 %v7867_v14, %v12159_v58  ;;  %v12163_v24 = vld [vmem:[#allocation111_spill] sm:$0xff]  ;;  %v2901_v15 = vpop.xlane.xlu0 %2900  ;;  %v12165_v58 = vld [vmem:[#allocation89_spill] sm:$0xff] }
 0x4a6   :  { %v3742_v59 = vmul.f32 %v7867_v14, %v12160_v19  ;;  %v3743_v56 = vmul.f32 %v7867_v14, %v10142_v0  ;;  %v3744_v31 = vmul.f32 %v7867_v14, %v10162_v12  ;;  %v3709_v61 = vmul.f32 %v7869_v53, %v12161_v9  ;;  %v12166_v9 = vld [vmem:[#allocation86_spill] sm:$0xff]  ;;  %v12189_v30 = vld [vmem:[#allocation143_spill] sm:$0xff] }
 0x4a7   :  { %v7871_v28 = vpop.eup %7870  ;;  %v3710_v3 = vmul.f32 %v7869_v53, %v12162_v2  ;;  %v3711_v38 = vmul.f32 %v7869_v53, %v12163_v24  ;;  %v3712_v55 = vmul.f32 %v7869_v53, %v12164_v43  ;;  %7880 = vpow2.f32 %v4311_v22  ;;  %v12167_v2 = vld [vmem:[#allocation169_spill] sm:$0xff]  ;;  %v12168_v24 = vld [vmem:[#allocation39_spill] sm:$0xff] }
 0x4a8   :  { %v10711_v16 = vpop.eup %7872  ;;  %v3777_v42 = vpack.c.bf16 %v3742_v59, %v3741_v62  ;;  %v3778_v5 = vpack.c.bf16 %v3744_v31, %v3743_v56  ;;  %v3713_v0 = vmul.f32 %v7871_v28, %v12165_v58  ;;  %v3714_v7 = vmul.f32 %v7871_v28, %v12166_v9  ;;  %v12176_v58 = vld [vmem:[#allocation43_spill] sm:$0xff] }
 0x4a9   :  { %v10714_v19 = vpop.eup %7874  ;;  %v3761_v12 = vpack.c.bf16 %v3710_v3, %v3709_v61  ;;  %v3762_v14 = vpack.c.bf16 %v3712_v55, %v3711_v38  ;;  %v3715_v23 = vmul.f32 %v7871_v28, %v12167_v2  ;;  %2875 = vadd.xlane.f32.xlu2 %v10626_v45  ;;  %v3716_v43 = vmul.f32 %v7871_v28, %v12168_v24  ;;  %v12169_v45 = vld [vmem:[#allocation117_spill] sm:$0xff]  ;;  %v12170_v28 = vld [vmem:[#allocation83_spill] sm:$0xff] }
 0x4aa   :  { %v10719_v53 = vpop.eup %7876  ;;  %3809 = vst [vmem:[#allocation2 + $0x2e0] sm:$0xff] %v3777_v42  ;;  %7882 = vrcp.f32 %v3613_v4  ;;  %v4398_v22 = vadd.f32 %v10711_v16, %v4397_v33  ;;  %v3605_v62 = vadd.f32 %v10572_v11, %v3604_v47  ;;  %v4221_v56 = vmul.f32 1.442695, %v4143_v20  ;;  %v12171_v47 = vld [vmem:[#allocation55_spill] sm:$0xff]  ;;  %v12173_v20 = vld [vmem:[#allocation133_spill] sm:$0xff]  ;;  %v12183_v4 = vld [vmem:[#allocation150_spill] sm:$0xff] }
 0x4ab   :  { %v10724_v59 = vpop.eup %7878  ;;  %3810 = vst [vmem:[#allocation2 + $0x2e8] sm:$0xff] %v3778_v5  ;;  %v3763_v31 = vpack.c.bf16 %v3714_v7, %v3713_v0  ;;  %7884 = vrcp.f32 %v2906_v25  ;;  %v4391_v61 = vadd.f32 %v10719_v53, %v10714_v19  ;;  %v4144_v3 = vsub.f32 %v12169_v45, %v10267_v34  ;;  %v12172_v55 = vld [vmem:[#allocation23_spill] sm:$0xff]  ;;  %v2896_v25 = vpop.xlane.xlu2 %2895  ;;  %v12177_v0 = vld [vmem:[#allocation126_spill] sm:$0xff]  ;;  %v6483_v2 = vld [vmem:[#allocation12 + $0x8] sm:$0xf] }
 0x4ac   :  { %3793 = vst [vmem:[#allocation2 + $0x260] sm:$0xff] %v3761_v12  ;;  %v3764_v38 = vpack.c.bf16 %v3716_v43, %v3715_v23  ;;  %7886 = vrcp.f32 %v2901_v15  ;;  %4399 = vadd.xlane.f32.xlu0 %v4398_v22  ;;  %v10731_v33 = vadd.f32 %v12170_v28, %v2877_v17  ;;  %v10740_v34 = vmul.f32 1.442695, %v3404_v41  ;;  %v12175_v17 = vld [vmem:[#allocation187_spill] sm:$0xff] }
 0x4ad   :  { %7888 = vpow2.f32 %v3473_v57  ;;  %3794 = vst [vmem:[#allocation2 + $0x268] sm:$0xff] %v3762_v14  ;;  %v4392_v42 = vadd.f32 %v10724_v59, %v4391_v61  ;;  %v10738_v5 = vpop.eup %7880  ;;  %v3606_v23 = vadd.f32 %v10583_v21, %v3605_v62  ;;  %v10745_v15 = vadd.f32 %v12175_v17, %v10694_v27  ;;  %v12178_v57 = vld [vmem:[#allocation131_spill] sm:$0xff]  ;;  %v3618_v9 = vpop.xlane.xlu0 %3617  ;;  %v12179_v61 = vld [vmem:[#allocation172_spill] sm:$0xff] }
 0x4ae   :  { %12174 = vst [vmem:[#allocation64_spill] sm:$0xff] %v10738_v5  ;;  %7890 = vrcp.f32 %v2896_v25  ;;  %v7192_v24 = vld [vmem:[#allocation12 + $0x14] sm:$0xf0]  ;;  %v4223_v22 = vmul.f32 1.442695, %v4144_v3  ;;  %v4336_v27 = vadd.f32 %v10613_v35, %v10589_v1  ;;  %v12180_v25 = vld [vmem:[#allocation108_spill] sm:$0xff] }
 0x4af   :  { %3795 = vst [vmem:[#allocation2 + $0x270] sm:$0xff] %v3763_v31  ;;  %7892 = vpow2.f32 %v4221_v56  ;;  %v4393_v41 = vadd.f32 %v10738_v5, %v4392_v42  ;;  %v6484_v62 = vor.u32 %v7192_v24, %v6483_v2  ;;  %v12181_v14 = vld [vmem:[#allocation144_spill] sm:$0xff]  ;;  %v12184_v17 = vld [vmem:[#allocation167_spill] sm:$0xff]  ;;  %v12186_v24 = vld [vmem:[#allocation146_spill] sm:$0xff] }
 0x4b0   :  { %3796 = vst [vmem:[#allocation2 + $0x278] sm:$0xff] %v3764_v38  ;;  %v7883_v43 = vpop.eup %7882  ;;  %7894 = vrcp.f32 %v3618_v9  ;;  %v12182_v38 = vld [vmem:[#allocation41_spill] sm:$0xff]  ;;  %v12185_v9 = vld [vmem:[#allocation88_spill] sm:$0xff]  ;;  %v12190_v5 = vld [vmem:[#allocation147_spill] sm:$0xff] }
 0x4b1   :  { %v7885_v31 = vpop.eup %7884  ;;  %v3701_v45 = vmul.f32 %v7883_v43, %v12179_v61  ;;  %v3702_v7 = vmul.f32 %v7883_v43, %v12180_v25  ;;  %v3703_v56 = vmul.f32 %v7883_v43, %v12181_v14  ;;  %v3704_v12 = vmul.f32 %v7883_v43, %v12182_v38  ;;  %4394 = vadd.xlane.f32.xlu1 %v4393_v41  ;;  %v12187_v25 = vld [vmem:[#allocation40_spill] sm:$0xff]  ;;  %v12188_v14 = vld [vmem:[#allocation183_spill] sm:$0xff]  ;;  %v7190_v43 = vld [vmem:[#allocation12 + $0xc] sm:$0xf] }
 0x4b2   :  { %v7887_v42 = vpop.eup %7886  ;;  %v2989_v28 = vmul.f32 %v7885_v31, %v12183_v4  ;;  %v2990_v3 = vmul.f32 %v7885_v31, %v12184_v17  ;;  %v2991_v2 = vmul.f32 %v7885_v31, %v12185_v9  ;;  %v2992_v37 = vmul.f32 %v7885_v31, %v12186_v24  ;;  %4650 = vmatpush.bf16.msrb.mxu2 %v6484_v62  ;;  %v6485_v41 = vld [vmem:[#allocation12 + $0x18] sm:$0xf0]  ;;  %v12193_v24 = vld [vmem:[#allocation149_spill] sm:$0xff] }
 0x4b3   :  { %v10762_v35 = vpop.eup %7888  ;;  %v3757_v61 = vpack.c.bf16 %v3702_v7, %v3701_v45  ;;  %v3758_v1 = vpack.c.bf16 %v3704_v12, %v3703_v56  ;;  %v2985_v21 = vmul.f32 %v7887_v42, %v12187_v25  ;;  %v2986_v11 = vmul.f32 %v7887_v42, %v12188_v14  ;;  %v12191_v7 = vld [vmem:[#allocation94_spill] sm:$0xff]  ;;  %v12192_v45 = vld [vmem:[#allocation97_spill] sm:$0xff] }
 0x4b4   :  { %v7891_v38 = vpop.eup %7890  ;;  %v3035_v49 = vpack.c.bf16 %v2990_v3, %v2989_v28  ;;  %v3036_v4 = vpack.c.bf16 %v2992_v37, %v2991_v2  ;;  %v2987_v17 = vmul.f32 %v7887_v42, %v12189_v30  ;;  %v2988_v9 = vmul.f32 %v7887_v42, %v12190_v5  ;;  %3607 = vadd.xlane.f32.xlu0 %v3606_v23  ;;  %v12194_v37 = vld [vmem:[#allocation31_spill] sm:$0xff]  ;;  %v12196_v23 = vld [vmem:[#allocation30_spill] sm:$0xff] }
 0x4b5   :  { %v10768_v31 = vpop.eup %7892  ;;  %3789 = vst [vmem:[#allocation2 + $0x240] sm:$0xff] %v3757_v61  ;;  %v3033_v62 = vpack.c.bf16 %v2986_v11, %v2985_v21  ;;  %v2981_v12 = vmul.f32 %v7891_v38, %v12191_v7  ;;  %v2982_v56 = vmul.f32 %v7891_v38, %v12192_v45  ;;  %v2983_v25 = vmul.f32 %v7891_v38, %v12193_v24  ;;  %v12195_v2 = vld [vmem:[#allocation71_spill] sm:$0xff]  ;;  %v12198_v61 = vld [vmem:[#allocation98_spill] sm:$0xff]  ;;  %v2891_v45 = vpop.xlane.xlu0 %2890 }
 0x4b6   :  { %v7895_v14 = vpop.eup %7894  ;;  %7896 = vpow2.f32 %v4223_v22  ;;  %3790 = vst [vmem:[#allocation2 + $0x248] sm:$0xff] %v3758_v1  ;;  %v3034_v28 = vpack.c.bf16 %v2988_v9, %v2987_v17  ;;  %v2984_v3 = vmul.f32 %v7891_v38, %v12194_v37  ;;  %v6488_v30 = vor.u32 %v7190_v43, %v6485_v41  ;;  %6507 = vmatmul.msk.bf16.vlgmr.msrb.gmra.mxu2 %vm4600_vm3, %v12195_v2  ;;  %v12197_v21 = vld [vmem:[#allocation155_spill] sm:$0xff]  ;;  %v12200_v38 = vld [vmem:[#allocation124_spill] sm:$0xff] }
 0x4b7   :  { %3067 = vst [vmem:[#allocation2 + $0x190] sm:$0xff] %v3035_v49  ;;  %v3031_v5 = vpack.c.bf16 %v2982_v56, %v2981_v12  ;;  %v3705_v11 = vmul.f32 %v7895_v14, %v12196_v23  ;;  %v3706_v42 = vmul.f32 %v7895_v14, %v12197_v21  ;;  %v3707_v7 = vmul.f32 %v7895_v14, %v12198_v61  ;;  %v12202_v12 = vld [vmem:[#allocation59_spill] sm:$0xff]  ;;  %v12213_v61 = vld [vmem:[#allocation114_spill] sm:$0xff] }
 0x4b8   :  { %v12199_v22 = vsub.f32 %v12172_v55, %v12171_v47  ;;  %3068 = vst [vmem:[#allocation2 + $0x198] sm:$0xff] %v3036_v4  ;;  %v3032_v17 = vpack.c.bf16 %v2984_v3, %v2983_v25  ;;  %v3708_v43 = vmul.f32 %v7895_v14, %v12200_v38  ;;  %7898 = vrcp.f32 %v2891_v45  ;;  %4663 = vmatpush.bf16.msrb.mxu3 %v6488_v30  ;;  %v12204_v25 = vld [vmem:[#allocation166_spill] sm:$0xff]  ;;  %v12208_v37 = vld [vmem:[#allocation35_spill] sm:$0xff]  ;;  %v12210_v30 = vld [vmem:[#allocation101_spill] sm:$0xff] }
 0x4b9   :  { %7900 = vpow2.f32 %v10652_v18  ;;  %v12201_v49 = vsub.f32 %v12177_v0, %v12176_v58  ;;  %3065 = vst [vmem:[#allocation2 + $0x180] sm:$0xff] %v3033_v62  ;;  %v3759_v9 = vpack.c.bf16 %v3706_v42, %v3705_v11  ;;  %v2879_v56 = vadd.f32 %v12202_v12, %v10731_v33  ;;  %3602 = vadd.xlane.f32.xlu1 %v10745_v15  ;;  %v12205_v15 = vld [vmem:[#allocation158_spill] sm:$0xff]  ;;  %v12216_v38 = vld [vmem:[#allocation37_spill] sm:$0xff] }
 0x4ba   :  { %v3465_v1 = vmul.f32 1.442695, %v12199_v22  ;;  %v12203_v55 = vsub.f32 %v12178_v57, %v12176_v58  ;;  %3066 = vst [vmem:[#allocation2 + $0x188] sm:$0xff] %v3034_v28  ;;  %v3760_v24 = vpack.c.bf16 %v3708_v43, %v3707_v7  ;;  %v3594_v18 = vadd.f32 %v12204_v25, %v10518_v60  ;;  %v12206_v0 = vld [vmem:[#allocation50_spill] sm:$0xff]  ;;  %v12214_v7 = vld [vmem:[#allocation173_spill] sm:$0xff] }
 0x4bb   :  { %v4201_v41 = vmul.f32 1.442695, %v12201_v49  ;;  %v4337_v14 = vadd.f32 %v10768_v31, %v4336_v27  ;;  %7902 = vpow2.f32 %v10740_v34  ;;  %3063 = vst [vmem:[#allocation2 + $0x170] sm:$0xff] %v3031_v5  ;;  %6508 = vmatmul.msk.bf16.vlgmr.msrb.gmra.mxu3 %vm4600_vm3, %v12195_v2  ;;  %v2666_v62 = vsub.f32 %v12206_v0, %v12205_v15  ;;  %v12209_v34 = vld [vmem:[#allocation51_spill] sm:$0xff]  ;;  %v12211_v2 = vld [vmem:[#allocation56_spill] sm:$0xff] }
 0x4bc   :  { %v4203_v4 = vmul.f32 1.442695, %v12203_v55  ;;  %v10799_v33 = vpop.eup %7896  ;;  %7904 = vpow2.f32 %v3465_v1  ;;  %v12207_v57 = vsub.f32 %v12173_v20, %v12171_v47  ;;  %v4135_v3 = vsub.f32 %v12208_v37, %v12176_v58  ;;  %3064 = vst [vmem:[#allocation2 + $0x178] sm:$0xff] %v3032_v17  ;;  %2880 = vadd.xlane.f32.xlu0 %v2879_v56  ;;  %v12215_v1 = vld [vmem:[#allocation92_spill] sm:$0xff]  ;;  %v12218_v49 = vld [vmem:[#allocation79_spill] sm:$0xff]  ;;  %v12220_v37 = vld [vmem:[#allocation38_spill] sm:$0xff] }
 0x4bd   :  { %v2667_v27 = vsub.f32 %v12209_v34, %v12205_v15  ;;  %v2671_v5 = vsub.f32 %v12211_v2, %v12210_v30  ;;  %v12212_v23 = vsub.f32 %v12150_v8, %v11980_v48  ;;  %7906 = vpow2.f32 %v4201_v41  ;;  %3791 = vst [vmem:[#allocation2 + $0x250] sm:$0xff] %v3759_v9  ;;  %v12217_v8 = vld [vmem:[#allocation78_spill] sm:$0xff]  ;;  %v12219_v56 = vld [vmem:[#allocation127_spill] sm:$0xff] }
 0x4be   :  { %v3467_v28 = vmul.f32 1.442695, %v12207_v57  ;;  %v7899_v21 = vpop.eup %7898  ;;  %7908 = vpow2.f32 %v4203_v4  ;;  %3792 = vst [vmem:[#allocation2 + $0x258] sm:$0xff] %v3760_v24  ;;  %v7247_v47 = vld [vmem:[#allocation2 + $0x18c] sm:$0xf0]  ;;  %v3595_v20 = vadd.f32 %v10762_v35, %v3594_v18  ;;  %v4338_v42 = vadd.f32 %v10799_v33, %v4337_v14  ;;  %v12221_v34 = vld [vmem:[#allocation26_spill] sm:$0xff] }
 0x4bf   :  { %v2751_v11 = vmul.f32 1.442695, %v12212_v23  ;;  %v3589_v45 = vadd.f32 %v12214_v7, %v12213_v61  ;;  %v10819_v22 = vpop.eup %7900  ;;  %v2977_v17 = vmul.f32 %v7899_v21, %v12215_v1  ;;  %v2978_v48 = vmul.f32 %v7899_v21, %v12216_v38 }
 0x4c0   :  { %v2979_v43 = vmul.f32 %v7899_v21, %v12217_v8  ;;  %v2980_v41 = vmul.f32 %v7899_v21, %v12218_v49  ;;  %v2731_v9 = vmul.f32 1.442695, %v2666_v62  ;;  %7910 = vpow2.f32 %v3467_v28  ;;  %v6703_v24 = vld [vmem:[#allocation2 + $0x180] sm:$0xf]  ;;  %v12223_v8 = vld [vmem:[#allocation52_spill] sm:$0xff] }
 0x4c1   :  { %v4136_v55 = vsub.f32 %v12219_v56, %v12176_v58  ;;  %v4205_v4 = vmul.f32 1.442695, %v4135_v3  ;;  %v10827_v18 = vpop.eup %7902  ;;  %v3029_v14 = vpack.c.bf16 %v2978_v48, %v2977_v17  ;;  %v6704_v57 = vor.u32 %v7247_v47, %v6703_v24  ;;  %4339 = vadd.xlane.f32.xlu1 %v4338_v42  ;;  %v4350_v21 = vpop.xlane.xlu1 %4349  ;;  %v12222_v58 = vld [vmem:[#allocation57_spill] sm:$0xff] }
 0x4c2   :  { %v3030_v0 = vpack.c.bf16 %v2980_v41, %v2979_v43  ;;  %v2867_v2 = vadd.f32 %v12221_v34, %v12220_v37  ;;  %v10831_v23 = vpop.eup %7904  ;;  %7912 = vpow2.f32 %v2751_v11  ;;  %v3596_v62 = vadd.f32 %v10827_v18, %v3595_v20  ;;  %v12224_v41 = vld [vmem:[#allocation76_spill] sm:$0xff] }
 0x4c3   :  { %v10834_v28 = vpop.eup %7906  ;;  %v2672_v3 = vsub.f32 %v12222_v58, %v12210_v30  ;;  %v2741_v1 = vmul.f32 1.442695, %v2671_v5  ;;  %3061 = vst [vmem:[#allocation2 + $0x160] sm:$0xff] %v3029_v14  ;;  %7914 = vrcp.f32 %v4350_v21  ;;  %5457 = vmatpush.bf16.msra.mxu1 %v6704_v57  ;;  %v3590_v47 = vadd.f32 %v10831_v23, %v3589_v45  ;;  %v12227_v14 = vld [vmem:[#allocation141_spill] sm:$0xff]  ;;  %v12228_v57 = vld [vmem:[#allocation82_spill] sm:$0xff] }
 0x4c4   :  { %v10839_v42 = vpop.eup %7908  ;;  %7916 = vpow2.f32 %v4205_v4  ;;  %v4207_v17 = vmul.f32 1.442695, %v4136_v55  ;;  %3062 = vst [vmem:[#allocation2 + $0x168] sm:$0xff] %v3030_v0  ;;  %3597 = vadd.xlane.f32.xlu0 %v3596_v62  ;;  %v2733_v11 = vmul.f32 1.442695, %v2667_v27  ;;  %v2868_v20 = vadd.f32 %v10819_v22, %v2867_v2  ;;  %v12226_v4 = vld [vmem:[#allocation175_spill] sm:$0xff] }
 0x4c5   :  { %7918 = vpow2.f32 %v2731_v9  ;;  %v2743_v30 = vmul.f32 1.442695, %v2672_v3  ;;  %v4326_v48 = vadd.f32 %v10839_v42, %v10834_v28  ;;  %v2668_v43 = vsub.f32 %v12223_v8, %v12205_v15  ;;  %v12225_v9 = vld [vmem:[#allocation77_spill] sm:$0xff]  ;;  %v7243_v58 = vld [vmem:[#allocation2 + $0x16c] sm:$0xf0] }
 0x4c6   :  { %v10842_v38 = vpop.eup %7910  ;;  %7920 = vpow2.f32 %v2741_v1  ;;  %v2862_v56 = vadd.f32 %v12225_v9, %v12224_v41  ;;  %v12229_v21 = vld [vmem:[#allocation53_spill] sm:$0xff] }
 0x4c7   :  { %v3591_v5 = vadd.f32 %v10842_v38, %v3590_v47  ;;  %7922 = vpow2.f32 %v4207_v17 }
 0x4c8   :  { %v10847_v45 = vpop.eup %7912  ;;  %7924 = vpow2.f32 %v2733_v11  ;;  %v2735_v11 = vmul.f32 1.442695, %v2668_v43 }
 0x4c9   :  { %v7915_v49 = vpop.eup %7914  ;;  %v2869_v27 = vadd.f32 %v10847_v45, %v2868_v20  ;;  %3592 = vadd.xlane.f32.xlu1 %v3591_v5  ;;  %7926 = vpow2.f32 %v2743_v30  ;;  %v4360_v1 = vpop.xlane.xlu1 %4359 }
 0x4ca   :  { %v10854_v55 = vpop.eup %7916  ;;  %v4437_v24 = vmul.f32 %v7915_v49, %v12226_v4  ;;  %v4438_v0 = vmul.f32 %v7915_v49, %v12227_v14  ;;  %v4439_v2 = vmul.f32 %v7915_v49, %v12228_v57  ;;  %v4440_v62 = vmul.f32 %v7915_v49, %v12229_v21  ;;  %v6687_v15 = vld [vmem:[#allocation2 + $0x160] sm:$0xf]  ;;  %v12232_v14 = vld [vmem:[#allocation159_spill] sm:$0xff] }
 0x4cb   :  { %v10860_v3 = vpop.eup %7918  ;;  %v6688_v47 = vor.u32 %v7243_v58, %v6687_v15  ;;  %v4327_v17 = vadd.f32 %v10854_v55, %v4326_v48  ;;  %7928 = vrcp.f32 %v4360_v1  ;;  %v12237_v58 = vld [vmem:[#allocation75_spill] sm:$0xff] }
 0x4cc   :  { %12230 = vst [vmem:[#allocation177_spill] sm:$0xff] %v10860_v3  ;;  %v4491_v20 = vpack.c.bf16 %v4438_v0, %v4437_v24  ;;  %v4492_v5 = vpack.c.bf16 %v4440_v62, %v4439_v2  ;;  %2870 = vadd.xlane.f32.xlu0 %v2869_v27  ;;  %v10863_v8 = vpop.eup %7920  ;;  %v2857_v30 = vadd.f32 %v10860_v3, %v12232_v14  ;;  %7930 = vpow2.f32 %v2735_v11  ;;  %v12236_v62 = vld [vmem:[#allocation58_spill] sm:$0xff]  ;;  %v12242_v3 = vld [vmem:[#allocation68_spill] sm:$0xff] }
 0x4cd   :  { %12231 = vst [vmem:[#allocation178_spill] sm:$0xff] %v10863_v8  ;;  %5458 = vmatpush.bf16.msra.mxu1 %v6688_v47  ;;  %v10865_v4 = vpop.eup %7922  ;;  %v2863_v49 = vadd.f32 %v10863_v8, %v2862_v56  ;;  %v12235_v56 = vld [vmem:[#allocation106_spill] sm:$0xff]  ;;  %v12238_v47 = vld [vmem:[#allocation179_spill] sm:$0xff] }
 0x4ce   :  { %4523 = vst [vmem:[#allocation2 + $0x350] sm:$0xff] %v4491_v20  ;;  %v10870_v57 = vpop.eup %7924  ;;  %v4328_v48 = vadd.f32 %v10865_v4, %v4327_v17  ;;  %v12243_v14 = vld [vmem:[#allocation174_spill] sm:$0xff] }
 0x4cf   :  { %12233 = vst [vmem:[#allocation182_spill] sm:$0xff] %v10870_v57  ;;  %v3668_v43 = vpop.xlane.xlu2 %3667  ;;  %v10873_v24 = vpop.eup %7926  ;;  %v2858_v2 = vadd.f32 %v10870_v57, %v2857_v30  ;;  %v12241_v57 = vld [vmem:[#allocation181_spill] sm:$0xff] }
 0x4d0   :  { %4524 = vst [vmem:[#allocation2 + $0x358] sm:$0xff] %v4492_v5  ;;  %7932 = vrcp.f32 %v3668_v43  ;;  %v2864_v0 = vadd.f32 %v10873_v24, %v2863_v49  ;;  %v12240_v49 = vld [vmem:[#allocation180_spill] sm:$0xff] }
 0x4d1   :  { %12234 = vst [vmem:[#allocation107_spill] sm:$0xff] %v10873_v24  ;;  %4329 = vadd.xlane.f32.xlu1 %v4328_v48  ;;  %v7929_v27 = vpop.eup %7928 }
 0x4d2   :  { %v4445_v21 = vmul.f32 %v7929_v27, %v12235_v56  ;;  %v4446_v15 = vmul.f32 %v7929_v27, %v12236_v62  ;;  %v4447_v1 = vmul.f32 %v7929_v27, %v12237_v58  ;;  %v4448_v20 = vmul.f32 %v7929_v27, %v12238_v47  ;;  %v10881_v5 = vpop.eup %7930 }
 0x4d3   :  { %12239 = vst [vmem:[#allocation44_spill] sm:$0xff] %v10881_v5  ;;  %v2859_v48 = vadd.f32 %v10881_v5, %v2858_v2  ;;  %v12245_v2 = vld [vmem:[#allocation69_spill] sm:$0xff]  ;;  %v6879_v5 = vld [vmem:[#allocation2 + $0x2e0] sm:$0xf] }
 0x4d4   :  { %2865 = vadd.xlane.f32.xlu0 %v2864_v0  ;;  %v4495_v17 = vpack.c.bf16 %v4446_v15, %v4445_v21  ;;  %v4496_v11 = vpack.c.bf16 %v4448_v20, %v4447_v1  ;;  %v12244_v1 = vld [vmem:[#allocation176_spill] sm:$0xff] }
 0x4d6   :  { %v7933_v43 = vpop.eup %7932  ;;  %4527 = vst [vmem:[#allocation2 + $0x370] sm:$0xff] %v4495_v17  ;;  %v12246_v17 = vld [vmem:[#allocation186_spill] sm:$0xff] }
 0x4d7   :  { %4528 = vst [vmem:[#allocation2 + $0x378] sm:$0xff] %v4496_v11  ;;  %v3745_v30 = vmul.f32 %v7933_v43, %v12240_v49  ;;  %v3746_v56 = vmul.f32 %v7933_v43, %v12241_v57  ;;  %v3747_v62 = vmul.f32 %v7933_v43, %v12242_v3  ;;  %v3748_v58 = vmul.f32 %v7933_v43, %v12243_v14  ;;  %v12247_v49 = vld [vmem:[#allocation188_spill] sm:$0xff] }
 0x4d8   :  { %v4370_v21 = vpop.xlane.xlu1 %4369 }
 0x4d9   :  { %2860 = vadd.xlane.f32.xlu1 %v2859_v48  ;;  %v3779_v27 = vpack.c.bf16 %v3746_v56, %v3745_v30  ;;  %v3780_v0 = vpack.c.bf16 %v3748_v58, %v3747_v62  ;;  %7934 = vrcp.f32 %v4370_v21  ;;  %v6863_v30 = vld [vmem:[#allocation2 + $0x2c0] sm:$0xf]  ;;  %v7287_v56 = vld [vmem:[#allocation2 + $0x2cc] sm:$0xf0] }
 0x4da   :  { %v6864_v62 = vor.u32 %v7287_v56, %v6863_v30  ;;  %v6847_v58 = vld [vmem:[#allocation2 + $0x2a0] sm:$0xf] }
 0x4db   :  { %3811 = vst [vmem:[#allocation2 + $0x2f0] sm:$0xff] %v3779_v27  ;;  %v6815_v56 = vld [vmem:[#allocation2 + $0x260] sm:$0xf] }
 0x4dc   :  { %3812 = vst [vmem:[#allocation2 + $0x2f8] sm:$0xff] %v3780_v0  ;;  %v7283_v0 = vld [vmem:[#allocation2 + $0x2ac] sm:$0xf0] }
 0x4df   :  { %v7935_v15 = vpop.eup %7934 }
 0x4e0   :  { %v4453_v47 = vmul.f32 %v7935_v15, %v12244_v1  ;;  %v4454_v20 = vmul.f32 %v7935_v15, %v12245_v2  ;;  %v4455_v11 = vmul.f32 %v7935_v15, %v12246_v17  ;;  %v4456_v57 = vmul.f32 %v7935_v15, %v12247_v49  ;;  %v12248_v1 = vld [vmem:[#allocation184_spill] sm:$0xff] }
 0x4e1   :  { %v6848_v15 = vor.u32 %v7283_v0, %v6847_v58  ;;  %v12252_v58 = vld [vmem:[#allocation148_spill] sm:$0xff] }
 0x4e2   :  { %v7291_v3 = vld [vmem:[#allocation2 + $0x2ec] sm:$0xf0]  ;;  %v4499_v24 = vpack.c.bf16 %v4454_v20, %v4453_v47  ;;  %v4500_v14 = vpack.c.bf16 %v4456_v57, %v4455_v11  ;;  %v4345_v48 = vpop.xlane.xlu2 %4344  ;;  %v12249_v47 = vld [vmem:[#allocation185_spill] sm:$0xff] }
 0x4e3   :  { %v6880_v43 = vor.u32 %v7291_v3, %v6879_v5  ;;  %7936 = vrcp.f32 %v4345_v48  ;;  %v12250_v5 = vld [vmem:[#allocation122_spill] sm:$0xff]  ;;  %v12251_v11 = vld [vmem:[#allocation129_spill] sm:$0xff]  ;;  %v7279_v57 = vld [vmem:[#allocation2 + $0x28c] sm:$0xf0] }
 0x4e4   :  { %4531 = vst [vmem:[#allocation2 + $0x390] sm:$0xff] %v4499_v24  ;;  %v12253_v0 = vld [vmem:[#allocation112_spill] sm:$0xff] }
 0x4e5   :  { %5467 = vmatpush.bf16.msra.mxu2 %v6880_v43  ;;  %4532 = vst [vmem:[#allocation2 + $0x398] sm:$0xff] %v4500_v14  ;;  %v6831_v43 = vld [vmem:[#allocation2 + $0x280] sm:$0xf] }
 0x4e6   :  { %v6832_v30 = vor.u32 %v7279_v57, %v6831_v43  ;;  %v12258_v43 = vld [vmem:[#allocation191_spill] sm:$0xff] }
 0x4e8   :  { %v4380_v27 = vpop.xlane.xlu0 %4379 }
 0x4e9   :  { %5468 = vmatpush.bf16.msra.mxu2 %v6864_v62  ;;  %7938 = vrcp.f32 %v4380_v27  ;;  %v7937_v21 = vpop.eup %7936  ;;  %v7275_v62 = vld [vmem:[#allocation2 + $0x26c] sm:$0xf0] }
 0x4ea   :  { %v4433_v2 = vmul.f32 %v7937_v21, %v12248_v1  ;;  %v4434_v20 = vmul.f32 %v7937_v21, %v12249_v47  ;;  %v4435_v17 = vmul.f32 %v7937_v21, %v12250_v5  ;;  %v4436_v49 = vmul.f32 %v7937_v21, %v12251_v11  ;;  %v12254_v47 = vld [vmem:[#allocation121_spill] sm:$0xff]  ;;  %v12255_v21 = vld [vmem:[#allocation24_spill] sm:$0xff] }
 0x4eb   :  { %v4355_v24 = vpop.xlane.xlu2 %4354 }
 0x4ec   :  { %7940 = vrcp.f32 %v4355_v24  ;;  %v4489_v3 = vpack.c.bf16 %v4434_v20, %v4433_v2  ;;  %v4490_v14 = vpack.c.bf16 %v4436_v49, %v4435_v17  ;;  %v12256_v17 = vld [vmem:[#allocation130_spill] sm:$0xff] }
 0x4ed   :  { %5469 = vmatpush.bf16.msra.mxu2 %v6848_v15  ;;  %v6816_v15 = vor.u32 %v7275_v62, %v6815_v56  ;;  %v12260_v62 = vld [vmem:[#allocation25_spill] sm:$0xff] }
 0x4ee   :  { %4521 = vst [vmem:[#allocation2 + $0x340] sm:$0xff] %v4489_v3  ;;  %v12257_v3 = vld [vmem:[#allocation142_spill] sm:$0xff] }
 0x4ef   :  { %v7939_v48 = vpop.eup %7938  ;;  %4522 = vst [vmem:[#allocation2 + $0x348] sm:$0xff] %v4490_v14  ;;  %v12259_v14 = vld [vmem:[#allocation192_spill] sm:$0xff] }
 0x4f0   :  { %v4461_v27 = vmul.f32 %v7939_v48, %v12252_v58  ;;  %v4462_v1 = vmul.f32 %v7939_v48, %v12253_v0  ;;  %v4463_v5 = vmul.f32 %v7939_v48, %v12254_v47  ;;  %v4464_v11 = vmul.f32 %v7939_v48, %v12255_v21  ;;  %v7271_v0 = vld [vmem:[#allocation2 + $0x24c] sm:$0xf0] }
 0x4f1   :  { %5470 = vmatpush.bf16.msra.mxu2 %v6832_v30  ;;  %v6799_v30 = vld [vmem:[#allocation2 + $0x240] sm:$0xf] }
 0x4f2   :  { %v7941_v24 = vpop.eup %7940  ;;  %v4503_v2 = vpack.c.bf16 %v4462_v1, %v4461_v27  ;;  %v4504_v20 = vpack.c.bf16 %v4464_v11, %v4463_v5  ;;  %v6800_v27 = vor.u32 %v7271_v0, %v6799_v30  ;;  %v12261_v5 = vld [vmem:[#allocation137_spill] sm:$0xff]  ;;  %v12262_v11 = vld [vmem:[#allocation138_spill] sm:$0xff]  ;;  %v12267_v0 = vld [vmem:[#allocation160_spill] sm:$0xff] }
 0x4f3   :  { %v4441_v49 = vmul.f32 %v7941_v24, %v12256_v17  ;;  %v4442_v57 = vmul.f32 %v7941_v24, %v12257_v3  ;;  %v4443_v8 = vmul.f32 %v7941_v24, %v12258_v43  ;;  %v4444_v9 = vmul.f32 %v7941_v24, %v12259_v14  ;;  %v4365_v58 = vpop.xlane.xlu2 %4364  ;;  %v12263_v17 = vld [vmem:[#allocation164_spill] sm:$0xff] }
 0x4f4   :  { %4535 = vst [vmem:[#allocation2 + $0x3b0] sm:$0xff] %v4503_v2  ;;  %7942 = vrcp.f32 %v4365_v58  ;;  %v12266_v14 = vld [vmem:[#allocation100_spill] sm:$0xff] }
 0x4f5   :  { %4536 = vst [vmem:[#allocation2 + $0x3b8] sm:$0xff] %v4504_v20  ;;  %v4493_v47 = vpack.c.bf16 %v4442_v57, %v4441_v49  ;;  %v4494_v48 = vpack.c.bf16 %v4444_v9, %v4443_v8  ;;  %5471 = vmatpush.bf16.msra.mxu2 %v6816_v15  ;;  %v12264_v8 = vld [vmem:[#allocation153_spill] sm:$0xff]  ;;  %v12265_v57 = vld [vmem:[#allocation154_spill] sm:$0xff] }
 0x4f7   :  { %4525 = vst [vmem:[#allocation2 + $0x360] sm:$0xff] %v4493_v47 }
 0x4f8   :  { %4526 = vst [vmem:[#allocation2 + $0x368] sm:$0xff] %v4494_v48 }
 0x4f9   :  { %5472 = vmatpush.bf16.msra.mxu2 %v6800_v27 }
 0x4fa   :  { %v7943_v56 = vpop.eup %7942 }
 0x4fb   :  { %v4449_v1 = vmul.f32 %v7943_v56, %v12260_v62  ;;  %v4450_v21 = vmul.f32 %v7943_v56, %v12261_v5  ;;  %v4451_v24 = vmul.f32 %v7943_v56, %v12262_v11  ;;  %v4452_v2 = vmul.f32 %v7943_v56, %v12263_v17  ;;  %v4390_v3 = vpop.xlane.xlu2 %4389  ;;  %v12268_v62 = vld [vmem:[#allocation49_spill] sm:$0xff]  ;;  %v12270_v11 = vld [vmem:[#allocation152_spill] sm:$0xff] }
 0x4fc   :  { %7944 = vrcp.f32 %v4390_v3  ;;  %v12269_v5 = vld [vmem:[#allocation105_spill] sm:$0xff] }
 0x4fd   :  { %v4497_v20 = vpack.c.bf16 %v4450_v21, %v4449_v1  ;;  %v4498_v49 = vpack.c.bf16 %v4452_v2, %v4451_v24 }
 0x4ff   :  { %4529 = vst [vmem:[#allocation2 + $0x380] sm:$0xff] %v4497_v20 }
 0x500   :  { %4530 = vst [vmem:[#allocation2 + $0x388] sm:$0xff] %v4498_v49 }
 0x502   :  { %v7945_v9 = vpop.eup %7944 }
 0x503   :  { %v4469_v15 = vmul.f32 %v7945_v9, %v12264_v8  ;;  %v4470_v43 = vmul.f32 %v7945_v9, %v12265_v57  ;;  %v4471_v58 = vmul.f32 %v7945_v9, %v12266_v14  ;;  %v4472_v47 = vmul.f32 %v7945_v9, %v12267_v0  ;;  %v12271_v8 = vld [vmem:[#allocation87_spill] sm:$0xff] }
 0x504   :  { %v4335_v48 = vpop.xlane.xlu2 %4334  ;;  %v12272_v57 = vld [vmem:[#allocation95_spill] sm:$0xff] }
 0x505   :  { %7946 = vrcp.f32 %v4335_v48  ;;  %v4507_v30 = vpack.c.bf16 %v4470_v43, %v4469_v15  ;;  %v4508_v27 = vpack.c.bf16 %v4472_v47, %v4471_v58 }
 0x507   :  { %4539 = vst [vmem:[#allocation2 + $0x3d0] sm:$0xff] %v4507_v30 }
 0x508   :  { %4540 = vst [vmem:[#allocation2 + $0x3d8] sm:$0xff] %v4508_v27 }
 0x50b   :  { %v7947_v56 = vpop.eup %7946 }
 0x50c   :  { %v4425_v1 = vmul.f32 %v7947_v56, %v12268_v62  ;;  %v4426_v21 = vmul.f32 %v7947_v56, %v12269_v5  ;;  %v4427_v24 = vmul.f32 %v7947_v56, %v12270_v11  ;;  %v4428_v17 = vmul.f32 %v7947_v56, %v10608_v51  ;;  %v2886_v2 = vpop.xlane.xlu2 %2885 }
 0x50d   :  { %7948 = vrcp.f32 %v2886_v2 }
 0x50e   :  { %v4485_v3 = vpack.c.bf16 %v4426_v21, %v4425_v1  ;;  %v4486_v20 = vpack.c.bf16 %v4428_v17, %v4427_v24 }
 0x510   :  { %4517 = vst [vmem:[#allocation2 + $0x320] sm:$0xff] %v4485_v3  ;;  %v12273_v3 = vld [vmem:[#allocation34_spill] sm:$0xff] }
 0x511   :  { %4518 = vst [vmem:[#allocation2 + $0x328] sm:$0xff] %v4486_v20  ;;  %v4375_v49 = vpop.xlane.xlu1 %4374 }
 0x512   :  { %7950 = vrcp.f32 %v4375_v49  ;;  %v12274_v49 = vld [vmem:[#allocation63_spill] sm:$0xff] }
 0x513   :  { %v7949_v9 = vpop.eup %7948 }
 0x514   :  { %v2973_v15 = vmul.f32 %v7949_v9, %v12271_v8  ;;  %v2974_v43 = vmul.f32 %v7949_v9, %v12272_v57  ;;  %v2975_v14 = vmul.f32 %v7949_v9, %v10282_v44  ;;  %v2976_v58 = vmul.f32 %v7949_v9, %v10288_v26  ;;  %v4325_v0 = vpop.xlane.xlu2 %4324 }
 0x515   :  { %7952 = vrcp.f32 %v4325_v0  ;;  %v12278_v0 = vld [vmem:[#allocation85_spill] sm:$0xff] }
 0x516   :  { %v3027_v51 = vpack.c.bf16 %v2974_v43, %v2973_v15  ;;  %v3028_v47 = vpack.c.bf16 %v2976_v58, %v2975_v14  ;;  %v4385_v48 = vpop.xlane.xlu0 %4384  ;;  %v12275_v15 = vld [vmem:[#allocation73_spill] sm:$0xff]  ;;  %v12276_v43 = vld [vmem:[#allocation74_spill] sm:$0xff] }
 0x517   :  { %7954 = vrcp.f32 %v4385_v48 }
 0x518   :  { %v7951_v30 = vpop.eup %7950  ;;  %3059 = vst [vmem:[#allocation2 + $0x150] sm:$0xff] %v3027_v51 }
 0x519   :  { %3060 = vst [vmem:[#allocation2 + $0x158] sm:$0xff] %v3028_v47  ;;  %v4457_v27 = vmul.f32 %v7951_v30, %v10622_v29  ;;  %v4458_v56 = vmul.f32 %v7951_v30, %v10628_v6  ;;  %v4459_v62 = vmul.f32 %v7951_v30, %v10637_v63  ;;  %v4460_v1 = vmul.f32 %v7951_v30, %v10655_v13 }
 0x51b   :  { %v7953_v44 = vpop.eup %7952  ;;  %v4501_v5 = vpack.c.bf16 %v4458_v56, %v4457_v27  ;;  %v4502_v26 = vpack.c.bf16 %v4460_v1, %v4459_v62 }
 0x51c   :  { %v4417_v21 = vmul.f32 %v7953_v44, %v10594_v40  ;;  %v4418_v11 = vmul.f32 %v7953_v44, %v10598_v50  ;;  %v4419_v24 = vmul.f32 %v7953_v44, %v10618_v46  ;;  %v4420_v17 = vmul.f32 %v7953_v44, %v10620_v39  ;;  %v2876_v2 = vpop.xlane.xlu2 %2875 }
 0x51d   :  { %4533 = vst [vmem:[#allocation2 + $0x3a0] sm:$0xff] %v4501_v5  ;;  %7956 = vrcp.f32 %v2876_v2  ;;  %v7955_v29 = vpop.eup %7954 }
 0x51e   :  { %4534 = vst [vmem:[#allocation2 + $0x3a8] sm:$0xff] %v4502_v26  ;;  %v4481_v6 = vpack.c.bf16 %v4418_v11, %v4417_v21  ;;  %v4482_v63 = vpack.c.bf16 %v4420_v17, %v4419_v24  ;;  %v4465_v13 = vmul.f32 %v7955_v29, %v10642_v52  ;;  %v4466_v20 = vmul.f32 %v7955_v29, %v12273_v3  ;;  %v12277_v52 = vld [vmem:[#allocation84_spill] sm:$0xff] }
 0x51f   :  { %v4467_v9 = vmul.f32 %v7955_v29, %v12274_v49  ;;  %v4468_v40 = vmul.f32 %v7955_v29, %v10682_v32  ;;  %v4400_v50 = vpop.xlane.xlu0 %4399 }
 0x520   :  { %4513 = vst [vmem:[#allocation2 + $0x300] sm:$0xff] %v4481_v6  ;;  %7958 = vrcp.f32 %v4400_v50  ;;  %v4505_v46 = vpack.c.bf16 %v4466_v20, %v4465_v13  ;;  %v12280_v6 = vld [vmem:[#allocation116_spill] sm:$0xff]  ;;  %v12281_v13 = vld [vmem:[#allocation135_spill] sm:$0xff] }
 0x521   :  { %4514 = vst [vmem:[#allocation2 + $0x308] sm:$0xff] %v4482_v63  ;;  %v4506_v39 = vpack.c.bf16 %v4468_v40, %v4467_v9  ;;  %v12282_v20 = vld [vmem:[#allocation80_spill] sm:$0xff]  ;;  %v12283_v9 = vld [vmem:[#allocation33_spill] sm:$0xff] }
 0x522   :  { %4537 = vst [vmem:[#allocation2 + $0x3c0] sm:$0xff] %v4505_v46  ;;  %v12284_v46 = vld [vmem:[#allocation145_spill] sm:$0xff] }
 0x523   :  { %v7957_v8 = vpop.eup %7956  ;;  %4538 = vst [vmem:[#allocation2 + $0x3c8] sm:$0xff] %v4506_v39 }
 0x524   :  { %v2965_v57 = vmul.f32 %v7957_v8, %v12275_v15  ;;  %v2966_v14 = vmul.f32 %v7957_v8, %v12276_v43  ;;  %v2967_v58 = vmul.f32 %v7957_v8, %v12277_v52  ;;  %v2968_v51 = vmul.f32 %v7957_v8, %v12278_v0  ;;  %v4395_v47 = vpop.xlane.xlu1 %4394  ;;  %v12285_v8 = vld [vmem:[#allocation72_spill] sm:$0xff] }
 0x525   :  { %7960 = vrcp.f32 %v4395_v47 }
 0x526   :  { %v7959_v32 = vpop.eup %7958  ;;  %v3023_v48 = vpack.c.bf16 %v2966_v14, %v2965_v57  ;;  %v3024_v30 = vpack.c.bf16 %v2968_v51, %v2967_v58  ;;  %v12286_v57 = vld [vmem:[#allocation104_spill] sm:$0xff]  ;;  %v12287_v14 = vld [vmem:[#allocation187_spill] sm:$0xff] }
 0x527   :  { %v4477_v27 = vmul.f32 %v7959_v32, %v10676_v54  ;;  %v4478_v56 = vmul.f32 %v7959_v32, %v10679_v10  ;;  %v4479_v62 = vmul.f32 %v7959_v32, %v10686_v36  ;;  %v4480_v1 = vmul.f32 %v7959_v32, %v10711_v16  ;;  %v3608_v44 = vpop.xlane.xlu0 %3607  ;;  %v12279_v10 = vld [vmem:[#allocation64_spill] sm:$0xff]  ;;  %v12288_v32 = vld [vmem:[#allocation139_spill] sm:$0xff] }
 0x528   :  { %3055 = vst [vmem:[#allocation2 + $0x130] sm:$0xff] %v3023_v48  ;;  %7962 = vrcp.f32 %v3608_v44 }
 0x529   :  { %3056 = vst [vmem:[#allocation2 + $0x138] sm:$0xff] %v3024_v30  ;;  %v4511_v5 = vpack.c.bf16 %v4478_v56, %v4477_v27  ;;  %v4512_v26 = vpack.c.bf16 %v4480_v1, %v4479_v62  ;;  %v12289_v30 = vld [vmem:[#allocation54_spill] sm:$0xff]  ;;  %v12290_v56 = vld [vmem:[#allocation83_spill] sm:$0xff] }
 0x52b   :  { %v7961_v21 = vpop.eup %7960  ;;  %4543 = vst [vmem:[#allocation2 + $0x3f0] sm:$0xff] %v4511_v5 }
 0x52c   :  { %4544 = vst [vmem:[#allocation2 + $0x3f8] sm:$0xff] %v4512_v26  ;;  %v4473_v11 = vmul.f32 %v7961_v21, %v10714_v19  ;;  %v4474_v24 = vmul.f32 %v7961_v21, %v10719_v53  ;;  %v4475_v54 = vmul.f32 %v7961_v21, %v10724_v59  ;;  %v4476_v17 = vmul.f32 %v7961_v21, %v12279_v10  ;;  %v3603_v36 = vpop.xlane.xlu1 %3602  ;;  %v7319_v10 = vld [vmem:[#allocation2 + $0x3cc] sm:$0xf0] }
 0x52d   :  { %7964 = vrcp.f32 %v3603_v36 }
 0x52e   :  { %v7963_v16 = vpop.eup %7962  ;;  %v4509_v2 = vpack.c.bf16 %v4474_v24, %v4473_v11  ;;  %v4510_v29 = vpack.c.bf16 %v4476_v17, %v4475_v54  ;;  %v6991_v11 = vld [vmem:[#allocation2 + $0x3c0] sm:$0xf] }
 0x52f   :  { %v3697_v63 = vmul.f32 %v7963_v16, %v12280_v6  ;;  %v3698_v3 = vmul.f32 %v7963_v16, %v12281_v13  ;;  %v3699_v49 = vmul.f32 %v7963_v16, %v12282_v20  ;;  %v3700_v40 = vmul.f32 %v7963_v16, %v12283_v9  ;;  %v2881_v19 = vpop.xlane.xlu0 %2880  ;;  %v6975_v20 = vld [vmem:[#allocation2 + $0x3a0] sm:$0xf] }
 0x530   :  { %4541 = vst [vmem:[#allocation2 + $0x3e0] sm:$0xff] %v4509_v2  ;;  %7966 = vrcp.f32 %v2881_v19  ;;  %v6992_v36 = vor.u32 %v7319_v10, %v6991_v11  ;;  %v12291_v2 = vld [vmem:[#allocation163_spill] sm:$0xff]  ;;  %v6927_v11 = vld [vmem:[#allocation2 + $0x340] sm:$0xf]  ;;  %v10976_v10 = vld [vmem:[#allocation14] sm:$0xf] }
 0x531   :  { %4542 = vst [vmem:[#allocation2 + $0x3e8] sm:$0xff] %v4510_v29  ;;  %v3755_v53 = vpack.c.bf16 %v3698_v3, %v3697_v63  ;;  %v3756_v59 = vpack.c.bf16 %v3700_v40, %v3699_v49  ;;  %v12292_v29 = vld [vmem:[#allocation125_spill] sm:$0xff] }
 0x532   :  { %v7323_v26 = vld [vmem:[#allocation2 + $0x3ec] sm:$0xf0] }
 0x533   :  { %v7965_v50 = vpop.eup %7964  ;;  %3787 = vst [vmem:[#allocation2 + $0x230] sm:$0xff] %v3755_v53 }
 0x534   :  { %3788 = vst [vmem:[#allocation2 + $0x238] sm:$0xff] %v3756_v59  ;;  %v3693_v39 = vmul.f32 %v7965_v50, %v12284_v46  ;;  %v3694_v15 = vmul.f32 %v7965_v50, %v12285_v8  ;;  %v3695_v43 = vmul.f32 %v7965_v50, %v12286_v57  ;;  %v3696_v52 = vmul.f32 %v7965_v50, %v12287_v14  ;;  %v4340_v58 = vpop.xlane.xlu1 %4339  ;;  %v7315_v8 = vld [vmem:[#allocation2 + $0x3ac] sm:$0xf0]  ;;  %v6959_v57 = vld [vmem:[#allocation2 + $0x380] sm:$0xf] }
 0x535   :  { %7968 = vrcp.f32 %v4340_v58 }
 0x536   :  { %v7967_v0 = vpop.eup %7966  ;;  %v3753_v51 = vpack.c.bf16 %v3694_v15, %v3693_v39  ;;  %v3754_v47 = vpack.c.bf16 %v3696_v52, %v3695_v43  ;;  %v6976_v15 = vor.u32 %v7315_v8, %v6975_v20 }
 0x537   :  { %v2969_v48 = vmul.f32 %v7967_v0, %v12288_v32  ;;  %v2970_v27 = vmul.f32 %v7967_v0, %v12289_v30  ;;  %v2971_v62 = vmul.f32 %v7967_v0, %v12290_v56  ;;  %v2972_v1 = vmul.f32 %v7967_v0, %v12202_v12  ;;  %v3598_v44 = vpop.xlane.xlu0 %3597  ;;  %v7007_v5 = vld [vmem:[#allocation2 + $0x3e0] sm:$0xf] }
 0x538   :  { %3785 = vst [vmem:[#allocation2 + $0x220] sm:$0xff] %v3753_v51  ;;  %7970 = vrcp.f32 %v3598_v44  ;;  %v7008_v21 = vor.u32 %v7323_v26, %v7007_v5 }
 0x539   :  { %3786 = vst [vmem:[#allocation2 + $0x228] sm:$0xff] %v3754_v47  ;;  %v3025_v24 = vpack.c.bf16 %v2970_v27, %v2969_v48  ;;  %v3026_v54 = vpack.c.bf16 %v2972_v1, %v2971_v62  ;;  %v10956_v16 = vpop.f32.mrf.mxu2  ;;  %v6943_v27 = vld [vmem:[#allocation2 + $0x360] sm:$0xf] }
 0x53a   :  { %5480 = vmatpush.bf16.msra.mxu3 %v7008_v21 }
 0x53b   :  { %v7969_v17 = vpop.eup %7968  ;;  %3057 = vst [vmem:[#allocation2 + $0x140] sm:$0xff] %v3025_v24 }
 0x53c   :  { %3058 = vst [vmem:[#allocation2 + $0x148] sm:$0xff] %v3026_v54  ;;  %v4429_v12 = vmul.f32 %v7969_v17, %v12291_v2  ;;  %v4430_v6 = vmul.f32 %v7969_v17, %v12292_v29  ;;  %v4431_v63 = vmul.f32 %v7969_v17, %v10768_v31  ;;  %v4432_v13 = vmul.f32 %v7969_v17, %v10799_v33  ;;  %v3593_v3 = vpop.xlane.xlu1 %3592  ;;  %v7267_v31 = vld [vmem:[#allocation2 + $0x22c] sm:$0xf0] }
 0x53d   :  { %7972 = vrcp.f32 %v3593_v3  ;;  %v4558_v17 = vperm.slane %v10976_v10, 2 }
 0x53e   :  { %v7971_v49 = vpop.eup %7970  ;;  %v4487_v9 = vpack.c.bf16 %v4430_v6, %v4429_v12  ;;  %v4488_v40 = vpack.c.bf16 %v4432_v13, %v4431_v63  ;;  %5481 = vmatpush.bf16.msra.mxu3 %v6992_v36  ;;  %v10970_v56 = vpop.f32.mrf.mxu3  ;;  %v6881_v13 = vld [vmem:[#allocation2 + $0x2f0] sm:$0xf0] }
 0x53f   :  { %v3689_v19 = vmul.f32 %v7971_v49, %v10518_v60  ;;  %v3690_v53 = vmul.f32 %v7971_v49, %v12204_v25  ;;  %v3691_v59 = vmul.f32 %v7971_v49, %v10762_v35  ;;  %v3692_v50 = vmul.f32 %v7971_v49, %v10827_v18  ;;  %v2871_v46 = vpop.xlane.xlu0 %2870  ;;  %v6783_v39 = vld [vmem:[#allocation2 + $0x220] sm:$0xf]  ;;  %v7239_v60 = vld [vmem:[#allocation2 + $0x14c] sm:$0xf0]  ;;  %v10983_v6 = vpop.f32.mrf.mxu1 }
 0x540   :  { %4519 = vst [vmem:[#allocation2 + $0x330] sm:$0xff] %v4487_v9  ;;  %7974 = vrcp.f32 %v2871_v46  ;;  %v6784_v33 = vor.u32 %v7267_v31, %v6783_v39  ;;  %v7311_v25 = vld [vmem:[#allocation2 + $0x38c] sm:$0xf0]  ;;  %v4653_v3 = vadd.f32 %v10956_v16, %v4558_v17  ;;  %v6911_v31 = vld [vmem:[#allocation2 + $0x320] sm:$0xf] }
 0x541   :  { %4520 = vst [vmem:[#allocation2 + $0x338] sm:$0xff] %v4488_v40  ;;  %v3751_v43 = vpack.c.bf16 %v3690_v53, %v3689_v19  ;;  %v3752_v14 = vpack.c.bf16 %v3692_v50, %v3691_v59  ;;  %v6960_v58 = vor.u32 %v7311_v25, %v6959_v57  ;;  %v4654_v0 = vpop.f32.mrf.mxu2  ;;  %v12293_v19 = vld [vmem:[#allocation77_spill] sm:$0xff]  ;;  %v12294_v53 = vld [vmem:[#allocation178_spill] sm:$0xff]  ;;  %v12295_v59 = vld [vmem:[#allocation107_spill] sm:$0xff] }
 0x542   :  { %v6671_v52 = vld [vmem:[#allocation2 + $0x140] sm:$0xf]  ;;  %5473 = vmatpush.bf16.msra.mxu2 %v6784_v33  ;;  %5482 = vmatpush.bf16.msra.mxu3 %v6976_v15  ;;  %v12297_v0 = vld [vmem:[#allocation177_spill] sm:$0xff] }
 0x543   :  { %v7973_v35 = vpop.eup %7972  ;;  %3783 = vst [vmem:[#allocation2 + $0x210] sm:$0xff] %v3751_v43  ;;  %v6672_v18 = vor.u32 %v7239_v60, %v6671_v52  ;;  %v10990_v43 = vpack.c.bf16 %v4653_v3, %v4653_v3  ;;  %v7235_v52 = vld [vmem:[#allocation2 + $0x12c] sm:$0xf0]  ;;  %v7285_v60 = vld [vmem:[#allocation2 + $0x2c4] sm:$0xf] }
 0x544   :  { %3784 = vst [vmem:[#allocation2 + $0x218] sm:$0xff] %v3752_v14  ;;  %v3685_v51 = vmul.f32 %v7973_v35, %v12213_v61  ;;  %v3686_v47 = vmul.f32 %v7973_v35, %v12214_v7  ;;  %v3687_v32 = vmul.f32 %v7973_v35, %v10831_v23  ;;  %v3688_v48 = vmul.f32 %v7973_v35, %v10842_v38  ;;  %v4330_v30 = vpop.xlane.xlu1 %4329  ;;  %v7307_v38 = vld [vmem:[#allocation2 + $0x36c] sm:$0xf0]  ;;  %v6817_v3 = vld [vmem:[#allocation2 + $0x270] sm:$0xf0] }
 0x545   :  { %5459 = vmatpush.bf16.msra.mxu1 %v6672_v18  ;;  %7976 = vrcp.f32 %v4330_v30  ;;  %v6944_v21 = vor.u32 %v7307_v38, %v6943_v27  ;;  %v12296_v18 = vld [vmem:[#allocation159_spill] sm:$0xff]  ;;  %v6865_v27 = vld [vmem:[#allocation2 + $0x2d0] sm:$0xf0] }
 0x546   :  { %v7975_v62 = vpop.eup %7974  ;;  %v3749_v1 = vpack.c.bf16 %v3686_v47, %v3685_v51  ;;  %v3750_v44 = vpack.c.bf16 %v3688_v48, %v3687_v32  ;;  %5483 = vmatpush.bf16.msra.mxu3 %v6960_v58  ;;  %v4667_v20 = vpop.f32.mrf.mxu3  ;;  %v12298_v47 = vld [vmem:[#allocation182_spill] sm:$0xff]  ;;  %v12299_v48 = vld [vmem:[#allocation44_spill] sm:$0xff] }
 0x547   :  { %v2961_v5 = vmul.f32 %v7975_v62, %v12220_v37  ;;  %v2962_v61 = vmul.f32 %v7975_v62, %v12221_v34  ;;  %v2963_v7 = vmul.f32 %v7975_v62, %v10819_v22  ;;  %v2964_v23 = vmul.f32 %v7975_v62, %v10847_v45  ;;  %v2866_v26 = vpop.xlane.xlu0 %2865  ;;  %v7303_v37 = vld [vmem:[#allocation2 + $0x34c] sm:$0xf0]  ;;  %v4641_v62 = vpop.f32.mrf.mxu1 }
 0x548   :  { %3781 = vst [vmem:[#allocation2 + $0x200] sm:$0xff] %v3749_v1  ;;  %7978 = vrcp.f32 %v2866_v26  ;;  %v6928_v22 = vor.u32 %v7303_v37, %v6927_v11  ;;  %v7299_v63 = vld [vmem:[#allocation2 + $0x32c] sm:$0xf0]  ;;  %v6868_v1 = vor.u32 %v7285_v60, %v6865_v27  ;;  %v6895_v26 = vld [vmem:[#allocation2 + $0x300] sm:$0xf] }
 0x549   :  { %3782 = vst [vmem:[#allocation2 + $0x208] sm:$0xff] %v3750_v44  ;;  %v3021_v24 = vpack.c.bf16 %v2962_v61, %v2961_v5  ;;  %v3022_v54 = vpack.c.bf16 %v2964_v23, %v2963_v7  ;;  %v6912_v16 = vor.u32 %v7299_v63, %v6911_v31  ;;  %v7281_v7 = vld [vmem:[#allocation2 + $0x2a4] sm:$0xf]  ;;  %v6849_v11 = vld [vmem:[#allocation2 + $0x2b0] sm:$0xf0] }
 0x54a   :  { %5484 = vmatpush.bf16.msra.mxu3 %v6944_v21  ;;  %v7263_v39 = vld [vmem:[#allocation2 + $0x20c] sm:$0xf0]  ;;  %v7321_v23 = vld [vmem:[#allocation2 + $0x3e4] sm:$0xf]  ;;  %v6753_v63 = vld [vmem:[#allocation2 + $0x1f0] sm:$0xf0] }
 0x54b   :  { %v7977_v34 = vpop.eup %7976  ;;  %3053 = vst [vmem:[#allocation2 + $0x120] sm:$0xff] %v3021_v24  ;;  %v7009_v24 = vld [vmem:[#allocation2 + $0x3f0] sm:$0xf0]  ;;  %v6887_v62 = vld [vmem:[#allocation2 + $0x2e8] sm:$0xf] }
 0x54c   :  { %3054 = vst [vmem:[#allocation2 + $0x128] sm:$0xff] %v3022_v54  ;;  %v4421_v45 = vmul.f32 %v7977_v34, %v10834_v28  ;;  %v4422_v36 = vmul.f32 %v7977_v34, %v10839_v42  ;;  %v4423_v2 = vmul.f32 %v7977_v34, %v10854_v55  ;;  %v4424_v12 = vmul.f32 %v7977_v34, %v10865_v4  ;;  %v2861_v29 = vpop.xlane.xlu1 %2860  ;;  %v7289_v28 = vld [vmem:[#allocation2 + $0x2e4] sm:$0xf]  ;;  %v6929_v27 = vld [vmem:[#allocation2 + $0x350] sm:$0xf0] }
 0x54d   :  { %7980 = vrcp.f32 %v2861_v29  ;;  %v6884_v33 = vor.u32 %v7289_v28, %v6881_v13  ;;  %v6852_v54 = vor.u32 %v7281_v7, %v6849_v11  ;;  %v7012_v17 = vor.u32 %v7321_v23, %v7009_v24  ;;  %v7273_v13 = vld [vmem:[#allocation2 + $0x264] sm:$0xf]  ;;  %v6871_v7 = vld [vmem:[#allocation2 + $0x2c8] sm:$0xf]  ;;  %v6689_v23 = vld [vmem:[#allocation2 + $0x170] sm:$0xf0] }
 0x54e   :  { %v7979_v49 = vpop.eup %7978  ;;  %v4483_v9 = vpack.c.bf16 %v4422_v36, %v4421_v45  ;;  %v4484_v40 = vpack.c.bf16 %v4424_v12, %v4423_v2  ;;  %5485 = vmatpush.bf16.msra.mxu3 %v6928_v22  ;;  %v4557_v34 = vperm.slane %v10976_v10, 1  ;;  %v7317_v22 = vld [vmem:[#allocation2 + $0x3c4] sm:$0xf]  ;;  %v6993_v36 = vld [vmem:[#allocation2 + $0x3d0] sm:$0xf0] }
 0x54f   :  { %v2957_v42 = vmul.f32 %v7979_v49, %v12224_v41  ;;  %v2958_v55 = vmul.f32 %v7979_v49, %v12293_v19  ;;  %v2959_v4 = vmul.f32 %v7979_v49, %v12294_v53  ;;  %v2960_v50 = vmul.f32 %v7979_v49, %v12295_v59  ;;  %v6767_v46 = vld [vmem:[#allocation2 + $0x200] sm:$0xf]  ;;  %v7277_v45 = vld [vmem:[#allocation2 + $0x284] sm:$0xf]  ;;  %v6977_v19 = vld [vmem:[#allocation2 + $0x3b0] sm:$0xf0] }
 0x550   :  { %4515 = vst [vmem:[#allocation2 + $0x310] sm:$0xff] %v4483_v9  ;;  %v6768_v8 = vor.u32 %v7263_v39, %v6767_v46  ;;  %v4559_v41 = vperm.slane %v10976_v10, 3  ;;  %v6996_v12 = vor.u32 %v7317_v22, %v6993_v36  ;;  %v4640_v29 = vadd.f32 %v10983_v6, %v4557_v34  ;;  %v7313_v49 = vld [vmem:[#allocation2 + $0x3a4] sm:$0xf]  ;;  %v6801_v59 = vld [vmem:[#allocation2 + $0x250] sm:$0xf0] }
 0x551   :  { %4516 = vst [vmem:[#allocation2 + $0x318] sm:$0xff] %v4484_v40  ;;  %v3019_v15 = vpack.c.bf16 %v2958_v55, %v2957_v42  ;;  %v3020_v57 = vpack.c.bf16 %v2960_v50, %v2959_v4  ;;  %v7257_v40 = vld [vmem:[#allocation2 + $0x1e4] sm:$0xf]  ;;  %v6820_v42 = vor.u32 %v7273_v13, %v6817_v3  ;;  %v6980_v53 = vor.u32 %v7313_v49, %v6977_v19  ;;  %v6737_v50 = vld [vmem:[#allocation2 + $0x1d0] sm:$0xf0] }
 0x552   :  { %v6655_v14 = vld [vmem:[#allocation2 + $0x120] sm:$0xf]  ;;  %5474 = vmatpush.bf16.msra.mxu2 %v6768_v8  ;;  %5486 = vmatpush.bf16.msra.mxu3 %v6912_v16  ;;  %v4666_v44 = vadd.f32 %v10970_v56, %v4559_v41  ;;  %v6833_v56 = vld [vmem:[#allocation2 + $0x290] sm:$0xf0]  ;;  %v6756_v28 = vor.u32 %v7257_v40, %v6753_v63  ;;  %v11004_v55 = vpack.c.bf16 %v4640_v29, %v4640_v29  ;;  %v7253_v4 = vld [vmem:[#allocation2 + $0x1c4] sm:$0xf] }
 0x553   :  { %v7981_v25 = vpop.eup %7980  ;;  %3051 = vst [vmem:[#allocation2 + $0x110] sm:$0xff] %v3019_v15  ;;  %v6656_v35 = vor.u32 %v7235_v52, %v6655_v14  ;;  %v6836_v2 = vor.u32 %v7277_v45, %v6833_v56  ;;  %v7309_v6 = vld [vmem:[#allocation2 + $0x384] sm:$0xf]  ;;  %v6740_v39 = vor.u32 %v7253_v4, %v6737_v50  ;;  %v6961_v8 = vld [vmem:[#allocation2 + $0x390] sm:$0xf0] }
 0x554   :  { %3052 = vst [vmem:[#allocation2 + $0x118] sm:$0xff] %v3020_v57  ;;  %v2953_v58 = vmul.f32 %v7981_v25, %v12296_v18  ;;  %v2954_v51 = vmul.f32 %v7981_v25, %v12297_v0  ;;  %v2955_v32 = vmul.f32 %v7981_v25, %v12298_v47  ;;  %v2956_v30 = vmul.f32 %v7981_v25, %v12299_v48  ;;  %v7269_v46 = vld [vmem:[#allocation2 + $0x244] sm:$0xf]  ;;  %v6721_v41 = vld [vmem:[#allocation2 + $0x1b0] sm:$0xf0] }
 0x555   :  { %5460 = vmatpush.bf16.msra.mxu1 %v6656_v35  ;;  %5475 = vmatmul.bf16.vlgmr.msra.gmra.mxu2 %v10990_v43  ;;  %v10999_v37 = vpack.c.bf16 %v4666_v44, %v4666_v44  ;;  %v6804_v31 = vor.u32 %v7269_v46, %v6801_v59  ;;  %v6964_v16 = vor.u32 %v7309_v6, %v6961_v8  ;;  %v7265_v15 = vld [vmem:[#allocation2 + $0x224] sm:$0xf]  ;;  %v6785_v14 = vld [vmem:[#allocation2 + $0x230] sm:$0xf0]  ;;  %v7292_v47 = vld [vmem:[#allocation2 + $0x2f4] sm:$0xf0] }
 0x556   :  { %5519 = vmatpush.bf16.msrb.mxu2 %v6884_v33  ;;  %v3017_v5 = vpack.c.bf16 %v2954_v51, %v2953_v58  ;;  %v3018_v61 = vpack.c.bf16 %v2956_v30, %v2955_v32  ;;  %v7249_v33 = vld [vmem:[#allocation2 + $0x1a4] sm:$0xf]  ;;  %v6788_v60 = vor.u32 %v7265_v15, %v6785_v14  ;;  %v6945_v25 = vld [vmem:[#allocation2 + $0x370] sm:$0xf0]  ;;  %v6888_v44 = vor.u32 %v7292_v47, %v6887_v62  ;;  %v6855_v34 = vld [vmem:[#allocation2 + $0x2a8] sm:$0xf] }
 0x557   :  { %v7295_v38 = vld [vmem:[#allocation2 + $0x30c] sm:$0xf0]  ;;  %v7305_v57 = vld [vmem:[#allocation2 + $0x364] sm:$0xf]  ;;  %v6724_v52 = vor.u32 %v7249_v33, %v6721_v41  ;;  %v6705_v58 = vld [vmem:[#allocation2 + $0x190] sm:$0xf0] }
 0x558   :  { %3049 = vst [vmem:[#allocation2 + $0x100] sm:$0xff] %v3017_v5  ;;  %v6896_v21 = vor.u32 %v7295_v38, %v6895_v26  ;;  %v6948_v35 = vor.u32 %v7305_v57, %v6945_v25  ;;  %v7245_v18 = vld [vmem:[#allocation2 + $0x184] sm:$0xf]  ;;  %v6769_v32 = vld [vmem:[#allocation2 + $0x210] sm:$0xf0] }
 0x559   :  { %3050 = vst [vmem:[#allocation2 + $0x108] sm:$0xff] %v3018_v61  ;;  %v7261_v0 = vld [vmem:[#allocation2 + $0x204] sm:$0xf]  ;;  %v6708_v48 = vor.u32 %v7245_v18, %v6705_v58  ;;  %v6913_v61 = vld [vmem:[#allocation2 + $0x330] sm:$0xf0] }
 0x55a   :  { %5520 = vmatpush.bf16.msrb.mxu2 %v6868_v1  ;;  %5487 = vmatpush.bf16.msra.mxu3 %v6896_v21  ;;  %v7231_v10 = vld [vmem:[#allocation2 + $0x10c] sm:$0xf0]  ;;  %v7301_v51 = vld [vmem:[#allocation2 + $0x344] sm:$0xf]  ;;  %v6772_v30 = vor.u32 %v7261_v0, %v6769_v32  ;;  %v7288_v21 = vld [vmem:[#allocation2 + $0x2d4] sm:$0xf0] }
 0x55b   :  { %v6932_v1 = vor.u32 %v7301_v51, %v6929_v27  ;;  %v7241_v5 = vld [vmem:[#allocation2 + $0x164] sm:$0xf]  ;;  %v6872_v24 = vor.u32 %v7288_v21, %v6871_v7  ;;  %v6673_v56 = vld [vmem:[#allocation2 + $0x150] sm:$0xf0]  ;;  %v7015_v22 = vld [vmem:[#allocation2 + $0x3e8] sm:$0xf] }
 0x55c   :  { %v6692_v26 = vor.u32 %v7241_v5, %v6689_v23  ;;  %v7297_v38 = vld [vmem:[#allocation2 + $0x324] sm:$0xf]  ;;  %v7324_v63 = vld [vmem:[#allocation2 + $0x3f4] sm:$0xf0]  ;;  %v6999_v49 = vld [vmem:[#allocation2 + $0x3c8] sm:$0xf] }
 0x55d   :  { %5488 = vmatmul.bf16.vlgmr.msra.gmra.mxu3 %v10999_v37  ;;  %v6916_v11 = vor.u32 %v7297_v38, %v6913_v61  ;;  %v7293_v36 = vld [vmem:[#allocation2 + $0x304] sm:$0xf]  ;;  %v7016_v3 = vor.u32 %v7324_v63, %v7015_v22  ;;  %v6839_v40 = vld [vmem:[#allocation2 + $0x288] sm:$0xf]  ;;  %v7260_v4 = vld [vmem:[#allocation2 + $0x1f4] sm:$0xf0] }
 0x55e   :  { %5521 = vmatpush.bf16.msrb.mxu2 %v6852_v54  ;;  %5532 = vmatpush.bf16.msrb.mxu3 %v7012_v17  ;;  %v7237_v54 = vld [vmem:[#allocation2 + $0x144] sm:$0xf]  ;;  %v6897_v17 = vld [vmem:[#allocation2 + $0x310] sm:$0xf0]  ;;  %v6823_v59 = vld [vmem:[#allocation2 + $0x268] sm:$0xf] }
 0x55f   :  { %v6639_v20 = vld [vmem:[#allocation2 + $0x100] sm:$0xf]  ;;  %v6676_v45 = vor.u32 %v7237_v54, %v6673_v56  ;;  %v7233_v13 = vld [vmem:[#allocation2 + $0x124] sm:$0xf]  ;;  %v7276_v6 = vld [vmem:[#allocation2 + $0x274] sm:$0xf0] }
 0x560   :  { %v6640_v9 = vor.u32 %v7231_v10, %v6639_v20  ;;  %v7280_v20 = vld [vmem:[#allocation2 + $0x294] sm:$0xf0]  ;;  %v6657_v10 = vld [vmem:[#allocation2 + $0x130] sm:$0xf0]  ;;  %v7229_v19 = vld [vmem:[#allocation2 + $0x104] sm:$0xf] }
 0x561   :  { %v6641_v50 = vld [vmem:[#allocation2 + $0x110] sm:$0xf0]  ;;  %v6983_v46 = vld [vmem:[#allocation2 + $0x3a8] sm:$0xf]  ;;  %v7316_v33 = vld [vmem:[#allocation2 + $0x3b4] sm:$0xf0] }
 0x562   :  { %5522 = vmatpush.bf16.msrb.mxu2 %v6836_v2  ;;  %5533 = vmatpush.bf16.msrb.mxu3 %v6996_v12  ;;  %v7284_v2 = vld [vmem:[#allocation2 + $0x2b4] sm:$0xf0]  ;;  %v6900_v12 = vor.u32 %v7293_v36, %v6897_v17  ;;  %v6984_v15 = vor.u32 %v7316_v33, %v6983_v46  ;;  %v6743_v57 = vld [vmem:[#allocation2 + $0x1c8] sm:$0xf]  ;;  %v6889_v23 = vld [vmem:[#allocation2 + $0x2f8] sm:$0xf0] }
 0x563   :  { %5461 = vmatpush.bf16.msra.mxu1 %v6640_v9  ;;  %v6856_v29 = vor.u32 %v7284_v2, %v6855_v34  ;;  %v6660_v9 = vor.u32 %v7233_v13, %v6657_v10  ;;  %v7272_v41 = vld [vmem:[#allocation2 + $0x254] sm:$0xf0]  ;;  %v6967_v14 = vld [vmem:[#allocation2 + $0x388] sm:$0xf]  ;;  %v7286_v22 = vld [vmem:[#allocation2 + $0x2cc] sm:$0xf] }
 0x564   :  { %v7312_v18 = vld [vmem:[#allocation2 + $0x394] sm:$0xf0]  ;;  %v6727_v0 = vld [vmem:[#allocation2 + $0x1a8] sm:$0xf]  ;;  %v7318_v46 = vld [vmem:[#allocation2 + $0x3cc] sm:$0xf] }
 0x565   :  { %v6968_v58 = vor.u32 %v7312_v18, %v6967_v14  ;;  %v6791_v51 = vld [vmem:[#allocation2 + $0x228] sm:$0xf]  ;;  %v7252_v32 = vld [vmem:[#allocation2 + $0x1b4] sm:$0xf0]  ;;  %v6825_v14 = vld [vmem:[#allocation2 + $0x278] sm:$0xf0] }
 0x566   :  { %5523 = vmatpush.bf16.msrb.mxu2 %v6820_v42  ;;  %5534 = vmatpush.bf16.msrb.mxu3 %v6980_v53  ;;  %v7320_v42 = vld [vmem:[#allocation2 + $0x3d4] sm:$0xf0]  ;;  %v6951_v47 = vld [vmem:[#allocation2 + $0x368] sm:$0xf] }
 0x567   :  { %5506 = vmatpush.bf16.msrb.mxu1 %v6756_v28  ;;  %v6840_v28 = vor.u32 %v7280_v20, %v6839_v40  ;;  %v7000_v53 = vor.u32 %v7320_v42, %v6999_v49  ;;  %v7308_v62 = vld [vmem:[#allocation2 + $0x374] sm:$0xf0]  ;;  %v6775_v61 = vld [vmem:[#allocation2 + $0x208] sm:$0xf]  ;;  %v7282_v20 = vld [vmem:[#allocation2 + $0x2ac] sm:$0xf] }
 0x568   :  { %5462 = vmatmul.bf16.vlgmr.msra.gmra.mxu1 %v11004_v55  ;;  %v7248_v5 = vld [vmem:[#allocation2 + $0x194] sm:$0xf0]  ;;  %v6935_v7 = vld [vmem:[#allocation2 + $0x348] sm:$0xf]  ;;  %v7322_v49 = vld [vmem:[#allocation2 + $0x3ec] sm:$0xf] }
 0x569   :  { %v6695_v34 = vld [vmem:[#allocation2 + $0x168] sm:$0xf]  ;;  %v7300_v56 = vld [vmem:[#allocation2 + $0x334] sm:$0xf0] }
 0x56a   :  { %5524 = vmatpush.bf16.msrb.mxu2 %v6804_v31  ;;  %5535 = vmatpush.bf16.msrb.mxu3 %v6964_v16  ;;  %v6759_v31 = vld [vmem:[#allocation2 + $0x1e8] sm:$0xf]  ;;  %v6824_v16 = vor.u32 %v7276_v6, %v6823_v59  ;;  %v7240_v10 = vld [vmem:[#allocation2 + $0x154] sm:$0xf0]  ;;  %v6841_v6 = vld [vmem:[#allocation2 + $0x298] sm:$0xf0] }
 0x56b   :  { %5507 = vmatpush.bf16.msrb.mxu1 %v6740_v39  ;;  %v6644_v39 = vor.u32 %v7229_v19, %v6641_v50  ;;  %v6760_v8 = vor.u32 %v7260_v4, %v6759_v31  ;;  %v6919_v2 = vld [vmem:[#allocation2 + $0x328] sm:$0xf]  ;;  %v7236_v50 = vld [vmem:[#allocation2 + $0x134] sm:$0xf0]  ;;  %v7278_v31 = vld [vmem:[#allocation2 + $0x28c] sm:$0xf] }
 0x56c   :  { %v6679_v13 = vld [vmem:[#allocation2 + $0x148] sm:$0xf] }
 0x56d   :  { %v6903_v40 = vld [vmem:[#allocation2 + $0x308] sm:$0xf] }
 0x56e   :  { %5525 = vmatpush.bf16.msrb.mxu2 %v6788_v60  ;;  %5536 = vmatpush.bf16.msrb.mxu3 %v6948_v35  ;;  %v6807_v60 = vld [vmem:[#allocation2 + $0x248] sm:$0xf] }
 0x56f   :  { %5508 = vmatpush.bf16.msrb.mxu1 %v6724_v52  ;;  %v7256_v52 = vld [vmem:[#allocation2 + $0x1d4] sm:$0xf0]  ;;  %v6808_v35 = vor.u32 %v7272_v41, %v6807_v60  ;;  %v6663_v4 = vld [vmem:[#allocation2 + $0x128] sm:$0xf]  ;;  %v7274_v41 = vld [vmem:[#allocation2 + $0x26c] sm:$0xf] }
 0x570   :  { %v6744_v25 = vor.u32 %v7256_v52, %v6743_v57  ;;  %v6647_v33 = vld [vmem:[#allocation2 + $0x108] sm:$0xf]  ;;  %v6761_v57 = vld [vmem:[#allocation2 + $0x1f8] sm:$0xf0]  ;;  %v7232_v52 = vld [vmem:[#allocation2 + $0x114] sm:$0xf0] }
 0x571   :  { %v7314_v60 = vld [vmem:[#allocation2 + $0x3ac] sm:$0xf] }
 0x572   :  { %5526 = vmatpush.bf16.msrb.mxu2 %v6772_v30  ;;  %5537 = vmatpush.bf16.msrb.mxu3 %v6932_v1  ;;  %v6728_v30 = vor.u32 %v7252_v32, %v6727_v0  ;;  %v6952_v1 = vor.u32 %v7308_v62, %v6951_v47  ;;  %v6985_v0 = vld [vmem:[#allocation2 + $0x3b8] sm:$0xf0]  ;;  %v7254_v47 = vld [vmem:[#allocation2 + $0x1cc] sm:$0xf] }
 0x573   :  { %5509 = vmatpush.bf16.msrb.mxu1 %v6708_v48  ;;  %v7268_v48 = vld [vmem:[#allocation2 + $0x234] sm:$0xf0]  ;;  %v6809_v32 = vld [vmem:[#allocation2 + $0x258] sm:$0xf0]  ;;  %v7270_v62 = vld [vmem:[#allocation2 + $0x24c] sm:$0xf] }
 0x574   :  { %v6792_v27 = vor.u32 %v7268_v48, %v6791_v51  ;;  %v6988_v51 = vor.u32 %v7314_v60, %v6985_v0  ;;  %v11012_v48 = vpop.f32.mrf.mxu0 }
 0x575   :  { %5527 = vmatmul.bf16.vlgmr.msrb.gmra.mxu2 %v10990_v43 }
 0x576   :  { %5571 = vmatpush.bf16.msra.mxu2 %v6888_v44  ;;  %5538 = vmatpush.bf16.msrb.mxu3 %v6916_v11  ;;  %v6711_v44 = vld [vmem:[#allocation2 + $0x188] sm:$0xf]  ;;  %v7304_v11 = vld [vmem:[#allocation2 + $0x354] sm:$0xf0] }
 0x577   :  { %5510 = vmatpush.bf16.msrb.mxu1 %v6692_v26  ;;  %v7264_v26 = vld [vmem:[#allocation2 + $0x214] sm:$0xf0]  ;;  %v6712_v38 = vor.u32 %v7248_v5, %v6711_v44  ;;  %v6936_v54 = vor.u32 %v7304_v11, %v6935_v7  ;;  %v6812_v44 = vor.u32 %v7270_v62, %v6809_v32  ;;  %v6969_v5 = vld [vmem:[#allocation2 + $0x398] sm:$0xf0]  ;;  %v7250_v7 = vld [vmem:[#allocation2 + $0x1ac] sm:$0xf] }
 0x578   :  { %v6776_v21 = vor.u32 %v7264_v26, %v6775_v61  ;;  %v7306_v26 = vld [vmem:[#allocation2 + $0x36c] sm:$0xf] }
 0x57a   :  { %5572 = vmatpush.bf16.msra.mxu2 %v6872_v24  ;;  %5539 = vmatpush.bf16.msrb.mxu3 %v6900_v12  ;;  %v7290_v24 = vld [vmem:[#allocation2 + $0x2ec] sm:$0xf]  ;;  %v6873_v12 = vld [vmem:[#allocation2 + $0x2d8] sm:$0xf0] }
 0x57b   :  { %5511 = vmatpush.bf16.msrb.mxu1 %v6676_v45  ;;  %v6892_v17 = vor.u32 %v7290_v24, %v6889_v23  ;;  %v7244_v45 = vld [vmem:[#allocation2 + $0x174] sm:$0xf0]  ;;  %v6876_v63 = vor.u32 %v7286_v22, %v6873_v12  ;;  %v7266_v23 = vld [vmem:[#allocation2 + $0x22c] sm:$0xf] }
 0x57c   :  { %v6696_v36 = vor.u32 %v7244_v45, %v6695_v34  ;;  %v7246_v34 = vld [vmem:[#allocation2 + $0x18c] sm:$0xf]  ;;  %v5452_v45 = vpop.f32.mrf.mxu0 }
 0x57d   :  { %5540 = vmatmul.bf16.vlgmr.msrb.gmra.mxu3 %v10999_v37  ;;  %v7262_v22 = vld [vmem:[#allocation2 + $0x20c] sm:$0xf] }
 0x57e   :  { %5573 = vmatpush.bf16.msra.mxu2 %v6856_v29  ;;  %5584 = vmatpush.bf16.msra.mxu3 %v7016_v3  ;;  %v6920_v29 = vor.u32 %v7300_v56, %v6919_v2  ;;  %v7296_v3 = vld [vmem:[#allocation2 + $0x314] sm:$0xf0]  ;;  %v6713_v56 = vld [vmem:[#allocation2 + $0x198] sm:$0xf0] }
 0x57f   :  { %5512 = vmatpush.bf16.msrb.mxu1 %v6660_v9  ;;  %v6680_v9 = vor.u32 %v7240_v10, %v6679_v13  ;;  %v6904_v42 = vor.u32 %v7296_v3, %v6903_v40  ;;  %v6777_v2 = vld [vmem:[#allocation2 + $0x218] sm:$0xf0]  ;;  %v6716_v12 = vor.u32 %v7246_v34, %v6713_v56  ;;  %v7242_v3 = vld [vmem:[#allocation2 + $0x16c] sm:$0xf] }
 0x580   :  { %v6697_v10 = vld [vmem:[#allocation2 + $0x178] sm:$0xf0] }
 0x582   :  { %5574 = vmatpush.bf16.msra.mxu2 %v6840_v28  ;;  %5585 = vmatpush.bf16.msra.mxu3 %v7000_v53  ;;  %v6857_v28 = vld [vmem:[#allocation2 + $0x2b8] sm:$0xf0] }
 0x583   :  { %5513 = vmatpush.bf16.msrb.mxu1 %v6644_v39  ;;  %v6860_v19 = vor.u32 %v7282_v20, %v6857_v28  ;;  %v7017_v53 = vld [vmem:[#allocation2 + $0x3f8] sm:$0xf0]  ;;  %v6664_v39 = vor.u32 %v7236_v50, %v6663_v4  ;;  %v7238_v28 = vld [vmem:[#allocation2 + $0x14c] sm:$0xf] }
 0x584   :  { %v7020_v59 = vor.u32 %v7322_v49, %v7017_v53  ;;  %v6921_v20 = vld [vmem:[#allocation2 + $0x338] sm:$0xf0]  ;;  %v6700_v49 = vor.u32 %v7242_v3, %v6697_v10  ;;  %v7234_v50 = vld [vmem:[#allocation2 + $0x12c] sm:$0xf] }
 0x585   :  { %v6681_v53 = vld [vmem:[#allocation2 + $0x158] sm:$0xf0] }
 0x586   :  { %5575 = vmatpush.bf16.msra.mxu2 %v6824_v16  ;;  %5586 = vmatpush.bf16.msra.mxu3 %v6984_v15  ;;  %v7001_v16 = vld [vmem:[#allocation2 + $0x3d8] sm:$0xf0]  ;;  %v6684_v4 = vor.u32 %v7238_v28, %v6681_v53 }
 0x587   :  { %5558 = vmatpush.bf16.msra.mxu1 %v6760_v8  ;;  %v6844_v8 = vor.u32 %v7278_v31, %v6841_v6  ;;  %v7004_v15 = vor.u32 %v7318_v46, %v7001_v16  ;;  %v6665_v46 = vld [vmem:[#allocation2 + $0x138] sm:$0xf0]  ;;  %v7230_v31 = vld [vmem:[#allocation2 + $0x10c] sm:$0xf] }
 0x588   :  { %5514 = vmatmul.bf16.vlgmr.msrb.gmra.mxu1 %v11004_v55 }
 0x58a   :  { %5576 = vmatpush.bf16.msra.mxu2 %v6808_v35  ;;  %5587 = vmatpush.bf16.msra.mxu3 %v6968_v58  ;;  %v7258_v35 = vld [vmem:[#allocation2 + $0x1ec] sm:$0xf]  ;;  %v6828_v58 = vor.u32 %v7274_v41, %v6825_v14 }
 0x58b   :  { %5559 = vmatpush.bf16.msra.mxu1 %v6744_v25  ;;  %v6648_v25 = vor.u32 %v7232_v52, %v6647_v33  ;;  %v6764_v18 = vor.u32 %v7258_v35, %v6761_v57 }
 0x58e   :  { %5577 = vmatpush.bf16.msra.mxu2 %v6792_v27  ;;  %5588 = vmatpush.bf16.msra.mxu3 %v6952_v1  ;;  %v6745_v27 = vld [vmem:[#allocation2 + $0x1d8] sm:$0xf0] }
 0x58f   :  { %5560 = vmatpush.bf16.msra.mxu1 %v6728_v30  ;;  %v7310_v30 = vld [vmem:[#allocation2 + $0x38c] sm:$0xf]  ;;  %v6748_v1 = vor.u32 %v7254_v47, %v6745_v27 }
 0x590   :  { %v6972_v61 = vor.u32 %v7310_v30, %v6969_v5 }
 0x592   :  { %5578 = vmatpush.bf16.msra.mxu2 %v6776_v21  ;;  %5589 = vmatpush.bf16.msra.mxu3 %v6936_v54  ;;  %v6793_v21 = vld [vmem:[#allocation2 + $0x238] sm:$0xf0] }
 0x593   :  { %5561 = vmatpush.bf16.msra.mxu1 %v6712_v38  ;;  %v6729_v38 = vld [vmem:[#allocation2 + $0x1b8] sm:$0xf0]  ;;  %v6796_v24 = vor.u32 %v7266_v23, %v6793_v21 }
 0x594   :  { %v6732_v11 = vor.u32 %v7250_v7, %v6729_v38  ;;  %v6953_v54 = vld [vmem:[#allocation2 + $0x378] sm:$0xf0] }
 0x595   :  { %5579 = vmatmul.bf16.vlgmr.msra.gmra.mxu2 %v10990_v43 }
 0x596   :  { %5623 = vmatpush.bf16.msrb.mxu2 %v6892_v17  ;;  %5590 = vmatpush.bf16.msra.mxu3 %v6920_v29  ;;  %v6956_v17 = vor.u32 %v7306_v26, %v6953_v54  ;;  %v6780_v29 = vor.u32 %v7262_v22, %v6777_v2 }
 0x597   :  { %5562 = vmatpush.bf16.msra.mxu1 %v6696_v36  ;;  %v7302_v36 = vld [vmem:[#allocation2 + $0x34c] sm:$0xf] }
 0x59a   :  { %5624 = vmatpush.bf16.msrb.mxu2 %v6876_v63  ;;  %5591 = vmatpush.bf16.msra.mxu3 %v6904_v42  ;;  %v6937_v63 = vld [vmem:[#allocation2 + $0x358] sm:$0xf0]  ;;  %v5502_v42 = vpop.f32.mrf.mxu0 }
 0x59b   :  { %5563 = vmatpush.bf16.msra.mxu1 %v6680_v9  ;;  %v6940_v13 = vor.u32 %v7302_v36, %v6937_v63  ;;  %v7298_v9 = vld [vmem:[#allocation2 + $0x32c] sm:$0xf] }
 0x59c   :  { %v6924_v40 = vor.u32 %v7298_v9, %v6921_v20 }
 0x59d   :  { %5592 = vmatmul.bf16.vlgmr.msra.gmra.mxu3 %v10999_v37 }
 0x59e   :  { %5625 = vmatpush.bf16.msrb.mxu2 %v6860_v19  ;;  %5636 = vmatpush.bf16.msrb.mxu3 %v7020_v59  ;;  %v6905_v19 = vld [vmem:[#allocation2 + $0x318] sm:$0xf0]  ;;  %v7294_v59 = vld [vmem:[#allocation2 + $0x30c] sm:$0xf] }
 0x59f   :  { %5564 = vmatpush.bf16.msra.mxu1 %v6664_v39  ;;  %v6908_v6 = vor.u32 %v7294_v59, %v6905_v19  ;;  %v6668_v39 = vor.u32 %v7234_v50, %v6665_v46 }
 0x5a2   :  { %5626 = vmatpush.bf16.msrb.mxu2 %v6844_v8  ;;  %5637 = vmatpush.bf16.msrb.mxu3 %v7004_v15  ;;  %v5504_v8 = vpop.f32.mrf.mxu0 }
 0x5a3   :  { %5565 = vmatpush.bf16.msra.mxu1 %v6648_v25 }
 0x5a6   :  { %5627 = vmatpush.bf16.msrb.mxu2 %v6828_v58  ;;  %5638 = vmatpush.bf16.msrb.mxu3 %v6988_v51 }
 0x5a7   :  { %5610 = vmatpush.bf16.msrb.mxu1 %v6764_v18 }
 0x5a8   :  { %5566 = vmatmul.bf16.vlgmr.msra.gmra.mxu1 %v11004_v55 }
 0x5aa   :  { %5628 = vmatpush.bf16.msrb.mxu2 %v6812_v44  ;;  %5639 = vmatpush.bf16.msrb.mxu3 %v6972_v61  ;;  %v5554_v33 = vpop.f32.mrf.mxu0 }
 0x5ab   :  { %5611 = vmatpush.bf16.msrb.mxu1 %v6748_v1 }
 0x5ae   :  { %5629 = vmatpush.bf16.msrb.mxu2 %v6796_v24  ;;  %5640 = vmatpush.bf16.msrb.mxu3 %v6956_v17 }
 0x5af   :  { %5612 = vmatpush.bf16.msrb.mxu1 %v6732_v11 }
 0x5b2   :  { %5630 = vmatpush.bf16.msrb.mxu2 %v6780_v29  ;;  %5641 = vmatpush.bf16.msrb.mxu3 %v6940_v13  ;;  %v5556_v15 = vpop.f32.mrf.mxu0 }
 0x5b3   :  { %5613 = vmatpush.bf16.msrb.mxu1 %v6716_v12 }
 0x5b5   :  { %5631 = vmatmul.bf16.vlgmr.msrb.gmra.mxu2 %v10990_v43  ;;  %v6649_v43 = vld [vmem:[#allocation2 + $0x118] sm:$0xf0] }
 0x5b6   :  { %5642 = vmatpush.bf16.msrb.mxu3 %v6924_v40  ;;  %v6652_v16 = vor.u32 %v7230_v31, %v6649_v43 }
 0x5b7   :  { %5614 = vmatpush.bf16.msrb.mxu1 %v6700_v49 }
 0x5ba   :  { %5643 = vmatpush.bf16.msrb.mxu3 %v6908_v6  ;;  %v5606_v57 = vpop.f32.mrf.mxu0 }
 0x5bb   :  { %5615 = vmatpush.bf16.msrb.mxu1 %v6684_v4 }
 0x5bd   :  { %5644 = vmatmul.bf16.vlgmr.msrb.gmra.mxu3 %v10999_v37 }
 0x5bf   :  { %5616 = vmatpush.bf16.msrb.mxu1 %v6668_v39 }
 0x5c2   :  { %v5608_v14 = vpop.f32.mrf.mxu0 }
 0x5c3   :  { %5617 = vmatpush.bf16.msrb.mxu1 %v6652_v16 }
 0x5c6   :  { %5618 = vmatmul.bf16.vlgmr.msrb.gmra.mxu1 %v11004_v55 }
 0x5d8   :  { %v5476_v41 = vpop.f32.mrf.mxu2 }
 0x5e0   :  { %v5478_v52 = vpop.f32.mrf.mxu2  ;;  %v5489_v60 = vpop.f32.mrf.mxu3 }
 0x5e5   :  { %v5463_v25 = vpop.f32.mrf.mxu1 }
 0x5e6   :  { %v5464_v35 = vadd.f32 %v5463_v25, %v11012_v48 }
 0x5e8   :  { %v5477_v18 = vadd.f32 %v5476_v41, %v5464_v35  ;;  %v5491_v0 = vpop.f32.mrf.mxu3 }
 0x5ea   :  { %v5490_v58 = vadd.f32 %v5489_v60, %v5477_v18 }
 0x5ec   :  { %5649 = vst [vmem:[#allocation15] sm:$0xff] %v5490_v58 }
 0x5ed   :  { %v5465_v37 = vpop.f32.mrf.mxu1 }
 0x5f8   :  { %v5528_v51 = vpop.f32.mrf.mxu2 }
 0x600   :  { %v5530_v47 = vpop.f32.mrf.mxu2  ;;  %v5541_v32 = vpop.f32.mrf.mxu3 }
 0x605   :  { %v5515_v30 = vpop.f32.mrf.mxu1 }
 0x606   :  { %v5516_v55 = vadd.f32 %v5515_v30, %v5502_v42 }
 0x608   :  { %v5529_v27 = vadd.f32 %v5528_v51, %v5516_v55  ;;  %v5543_v1 = vpop.f32.mrf.mxu3 }
 0x60a   :  { %v5542_v62 = vadd.f32 %v5541_v32, %v5529_v27 }
 0x60c   :  { %5650 = vst [vmem:[#allocation15 + $0x8] sm:$0xff] %v5542_v62 }
 0x60d   :  { %v5517_v44 = vpop.f32.mrf.mxu1 }
 0x618   :  { %v5580_v5 = vpop.f32.mrf.mxu2 }
 0x620   :  { %v5582_v61 = vpop.f32.mrf.mxu2  ;;  %v5593_v7 = vpop.f32.mrf.mxu3 }
 0x625   :  { %v5567_v23 = vpop.f32.mrf.mxu1 }
 0x626   :  { %v5568_v48 = vadd.f32 %v5567_v23, %v5554_v33 }
 0x628   :  { %v5581_v26 = vadd.f32 %v5580_v5, %v5568_v48  ;;  %v5595_v21 = vpop.f32.mrf.mxu3 }
 0x62a   :  { %v5594_v38 = vadd.f32 %v5593_v7, %v5581_v26 }
 0x62c   :  { %5651 = vst [vmem:[#allocation15 + $0x10] sm:$0xff] %v5594_v38 }
 0x62d   :  { %v5569_v11 = vpop.f32.mrf.mxu1 }
 0x638   :  { %v5632_v24 = vpop.f32.mrf.mxu2 }
 0x640   :  { %v5634_v54 = vpop.f32.mrf.mxu2  ;;  %v5645_v17 = vpop.f32.mrf.mxu3 }
 0x643   :  { %v5619_v34 = vpop.f32.mrf.mxu1 }
 0x644   :  { %v5620_v56 = vadd.f32 %v5619_v34, %v5606_v57 }
 0x646   :  { %v5633_v22 = vadd.f32 %v5632_v24, %v5620_v56 }
 0x648   :  { %v5646_v45 = vadd.f32 %v5645_v17, %v5633_v22  ;;  %v5647_v36 = vpop.f32.mrf.mxu3 }
 0x64a   :  { %5652 = vst [vmem:[#allocation15 + $0x18] sm:$0xff] %v5646_v45 }
 0x64b   :  { %v5621_v2 = vpop.f32.mrf.mxu1  ;;  %5663 = dma.vmem_to_hbm [thread:$0]  %s5659_s25, 512, %s5661_s27, [#allocation5]  }
 0x64c   :  { %8184 = dma.done.wait [#allocation5], 512  }
 0x64d   :  { %8185 = vsyncadd [#allocation5], 4294966784 }
 0x64e   :  { %5668 = vsyncpa [#allocation4], 1 }
 0x64f   :  { %5669 = vsyncpa [#allocation7], 1 }
 0x650   :  { %5670 = vsyncpa [#allocation10], 1 }
 0x651   :  { %5671 = vsyncpa [#allocation13], 1 }
 0x652   :  { %5672 = vsyncpa [#allocation5], 1 }

</bundles_post_ra>
